<compile_context>
chip_gen: v7x
topology: tpu7x:2x2x1
jax: 0.10.0
libtpu: 0.0.40
codegen_flags: <defaults>
</compile_context>

<pallas_src>
import functools

import jax
import jax.numpy as jnp
from jax import lax
from jax.experimental import pallas as pl
from jax.experimental.pallas import tpu as pltpu


# ------------------------------ fused kernel ----------------------------------

def _fused_cnn_kernel(xph_ref, w1_ref, b1_ref, w2_ref, b2_ref, wfc_ref, bfc_ref,
                      out_ref, y1cp0_ref, y1cp1_ref, p2_ref, *,
                      C1, C2, NCLS, H1, W2):
    """One grid step = one batch element.

    xph_ref  : (30, 8, 4)       padded input, column-phase split: [row, m, t],
                                padded column = 4*m + t
    w1_ref   : (16, 4*C1)       conv1 weight: rows (row-offset r, col-phase t),
                                cols (pool position, out channel)
    b1_ref   : (1, C1)
    w2_ref   : (16*C1, 4*C2)    conv2 weight: rows (r, s, in ch), cols (pos, out ch)
    b2_ref   : (1, C2)
    wfc_ref  : (C2, 49, NCLS)   fc weight in (c, h*7+w, n) order
    bfc_ref  : (1, NCLS)
    out_ref  : (1, NCLS)
    y1cp0_ref: (16, 8, C1)      pooled conv1 output, EVEN padded columns
    y1cp1_ref: (16, 8, C1)      pooled conv1 output, ODD padded columns
    p2_ref   : (49, C2)         pooled conv2 output
    """
    H2 = H1 // 2                                   # 7

    w1m = w1_ref[...]                              # (16, 32)
    w2m = w2_ref[...]                              # (128, 64)
    b1 = b1_ref[...]                               # (1, C1)
    b2 = b2_ref[...]                               # (1, C2)

    # ---- zero only the halo rows of the y1 scratch (interiors are always ----
    # ---- fully overwritten below; done every step so megacore-safe)      ----
    zrow = jnp.zeros((8, C1), jnp.float32)
    y1cp0_ref[0] = zrow
    y1cp0_ref[H1 + 1] = zrow
    y1cp1_ref[0] = zrow
    y1cp1_ref[H1 + 1] = zrow

    zpix = jnp.zeros((1, C1), jnp.float32)

    # ---- conv1 (3x3, pad 1) + ReLU + 2x2 maxpool: one pooled row per iter ----
    # LHS rows 0..6  = even pooled columns (j = 2m), rows 7..13 = odd (j = 2m+1)
    # LHS lanes      = (row-offset r in 0..3) x (col-phase k in 0..3)
    for i in range(H1):
        blocks = []
        for r in range(4):
            row = xph_ref[2 * i + r]               # (8, 4): xpad[2i+r, 4m+t]
            e_piece = row[0:7, :]                  # cols 4m + k
            o_piece = jnp.concatenate(             # cols 4m + 2 + k
                [row[0:7, 2:4], row[1:8, 0:2]], axis=1)
            blocks.append(jnp.concatenate([e_piece, o_piece], axis=0))  # (14, 4)
        lhs = jnp.concatenate(blocks, axis=1)      # (14, 16)
        y = jnp.dot(lhs, w1m, preferred_element_type=jnp.float32)       # (14, 32)
        m = jnp.maximum(jnp.maximum(y[:, 0:C1], y[:, C1:2 * C1]),
                        jnp.maximum(y[:, 2 * C1:3 * C1], y[:, 3 * C1:4 * C1]))
        act = jnp.maximum(m + b1, 0.0)             # (14, C1)
        # pooled row i -> padded row i+1; even j -> odd padded col (y1cp1),
        # odd j -> even padded col (y1cp0).  Full-row stores include the halo.
        y1cp1_ref[i + 1] = jnp.concatenate([act[0:7], zpix], axis=0)
        y1cp0_ref[i + 1] = jnp.concatenate([zpix, act[7:14]], axis=0)

    # ---- conv2 + ReLU + 2x2 maxpool: one pooled row per iter ------------------
    # LHS lanes = (row-offset r in 0..3) x (col-offset s in 0..3) x (in channel)
    for h in range(H2):
        pieces = []
        for r in range(4):
            row0 = y1cp0_ref[2 * h + r]            # (8, C1): even padded cols
            row1 = y1cp1_ref[2 * h + r]            # (8, C1): odd  padded cols
            # s=0 -> col 2w   ; s=1 -> col 2w+1 ; s=2 -> col 2w+2 ; s=3 -> 2w+3
            pieces += [row0[0:7], row1[0:7], row0[1:8], row1[1:8]]
        lhs = jnp.concatenate(pieces, axis=1)      # (7, 128)
        y = jnp.dot(lhs, w2m, preferred_element_type=jnp.float32)       # (7, 64)
        m = jnp.maximum(jnp.maximum(y[:, 0:C2], y[:, C2:2 * C2]),
                        jnp.maximum(y[:, 2 * C2:3 * C2], y[:, 3 * C2:4 * C2]))
        p2_ref[h * W2:(h + 1) * W2, :] = jnp.maximum(m + b2, 0.0)       # (7, C2)

    # ---- fully-connected layer (K = 49*16 = 784) -------------------------------
    p2 = p2_ref[...]                               # (49, C2)
    acc = jnp.zeros((H2 * W2, NCLS), jnp.float32)
    for c in range(C2):
        acc = acc + p2[:, c:c + 1] * wfc_ref[c]    # (49,1) * (49,NCLS)
    out_ref[...] = jnp.sum(acc, axis=0, keepdims=True) + bfc_ref[...]


# ------------------------------- full forward ---------------------------------

def cnn_forward(x_nchw, params):
    """Pallas implementation of CNN.forward.  x_nchw: (B, 1, 28, 28)."""
    conv1_w, conv1_b, conv2_w, conv2_b, fc_w, fc_b = params
    B, Cin, H, W = x_nchw.shape
    assert Cin == 1 and H == 28 and W == 28, "module is defined for 1x28x28 input"
    C1 = conv1_w.shape[0]                          # 8
    C2 = conv2_w.shape[0]                          # 16
    NCLS = fc_w.shape[0]                           # 10
    H1, W1 = H // 2, W // 2                        # 14, 14
    H2, W2 = H1 // 2, W1 // 2                      # 7, 7
    f32 = jnp.float32

    # ---- input: zero-pad (padding=1) and split columns into 4 phases ----------
    # (trace-time layout plumbing; padded col = 4*m + t, t on the minor axis)
    x2d = x_nchw[:, 0].astype(f32)                              # (B, 28, 28)
    xpad = jnp.pad(x2d, ((0, 0), (1, 1), (1, 3)))               # (B, 30, 32)
    xph = xpad.reshape(B, H + 2, (W + 4) // 4, 4)               # (B, 30, 8, 4)

    # ---- conv1 weight -> (16, 4*C1): rows (r, t), cols (pool pos, out ch) ------
    w1 = conv1_w.reshape(C1, 3, 3).astype(f32)
    W1c = jnp.zeros((16, 4 * C1), f32)
    for p in range(2):
        for q in range(2):
            pos = 2 * p + q
            for kh in range(3):
                for kw in range(3):
                    W1c = W1c.at[(p + kh) * 4 + (q + kw),
                                 pos * C1:(pos + 1) * C1].set(w1[:, kh, kw])

    # ---- conv2 weight -> (16*C1, 4*C2): rows (r, s, cin), cols (pos, cout) -----
    w2 = conv2_w.astype(f32)
    W2c = jnp.zeros((16 * C1, 4 * C2), f32)
    for p in range(2):
        for q in range(2):
            pos = 2 * p + q
            for kh in range(3):
                for kw in range(3):
                    r, s = p + kh, q + kw
                    W2c = W2c.at[(r * 4 + s) * C1:(r * 4 + s + 1) * C1,
                                 pos * C2:(pos + 1) * C2].set(w2[:, :, kh, kw].T)

    # ---- fc weight: PyTorch NCHW flatten (c*49 + h*7 + w) -> (C2, 49, NCLS) ----
    wfc = fc_w.astype(f32).reshape(NCLS, C2, H2 * W2).transpose(1, 2, 0)

    kernel = functools.partial(_fused_cnn_kernel, C1=C1, C2=C2, NCLS=NCLS,
                               H1=H1, W2=W2)

    out = pl.pallas_call(
        kernel,
        out_shape=jax.ShapeDtypeStruct((B, 1, NCLS), f32),
        grid_spec=pltpu.PrefetchScalarGridSpec(
            num_scalar_prefetch=0,
            grid=(B,),
            in_specs=[
                pl.BlockSpec((None, H + 2, (W + 4) // 4, 4),
                             lambda b: (b, 0, 0, 0)),
                pl.BlockSpec((16, 4 * C1), lambda b: (0, 0)),
                pl.BlockSpec((1, C1), lambda b: (0, 0)),
                pl.BlockSpec((16 * C1, 4 * C2), lambda b: (0, 0)),
                pl.BlockSpec((1, C2), lambda b: (0, 0)),
                pl.BlockSpec((C2, H2 * W2, NCLS), lambda b: (0, 0, 0)),
                pl.BlockSpec((1, NCLS), lambda b: (0, 0)),
            ],
            out_specs=pl.BlockSpec((None, 1, NCLS), lambda b: (b, 0, 0)),
            scratch_shapes=[
                pltpu.VMEM((H1 + 2, W1 // 2 + 1, C1), f32),   # y1, even padded cols
                pltpu.VMEM((H1 + 2, W1 // 2 + 1, C1), f32),   # y1, odd  padded cols
                pltpu.VMEM((H2 * W2, C2), f32),               # pooled conv2 output
            ],
        ),
        compiler_params=pltpu.CompilerParams(
            dimension_semantics=("parallel",)),
    )(xph, W1c, conv1_b.reshape(1, C1).astype(f32), W2c,
      conv2_b.reshape(1, C2).astype(f32), wfc, fc_b.reshape(1, NCLS).astype(f32))
    return out.reshape(B, NCLS)


def cnn_reference(x_nchw, params):
    """Pure-JAX reference (mirrors the PyTorch module), full f32 precision."""
    conv1_w, conv1_b, conv2_w, conv2_b, fc_w, fc_b = params

    def conv(x, w, b):
        y = lax.conv_general_dilated(
            x, w, window_strides=(1, 1), padding=((1, 1), (1, 1)),
            dimension_numbers=("NCHW", "OIHW", "NCHW"),
            precision=lax.Precision.HIGHEST)
        return jnp.maximum(y + b[None, :, None, None], 0.0)

    def pool(x):
        return lax.reduce_window(x, -jnp.inf, lax.max,
                                 (1, 1, 2, 2), (1, 1, 2, 2), "VALID")

    y = pool(conv(x_nchw, conv1_w, conv1_b))
    y = pool(conv(y, conv2_w, conv2_b))
    flat = y.reshape(y.shape[0], -1)
    return jnp.dot(flat, fc_w.T, precision=lax.Precision.HIGHEST) + fc_b


# ----------------------------------- main --------------------------------------

if __name__ == "__main__":
    key = jax.random.PRNGKey(0)
    ks = jax.random.split(key, 7)

    B, in_channels, num_classes = 2, 1, 10
    # input must be 28x28 so the flattened size is 16*7*7 (as in fc1)
    x = jax.random.normal(ks[0], (B, in_channels, 28, 28), jnp.float32)

    params = (
        0.1 * jax.random.normal(ks[1], (8, in_channels, 3, 3), jnp.float32),      # conv1.weight
        0.1 * jax.random.normal(ks[2], (8,), jnp.float32),                        # conv1.bias
        0.1 * jax.random.normal(ks[3], (16, 8, 3, 3), jnp.float32),               # conv2.weight
        0.1 * jax.random.normal(ks[4], (16,), jnp.float32),                       # conv2.bias
        0.05 * jax.random.normal(ks[5], (num_classes, 16 * 7 * 7), jnp.float32),  # fc1.weight
        0.05 * jax.random.normal(ks[6], (num_classes,), jnp.float32),             # fc1.bias
    )

    fwd = jax.jit(cnn_forward)
    logits = fwd(x, params)
    jax.block_until_ready(logits)
    assert logits.shape == (B, num_classes), logits.shape

    ref = cnn_reference(x, params)
    err = float(jnp.max(jnp.abs(logits - ref)))
    assert jnp.allclose(logits, ref, atol=1e-3, rtol=1e-3), ("mismatch vs reference", err)

    print("KERNEL_OK")
</pallas_src>

<mosaic_0001>
module attributes {stable_mosaic.version = 11 : i64} {
  func.func @_fused_cnn_kernel(%arg0: i32, %arg1: memref<1x30x8x4xf32, #tpu.memory_space<vmem>>, %arg2: memref<16x32xf32, #tpu.memory_space<vmem>>, %arg3: memref<1x8xf32, #tpu.memory_space<vmem>>, %arg4: memref<128x64xf32, #tpu.memory_space<vmem>>, %arg5: memref<1x16xf32, #tpu.memory_space<vmem>>, %arg6: memref<16x49x10xf32, #tpu.memory_space<vmem>>, %arg7: memref<1x10xf32, #tpu.memory_space<vmem>>, %arg8: memref<1x1x10xf32, #tpu.memory_space<vmem>>, %arg9: memref<16x8x8xf32, #tpu.memory_space<vmem>>, %arg10: memref<16x8x8xf32, #tpu.memory_space<vmem>>, %arg11: memref<49x16xf32, #tpu.memory_space<vmem>>) attributes {dimension_semantics = [#tpu.dimension_semantics<parallel>], iteration_bounds = array<i64: 2>, scalar_prefetch = 0 : i64, scratch_operands = 3 : i64, tpu.core_type = #tpu.core_type<tc>, window_params = [{transform_indices = @transform_0, window_bounds = array<i64: 1, 30, 8, 4>}, {pipeline_mode = #tpu.pipeline_mode<synchronous>, transform_indices = @transform_1, window_bounds = array<i64: 16, 32>}, {pipeline_mode = #tpu.pipeline_mode<synchronous>, transform_indices = @transform_2, window_bounds = array<i64: 1, 8>}, {pipeline_mode = #tpu.pipeline_mode<synchronous>, transform_indices = @transform_3, window_bounds = array<i64: 128, 64>}, {pipeline_mode = #tpu.pipeline_mode<synchronous>, transform_indices = @transform_4, window_bounds = array<i64: 1, 16>}, {pipeline_mode = #tpu.pipeline_mode<synchronous>, transform_indices = @transform_5, window_bounds = array<i64: 16, 49, 10>}, {pipeline_mode = #tpu.pipeline_mode<synchronous>, transform_indices = @transform_6, window_bounds = array<i64: 1, 10>}, {transform_indices = @transform_7, window_bounds = array<i64: 1, 1, 10>}]} {
    %c0 = arith.constant 0 : index
    %c0_0 = arith.constant 0 : index
    %0 = vector.load %arg2[%c0, %c0_0] : memref<16x32xf32, #tpu.memory_space<vmem>>, vector<16x32xf32>
    %c0_1 = arith.constant 0 : index
    %c0_2 = arith.constant 0 : index
    %1 = vector.load %arg4[%c0_1, %c0_2] : memref<128x64xf32, #tpu.memory_space<vmem>>, vector<128x64xf32>
    %c0_3 = arith.constant 0 : index
    %c0_4 = arith.constant 0 : index
    %2 = vector.load %arg3[%c0_3, %c0_4] : memref<1x8xf32, #tpu.memory_space<vmem>>, vector<1x8xf32>
    %c0_5 = arith.constant 0 : index
    %c0_6 = arith.constant 0 : index
    %3 = vector.load %arg5[%c0_5, %c0_6] : memref<1x16xf32, #tpu.memory_space<vmem>>, vector<1x16xf32>
    %cst = arith.constant 0.000000e+00 : f32
    %4 = vector.broadcast %cst : f32 to vector<8x8xf32>
    %c0_7 = arith.constant 0 : index
    %c0_8 = arith.constant 0 : index
    %c0_9 = arith.constant 0 : index
    %5 = vector.load %arg9[%c0_7, %c0_8, %c0_9] : memref<16x8x8xf32, #tpu.memory_space<vmem>>, vector<1x8x8xf32>
    %6 = vector.shape_cast %5 : vector<1x8x8xf32> to vector<8x8xf32>
    %7 = vector.shape_cast %4 : vector<8x8xf32> to vector<1x8x8xf32>
    tpu.vector_store %arg9[%c0_7, %c0_8, %c0_9], %7 {strides = array<i32>} : memref<16x8x8xf32, #tpu.memory_space<vmem>>, vector<1x8x8xf32>,
    %c15 = arith.constant 15 : index
    %c0_10 = arith.constant 0 : index
    %c0_11 = arith.constant 0 : index
    %8 = vector.load %arg9[%c15, %c0_10, %c0_11] : memref<16x8x8xf32, #tpu.memory_space<vmem>>, vector<1x8x8xf32>
    %9 = vector.shape_cast %8 : vector<1x8x8xf32> to vector<8x8xf32>
    %10 = vector.shape_cast %4 : vector<8x8xf32> to vector<1x8x8xf32>
    tpu.vector_store %arg9[%c15, %c0_10, %c0_11], %10 {strides = array<i32>} : memref<16x8x8xf32, #tpu.memory_space<vmem>>, vector<1x8x8xf32>,
    %c0_12 = arith.constant 0 : index
    %c0_13 = arith.constant 0 : index
    %c0_14 = arith.constant 0 : index
    %11 = vector.load %arg10[%c0_12, %c0_13, %c0_14] : memref<16x8x8xf32, #tpu.memory_space<vmem>>, vector<1x8x8xf32>
    %12 = vector.shape_cast %11 : vector<1x8x8xf32> to vector<8x8xf32>
    %13 = vector.shape_cast %4 : vector<8x8xf32> to vector<1x8x8xf32>
    tpu.vector_store %arg10[%c0_12, %c0_13, %c0_14], %13 {strides = array<i32>} : memref<16x8x8xf32, #tpu.memory_space<vmem>>, vector<1x8x8xf32>,
    %c15_15 = arith.constant 15 : index
    %c0_16 = arith.constant 0 : index
    %c0_17 = arith.constant 0 : index
    %14 = vector.load %arg10[%c15_15, %c0_16, %c0_17] : memref<16x8x8xf32, #tpu.memory_space<vmem>>, vector<1x8x8xf32>
    %15 = vector.shape_cast %14 : vector<1x8x8xf32> to vector<8x8xf32>
    %16 = vector.shape_cast %4 : vector<8x8xf32> to vector<1x8x8xf32>
    tpu.vector_store %arg10[%c15_15, %c0_16, %c0_17], %16 {strides = array<i32>} : memref<16x8x8xf32, #tpu.memory_space<vmem>>, vector<1x8x8xf32>,
    %cst_18 = arith.constant 0.000000e+00 : f32
    %17 = vector.broadcast %cst_18 : f32 to vector<1x8xf32>
    %c0_19 = arith.constant 0 : index
    %c0_20 = arith.constant 0 : index
    %c0_21 = arith.constant 0 : index
    %c0_22 = arith.constant 0 : index
    %18 = vector.load %arg1[%c0_19, %c0_20, %c0_21, %c0_22] : memref<1x30x8x4xf32, #tpu.memory_space<vmem>>, vector<1x1x8x4xf32>
    %19 = vector.shape_cast %18 : vector<1x1x8x4xf32> to vector<8x4xf32>
    %20 = vector.extract_strided_slice %19 {offsets = [0, 0], sizes = [7, 4], strides = [1, 1]} : vector<8x4xf32> to vector<7x4xf32>
    %21 = vector.extract_strided_slice %19 {offsets = [0, 2], sizes = [7, 2], strides = [1, 1]} : vector<8x4xf32> to vector<7x2xf32>
    %22 = vector.extract_strided_slice %19 {offsets = [1, 0], sizes = [7, 2], strides = [1, 1]} : vector<8x4xf32> to vector<7x2xf32>
    %23 = tpu.concatenate %21, %22 in 1 : vector<7x2xf32>, vector<7x2xf32> -> vector<7x4xf32>
    %24 = tpu.concatenate %20, %23 in 0 : vector<7x4xf32>, vector<7x4xf32> -> vector<14x4xf32>
    %c0_23 = arith.constant 0 : index
    %c1 = arith.constant 1 : index
    %c0_24 = arith.constant 0 : index
    %c0_25 = arith.constant 0 : index
    %25 = vector.load %arg1[%c0_23, %c1, %c0_24, %c0_25] : memref<1x30x8x4xf32, #tpu.memory_space<vmem>>, vector<1x1x8x4xf32>
    %26 = vector.shape_cast %25 : vector<1x1x8x4xf32> to vector<8x4xf32>
    %27 = vector.extract_strided_slice %26 {offsets = [0, 0], sizes = [7, 4], strides = [1, 1]} : vector<8x4xf32> to vector<7x4xf32>
    %28 = vector.extract_strided_slice %26 {offsets = [0, 2], sizes = [7, 2], strides = [1, 1]} : vector<8x4xf32> to vector<7x2xf32>
    %29 = vector.extract_strided_slice %26 {offsets = [1, 0], sizes = [7, 2], strides = [1, 1]} : vector<8x4xf32> to vector<7x2xf32>
    %30 = tpu.concatenate %28, %29 in 1 : vector<7x2xf32>, vector<7x2xf32> -> vector<7x4xf32>
    %31 = tpu.concatenate %27, %30 in 0 : vector<7x4xf32>, vector<7x4xf32> -> vector<14x4xf32>
    %c0_26 = arith.constant 0 : index
    %c2 = arith.constant 2 : index
    %c0_27 = arith.constant 0 : index
    %c0_28 = arith.constant 0 : index
    %32 = vector.load %arg1[%c0_26, %c2, %c0_27, %c0_28] : memref<1x30x8x4xf32, #tpu.memory_space<vmem>>, vector<1x1x8x4xf32>
    %33 = vector.shape_cast %32 : vector<1x1x8x4xf32> to vector<8x4xf32>
    %34 = vector.extract_strided_slice %33 {offsets = [0, 0], sizes = [7, 4], strides = [1, 1]} : vector<8x4xf32> to vector<7x4xf32>
    %35 = vector.extract_strided_slice %33 {offsets = [0, 2], sizes = [7, 2], strides = [1, 1]} : vector<8x4xf32> to vector<7x2xf32>
    %36 = vector.extract_strided_slice %33 {offsets = [1, 0], sizes = [7, 2], strides = [1, 1]} : vector<8x4xf32> to vector<7x2xf32>
    %37 = tpu.concatenate %35, %36 in 1 : vector<7x2xf32>, vector<7x2xf32> -> vector<7x4xf32>
    %38 = tpu.concatenate %34, %37 in 0 : vector<7x4xf32>, vector<7x4xf32> -> vector<14x4xf32>
    %c0_29 = arith.constant 0 : index
    %c3 = arith.constant 3 : index
    %c0_30 = arith.constant 0 : index
    %c0_31 = arith.constant 0 : index
    %39 = vector.load %arg1[%c0_29, %c3, %c0_30, %c0_31] : memref<1x30x8x4xf32, #tpu.memory_space<vmem>>, vector<1x1x8x4xf32>
    %40 = vector.shape_cast %39 : vector<1x1x8x4xf32> to vector<8x4xf32>
    %41 = vector.extract_strided_slice %40 {offsets = [0, 0], sizes = [7, 4], strides = [1, 1]} : vector<8x4xf32> to vector<7x4xf32>
    %42 = vector.extract_strided_slice %40 {offsets = [0, 2], sizes = [7, 2], strides = [1, 1]} : vector<8x4xf32> to vector<7x2xf32>
    %43 = vector.extract_strided_slice %40 {offsets = [1, 0], sizes = [7, 2], strides = [1, 1]} : vector<8x4xf32> to vector<7x2xf32>
    %44 = tpu.concatenate %42, %43 in 1 : vector<7x2xf32>, vector<7x2xf32> -> vector<7x4xf32>
    %45 = tpu.concatenate %41, %44 in 0 : vector<7x4xf32>, vector<7x4xf32> -> vector<14x4xf32>
    %46 = tpu.concatenate %24, %31, %38, %45 in 1 : vector<14x4xf32>, vector<14x4xf32>, vector<14x4xf32>, vector<14x4xf32> -> vector<14x16xf32>
    %cst_32 = arith.constant dense<0.000000e+00> : vector<14x32xf32>
    %47 = tpu.matmul %46, %0, %cst_32 {dimension_numbers = #tpu.dot_dimension_numbers<[1], [0], [0], [1], [0, 0, 1, 1], [], []>} : vector<14x16xf32>, vector<16x32xf32>, vector<14x32xf32> -> vector<14x32xf32>
    %48 = vector.extract_strided_slice %47 {offsets = [0, 0], sizes = [14, 8], strides = [1, 1]} : vector<14x32xf32> to vector<14x8xf32>
    %49 = vector.extract_strided_slice %47 {offsets = [0, 8], sizes = [14, 8], strides = [1, 1]} : vector<14x32xf32> to vector<14x8xf32>
    %50 = arith.maximumf %48, %49 : vector<14x8xf32>
    %51 = vector.extract_strided_slice %47 {offsets = [0, 16], sizes = [14, 8], strides = [1, 1]} : vector<14x32xf32> to vector<14x8xf32>
    %52 = vector.extract_strided_slice %47 {offsets = [0, 24], sizes = [14, 8], strides = [1, 1]} : vector<14x32xf32> to vector<14x8xf32>
    %53 = arith.maximumf %51, %52 : vector<14x8xf32>
    %54 = arith.maximumf %50, %53 : vector<14x8xf32>
    %55 = vector.broadcast %2 : vector<1x8xf32> to vector<14x8xf32>
    %56 = arith.addf %54, %55 : vector<14x8xf32>
    %cst_33 = arith.constant 0.000000e+00 : f32
    %57 = vector.broadcast %cst_33 : f32 to vector<14x8xf32>
    %58 = arith.maximumf %56, %57 : vector<14x8xf32>
    %59 = vector.extract_strided_slice %58 {offsets = [0, 0], sizes = [7, 8], strides = [1, 1]} : vector<14x8xf32> to vector<7x8xf32>
    %60 = tpu.concatenate %59, %17 in 0 : vector<7x8xf32>, vector<1x8xf32> -> vector<8x8xf32>
    %c1_34 = arith.constant 1 : index
    %c0_35 = arith.constant 0 : index
    %c0_36 = arith.constant 0 : index
    %61 = vector.load %arg10[%c1_34, %c0_35, %c0_36] : memref<16x8x8xf32, #tpu.memory_space<vmem>>, vector<1x8x8xf32>
    %62 = vector.shape_cast %61 : vector<1x8x8xf32> to vector<8x8xf32>
    %63 = vector.shape_cast %60 : vector<8x8xf32> to vector<1x8x8xf32>
    tpu.vector_store %arg10[%c1_34, %c0_35, %c0_36], %63 {strides = array<i32>} : memref<16x8x8xf32, #tpu.memory_space<vmem>>, vector<1x8x8xf32>,
    %64 = vector.extract_strided_slice %58 {offsets = [7, 0], sizes = [7, 8], strides = [1, 1]} : vector<14x8xf32> to vector<7x8xf32>
    %65 = tpu.concatenate %17, %64 in 0 : vector<1x8xf32>, vector<7x8xf32> -> vector<8x8xf32>
    %c1_37 = arith.constant 1 : index
    %c0_38 = arith.constant 0 : index
    %c0_39 = arith.constant 0 : index
    %66 = vector.load %arg9[%c1_37, %c0_38, %c0_39] : memref<16x8x8xf32, #tpu.memory_space<vmem>>, vector<1x8x8xf32>
    %67 = vector.shape_cast %66 : vector<1x8x8xf32> to vector<8x8xf32>
    %68 = vector.shape_cast %65 : vector<8x8xf32> to vector<1x8x8xf32>
    tpu.vector_store %arg9[%c1_37, %c0_38, %c0_39], %68 {strides = array<i32>} : memref<16x8x8xf32, #tpu.memory_space<vmem>>, vector<1x8x8xf32>,
    %c0_40 = arith.constant 0 : index
    %c2_41 = arith.constant 2 : index
    %c0_42 = arith.constant 0 : index
    %c0_43 = arith.constant 0 : index
    %69 = vector.load %arg1[%c0_40, %c2_41, %c0_42, %c0_43] : memref<1x30x8x4xf32, #tpu.memory_space<vmem>>, vector<1x1x8x4xf32>
    %70 = vector.shape_cast %69 : vector<1x1x8x4xf32> to vector<8x4xf32>
    %71 = vector.extract_strided_slice %70 {offsets = [0, 0], sizes = [7, 4], strides = [1, 1]} : vector<8x4xf32> to vector<7x4xf32>
    %72 = vector.extract_strided_slice %70 {offsets = [0, 2], sizes = [7, 2], strides = [1, 1]} : vector<8x4xf32> to vector<7x2xf32>
    %73 = vector.extract_strided_slice %70 {offsets = [1, 0], sizes = [7, 2], strides = [1, 1]} : vector<8x4xf32> to vector<7x2xf32>
    %74 = tpu.concatenate %72, %73 in 1 : vector<7x2xf32>, vector<7x2xf32> -> vector<7x4xf32>
    %75 = tpu.concatenate %71, %74 in 0 : vector<7x4xf32>, vector<7x4xf32> -> vector<14x4xf32>
    %c0_44 = arith.constant 0 : index
    %c3_45 = arith.constant 3 : index
    %c0_46 = arith.constant 0 : index
    %c0_47 = arith.constant 0 : index
    %76 = vector.load %arg1[%c0_44, %c3_45, %c0_46, %c0_47] : memref<1x30x8x4xf32, #tpu.memory_space<vmem>>, vector<1x1x8x4xf32>
    %77 = vector.shape_cast %76 : vector<1x1x8x4xf32> to vector<8x4xf32>
    %78 = vector.extract_strided_slice %77 {offsets = [0, 0], sizes = [7, 4], strides = [1, 1]} : vector<8x4xf32> to vector<7x4xf32>
    %79 = vector.extract_strided_slice %77 {offsets = [0, 2], sizes = [7, 2], strides = [1, 1]} : vector<8x4xf32> to vector<7x2xf32>
    %80 = vector.extract_strided_slice %77 {offsets = [1, 0], sizes = [7, 2], strides = [1, 1]} : vector<8x4xf32> to vector<7x2xf32>
    %81 = tpu.concatenate %79, %80 in 1 : vector<7x2xf32>, vector<7x2xf32> -> vector<7x4xf32>
    %82 = tpu.concatenate %78, %81 in 0 : vector<7x4xf32>, vector<7x4xf32> -> vector<14x4xf32>
    %c0_48 = arith.constant 0 : index
    %c4 = arith.constant 4 : index
    %c0_49 = arith.constant 0 : index
    %c0_50 = arith.constant 0 : index
    %83 = vector.load %arg1[%c0_48, %c4, %c0_49, %c0_50] : memref<1x30x8x4xf32, #tpu.memory_space<vmem>>, vector<1x1x8x4xf32>
    %84 = vector.shape_cast %83 : vector<1x1x8x4xf32> to vector<8x4xf32>
    %85 = vector.extract_strided_slice %84 {offsets = [0, 0], sizes = [7, 4], strides = [1, 1]} : vector<8x4xf32> to vector<7x4xf32>
    %86 = vector.extract_strided_slice %84 {offsets = [0, 2], sizes = [7, 2], strides = [1, 1]} : vector<8x4xf32> to vector<7x2xf32>
    %87 = vector.extract_strided_slice %84 {offsets = [1, 0], sizes = [7, 2], strides = [1, 1]} : vector<8x4xf32> to vector<7x2xf32>
    %88 = tpu.concatenate %86, %87 in 1 : vector<7x2xf32>, vector<7x2xf32> -> vector<7x4xf32>
    %89 = tpu.concatenate %85, %88 in 0 : vector<7x4xf32>, vector<7x4xf32> -> vector<14x4xf32>
    %c0_51 = arith.constant 0 : index
    %c5 = arith.constant 5 : index
    %c0_52 = arith.constant 0 : index
    %c0_53 = arith.constant 0 : index
    %90 = vector.load %arg1[%c0_51, %c5, %c0_52, %c0_53] : memref<1x30x8x4xf32, #tpu.memory_space<vmem>>, vector<1x1x8x4xf32>
    %91 = vector.shape_cast %90 : vector<1x1x8x4xf32> to vector<8x4xf32>
    %92 = vector.extract_strided_slice %91 {offsets = [0, 0], sizes = [7, 4], strides = [1, 1]} : vector<8x4xf32> to vector<7x4xf32>
    %93 = vector.extract_strided_slice %91 {offsets = [0, 2], sizes = [7, 2], strides = [1, 1]} : vector<8x4xf32> to vector<7x2xf32>
    %94 = vector.extract_strided_slice %91 {offsets = [1, 0], sizes = [7, 2], strides = [1, 1]} : vector<8x4xf32> to vector<7x2xf32>
    %95 = tpu.concatenate %93, %94 in 1 : vector<7x2xf32>, vector<7x2xf32> -> vector<7x4xf32>
    %96 = tpu.concatenate %92, %95 in 0 : vector<7x4xf32>, vector<7x4xf32> -> vector<14x4xf32>
    %97 = tpu.concatenate %75, %82, %89, %96 in 1 : vector<14x4xf32>, vector<14x4xf32>, vector<14x4xf32>, vector<14x4xf32> -> vector<14x16xf32>
    %cst_54 = arith.constant dense<0.000000e+00> : vector<14x32xf32>
    %98 = tpu.matmul %97, %0, %cst_54 {dimension_numbers = #tpu.dot_dimension_numbers<[1], [0], [0], [1], [0, 0, 1, 1], [], []>} : vector<14x16xf32>, vector<16x32xf32>, vector<14x32xf32> -> vector<14x32xf32>
    %99 = vector.extract_strided_slice %98 {offsets = [0, 0], sizes = [14, 8], strides = [1, 1]} : vector<14x32xf32> to vector<14x8xf32>
    %100 = vector.extract_strided_slice %98 {offsets = [0, 8], sizes = [14, 8], strides = [1, 1]} : vector<14x32xf32> to vector<14x8xf32>
    %101 = arith.maximumf %99, %100 : vector<14x8xf32>
    %102 = vector.extract_strided_slice %98 {offsets = [0, 16], sizes = [14, 8], strides = [1, 1]} : vector<14x32xf32> to vector<14x8xf32>
    %103 = vector.extract_strided_slice %98 {offsets = [0, 24], sizes = [14, 8], strides = [1, 1]} : vector<14x32xf32> to vector<14x8xf32>
    %104 = arith.maximumf %102, %103 : vector<14x8xf32>
    %105 = arith.maximumf %101, %104 : vector<14x8xf32>
    %106 = vector.broadcast %2 : vector<1x8xf32> to vector<14x8xf32>
    %107 = arith.addf %105, %106 : vector<14x8xf32>
    %cst_55 = arith.constant 0.000000e+00 : f32
    %108 = vector.broadcast %cst_55 : f32 to vector<14x8xf32>
    %109 = arith.maximumf %107, %108 : vector<14x8xf32>
    %110 = vector.extract_strided_slice %109 {offsets = [0, 0], sizes = [7, 8], strides = [1, 1]} : vector<14x8xf32> to vector<7x8xf32>
    %111 = tpu.concatenate %110, %17 in 0 : vector<7x8xf32>, vector<1x8xf32> -> vector<8x8xf32>
    %c2_56 = arith.constant 2 : index
    %c0_57 = arith.constant 0 : index
    %c0_58 = arith.constant 0 : index
    %112 = vector.load %arg10[%c2_56, %c0_57, %c0_58] : memref<16x8x8xf32, #tpu.memory_space<vmem>>, vector<1x8x8xf32>
    %113 = vector.shape_cast %112 : vector<1x8x8xf32> to vector<8x8xf32>
    %114 = vector.shape_cast %111 : vector<8x8xf32> to vector<1x8x8xf32>
    tpu.vector_store %arg10[%c2_56, %c0_57, %c0_58], %114 {strides = array<i32>} : memref<16x8x8xf32, #tpu.memory_space<vmem>>, vector<1x8x8xf32>,
    %115 = vector.extract_strided_slice %109 {offsets = [7, 0], sizes = [7, 8], strides = [1, 1]} : vector<14x8xf32> to vector<7x8xf32>
    %116 = tpu.concatenate %17, %115 in 0 : vector<1x8xf32>, vector<7x8xf32> -> vector<8x8xf32>
    %c2_59 = arith.constant 2 : index
    %c0_60 = arith.constant 0 : index
    %c0_61 = arith.constant 0 : index
    %117 = vector.load %arg9[%c2_59, %c0_60, %c0_61] : memref<16x8x8xf32, #tpu.memory_space<vmem>>, vector<1x8x8xf32>
    %118 = vector.shape_cast %117 : vector<1x8x8xf32> to vector<8x8xf32>
    %119 = vector.shape_cast %116 : vector<8x8xf32> to vector<1x8x8xf32>
    tpu.vector_store %arg9[%c2_59, %c0_60, %c0_61], %119 {strides = array<i32>} : memref<16x8x8xf32, #tpu.memory_space<vmem>>, vector<1x8x8xf32>,
    %c0_62 = arith.constant 0 : index
    %c4_63 = arith.constant 4 : index
    %c0_64 = arith.constant 0 : index
    %c0_65 = arith.constant 0 : index
    %120 = vector.load %arg1[%c0_62, %c4_63, %c0_64, %c0_65] : memref<1x30x8x4xf32, #tpu.memory_space<vmem>>, vector<1x1x8x4xf32>
    %121 = vector.shape_cast %120 : vector<1x1x8x4xf32> to vector<8x4xf32>
    %122 = vector.extract_strided_slice %121 {offsets = [0, 0], sizes = [7, 4], strides = [1, 1]} : vector<8x4xf32> to vector<7x4xf32>
    %123 = vector.extract_strided_slice %121 {offsets = [0, 2], sizes = [7, 2], strides = [1, 1]} : vector<8x4xf32> to vector<7x2xf32>
    %124 = vector.extract_strided_slice %121 {offsets = [1, 0], sizes = [7, 2], strides = [1, 1]} : vector<8x4xf32> to vector<7x2xf32>
    %125 = tpu.concatenate %123, %124 in 1 : vector<7x2xf32>, vector<7x2xf32> -> vector<7x4xf32>
    %126 = tpu.concatenate %122, %125 in 0 : vector<7x4xf32>, vector<7x4xf32> -> vector<14x4xf32>
    %c0_66 = arith.constant 0 : index
    %c5_67 = arith.constant 5 : index
    %c0_68 = arith.constant 0 : index
    %c0_69 = arith.constant 0 : index
    %127 = vector.load %arg1[%c0_66, %c5_67, %c0_68, %c0_69] : memref<1x30x8x4xf32, #tpu.memory_space<vmem>>, vector<1x1x8x4xf32>
    %128 = vector.shape_cast %127 : vector<1x1x8x4xf32> to vector<8x4xf32>
    %129 = vector.extract_strided_slice %128 {offsets = [0, 0], sizes = [7, 4], strides = [1, 1]} : vector<8x4xf32> to vector<7x4xf32>
    %130 = vector.extract_strided_slice %128 {offsets = [0, 2], sizes = [7, 2], strides = [1, 1]} : vector<8x4xf32> to vector<7x2xf32>
    %131 = vector.extract_strided_slice %128 {offsets = [1, 0], sizes = [7, 2], strides = [1, 1]} : vector<8x4xf32> to vector<7x2xf32>
    %132 = tpu.concatenate %130, %131 in 1 : vector<7x2xf32>, vector<7x2xf32> -> vector<7x4xf32>
    %133 = tpu.concatenate %129, %132 in 0 : vector<7x4xf32>, vector<7x4xf32> -> vector<14x4xf32>
    %c0_70 = arith.constant 0 : index
    %c6 = arith.constant 6 : index
    %c0_71 = arith.constant 0 : index
    %c0_72 = arith.constant 0 : index
    %134 = vector.load %arg1[%c0_70, %c6, %c0_71, %c0_72] : memref<1x30x8x4xf32, #tpu.memory_space<vmem>>, vector<1x1x8x4xf32>
    %135 = vector.shape_cast %134 : vector<1x1x8x4xf32> to vector<8x4xf32>
    %136 = vector.extract_strided_slice %135 {offsets = [0, 0], sizes = [7, 4], strides = [1, 1]} : vector<8x4xf32> to vector<7x4xf32>
    %137 = vector.extract_strided_slice %135 {offsets = [0, 2], sizes = [7, 2], strides = [1, 1]} : vector<8x4xf32> to vector<7x2xf32>
    %138 = vector.extract_strided_slice %135 {offsets = [1, 0], sizes = [7, 2], strides = [1, 1]} : vector<8x4xf32> to vector<7x2xf32>
    %139 = tpu.concatenate %137, %138 in 1 : vector<7x2xf32>, vector<7x2xf32> -> vector<7x4xf32>
    %140 = tpu.concatenate %136, %139 in 0 : vector<7x4xf32>, vector<7x4xf32> -> vector<14x4xf32>
    %c0_73 = arith.constant 0 : index
    %c7 = arith.constant 7 : index
    %c0_74 = arith.constant 0 : index
    %c0_75 = arith.constant 0 : index
    %141 = vector.load %arg1[%c0_73, %c7, %c0_74, %c0_75] : memref<1x30x8x4xf32, #tpu.memory_space<vmem>>, vector<1x1x8x4xf32>
    %142 = vector.shape_cast %141 : vector<1x1x8x4xf32> to vector<8x4xf32>
    %143 = vector.extract_strided_slice %142 {offsets = [0, 0], sizes = [7, 4], strides = [1, 1]} : vector<8x4xf32> to vector<7x4xf32>
    %144 = vector.extract_strided_slice %142 {offsets = [0, 2], sizes = [7, 2], strides = [1, 1]} : vector<8x4xf32> to vector<7x2xf32>
    %145 = vector.extract_strided_slice %142 {offsets = [1, 0], sizes = [7, 2], strides = [1, 1]} : vector<8x4xf32> to vector<7x2xf32>
    %146 = tpu.concatenate %144, %145 in 1 : vector<7x2xf32>, vector<7x2xf32> -> vector<7x4xf32>
    %147 = tpu.concatenate %143, %146 in 0 : vector<7x4xf32>, vector<7x4xf32> -> vector<14x4xf32>
    %148 = tpu.concatenate %126, %133, %140, %147 in 1 : vector<14x4xf32>, vector<14x4xf32>, vector<14x4xf32>, vector<14x4xf32> -> vector<14x16xf32>
    %cst_76 = arith.constant dense<0.000000e+00> : vector<14x32xf32>
    %149 = tpu.matmul %148, %0, %cst_76 {dimension_numbers = #tpu.dot_dimension_numbers<[1], [0], [0], [1], [0, 0, 1, 1], [], []>} : vector<14x16xf32>, vector<16x32xf32>, vector<14x32xf32> -> vector<14x32xf32>
    %150 = vector.extract_strided_slice %149 {offsets = [0, 0], sizes = [14, 8], strides = [1, 1]} : vector<14x32xf32> to vector<14x8xf32>
    %151 = vector.extract_strided_slice %149 {offsets = [0, 8], sizes = [14, 8], strides = [1, 1]} : vector<14x32xf32> to vector<14x8xf32>
    %152 = arith.maximumf %150, %151 : vector<14x8xf32>
    %153 = vector.extract_strided_slice %149 {offsets = [0, 16], sizes = [14, 8], strides = [1, 1]} : vector<14x32xf32> to vector<14x8xf32>
    %154 = vector.extract_strided_slice %149 {offsets = [0, 24], sizes = [14, 8], strides = [1, 1]} : vector<14x32xf32> to vector<14x8xf32>
    %155 = arith.maximumf %153, %154 : vector<14x8xf32>
    %156 = arith.maximumf %152, %155 : vector<14x8xf32>
    %157 = vector.broadcast %2 : vector<1x8xf32> to vector<14x8xf32>
    %158 = arith.addf %156, %157 : vector<14x8xf32>
    %cst_77 = arith.constant 0.000000e+00 : f32
    %159 = vector.broadcast %cst_77 : f32 to vector<14x8xf32>
    %160 = arith.maximumf %158, %159 : vector<14x8xf32>
    %161 = vector.extract_strided_slice %160 {offsets = [0, 0], sizes = [7, 8], strides = [1, 1]} : vector<14x8xf32> to vector<7x8xf32>
    %162 = tpu.concatenate %161, %17 in 0 : vector<7x8xf32>, vector<1x8xf32> -> vector<8x8xf32>
    %c3_78 = arith.constant 3 : index
    %c0_79 = arith.constant 0 : index
    %c0_80 = arith.constant 0 : index
    %163 = vector.load %arg10[%c3_78, %c0_79, %c0_80] : memref<16x8x8xf32, #tpu.memory_space<vmem>>, vector<1x8x8xf32>
    %164 = vector.shape_cast %163 : vector<1x8x8xf32> to vector<8x8xf32>
    %165 = vector.shape_cast %162 : vector<8x8xf32> to vector<1x8x8xf32>
    tpu.vector_store %arg10[%c3_78, %c0_79, %c0_80], %165 {strides = array<i32>} : memref<16x8x8xf32, #tpu.memory_space<vmem>>, vector<1x8x8xf32>,
    %166 = vector.extract_strided_slice %160 {offsets = [7, 0], sizes = [7, 8], strides = [1, 1]} : vector<14x8xf32> to vector<7x8xf32>
    %167 = tpu.concatenate %17, %166 in 0 : vector<1x8xf32>, vector<7x8xf32> -> vector<8x8xf32>
    %c3_81 = arith.constant 3 : index
    %c0_82 = arith.constant 0 : index
    %c0_83 = arith.constant 0 : index
    %168 = vector.load %arg9[%c3_81, %c0_82, %c0_83] : memref<16x8x8xf32, #tpu.memory_space<vmem>>, vector<1x8x8xf32>
    %169 = vector.shape_cast %168 : vector<1x8x8xf32> to vector<8x8xf32>
    %170 = vector.shape_cast %167 : vector<8x8xf32> to vector<1x8x8xf32>
    tpu.vector_store %arg9[%c3_81, %c0_82, %c0_83], %170 {strides = array<i32>} : memref<16x8x8xf32, #tpu.memory_space<vmem>>, vector<1x8x8xf32>,
    %c0_84 = arith.constant 0 : index
    %c6_85 = arith.constant 6 : index
    %c0_86 = arith.constant 0 : index
    %c0_87 = arith.constant 0 : index
    %171 = vector.load %arg1[%c0_84, %c6_85, %c0_86, %c0_87] : memref<1x30x8x4xf32, #tpu.memory_space<vmem>>, vector<1x1x8x4xf32>
    %172 = vector.shape_cast %171 : vector<1x1x8x4xf32> to vector<8x4xf32>
    %173 = vector.extract_strided_slice %172 {offsets = [0, 0], sizes = [7, 4], strides = [1, 1]} : vector<8x4xf32> to vector<7x4xf32>
    %174 = vector.extract_strided_slice %172 {offsets = [0, 2], sizes = [7, 2], strides = [1, 1]} : vector<8x4xf32> to vector<7x2xf32>
    %175 = vector.extract_strided_slice %172 {offsets = [1, 0], sizes = [7, 2], strides = [1, 1]} : vector<8x4xf32> to vector<7x2xf32>
    %176 = tpu.concatenate %174, %175 in 1 : vector<7x2xf32>, vector<7x2xf32> -> vector<7x4xf32>
    %177 = tpu.concatenate %173, %176 in 0 : vector<7x4xf32>, vector<7x4xf32> -> vector<14x4xf32>
    %c0_88 = arith.constant 0 : index
    %c7_89 = arith.constant 7 : index
    %c0_90 = arith.constant 0 : index
    %c0_91 = arith.constant 0 : index
    %178 = vector.load %arg1[%c0_88, %c7_89, %c0_90, %c0_91] : memref<1x30x8x4xf32, #tpu.memory_space<vmem>>, vector<1x1x8x4xf32>
    %179 = vector.shape_cast %178 : vector<1x1x8x4xf32> to vector<8x4xf32>
    %180 = vector.extract_strided_slice %179 {offsets = [0, 0], sizes = [7, 4], strides = [1, 1]} : vector<8x4xf32> to vector<7x4xf32>
    %181 = vector.extract_strided_slice %179 {offsets = [0, 2], sizes = [7, 2], strides = [1, 1]} : vector<8x4xf32> to vector<7x2xf32>
    %182 = vector.extract_strided_slice %179 {offsets = [1, 0], sizes = [7, 2], strides = [1, 1]} : vector<8x4xf32> to vector<7x2xf32>
    %183 = tpu.concatenate %181, %182 in 1 : vector<7x2xf32>, vector<7x2xf32> -> vector<7x4xf32>
    %184 = tpu.concatenate %180, %183 in 0 : vector<7x4xf32>, vector<7x4xf32> -> vector<14x4xf32>
    %c0_92 = arith.constant 0 : index
    %c8 = arith.constant 8 : index
    %c0_93 = arith.constant 0 : index
    %c0_94 = arith.constant 0 : index
    %185 = vector.load %arg1[%c0_92, %c8, %c0_93, %c0_94] : memref<1x30x8x4xf32, #tpu.memory_space<vmem>>, vector<1x1x8x4xf32>
    %186 = vector.shape_cast %185 : vector<1x1x8x4xf32> to vector<8x4xf32>
    %187 = vector.extract_strided_slice %186 {offsets = [0, 0], sizes = [7, 4], strides = [1, 1]} : vector<8x4xf32> to vector<7x4xf32>
    %188 = vector.extract_strided_slice %186 {offsets = [0, 2], sizes = [7, 2], strides = [1, 1]} : vector<8x4xf32> to vector<7x2xf32>
    %189 = vector.extract_strided_slice %186 {offsets = [1, 0], sizes = [7, 2], strides = [1, 1]} : vector<8x4xf32> to vector<7x2xf32>
    %190 = tpu.concatenate %188, %189 in 1 : vector<7x2xf32>, vector<7x2xf32> -> vector<7x4xf32>
    %191 = tpu.concatenate %187, %190 in 0 : vector<7x4xf32>, vector<7x4xf32> -> vector<14x4xf32>
    %c0_95 = arith.constant 0 : index
    %c9 = arith.constant 9 : index
    %c0_96 = arith.constant 0 : index
    %c0_97 = arith.constant 0 : index
    %192 = vector.load %arg1[%c0_95, %c9, %c0_96, %c0_97] : memref<1x30x8x4xf32, #tpu.memory_space<vmem>>, vector<1x1x8x4xf32>
    %193 = vector.shape_cast %192 : vector<1x1x8x4xf32> to vector<8x4xf32>
    %194 = vector.extract_strided_slice %193 {offsets = [0, 0], sizes = [7, 4], strides = [1, 1]} : vector<8x4xf32> to vector<7x4xf32>
    %195 = vector.extract_strided_slice %193 {offsets = [0, 2], sizes = [7, 2], strides = [1, 1]} : vector<8x4xf32> to vector<7x2xf32>
    %196 = vector.extract_strided_slice %193 {offsets = [1, 0], sizes = [7, 2], strides = [1, 1]} : vector<8x4xf32> to vector<7x2xf32>
    %197 = tpu.concatenate %195, %196 in 1 : vector<7x2xf32>, vector<7x2xf32> -> vector<7x4xf32>
    %198 = tpu.concatenate %194, %197 in 0 : vector<7x4xf32>, vector<7x4xf32> -> vector<14x4xf32>
    %199 = tpu.concatenate %177, %184, %191, %198 in 1 : vector<14x4xf32>, vector<14x4xf32>, vector<14x4xf32>, vector<14x4xf32> -> vector<14x16xf32>
    %cst_98 = arith.constant dense<0.000000e+00> : vector<14x32xf32>
    %200 = tpu.matmul %199, %0, %cst_98 {dimension_numbers = #tpu.dot_dimension_numbers<[1], [0], [0], [1], [0, 0, 1, 1], [], []>} : vector<14x16xf32>, vector<16x32xf32>, vector<14x32xf32> -> vector<14x32xf32>
    %201 = vector.extract_strided_slice %200 {offsets = [0, 0], sizes = [14, 8], strides = [1, 1]} : vector<14x32xf32> to vector<14x8xf32>
    %202 = vector.extract_strided_slice %200 {offsets = [0, 8], sizes = [14, 8], strides = [1, 1]} : vector<14x32xf32> to vector<14x8xf32>
    %203 = arith.maximumf %201, %202 : vector<14x8xf32>
    %204 = vector.extract_strided_slice %200 {offsets = [0, 16], sizes = [14, 8], strides = [1, 1]} : vector<14x32xf32> to vector<14x8xf32>
    %205 = vector.extract_strided_slice %200 {offsets = [0, 24], sizes = [14, 8], strides = [1, 1]} : vector<14x32xf32> to vector<14x8xf32>
    %206 = arith.maximumf %204, %205 : vector<14x8xf32>
    %207 = arith.maximumf %203, %206 : vector<14x8xf32>
    %208 = vector.broadcast %2 : vector<1x8xf32> to vector<14x8xf32>
    %209 = arith.addf %207, %208 : vector<14x8xf32>
    %cst_99 = arith.constant 0.000000e+00 : f32
    %210 = vector.broadcast %cst_99 : f32 to vector<14x8xf32>
    %211 = arith.maximumf %209, %210 : vector<14x8xf32>
    %212 = vector.extract_strided_slice %211 {offsets = [0, 0], sizes = [7, 8], strides = [1, 1]} : vector<14x8xf32> to vector<7x8xf32>
    %213 = tpu.concatenate %212, %17 in 0 : vector<7x8xf32>, vector<1x8xf32> -> vector<8x8xf32>
    %c4_100 = arith.constant 4 : index
    %c0_101 = arith.constant 0 : index
    %c0_102 = arith.constant 0 : index
    %214 = vector.load %arg10[%c4_100, %c0_101, %c0_102] : memref<16x8x8xf32, #tpu.memory_space<vmem>>, vector<1x8x8xf32>
    %215 = vector.shape_cast %214 : vector<1x8x8xf32> to vector<8x8xf32>
    %216 = vector.shape_cast %213 : vector<8x8xf32> to vector<1x8x8xf32>
    tpu.vector_store %arg10[%c4_100, %c0_101, %c0_102], %216 {strides = array<i32>} : memref<16x8x8xf32, #tpu.memory_space<vmem>>, vector<1x8x8xf32>,
    %217 = vector.extract_strided_slice %211 {offsets = [7, 0], sizes = [7, 8], strides = [1, 1]} : vector<14x8xf32> to vector<7x8xf32>
    %218 = tpu.concatenate %17, %217 in 0 : vector<1x8xf32>, vector<7x8xf32> -> vector<8x8xf32>
    %c4_103 = arith.constant 4 : index
    %c0_104 = arith.constant 0 : index
    %c0_105 = arith.constant 0 : index
    %219 = vector.load %arg9[%c4_103, %c0_104, %c0_105] : memref<16x8x8xf32, #tpu.memory_space<vmem>>, vector<1x8x8xf32>
    %220 = vector.shape_cast %219 : vector<1x8x8xf32> to vector<8x8xf32>
    %221 = vector.shape_cast %218 : vector<8x8xf32> to vector<1x8x8xf32>
    tpu.vector_store %arg9[%c4_103, %c0_104, %c0_105], %221 {strides = array<i32>} : memref<16x8x8xf32, #tpu.memory_space<vmem>>, vector<1x8x8xf32>,
    %c0_106 = arith.constant 0 : index
    %c8_107 = arith.constant 8 : index
    %c0_108 = arith.constant 0 : index
    %c0_109 = arith.constant 0 : index
    %222 = vector.load %arg1[%c0_106, %c8_107, %c0_108, %c0_109] : memref<1x30x8x4xf32, #tpu.memory_space<vmem>>, vector<1x1x8x4xf32>
    %223 = vector.shape_cast %222 : vector<1x1x8x4xf32> to vector<8x4xf32>
    %224 = vector.extract_strided_slice %223 {offsets = [0, 0], sizes = [7, 4], strides = [1, 1]} : vector<8x4xf32> to vector<7x4xf32>
    %225 = vector.extract_strided_slice %223 {offsets = [0, 2], sizes = [7, 2], strides = [1, 1]} : vector<8x4xf32> to vector<7x2xf32>
    %226 = vector.extract_strided_slice %223 {offsets = [1, 0], sizes = [7, 2], strides = [1, 1]} : vector<8x4xf32> to vector<7x2xf32>
    %227 = tpu.concatenate %225, %226 in 1 : vector<7x2xf32>, vector<7x2xf32> -> vector<7x4xf32>
    %228 = tpu.concatenate %224, %227 in 0 : vector<7x4xf32>, vector<7x4xf32> -> vector<14x4xf32>
    %c0_110 = arith.constant 0 : index
    %c9_111 = arith.constant 9 : index
    %c0_112 = arith.constant 0 : index
    %c0_113 = arith.constant 0 : index
    %229 = vector.load %arg1[%c0_110, %c9_111, %c0_112, %c0_113] : memref<1x30x8x4xf32, #tpu.memory_space<vmem>>, vector<1x1x8x4xf32>
    %230 = vector.shape_cast %229 : vector<1x1x8x4xf32> to vector<8x4xf32>
    %231 = vector.extract_strided_slice %230 {offsets = [0, 0], sizes = [7, 4], strides = [1, 1]} : vector<8x4xf32> to vector<7x4xf32>
    %232 = vector.extract_strided_slice %230 {offsets = [0, 2], sizes = [7, 2], strides = [1, 1]} : vector<8x4xf32> to vector<7x2xf32>
    %233 = vector.extract_strided_slice %230 {offsets = [1, 0], sizes = [7, 2], strides = [1, 1]} : vector<8x4xf32> to vector<7x2xf32>
    %234 = tpu.concatenate %232, %233 in 1 : vector<7x2xf32>, vector<7x2xf32> -> vector<7x4xf32>
    %235 = tpu.concatenate %231, %234 in 0 : vector<7x4xf32>, vector<7x4xf32> -> vector<14x4xf32>
    %c0_114 = arith.constant 0 : index
    %c10 = arith.constant 10 : index
    %c0_115 = arith.constant 0 : index
    %c0_116 = arith.constant 0 : index
    %236 = vector.load %arg1[%c0_114, %c10, %c0_115, %c0_116] : memref<1x30x8x4xf32, #tpu.memory_space<vmem>>, vector<1x1x8x4xf32>
    %237 = vector.shape_cast %236 : vector<1x1x8x4xf32> to vector<8x4xf32>
    %238 = vector.extract_strided_slice %237 {offsets = [0, 0], sizes = [7, 4], strides = [1, 1]} : vector<8x4xf32> to vector<7x4xf32>
    %239 = vector.extract_strided_slice %237 {offsets = [0, 2], sizes = [7, 2], strides = [1, 1]} : vector<8x4xf32> to vector<7x2xf32>
    %240 = vector.extract_strided_slice %237 {offsets = [1, 0], sizes = [7, 2], strides = [1, 1]} : vector<8x4xf32> to vector<7x2xf32>
    %241 = tpu.concatenate %239, %240 in 1 : vector<7x2xf32>, vector<7x2xf32> -> vector<7x4xf32>
    %242 = tpu.concatenate %238, %241 in 0 : vector<7x4xf32>, vector<7x4xf32> -> vector<14x4xf32>
    %c0_117 = arith.constant 0 : index
    %c11 = arith.constant 11 : index
    %c0_118 = arith.constant 0 : index
    %c0_119 = arith.constant 0 : index
    %243 = vector.load %arg1[%c0_117, %c11, %c0_118, %c0_119] : memref<1x30x8x4xf32, #tpu.memory_space<vmem>>, vector<1x1x8x4xf32>
    %244 = vector.shape_cast %243 : vector<1x1x8x4xf32> to vector<8x4xf32>
    %245 = vector.extract_strided_slice %244 {offsets = [0, 0], sizes = [7, 4], strides = [1, 1]} : vector<8x4xf32> to vector<7x4xf32>
    %246 = vector.extract_strided_slice %244 {offsets = [0, 2], sizes = [7, 2], strides = [1, 1]} : vector<8x4xf32> to vector<7x2xf32>
    %247 = vector.extract_strided_slice %244 {offsets = [1, 0], sizes = [7, 2], strides = [1, 1]} : vector<8x4xf32> to vector<7x2xf32>
    %248 = tpu.concatenate %246, %247 in 1 : vector<7x2xf32>, vector<7x2xf32> -> vector<7x4xf32>
    %249 = tpu.concatenate %245, %248 in 0 : vector<7x4xf32>, vector<7x4xf32> -> vector<14x4xf32>
    %250 = tpu.concatenate %228, %235, %242, %249 in 1 : vector<14x4xf32>, vector<14x4xf32>, vector<14x4xf32>, vector<14x4xf32> -> vector<14x16xf32>
    %cst_120 = arith.constant dense<0.000000e+00> : vector<14x32xf32>
    %251 = tpu.matmul %250, %0, %cst_120 {dimension_numbers = #tpu.dot_dimension_numbers<[1], [0], [0], [1], [0, 0, 1, 1], [], []>} : vector<14x16xf32>, vector<16x32xf32>, vector<14x32xf32> -> vector<14x32xf32>
    %252 = vector.extract_strided_slice %251 {offsets = [0, 0], sizes = [14, 8], strides = [1, 1]} : vector<14x32xf32> to vector<14x8xf32>
    %253 = vector.extract_strided_slice %251 {offsets = [0, 8], sizes = [14, 8], strides = [1, 1]} : vector<14x32xf32> to vector<14x8xf32>
    %254 = arith.maximumf %252, %253 : vector<14x8xf32>
    %255 = vector.extract_strided_slice %251 {offsets = [0, 16], sizes = [14, 8], strides = [1, 1]} : vector<14x32xf32> to vector<14x8xf32>
    %256 = vector.extract_strided_slice %251 {offsets = [0, 24], sizes = [14, 8], strides = [1, 1]} : vector<14x32xf32> to vector<14x8xf32>
    %257 = arith.maximumf %255, %256 : vector<14x8xf32>
    %258 = arith.maximumf %254, %257 : vector<14x8xf32>
    %259 = vector.broadcast %2 : vector<1x8xf32> to vector<14x8xf32>
    %260 = arith.addf %258, %259 : vector<14x8xf32>
    %cst_121 = arith.constant 0.000000e+00 : f32
    %261 = vector.broadcast %cst_121 : f32 to vector<14x8xf32>
    %262 = arith.maximumf %260, %261 : vector<14x8xf32>
    %263 = vector.extract_strided_slice %262 {offsets = [0, 0], sizes = [7, 8], strides = [1, 1]} : vector<14x8xf32> to vector<7x8xf32>
    %264 = tpu.concatenate %263, %17 in 0 : vector<7x8xf32>, vector<1x8xf32> -> vector<8x8xf32>
    %c5_122 = arith.constant 5 : index
    %c0_123 = arith.constant 0 : index
    %c0_124 = arith.constant 0 : index
    %265 = vector.load %arg10[%c5_122, %c0_123, %c0_124] : memref<16x8x8xf32, #tpu.memory_space<vmem>>, vector<1x8x8xf32>
    %266 = vector.shape_cast %265 : vector<1x8x8xf32> to vector<8x8xf32>
    %267 = vector.shape_cast %264 : vector<8x8xf32> to vector<1x8x8xf32>
    tpu.vector_store %arg10[%c5_122, %c0_123, %c0_124], %267 {strides = array<i32>} : memref<16x8x8xf32, #tpu.memory_space<vmem>>, vector<1x8x8xf32>,
    %268 = vector.extract_strided_slice %262 {offsets = [7, 0], sizes = [7, 8], strides = [1, 1]} : vector<14x8xf32> to vector<7x8xf32>
    %269 = tpu.concatenate %17, %268 in 0 : vector<1x8xf32>, vector<7x8xf32> -> vector<8x8xf32>
    %c5_125 = arith.constant 5 : index
    %c0_126 = arith.constant 0 : index
    %c0_127 = arith.constant 0 : index
    %270 = vector.load %arg9[%c5_125, %c0_126, %c0_127] : memref<16x8x8xf32, #tpu.memory_space<vmem>>, vector<1x8x8xf32>
    %271 = vector.shape_cast %270 : vector<1x8x8xf32> to vector<8x8xf32>
    %272 = vector.shape_cast %269 : vector<8x8xf32> to vector<1x8x8xf32>
    tpu.vector_store %arg9[%c5_125, %c0_126, %c0_127], %272 {strides = array<i32>} : memref<16x8x8xf32, #tpu.memory_space<vmem>>, vector<1x8x8xf32>,
    %c0_128 = arith.constant 0 : index
    %c10_129 = arith.constant 10 : index
    %c0_130 = arith.constant 0 : index
    %c0_131 = arith.constant 0 : index
    %273 = vector.load %arg1[%c0_128, %c10_129, %c0_130, %c0_131] : memref<1x30x8x4xf32, #tpu.memory_space<vmem>>, vector<1x1x8x4xf32>
    %274 = vector.shape_cast %273 : vector<1x1x8x4xf32> to vector<8x4xf32>
    %275 = vector.extract_strided_slice %274 {offsets = [0, 0], sizes = [7, 4], strides = [1, 1]} : vector<8x4xf32> to vector<7x4xf32>
    %276 = vector.extract_strided_slice %274 {offsets = [0, 2], sizes = [7, 2], strides = [1, 1]} : vector<8x4xf32> to vector<7x2xf32>
    %277 = vector.extract_strided_slice %274 {offsets = [1, 0], sizes = [7, 2], strides = [1, 1]} : vector<8x4xf32> to vector<7x2xf32>
    %278 = tpu.concatenate %276, %277 in 1 : vector<7x2xf32>, vector<7x2xf32> -> vector<7x4xf32>
    %279 = tpu.concatenate %275, %278 in 0 : vector<7x4xf32>, vector<7x4xf32> -> vector<14x4xf32>
    %c0_132 = arith.constant 0 : index
    %c11_133 = arith.constant 11 : index
    %c0_134 = arith.constant 0 : index
    %c0_135 = arith.constant 0 : index
    %280 = vector.load %arg1[%c0_132, %c11_133, %c0_134, %c0_135] : memref<1x30x8x4xf32, #tpu.memory_space<vmem>>, vector<1x1x8x4xf32>
    %281 = vector.shape_cast %280 : vector<1x1x8x4xf32> to vector<8x4xf32>
    %282 = vector.extract_strided_slice %281 {offsets = [0, 0], sizes = [7, 4], strides = [1, 1]} : vector<8x4xf32> to vector<7x4xf32>
    %283 = vector.extract_strided_slice %281 {offsets = [0, 2], sizes = [7, 2], strides = [1, 1]} : vector<8x4xf32> to vector<7x2xf32>
    %284 = vector.extract_strided_slice %281 {offsets = [1, 0], sizes = [7, 2], strides = [1, 1]} : vector<8x4xf32> to vector<7x2xf32>
    %285 = tpu.concatenate %283, %284 in 1 : vector<7x2xf32>, vector<7x2xf32> -> vector<7x4xf32>
    %286 = tpu.concatenate %282, %285 in 0 : vector<7x4xf32>, vector<7x4xf32> -> vector<14x4xf32>
    %c0_136 = arith.constant 0 : index
    %c12 = arith.constant 12 : index
    %c0_137 = arith.constant 0 : index
    %c0_138 = arith.constant 0 : index
    %287 = vector.load %arg1[%c0_136, %c12, %c0_137, %c0_138] : memref<1x30x8x4xf32, #tpu.memory_space<vmem>>, vector<1x1x8x4xf32>
    %288 = vector.shape_cast %287 : vector<1x1x8x4xf32> to vector<8x4xf32>
    %289 = vector.extract_strided_slice %288 {offsets = [0, 0], sizes = [7, 4], strides = [1, 1]} : vector<8x4xf32> to vector<7x4xf32>
    %290 = vector.extract_strided_slice %288 {offsets = [0, 2], sizes = [7, 2], strides = [1, 1]} : vector<8x4xf32> to vector<7x2xf32>
    %291 = vector.extract_strided_slice %288 {offsets = [1, 0], sizes = [7, 2], strides = [1, 1]} : vector<8x4xf32> to vector<7x2xf32>
    %292 = tpu.concatenate %290, %291 in 1 : vector<7x2xf32>, vector<7x2xf32> -> vector<7x4xf32>
    %293 = tpu.concatenate %289, %292 in 0 : vector<7x4xf32>, vector<7x4xf32> -> vector<14x4xf32>
    %c0_139 = arith.constant 0 : index
    %c13 = arith.constant 13 : index
    %c0_140 = arith.constant 0 : index
    %c0_141 = arith.constant 0 : index
    %294 = vector.load %arg1[%c0_139, %c13, %c0_140, %c0_141] : memref<1x30x8x4xf32, #tpu.memory_space<vmem>>, vector<1x1x8x4xf32>
    %295 = vector.shape_cast %294 : vector<1x1x8x4xf32> to vector<8x4xf32>
    %296 = vector.extract_strided_slice %295 {offsets = [0, 0], sizes = [7, 4], strides = [1, 1]} : vector<8x4xf32> to vector<7x4xf32>
    %297 = vector.extract_strided_slice %295 {offsets = [0, 2], sizes = [7, 2], strides = [1, 1]} : vector<8x4xf32> to vector<7x2xf32>
    %298 = vector.extract_strided_slice %295 {offsets = [1, 0], sizes = [7, 2], strides = [1, 1]} : vector<8x4xf32> to vector<7x2xf32>
    %299 = tpu.concatenate %297, %298 in 1 : vector<7x2xf32>, vector<7x2xf32> -> vector<7x4xf32>
    %300 = tpu.concatenate %296, %299 in 0 : vector<7x4xf32>, vector<7x4xf32> -> vector<14x4xf32>
    %301 = tpu.concatenate %279, %286, %293, %300 in 1 : vector<14x4xf32>, vector<14x4xf32>, vector<14x4xf32>, vector<14x4xf32> -> vector<14x16xf32>
    %cst_142 = arith.constant dense<0.000000e+00> : vector<14x32xf32>
    %302 = tpu.matmul %301, %0, %cst_142 {dimension_numbers = #tpu.dot_dimension_numbers<[1], [0], [0], [1], [0, 0, 1, 1], [], []>} : vector<14x16xf32>, vector<16x32xf32>, vector<14x32xf32> -> vector<14x32xf32>
    %303 = vector.extract_strided_slice %302 {offsets = [0, 0], sizes = [14, 8], strides = [1, 1]} : vector<14x32xf32> to vector<14x8xf32>
    %304 = vector.extract_strided_slice %302 {offsets = [0, 8], sizes = [14, 8], strides = [1, 1]} : vector<14x32xf32> to vector<14x8xf32>
    %305 = arith.maximumf %303, %304 : vector<14x8xf32>
    %306 = vector.extract_strided_slice %302 {offsets = [0, 16], sizes = [14, 8], strides = [1, 1]} : vector<14x32xf32> to vector<14x8xf32>
    %307 = vector.extract_strided_slice %302 {offsets = [0, 24], sizes = [14, 8], strides = [1, 1]} : vector<14x32xf32> to vector<14x8xf32>
    %308 = arith.maximumf %306, %307 : vector<14x8xf32>
    %309 = arith.maximumf %305, %308 : vector<14x8xf32>
    %310 = vector.broadcast %2 : vector<1x8xf32> to vector<14x8xf32>
    %311 = arith.addf %309, %310 : vector<14x8xf32>
    %cst_143 = arith.constant 0.000000e+00 : f32
    %312 = vector.broadcast %cst_143 : f32 to vector<14x8xf32>
    %313 = arith.maximumf %311, %312 : vector<14x8xf32>
    %314 = vector.extract_strided_slice %313 {offsets = [0, 0], sizes = [7, 8], strides = [1, 1]} : vector<14x8xf32> to vector<7x8xf32>
    %315 = tpu.concatenate %314, %17 in 0 : vector<7x8xf32>, vector<1x8xf32> -> vector<8x8xf32>
    %c6_144 = arith.constant 6 : index
    %c0_145 = arith.constant 0 : index
    %c0_146 = arith.constant 0 : index
    %316 = vector.load %arg10[%c6_144, %c0_145, %c0_146] : memref<16x8x8xf32, #tpu.memory_space<vmem>>, vector<1x8x8xf32>
    %317 = vector.shape_cast %316 : vector<1x8x8xf32> to vector<8x8xf32>
    %318 = vector.shape_cast %315 : vector<8x8xf32> to vector<1x8x8xf32>
    tpu.vector_store %arg10[%c6_144, %c0_145, %c0_146], %318 {strides = array<i32>} : memref<16x8x8xf32, #tpu.memory_space<vmem>>, vector<1x8x8xf32>,
    %319 = vector.extract_strided_slice %313 {offsets = [7, 0], sizes = [7, 8], strides = [1, 1]} : vector<14x8xf32> to vector<7x8xf32>
    %320 = tpu.concatenate %17, %319 in 0 : vector<1x8xf32>, vector<7x8xf32> -> vector<8x8xf32>
    %c6_147 = arith.constant 6 : index
    %c0_148 = arith.constant 0 : index
    %c0_149 = arith.constant 0 : index
    %321 = vector.load %arg9[%c6_147, %c0_148, %c0_149] : memref<16x8x8xf32, #tpu.memory_space<vmem>>, vector<1x8x8xf32>
    %322 = vector.shape_cast %321 : vector<1x8x8xf32> to vector<8x8xf32>
    %323 = vector.shape_cast %320 : vector<8x8xf32> to vector<1x8x8xf32>
    tpu.vector_store %arg9[%c6_147, %c0_148, %c0_149], %323 {strides = array<i32>} : memref<16x8x8xf32, #tpu.memory_space<vmem>>, vector<1x8x8xf32>,
    %c0_150 = arith.constant 0 : index
    %c12_151 = arith.constant 12 : index
    %c0_152 = arith.constant 0 : index
    %c0_153 = arith.constant 0 : index
    %324 = vector.load %arg1[%c0_150, %c12_151, %c0_152, %c0_153] : memref<1x30x8x4xf32, #tpu.memory_space<vmem>>, vector<1x1x8x4xf32>
    %325 = vector.shape_cast %324 : vector<1x1x8x4xf32> to vector<8x4xf32>
    %326 = vector.extract_strided_slice %325 {offsets = [0, 0], sizes = [7, 4], strides = [1, 1]} : vector<8x4xf32> to vector<7x4xf32>
    %327 = vector.extract_strided_slice %325 {offsets = [0, 2], sizes = [7, 2], strides = [1, 1]} : vector<8x4xf32> to vector<7x2xf32>
    %328 = vector.extract_strided_slice %325 {offsets = [1, 0], sizes = [7, 2], strides = [1, 1]} : vector<8x4xf32> to vector<7x2xf32>
    %329 = tpu.concatenate %327, %328 in 1 : vector<7x2xf32>, vector<7x2xf32> -> vector<7x4xf32>
    %330 = tpu.concatenate %326, %329 in 0 : vector<7x4xf32>, vector<7x4xf32> -> vector<14x4xf32>
    %c0_154 = arith.constant 0 : index
    %c13_155 = arith.constant 13 : index
    %c0_156 = arith.constant 0 : index
    %c0_157 = arith.constant 0 : index
    %331 = vector.load %arg1[%c0_154, %c13_155, %c0_156, %c0_157] : memref<1x30x8x4xf32, #tpu.memory_space<vmem>>, vector<1x1x8x4xf32>
    %332 = vector.shape_cast %331 : vector<1x1x8x4xf32> to vector<8x4xf32>
    %333 = vector.extract_strided_slice %332 {offsets = [0, 0], sizes = [7, 4], strides = [1, 1]} : vector<8x4xf32> to vector<7x4xf32>
    %334 = vector.extract_strided_slice %332 {offsets = [0, 2], sizes = [7, 2], strides = [1, 1]} : vector<8x4xf32> to vector<7x2xf32>
    %335 = vector.extract_strided_slice %332 {offsets = [1, 0], sizes = [7, 2], strides = [1, 1]} : vector<8x4xf32> to vector<7x2xf32>
    %336 = tpu.concatenate %334, %335 in 1 : vector<7x2xf32>, vector<7x2xf32> -> vector<7x4xf32>
    %337 = tpu.concatenate %333, %336 in 0 : vector<7x4xf32>, vector<7x4xf32> -> vector<14x4xf32>
    %c0_158 = arith.constant 0 : index
    %c14 = arith.constant 14 : index
    %c0_159 = arith.constant 0 : index
    %c0_160 = arith.constant 0 : index
    %338 = vector.load %arg1[%c0_158, %c14, %c0_159, %c0_160] : memref<1x30x8x4xf32, #tpu.memory_space<vmem>>, vector<1x1x8x4xf32>
    %339 = vector.shape_cast %338 : vector<1x1x8x4xf32> to vector<8x4xf32>
    %340 = vector.extract_strided_slice %339 {offsets = [0, 0], sizes = [7, 4], strides = [1, 1]} : vector<8x4xf32> to vector<7x4xf32>
    %341 = vector.extract_strided_slice %339 {offsets = [0, 2], sizes = [7, 2], strides = [1, 1]} : vector<8x4xf32> to vector<7x2xf32>
    %342 = vector.extract_strided_slice %339 {offsets = [1, 0], sizes = [7, 2], strides = [1, 1]} : vector<8x4xf32> to vector<7x2xf32>
    %343 = tpu.concatenate %341, %342 in 1 : vector<7x2xf32>, vector<7x2xf32> -> vector<7x4xf32>
    %344 = tpu.concatenate %340, %343 in 0 : vector<7x4xf32>, vector<7x4xf32> -> vector<14x4xf32>
    %c0_161 = arith.constant 0 : index
    %c15_162 = arith.constant 15 : index
    %c0_163 = arith.constant 0 : index
    %c0_164 = arith.constant 0 : index
    %345 = vector.load %arg1[%c0_161, %c15_162, %c0_163, %c0_164] : memref<1x30x8x4xf32, #tpu.memory_space<vmem>>, vector<1x1x8x4xf32>
    %346 = vector.shape_cast %345 : vector<1x1x8x4xf32> to vector<8x4xf32>
    %347 = vector.extract_strided_slice %346 {offsets = [0, 0], sizes = [7, 4], strides = [1, 1]} : vector<8x4xf32> to vector<7x4xf32>
    %348 = vector.extract_strided_slice %346 {offsets = [0, 2], sizes = [7, 2], strides = [1, 1]} : vector<8x4xf32> to vector<7x2xf32>
    %349 = vector.extract_strided_slice %346 {offsets = [1, 0], sizes = [7, 2], strides = [1, 1]} : vector<8x4xf32> to vector<7x2xf32>
    %350 = tpu.concatenate %348, %349 in 1 : vector<7x2xf32>, vector<7x2xf32> -> vector<7x4xf32>
    %351 = tpu.concatenate %347, %350 in 0 : vector<7x4xf32>, vector<7x4xf32> -> vector<14x4xf32>
    %352 = tpu.concatenate %330, %337, %344, %351 in 1 : vector<14x4xf32>, vector<14x4xf32>, vector<14x4xf32>, vector<14x4xf32> -> vector<14x16xf32>
    %cst_165 = arith.constant dense<0.000000e+00> : vector<14x32xf32>
    %353 = tpu.matmul %352, %0, %cst_165 {dimension_numbers = #tpu.dot_dimension_numbers<[1], [0], [0], [1], [0, 0, 1, 1], [], []>} : vector<14x16xf32>, vector<16x32xf32>, vector<14x32xf32> -> vector<14x32xf32>
    %354 = vector.extract_strided_slice %353 {offsets = [0, 0], sizes = [14, 8], strides = [1, 1]} : vector<14x32xf32> to vector<14x8xf32>
    %355 = vector.extract_strided_slice %353 {offsets = [0, 8], sizes = [14, 8], strides = [1, 1]} : vector<14x32xf32> to vector<14x8xf32>
    %356 = arith.maximumf %354, %355 : vector<14x8xf32>
    %357 = vector.extract_strided_slice %353 {offsets = [0, 16], sizes = [14, 8], strides = [1, 1]} : vector<14x32xf32> to vector<14x8xf32>
    %358 = vector.extract_strided_slice %353 {offsets = [0, 24], sizes = [14, 8], strides = [1, 1]} : vector<14x32xf32> to vector<14x8xf32>
    %359 = arith.maximumf %357, %358 : vector<14x8xf32>
    %360 = arith.maximumf %356, %359 : vector<14x8xf32>
    %361 = vector.broadcast %2 : vector<1x8xf32> to vector<14x8xf32>
    %362 = arith.addf %360, %361 : vector<14x8xf32>
    %cst_166 = arith.constant 0.000000e+00 : f32
    %363 = vector.broadcast %cst_166 : f32 to vector<14x8xf32>
    %364 = arith.maximumf %362, %363 : vector<14x8xf32>
    %365 = vector.extract_strided_slice %364 {offsets = [0, 0], sizes = [7, 8], strides = [1, 1]} : vector<14x8xf32> to vector<7x8xf32>
    %366 = tpu.concatenate %365, %17 in 0 : vector<7x8xf32>, vector<1x8xf32> -> vector<8x8xf32>
    %c7_167 = arith.constant 7 : index
    %c0_168 = arith.constant 0 : index
    %c0_169 = arith.constant 0 : index
    %367 = vector.load %arg10[%c7_167, %c0_168, %c0_169] : memref<16x8x8xf32, #tpu.memory_space<vmem>>, vector<1x8x8xf32>
    %368 = vector.shape_cast %367 : vector<1x8x8xf32> to vector<8x8xf32>
    %369 = vector.shape_cast %366 : vector<8x8xf32> to vector<1x8x8xf32>
    tpu.vector_store %arg10[%c7_167, %c0_168, %c0_169], %369 {strides = array<i32>} : memref<16x8x8xf32, #tpu.memory_space<vmem>>, vector<1x8x8xf32>,
    %370 = vector.extract_strided_slice %364 {offsets = [7, 0], sizes = [7, 8], strides = [1, 1]} : vector<14x8xf32> to vector<7x8xf32>
    %371 = tpu.concatenate %17, %370 in 0 : vector<1x8xf32>, vector<7x8xf32> -> vector<8x8xf32>
    %c7_170 = arith.constant 7 : index
    %c0_171 = arith.constant 0 : index
    %c0_172 = arith.constant 0 : index
    %372 = vector.load %arg9[%c7_170, %c0_171, %c0_172] : memref<16x8x8xf32, #tpu.memory_space<vmem>>, vector<1x8x8xf32>
    %373 = vector.shape_cast %372 : vector<1x8x8xf32> to vector<8x8xf32>
    %374 = vector.shape_cast %371 : vector<8x8xf32> to vector<1x8x8xf32>
    tpu.vector_store %arg9[%c7_170, %c0_171, %c0_172], %374 {strides = array<i32>} : memref<16x8x8xf32, #tpu.memory_space<vmem>>, vector<1x8x8xf32>,
    %c0_173 = arith.constant 0 : index
    %c14_174 = arith.constant 14 : index
    %c0_175 = arith.constant 0 : index
    %c0_176 = arith.constant 0 : index
    %375 = vector.load %arg1[%c0_173, %c14_174, %c0_175, %c0_176] : memref<1x30x8x4xf32, #tpu.memory_space<vmem>>, vector<1x1x8x4xf32>
    %376 = vector.shape_cast %375 : vector<1x1x8x4xf32> to vector<8x4xf32>
    %377 = vector.extract_strided_slice %376 {offsets = [0, 0], sizes = [7, 4], strides = [1, 1]} : vector<8x4xf32> to vector<7x4xf32>
    %378 = vector.extract_strided_slice %376 {offsets = [0, 2], sizes = [7, 2], strides = [1, 1]} : vector<8x4xf32> to vector<7x2xf32>
    %379 = vector.extract_strided_slice %376 {offsets = [1, 0], sizes = [7, 2], strides = [1, 1]} : vector<8x4xf32> to vector<7x2xf32>
    %380 = tpu.concatenate %378, %379 in 1 : vector<7x2xf32>, vector<7x2xf32> -> vector<7x4xf32>
    %381 = tpu.concatenate %377, %380 in 0 : vector<7x4xf32>, vector<7x4xf32> -> vector<14x4xf32>
    %c0_177 = arith.constant 0 : index
    %c15_178 = arith.constant 15 : index
    %c0_179 = arith.constant 0 : index
    %c0_180 = arith.constant 0 : index
    %382 = vector.load %arg1[%c0_177, %c15_178, %c0_179, %c0_180] : memref<1x30x8x4xf32, #tpu.memory_space<vmem>>, vector<1x1x8x4xf32>
    %383 = vector.shape_cast %382 : vector<1x1x8x4xf32> to vector<8x4xf32>
    %384 = vector.extract_strided_slice %383 {offsets = [0, 0], sizes = [7, 4], strides = [1, 1]} : vector<8x4xf32> to vector<7x4xf32>
    %385 = vector.extract_strided_slice %383 {offsets = [0, 2], sizes = [7, 2], strides = [1, 1]} : vector<8x4xf32> to vector<7x2xf32>
    %386 = vector.extract_strided_slice %383 {offsets = [1, 0], sizes = [7, 2], strides = [1, 1]} : vector<8x4xf32> to vector<7x2xf32>
    %387 = tpu.concatenate %385, %386 in 1 : vector<7x2xf32>, vector<7x2xf32> -> vector<7x4xf32>
    %388 = tpu.concatenate %384, %387 in 0 : vector<7x4xf32>, vector<7x4xf32> -> vector<14x4xf32>
    %c0_181 = arith.constant 0 : index
    %c16 = arith.constant 16 : index
    %c0_182 = arith.constant 0 : index
    %c0_183 = arith.constant 0 : index
    %389 = vector.load %arg1[%c0_181, %c16, %c0_182, %c0_183] : memref<1x30x8x4xf32, #tpu.memory_space<vmem>>, vector<1x1x8x4xf32>
    %390 = vector.shape_cast %389 : vector<1x1x8x4xf32> to vector<8x4xf32>
    %391 = vector.extract_strided_slice %390 {offsets = [0, 0], sizes = [7, 4], strides = [1, 1]} : vector<8x4xf32> to vector<7x4xf32>
    %392 = vector.extract_strided_slice %390 {offsets = [0, 2], sizes = [7, 2], strides = [1, 1]} : vector<8x4xf32> to vector<7x2xf32>
    %393 = vector.extract_strided_slice %390 {offsets = [1, 0], sizes = [7, 2], strides = [1, 1]} : vector<8x4xf32> to vector<7x2xf32>
    %394 = tpu.concatenate %392, %393 in 1 : vector<7x2xf32>, vector<7x2xf32> -> vector<7x4xf32>
    %395 = tpu.concatenate %391, %394 in 0 : vector<7x4xf32>, vector<7x4xf32> -> vector<14x4xf32>
    %c0_184 = arith.constant 0 : index
    %c17 = arith.constant 17 : index
    %c0_185 = arith.constant 0 : index
    %c0_186 = arith.constant 0 : index
    %396 = vector.load %arg1[%c0_184, %c17, %c0_185, %c0_186] : memref<1x30x8x4xf32, #tpu.memory_space<vmem>>, vector<1x1x8x4xf32>
    %397 = vector.shape_cast %396 : vector<1x1x8x4xf32> to vector<8x4xf32>
    %398 = vector.extract_strided_slice %397 {offsets = [0, 0], sizes = [7, 4], strides = [1, 1]} : vector<8x4xf32> to vector<7x4xf32>
    %399 = vector.extract_strided_slice %397 {offsets = [0, 2], sizes = [7, 2], strides = [1, 1]} : vector<8x4xf32> to vector<7x2xf32>
    %400 = vector.extract_strided_slice %397 {offsets = [1, 0], sizes = [7, 2], strides = [1, 1]} : vector<8x4xf32> to vector<7x2xf32>
    %401 = tpu.concatenate %399, %400 in 1 : vector<7x2xf32>, vector<7x2xf32> -> vector<7x4xf32>
    %402 = tpu.concatenate %398, %401 in 0 : vector<7x4xf32>, vector<7x4xf32> -> vector<14x4xf32>
    %403 = tpu.concatenate %381, %388, %395, %402 in 1 : vector<14x4xf32>, vector<14x4xf32>, vector<14x4xf32>, vector<14x4xf32> -> vector<14x16xf32>
    %cst_187 = arith.constant dense<0.000000e+00> : vector<14x32xf32>
    %404 = tpu.matmul %403, %0, %cst_187 {dimension_numbers = #tpu.dot_dimension_numbers<[1], [0], [0], [1], [0, 0, 1, 1], [], []>} : vector<14x16xf32>, vector<16x32xf32>, vector<14x32xf32> -> vector<14x32xf32>
    %405 = vector.extract_strided_slice %404 {offsets = [0, 0], sizes = [14, 8], strides = [1, 1]} : vector<14x32xf32> to vector<14x8xf32>
    %406 = vector.extract_strided_slice %404 {offsets = [0, 8], sizes = [14, 8], strides = [1, 1]} : vector<14x32xf32> to vector<14x8xf32>
    %407 = arith.maximumf %405, %406 : vector<14x8xf32>
    %408 = vector.extract_strided_slice %404 {offsets = [0, 16], sizes = [14, 8], strides = [1, 1]} : vector<14x32xf32> to vector<14x8xf32>
    %409 = vector.extract_strided_slice %404 {offsets = [0, 24], sizes = [14, 8], strides = [1, 1]} : vector<14x32xf32> to vector<14x8xf32>
    %410 = arith.maximumf %408, %409 : vector<14x8xf32>
    %411 = arith.maximumf %407, %410 : vector<14x8xf32>
    %412 = vector.broadcast %2 : vector<1x8xf32> to vector<14x8xf32>
    %413 = arith.addf %411, %412 : vector<14x8xf32>
    %cst_188 = arith.constant 0.000000e+00 : f32
    %414 = vector.broadcast %cst_188 : f32 to vector<14x8xf32>
    %415 = arith.maximumf %413, %414 : vector<14x8xf32>
    %416 = vector.extract_strided_slice %415 {offsets = [0, 0], sizes = [7, 8], strides = [1, 1]} : vector<14x8xf32> to vector<7x8xf32>
    %417 = tpu.concatenate %416, %17 in 0 : vector<7x8xf32>, vector<1x8xf32> -> vector<8x8xf32>
    %c8_189 = arith.constant 8 : index
    %c0_190 = arith.constant 0 : index
    %c0_191 = arith.constant 0 : index
    %418 = vector.load %arg10[%c8_189, %c0_190, %c0_191] : memref<16x8x8xf32, #tpu.memory_space<vmem>>, vector<1x8x8xf32>
    %419 = vector.shape_cast %418 : vector<1x8x8xf32> to vector<8x8xf32>
    %420 = vector.shape_cast %417 : vector<8x8xf32> to vector<1x8x8xf32>
    tpu.vector_store %arg10[%c8_189, %c0_190, %c0_191], %420 {strides = array<i32>} : memref<16x8x8xf32, #tpu.memory_space<vmem>>, vector<1x8x8xf32>,
    %421 = vector.extract_strided_slice %415 {offsets = [7, 0], sizes = [7, 8], strides = [1, 1]} : vector<14x8xf32> to vector<7x8xf32>
    %422 = tpu.concatenate %17, %421 in 0 : vector<1x8xf32>, vector<7x8xf32> -> vector<8x8xf32>
    %c8_192 = arith.constant 8 : index
    %c0_193 = arith.constant 0 : index
    %c0_194 = arith.constant 0 : index
    %423 = vector.load %arg9[%c8_192, %c0_193, %c0_194] : memref<16x8x8xf32, #tpu.memory_space<vmem>>, vector<1x8x8xf32>
    %424 = vector.shape_cast %423 : vector<1x8x8xf32> to vector<8x8xf32>
    %425 = vector.shape_cast %422 : vector<8x8xf32> to vector<1x8x8xf32>
    tpu.vector_store %arg9[%c8_192, %c0_193, %c0_194], %425 {strides = array<i32>} : memref<16x8x8xf32, #tpu.memory_space<vmem>>, vector<1x8x8xf32>,
    %c0_195 = arith.constant 0 : index
    %c16_196 = arith.constant 16 : index
    %c0_197 = arith.constant 0 : index
    %c0_198 = arith.constant 0 : index
    %426 = vector.load %arg1[%c0_195, %c16_196, %c0_197, %c0_198] : memref<1x30x8x4xf32, #tpu.memory_space<vmem>>, vector<1x1x8x4xf32>
    %427 = vector.shape_cast %426 : vector<1x1x8x4xf32> to vector<8x4xf32>
    %428 = vector.extract_strided_slice %427 {offsets = [0, 0], sizes = [7, 4], strides = [1, 1]} : vector<8x4xf32> to vector<7x4xf32>
    %429 = vector.extract_strided_slice %427 {offsets = [0, 2], sizes = [7, 2], strides = [1, 1]} : vector<8x4xf32> to vector<7x2xf32>
    %430 = vector.extract_strided_slice %427 {offsets = [1, 0], sizes = [7, 2], strides = [1, 1]} : vector<8x4xf32> to vector<7x2xf32>
    %431 = tpu.concatenate %429, %430 in 1 : vector<7x2xf32>, vector<7x2xf32> -> vector<7x4xf32>
    %432 = tpu.concatenate %428, %431 in 0 : vector<7x4xf32>, vector<7x4xf32> -> vector<14x4xf32>
    %c0_199 = arith.constant 0 : index
    %c17_200 = arith.constant 17 : index
    %c0_201 = arith.constant 0 : index
    %c0_202 = arith.constant 0 : index
    %433 = vector.load %arg1[%c0_199, %c17_200, %c0_201, %c0_202] : memref<1x30x8x4xf32, #tpu.memory_space<vmem>>, vector<1x1x8x4xf32>
    %434 = vector.shape_cast %433 : vector<1x1x8x4xf32> to vector<8x4xf32>
    %435 = vector.extract_strided_slice %434 {offsets = [0, 0], sizes = [7, 4], strides = [1, 1]} : vector<8x4xf32> to vector<7x4xf32>
    %436 = vector.extract_strided_slice %434 {offsets = [0, 2], sizes = [7, 2], strides = [1, 1]} : vector<8x4xf32> to vector<7x2xf32>
    %437 = vector.extract_strided_slice %434 {offsets = [1, 0], sizes = [7, 2], strides = [1, 1]} : vector<8x4xf32> to vector<7x2xf32>
    %438 = tpu.concatenate %436, %437 in 1 : vector<7x2xf32>, vector<7x2xf32> -> vector<7x4xf32>
    %439 = tpu.concatenate %435, %438 in 0 : vector<7x4xf32>, vector<7x4xf32> -> vector<14x4xf32>
    %c0_203 = arith.constant 0 : index
    %c18 = arith.constant 18 : index
    %c0_204 = arith.constant 0 : index
    %c0_205 = arith.constant 0 : index
    %440 = vector.load %arg1[%c0_203, %c18, %c0_204, %c0_205] : memref<1x30x8x4xf32, #tpu.memory_space<vmem>>, vector<1x1x8x4xf32>
    %441 = vector.shape_cast %440 : vector<1x1x8x4xf32> to vector<8x4xf32>
    %442 = vector.extract_strided_slice %441 {offsets = [0, 0], sizes = [7, 4], strides = [1, 1]} : vector<8x4xf32> to vector<7x4xf32>
    %443 = vector.extract_strided_slice %441 {offsets = [0, 2], sizes = [7, 2], strides = [1, 1]} : vector<8x4xf32> to vector<7x2xf32>
    %444 = vector.extract_strided_slice %441 {offsets = [1, 0], sizes = [7, 2], strides = [1, 1]} : vector<8x4xf32> to vector<7x2xf32>
    %445 = tpu.concatenate %443, %444 in 1 : vector<7x2xf32>, vector<7x2xf32> -> vector<7x4xf32>
    %446 = tpu.concatenate %442, %445 in 0 : vector<7x4xf32>, vector<7x4xf32> -> vector<14x4xf32>
    %c0_206 = arith.constant 0 : index
    %c19 = arith.constant 19 : index
    %c0_207 = arith.constant 0 : index
    %c0_208 = arith.constant 0 : index
    %447 = vector.load %arg1[%c0_206, %c19, %c0_207, %c0_208] : memref<1x30x8x4xf32, #tpu.memory_space<vmem>>, vector<1x1x8x4xf32>
    %448 = vector.shape_cast %447 : vector<1x1x8x4xf32> to vector<8x4xf32>
    %449 = vector.extract_strided_slice %448 {offsets = [0, 0], sizes = [7, 4], strides = [1, 1]} : vector<8x4xf32> to vector<7x4xf32>
    %450 = vector.extract_strided_slice %448 {offsets = [0, 2], sizes = [7, 2], strides = [1, 1]} : vector<8x4xf32> to vector<7x2xf32>
    %451 = vector.extract_strided_slice %448 {offsets = [1, 0], sizes = [7, 2], strides = [1, 1]} : vector<8x4xf32> to vector<7x2xf32>
    %452 = tpu.concatenate %450, %451 in 1 : vector<7x2xf32>, vector<7x2xf32> -> vector<7x4xf32>
    %453 = tpu.concatenate %449, %452 in 0 : vector<7x4xf32>, vector<7x4xf32> -> vector<14x4xf32>
    %454 = tpu.concatenate %432, %439, %446, %453 in 1 : vector<14x4xf32>, vector<14x4xf32>, vector<14x4xf32>, vector<14x4xf32> -> vector<14x16xf32>
    %cst_209 = arith.constant dense<0.000000e+00> : vector<14x32xf32>
    %455 = tpu.matmul %454, %0, %cst_209 {dimension_numbers = #tpu.dot_dimension_numbers<[1], [0], [0], [1], [0, 0, 1, 1], [], []>} : vector<14x16xf32>, vector<16x32xf32>, vector<14x32xf32> -> vector<14x32xf32>
    %456 = vector.extract_strided_slice %455 {offsets = [0, 0], sizes = [14, 8], strides = [1, 1]} : vector<14x32xf32> to vector<14x8xf32>
    %457 = vector.extract_strided_slice %455 {offsets = [0, 8], sizes = [14, 8], strides = [1, 1]} : vector<14x32xf32> to vector<14x8xf32>
    %458 = arith.maximumf %456, %457 : vector<14x8xf32>
    %459 = vector.extract_strided_slice %455 {offsets = [0, 16], sizes = [14, 8], strides = [1, 1]} : vector<14x32xf32> to vector<14x8xf32>
    %460 = vector.extract_strided_slice %455 {offsets = [0, 24], sizes = [14, 8], strides = [1, 1]} : vector<14x32xf32> to vector<14x8xf32>
    %461 = arith.maximumf %459, %460 : vector<14x8xf32>
    %462 = arith.maximumf %458, %461 : vector<14x8xf32>
    %463 = vector.broadcast %2 : vector<1x8xf32> to vector<14x8xf32>
    %464 = arith.addf %462, %463 : vector<14x8xf32>
    %cst_210 = arith.constant 0.000000e+00 : f32
    %465 = vector.broadcast %cst_210 : f32 to vector<14x8xf32>
    %466 = arith.maximumf %464, %465 : vector<14x8xf32>
    %467 = vector.extract_strided_slice %466 {offsets = [0, 0], sizes = [7, 8], strides = [1, 1]} : vector<14x8xf32> to vector<7x8xf32>
    %468 = tpu.concatenate %467, %17 in 0 : vector<7x8xf32>, vector<1x8xf32> -> vector<8x8xf32>
    %c9_211 = arith.constant 9 : index
    %c0_212 = arith.constant 0 : index
    %c0_213 = arith.constant 0 : index
    %469 = vector.load %arg10[%c9_211, %c0_212, %c0_213] : memref<16x8x8xf32, #tpu.memory_space<vmem>>, vector<1x8x8xf32>
    %470 = vector.shape_cast %469 : vector<1x8x8xf32> to vector<8x8xf32>
    %471 = vector.shape_cast %468 : vector<8x8xf32> to vector<1x8x8xf32>
    tpu.vector_store %arg10[%c9_211, %c0_212, %c0_213], %471 {strides = array<i32>} : memref<16x8x8xf32, #tpu.memory_space<vmem>>, vector<1x8x8xf32>,
    %472 = vector.extract_strided_slice %466 {offsets = [7, 0], sizes = [7, 8], strides = [1, 1]} : vector<14x8xf32> to vector<7x8xf32>
    %473 = tpu.concatenate %17, %472 in 0 : vector<1x8xf32>, vector<7x8xf32> -> vector<8x8xf32>
    %c9_214 = arith.constant 9 : index
    %c0_215 = arith.constant 0 : index
    %c0_216 = arith.constant 0 : index
    %474 = vector.load %arg9[%c9_214, %c0_215, %c0_216] : memref<16x8x8xf32, #tpu.memory_space<vmem>>, vector<1x8x8xf32>
    %475 = vector.shape_cast %474 : vector<1x8x8xf32> to vector<8x8xf32>
    %476 = vector.shape_cast %473 : vector<8x8xf32> to vector<1x8x8xf32>
    tpu.vector_store %arg9[%c9_214, %c0_215, %c0_216], %476 {strides = array<i32>} : memref<16x8x8xf32, #tpu.memory_space<vmem>>, vector<1x8x8xf32>,
    %c0_217 = arith.constant 0 : index
    %c18_218 = arith.constant 18 : index
    %c0_219 = arith.constant 0 : index
    %c0_220 = arith.constant 0 : index
    %477 = vector.load %arg1[%c0_217, %c18_218, %c0_219, %c0_220] : memref<1x30x8x4xf32, #tpu.memory_space<vmem>>, vector<1x1x8x4xf32>
    %478 = vector.shape_cast %477 : vector<1x1x8x4xf32> to vector<8x4xf32>
    %479 = vector.extract_strided_slice %478 {offsets = [0, 0], sizes = [7, 4], strides = [1, 1]} : vector<8x4xf32> to vector<7x4xf32>
    %480 = vector.extract_strided_slice %478 {offsets = [0, 2], sizes = [7, 2], strides = [1, 1]} : vector<8x4xf32> to vector<7x2xf32>
    %481 = vector.extract_strided_slice %478 {offsets = [1, 0], sizes = [7, 2], strides = [1, 1]} : vector<8x4xf32> to vector<7x2xf32>
    %482 = tpu.concatenate %480, %481 in 1 : vector<7x2xf32>, vector<7x2xf32> -> vector<7x4xf32>
    %483 = tpu.concatenate %479, %482 in 0 : vector<7x4xf32>, vector<7x4xf32> -> vector<14x4xf32>
    %c0_221 = arith.constant 0 : index
    %c19_222 = arith.constant 19 : index
    %c0_223 = arith.constant 0 : index
    %c0_224 = arith.constant 0 : index
    %484 = vector.load %arg1[%c0_221, %c19_222, %c0_223, %c0_224] : memref<1x30x8x4xf32, #tpu.memory_space<vmem>>, vector<1x1x8x4xf32>
    %485 = vector.shape_cast %484 : vector<1x1x8x4xf32> to vector<8x4xf32>
    %486 = vector.extract_strided_slice %485 {offsets = [0, 0], sizes = [7, 4], strides = [1, 1]} : vector<8x4xf32> to vector<7x4xf32>
    %487 = vector.extract_strided_slice %485 {offsets = [0, 2], sizes = [7, 2], strides = [1, 1]} : vector<8x4xf32> to vector<7x2xf32>
    %488 = vector.extract_strided_slice %485 {offsets = [1, 0], sizes = [7, 2], strides = [1, 1]} : vector<8x4xf32> to vector<7x2xf32>
    %489 = tpu.concatenate %487, %488 in 1 : vector<7x2xf32>, vector<7x2xf32> -> vector<7x4xf32>
    %490 = tpu.concatenate %486, %489 in 0 : vector<7x4xf32>, vector<7x4xf32> -> vector<14x4xf32>
    %c0_225 = arith.constant 0 : index
    %c20 = arith.constant 20 : index
    %c0_226 = arith.constant 0 : index
    %c0_227 = arith.constant 0 : index
    %491 = vector.load %arg1[%c0_225, %c20, %c0_226, %c0_227] : memref<1x30x8x4xf32, #tpu.memory_space<vmem>>, vector<1x1x8x4xf32>
    %492 = vector.shape_cast %491 : vector<1x1x8x4xf32> to vector<8x4xf32>
    %493 = vector.extract_strided_slice %492 {offsets = [0, 0], sizes = [7, 4], strides = [1, 1]} : vector<8x4xf32> to vector<7x4xf32>
    %494 = vector.extract_strided_slice %492 {offsets = [0, 2], sizes = [7, 2], strides = [1, 1]} : vector<8x4xf32> to vector<7x2xf32>
    %495 = vector.extract_strided_slice %492 {offsets = [1, 0], sizes = [7, 2], strides = [1, 1]} : vector<8x4xf32> to vector<7x2xf32>
    %496 = tpu.concatenate %494, %495 in 1 : vector<7x2xf32>, vector<7x2xf32> -> vector<7x4xf32>
    %497 = tpu.concatenate %493, %496 in 0 : vector<7x4xf32>, vector<7x4xf32> -> vector<14x4xf32>
    %c0_228 = arith.constant 0 : index
    %c21 = arith.constant 21 : index
    %c0_229 = arith.constant 0 : index
    %c0_230 = arith.constant 0 : index
    %498 = vector.load %arg1[%c0_228, %c21, %c0_229, %c0_230] : memref<1x30x8x4xf32, #tpu.memory_space<vmem>>, vector<1x1x8x4xf32>
    %499 = vector.shape_cast %498 : vector<1x1x8x4xf32> to vector<8x4xf32>
    %500 = vector.extract_strided_slice %499 {offsets = [0, 0], sizes = [7, 4], strides = [1, 1]} : vector<8x4xf32> to vector<7x4xf32>
    %501 = vector.extract_strided_slice %499 {offsets = [0, 2], sizes = [7, 2], strides = [1, 1]} : vector<8x4xf32> to vector<7x2xf32>
    %502 = vector.extract_strided_slice %499 {offsets = [1, 0], sizes = [7, 2], strides = [1, 1]} : vector<8x4xf32> to vector<7x2xf32>
    %503 = tpu.concatenate %501, %502 in 1 : vector<7x2xf32>, vector<7x2xf32> -> vector<7x4xf32>
    %504 = tpu.concatenate %500, %503 in 0 : vector<7x4xf32>, vector<7x4xf32> -> vector<14x4xf32>
    %505 = tpu.concatenate %483, %490, %497, %504 in 1 : vector<14x4xf32>, vector<14x4xf32>, vector<14x4xf32>, vector<14x4xf32> -> vector<14x16xf32>
    %cst_231 = arith.constant dense<0.000000e+00> : vector<14x32xf32>
    %506 = tpu.matmul %505, %0, %cst_231 {dimension_numbers = #tpu.dot_dimension_numbers<[1], [0], [0], [1], [0, 0, 1, 1], [], []>} : vector<14x16xf32>, vector<16x32xf32>, vector<14x32xf32> -> vector<14x32xf32>
    %507 = vector.extract_strided_slice %506 {offsets = [0, 0], sizes = [14, 8], strides = [1, 1]} : vector<14x32xf32> to vector<14x8xf32>
    %508 = vector.extract_strided_slice %506 {offsets = [0, 8], sizes = [14, 8], strides = [1, 1]} : vector<14x32xf32> to vector<14x8xf32>
    %509 = arith.maximumf %507, %508 : vector<14x8xf32>
    %510 = vector.extract_strided_slice %506 {offsets = [0, 16], sizes = [14, 8], strides = [1, 1]} : vector<14x32xf32> to vector<14x8xf32>
    %511 = vector.extract_strided_slice %506 {offsets = [0, 24], sizes = [14, 8], strides = [1, 1]} : vector<14x32xf32> to vector<14x8xf32>
    %512 = arith.maximumf %510, %511 : vector<14x8xf32>
    %513 = arith.maximumf %509, %512 : vector<14x8xf32>
    %514 = vector.broadcast %2 : vector<1x8xf32> to vector<14x8xf32>
    %515 = arith.addf %513, %514 : vector<14x8xf32>
    %cst_232 = arith.constant 0.000000e+00 : f32
    %516 = vector.broadcast %cst_232 : f32 to vector<14x8xf32>
    %517 = arith.maximumf %515, %516 : vector<14x8xf32>
    %518 = vector.extract_strided_slice %517 {offsets = [0, 0], sizes = [7, 8], strides = [1, 1]} : vector<14x8xf32> to vector<7x8xf32>
    %519 = tpu.concatenate %518, %17 in 0 : vector<7x8xf32>, vector<1x8xf32> -> vector<8x8xf32>
    %c10_233 = arith.constant 10 : index
    %c0_234 = arith.constant 0 : index
    %c0_235 = arith.constant 0 : index
    %520 = vector.load %arg10[%c10_233, %c0_234, %c0_235] : memref<16x8x8xf32, #tpu.memory_space<vmem>>, vector<1x8x8xf32>
    %521 = vector.shape_cast %520 : vector<1x8x8xf32> to vector<8x8xf32>
    %522 = vector.shape_cast %519 : vector<8x8xf32> to vector<1x8x8xf32>
    tpu.vector_store %arg10[%c10_233, %c0_234, %c0_235], %522 {strides = array<i32>} : memref<16x8x8xf32, #tpu.memory_space<vmem>>, vector<1x8x8xf32>,
    %523 = vector.extract_strided_slice %517 {offsets = [7, 0], sizes = [7, 8], strides = [1, 1]} : vector<14x8xf32> to vector<7x8xf32>
    %524 = tpu.concatenate %17, %523 in 0 : vector<1x8xf32>, vector<7x8xf32> -> vector<8x8xf32>
    %c10_236 = arith.constant 10 : index
    %c0_237 = arith.constant 0 : index
    %c0_238 = arith.constant 0 : index
    %525 = vector.load %arg9[%c10_236, %c0_237, %c0_238] : memref<16x8x8xf32, #tpu.memory_space<vmem>>, vector<1x8x8xf32>
    %526 = vector.shape_cast %525 : vector<1x8x8xf32> to vector<8x8xf32>
    %527 = vector.shape_cast %524 : vector<8x8xf32> to vector<1x8x8xf32>
    tpu.vector_store %arg9[%c10_236, %c0_237, %c0_238], %527 {strides = array<i32>} : memref<16x8x8xf32, #tpu.memory_space<vmem>>, vector<1x8x8xf32>,
    %c0_239 = arith.constant 0 : index
    %c20_240 = arith.constant 20 : index
    %c0_241 = arith.constant 0 : index
    %c0_242 = arith.constant 0 : index
    %528 = vector.load %arg1[%c0_239, %c20_240, %c0_241, %c0_242] : memref<1x30x8x4xf32, #tpu.memory_space<vmem>>, vector<1x1x8x4xf32>
    %529 = vector.shape_cast %528 : vector<1x1x8x4xf32> to vector<8x4xf32>
    %530 = vector.extract_strided_slice %529 {offsets = [0, 0], sizes = [7, 4], strides = [1, 1]} : vector<8x4xf32> to vector<7x4xf32>
    %531 = vector.extract_strided_slice %529 {offsets = [0, 2], sizes = [7, 2], strides = [1, 1]} : vector<8x4xf32> to vector<7x2xf32>
    %532 = vector.extract_strided_slice %529 {offsets = [1, 0], sizes = [7, 2], strides = [1, 1]} : vector<8x4xf32> to vector<7x2xf32>
    %533 = tpu.concatenate %531, %532 in 1 : vector<7x2xf32>, vector<7x2xf32> -> vector<7x4xf32>
    %534 = tpu.concatenate %530, %533 in 0 : vector<7x4xf32>, vector<7x4xf32> -> vector<14x4xf32>
    %c0_243 = arith.constant 0 : index
    %c21_244 = arith.constant 21 : index
    %c0_245 = arith.constant 0 : index
    %c0_246 = arith.constant 0 : index
    %535 = vector.load %arg1[%c0_243, %c21_244, %c0_245, %c0_246] : memref<1x30x8x4xf32, #tpu.memory_space<vmem>>, vector<1x1x8x4xf32>
    %536 = vector.shape_cast %535 : vector<1x1x8x4xf32> to vector<8x4xf32>
    %537 = vector.extract_strided_slice %536 {offsets = [0, 0], sizes = [7, 4], strides = [1, 1]} : vector<8x4xf32> to vector<7x4xf32>
    %538 = vector.extract_strided_slice %536 {offsets = [0, 2], sizes = [7, 2], strides = [1, 1]} : vector<8x4xf32> to vector<7x2xf32>
    %539 = vector.extract_strided_slice %536 {offsets = [1, 0], sizes = [7, 2], strides = [1, 1]} : vector<8x4xf32> to vector<7x2xf32>
    %540 = tpu.concatenate %538, %539 in 1 : vector<7x2xf32>, vector<7x2xf32> -> vector<7x4xf32>
    %541 = tpu.concatenate %537, %540 in 0 : vector<7x4xf32>, vector<7x4xf32> -> vector<14x4xf32>
    %c0_247 = arith.constant 0 : index
    %c22 = arith.constant 22 : index
    %c0_248 = arith.constant 0 : index
    %c0_249 = arith.constant 0 : index
    %542 = vector.load %arg1[%c0_247, %c22, %c0_248, %c0_249] : memref<1x30x8x4xf32, #tpu.memory_space<vmem>>, vector<1x1x8x4xf32>
    %543 = vector.shape_cast %542 : vector<1x1x8x4xf32> to vector<8x4xf32>
    %544 = vector.extract_strided_slice %543 {offsets = [0, 0], sizes = [7, 4], strides = [1, 1]} : vector<8x4xf32> to vector<7x4xf32>
    %545 = vector.extract_strided_slice %543 {offsets = [0, 2], sizes = [7, 2], strides = [1, 1]} : vector<8x4xf32> to vector<7x2xf32>
    %546 = vector.extract_strided_slice %543 {offsets = [1, 0], sizes = [7, 2], strides = [1, 1]} : vector<8x4xf32> to vector<7x2xf32>
    %547 = tpu.concatenate %545, %546 in 1 : vector<7x2xf32>, vector<7x2xf32> -> vector<7x4xf32>
    %548 = tpu.concatenate %544, %547 in 0 : vector<7x4xf32>, vector<7x4xf32> -> vector<14x4xf32>
    %c0_250 = arith.constant 0 : index
    %c23 = arith.constant 23 : index
    %c0_251 = arith.constant 0 : index
    %c0_252 = arith.constant 0 : index
    %549 = vector.load %arg1[%c0_250, %c23, %c0_251, %c0_252] : memref<1x30x8x4xf32, #tpu.memory_space<vmem>>, vector<1x1x8x4xf32>
    %550 = vector.shape_cast %549 : vector<1x1x8x4xf32> to vector<8x4xf32>
    %551 = vector.extract_strided_slice %550 {offsets = [0, 0], sizes = [7, 4], strides = [1, 1]} : vector<8x4xf32> to vector<7x4xf32>
    %552 = vector.extract_strided_slice %550 {offsets = [0, 2], sizes = [7, 2], strides = [1, 1]} : vector<8x4xf32> to vector<7x2xf32>
    %553 = vector.extract_strided_slice %550 {offsets = [1, 0], sizes = [7, 2], strides = [1, 1]} : vector<8x4xf32> to vector<7x2xf32>
    %554 = tpu.concatenate %552, %553 in 1 : vector<7x2xf32>, vector<7x2xf32> -> vector<7x4xf32>
    %555 = tpu.concatenate %551, %554 in 0 : vector<7x4xf32>, vector<7x4xf32> -> vector<14x4xf32>
    %556 = tpu.concatenate %534, %541, %548, %555 in 1 : vector<14x4xf32>, vector<14x4xf32>, vector<14x4xf32>, vector<14x4xf32> -> vector<14x16xf32>
    %cst_253 = arith.constant dense<0.000000e+00> : vector<14x32xf32>
    %557 = tpu.matmul %556, %0, %cst_253 {dimension_numbers = #tpu.dot_dimension_numbers<[1], [0], [0], [1], [0, 0, 1, 1], [], []>} : vector<14x16xf32>, vector<16x32xf32>, vector<14x32xf32> -> vector<14x32xf32>
    %558 = vector.extract_strided_slice %557 {offsets = [0, 0], sizes = [14, 8], strides = [1, 1]} : vector<14x32xf32> to vector<14x8xf32>
    %559 = vector.extract_strided_slice %557 {offsets = [0, 8], sizes = [14, 8], strides = [1, 1]} : vector<14x32xf32> to vector<14x8xf32>
    %560 = arith.maximumf %558, %559 : vector<14x8xf32>
    %561 = vector.extract_strided_slice %557 {offsets = [0, 16], sizes = [14, 8], strides = [1, 1]} : vector<14x32xf32> to vector<14x8xf32>
    %562 = vector.extract_strided_slice %557 {offsets = [0, 24], sizes = [14, 8], strides = [1, 1]} : vector<14x32xf32> to vector<14x8xf32>
    %563 = arith.maximumf %561, %562 : vector<14x8xf32>
    %564 = arith.maximumf %560, %563 : vector<14x8xf32>
    %565 = vector.broadcast %2 : vector<1x8xf32> to vector<14x8xf32>
    %566 = arith.addf %564, %565 : vector<14x8xf32>
    %cst_254 = arith.constant 0.000000e+00 : f32
    %567 = vector.broadcast %cst_254 : f32 to vector<14x8xf32>
    %568 = arith.maximumf %566, %567 : vector<14x8xf32>
    %569 = vector.extract_strided_slice %568 {offsets = [0, 0], sizes = [7, 8], strides = [1, 1]} : vector<14x8xf32> to vector<7x8xf32>
    %570 = tpu.concatenate %569, %17 in 0 : vector<7x8xf32>, vector<1x8xf32> -> vector<8x8xf32>
    %c11_255 = arith.constant 11 : index
    %c0_256 = arith.constant 0 : index
    %c0_257 = arith.constant 0 : index
    %571 = vector.load %arg10[%c11_255, %c0_256, %c0_257] : memref<16x8x8xf32, #tpu.memory_space<vmem>>, vector<1x8x8xf32>
    %572 = vector.shape_cast %571 : vector<1x8x8xf32> to vector<8x8xf32>
    %573 = vector.shape_cast %570 : vector<8x8xf32> to vector<1x8x8xf32>
    tpu.vector_store %arg10[%c11_255, %c0_256, %c0_257], %573 {strides = array<i32>} : memref<16x8x8xf32, #tpu.memory_space<vmem>>, vector<1x8x8xf32>,
    %574 = vector.extract_strided_slice %568 {offsets = [7, 0], sizes = [7, 8], strides = [1, 1]} : vector<14x8xf32> to vector<7x8xf32>
    %575 = tpu.concatenate %17, %574 in 0 : vector<1x8xf32>, vector<7x8xf32> -> vector<8x8xf32>
    %c11_258 = arith.constant 11 : index
    %c0_259 = arith.constant 0 : index
    %c0_260 = arith.constant 0 : index
    %576 = vector.load %arg9[%c11_258, %c0_259, %c0_260] : memref<16x8x8xf32, #tpu.memory_space<vmem>>, vector<1x8x8xf32>
    %577 = vector.shape_cast %576 : vector<1x8x8xf32> to vector<8x8xf32>
    %578 = vector.shape_cast %575 : vector<8x8xf32> to vector<1x8x8xf32>
    tpu.vector_store %arg9[%c11_258, %c0_259, %c0_260], %578 {strides = array<i32>} : memref<16x8x8xf32, #tpu.memory_space<vmem>>, vector<1x8x8xf32>,
    %c0_261 = arith.constant 0 : index
    %c22_262 = arith.constant 22 : index
    %c0_263 = arith.constant 0 : index
    %c0_264 = arith.constant 0 : index
    %579 = vector.load %arg1[%c0_261, %c22_262, %c0_263, %c0_264] : memref<1x30x8x4xf32, #tpu.memory_space<vmem>>, vector<1x1x8x4xf32>
    %580 = vector.shape_cast %579 : vector<1x1x8x4xf32> to vector<8x4xf32>
    %581 = vector.extract_strided_slice %580 {offsets = [0, 0], sizes = [7, 4], strides = [1, 1]} : vector<8x4xf32> to vector<7x4xf32>
    %582 = vector.extract_strided_slice %580 {offsets = [0, 2], sizes = [7, 2], strides = [1, 1]} : vector<8x4xf32> to vector<7x2xf32>
    %583 = vector.extract_strided_slice %580 {offsets = [1, 0], sizes = [7, 2], strides = [1, 1]} : vector<8x4xf32> to vector<7x2xf32>
    %584 = tpu.concatenate %582, %583 in 1 : vector<7x2xf32>, vector<7x2xf32> -> vector<7x4xf32>
    %585 = tpu.concatenate %581, %584 in 0 : vector<7x4xf32>, vector<7x4xf32> -> vector<14x4xf32>
    %c0_265 = arith.constant 0 : index
    %c23_266 = arith.constant 23 : index
    %c0_267 = arith.constant 0 : index
    %c0_268 = arith.constant 0 : index
    %586 = vector.load %arg1[%c0_265, %c23_266, %c0_267, %c0_268] : memref<1x30x8x4xf32, #tpu.memory_space<vmem>>, vector<1x1x8x4xf32>
    %587 = vector.shape_cast %586 : vector<1x1x8x4xf32> to vector<8x4xf32>
    %588 = vector.extract_strided_slice %587 {offsets = [0, 0], sizes = [7, 4], strides = [1, 1]} : vector<8x4xf32> to vector<7x4xf32>
    %589 = vector.extract_strided_slice %587 {offsets = [0, 2], sizes = [7, 2], strides = [1, 1]} : vector<8x4xf32> to vector<7x2xf32>
    %590 = vector.extract_strided_slice %587 {offsets = [1, 0], sizes = [7, 2], strides = [1, 1]} : vector<8x4xf32> to vector<7x2xf32>
    %591 = tpu.concatenate %589, %590 in 1 : vector<7x2xf32>, vector<7x2xf32> -> vector<7x4xf32>
    %592 = tpu.concatenate %588, %591 in 0 : vector<7x4xf32>, vector<7x4xf32> -> vector<14x4xf32>
    %c0_269 = arith.constant 0 : index
    %c24 = arith.constant 24 : index
    %c0_270 = arith.constant 0 : index
    %c0_271 = arith.constant 0 : index
    %593 = vector.load %arg1[%c0_269, %c24, %c0_270, %c0_271] : memref<1x30x8x4xf32, #tpu.memory_space<vmem>>, vector<1x1x8x4xf32>
    %594 = vector.shape_cast %593 : vector<1x1x8x4xf32> to vector<8x4xf32>
    %595 = vector.extract_strided_slice %594 {offsets = [0, 0], sizes = [7, 4], strides = [1, 1]} : vector<8x4xf32> to vector<7x4xf32>
    %596 = vector.extract_strided_slice %594 {offsets = [0, 2], sizes = [7, 2], strides = [1, 1]} : vector<8x4xf32> to vector<7x2xf32>
    %597 = vector.extract_strided_slice %594 {offsets = [1, 0], sizes = [7, 2], strides = [1, 1]} : vector<8x4xf32> to vector<7x2xf32>
    %598 = tpu.concatenate %596, %597 in 1 : vector<7x2xf32>, vector<7x2xf32> -> vector<7x4xf32>
    %599 = tpu.concatenate %595, %598 in 0 : vector<7x4xf32>, vector<7x4xf32> -> vector<14x4xf32>
    %c0_272 = arith.constant 0 : index
    %c25 = arith.constant 25 : index
    %c0_273 = arith.constant 0 : index
    %c0_274 = arith.constant 0 : index
    %600 = vector.load %arg1[%c0_272, %c25, %c0_273, %c0_274] : memref<1x30x8x4xf32, #tpu.memory_space<vmem>>, vector<1x1x8x4xf32>
    %601 = vector.shape_cast %600 : vector<1x1x8x4xf32> to vector<8x4xf32>
    %602 = vector.extract_strided_slice %601 {offsets = [0, 0], sizes = [7, 4], strides = [1, 1]} : vector<8x4xf32> to vector<7x4xf32>
    %603 = vector.extract_strided_slice %601 {offsets = [0, 2], sizes = [7, 2], strides = [1, 1]} : vector<8x4xf32> to vector<7x2xf32>
    %604 = vector.extract_strided_slice %601 {offsets = [1, 0], sizes = [7, 2], strides = [1, 1]} : vector<8x4xf32> to vector<7x2xf32>
    %605 = tpu.concatenate %603, %604 in 1 : vector<7x2xf32>, vector<7x2xf32> -> vector<7x4xf32>
    %606 = tpu.concatenate %602, %605 in 0 : vector<7x4xf32>, vector<7x4xf32> -> vector<14x4xf32>
    %607 = tpu.concatenate %585, %592, %599, %606 in 1 : vector<14x4xf32>, vector<14x4xf32>, vector<14x4xf32>, vector<14x4xf32> -> vector<14x16xf32>
    %cst_275 = arith.constant dense<0.000000e+00> : vector<14x32xf32>
    %608 = tpu.matmul %607, %0, %cst_275 {dimension_numbers = #tpu.dot_dimension_numbers<[1], [0], [0], [1], [0, 0, 1, 1], [], []>} : vector<14x16xf32>, vector<16x32xf32>, vector<14x32xf32> -> vector<14x32xf32>
    %609 = vector.extract_strided_slice %608 {offsets = [0, 0], sizes = [14, 8], strides = [1, 1]} : vector<14x32xf32> to vector<14x8xf32>
    %610 = vector.extract_strided_slice %608 {offsets = [0, 8], sizes = [14, 8], strides = [1, 1]} : vector<14x32xf32> to vector<14x8xf32>
    %611 = arith.maximumf %609, %610 : vector<14x8xf32>
    %612 = vector.extract_strided_slice %608 {offsets = [0, 16], sizes = [14, 8], strides = [1, 1]} : vector<14x32xf32> to vector<14x8xf32>
    %613 = vector.extract_strided_slice %608 {offsets = [0, 24], sizes = [14, 8], strides = [1, 1]} : vector<14x32xf32> to vector<14x8xf32>
    %614 = arith.maximumf %612, %613 : vector<14x8xf32>
    %615 = arith.maximumf %611, %614 : vector<14x8xf32>
    %616 = vector.broadcast %2 : vector<1x8xf32> to vector<14x8xf32>
    %617 = arith.addf %615, %616 : vector<14x8xf32>
    %cst_276 = arith.constant 0.000000e+00 : f32
    %618 = vector.broadcast %cst_276 : f32 to vector<14x8xf32>
    %619 = arith.maximumf %617, %618 : vector<14x8xf32>
    %620 = vector.extract_strided_slice %619 {offsets = [0, 0], sizes = [7, 8], strides = [1, 1]} : vector<14x8xf32> to vector<7x8xf32>
    %621 = tpu.concatenate %620, %17 in 0 : vector<7x8xf32>, vector<1x8xf32> -> vector<8x8xf32>
    %c12_277 = arith.constant 12 : index
    %c0_278 = arith.constant 0 : index
    %c0_279 = arith.constant 0 : index
    %622 = vector.load %arg10[%c12_277, %c0_278, %c0_279] : memref<16x8x8xf32, #tpu.memory_space<vmem>>, vector<1x8x8xf32>
    %623 = vector.shape_cast %622 : vector<1x8x8xf32> to vector<8x8xf32>
    %624 = vector.shape_cast %621 : vector<8x8xf32> to vector<1x8x8xf32>
    tpu.vector_store %arg10[%c12_277, %c0_278, %c0_279], %624 {strides = array<i32>} : memref<16x8x8xf32, #tpu.memory_space<vmem>>, vector<1x8x8xf32>,
    %625 = vector.extract_strided_slice %619 {offsets = [7, 0], sizes = [7, 8], strides = [1, 1]} : vector<14x8xf32> to vector<7x8xf32>
    %626 = tpu.concatenate %17, %625 in 0 : vector<1x8xf32>, vector<7x8xf32> -> vector<8x8xf32>
    %c12_280 = arith.constant 12 : index
    %c0_281 = arith.constant 0 : index
    %c0_282 = arith.constant 0 : index
    %627 = vector.load %arg9[%c12_280, %c0_281, %c0_282] : memref<16x8x8xf32, #tpu.memory_space<vmem>>, vector<1x8x8xf32>
    %628 = vector.shape_cast %627 : vector<1x8x8xf32> to vector<8x8xf32>
    %629 = vector.shape_cast %626 : vector<8x8xf32> to vector<1x8x8xf32>
    tpu.vector_store %arg9[%c12_280, %c0_281, %c0_282], %629 {strides = array<i32>} : memref<16x8x8xf32, #tpu.memory_space<vmem>>, vector<1x8x8xf32>,
    %c0_283 = arith.constant 0 : index
    %c24_284 = arith.constant 24 : index
    %c0_285 = arith.constant 0 : index
    %c0_286 = arith.constant 0 : index
    %630 = vector.load %arg1[%c0_283, %c24_284, %c0_285, %c0_286] : memref<1x30x8x4xf32, #tpu.memory_space<vmem>>, vector<1x1x8x4xf32>
    %631 = vector.shape_cast %630 : vector<1x1x8x4xf32> to vector<8x4xf32>
    %632 = vector.extract_strided_slice %631 {offsets = [0, 0], sizes = [7, 4], strides = [1, 1]} : vector<8x4xf32> to vector<7x4xf32>
    %633 = vector.extract_strided_slice %631 {offsets = [0, 2], sizes = [7, 2], strides = [1, 1]} : vector<8x4xf32> to vector<7x2xf32>
    %634 = vector.extract_strided_slice %631 {offsets = [1, 0], sizes = [7, 2], strides = [1, 1]} : vector<8x4xf32> to vector<7x2xf32>
    %635 = tpu.concatenate %633, %634 in 1 : vector<7x2xf32>, vector<7x2xf32> -> vector<7x4xf32>
    %636 = tpu.concatenate %632, %635 in 0 : vector<7x4xf32>, vector<7x4xf32> -> vector<14x4xf32>
    %c0_287 = arith.constant 0 : index
    %c25_288 = arith.constant 25 : index
    %c0_289 = arith.constant 0 : index
    %c0_290 = arith.constant 0 : index
    %637 = vector.load %arg1[%c0_287, %c25_288, %c0_289, %c0_290] : memref<1x30x8x4xf32, #tpu.memory_space<vmem>>, vector<1x1x8x4xf32>
    %638 = vector.shape_cast %637 : vector<1x1x8x4xf32> to vector<8x4xf32>
    %639 = vector.extract_strided_slice %638 {offsets = [0, 0], sizes = [7, 4], strides = [1, 1]} : vector<8x4xf32> to vector<7x4xf32>
    %640 = vector.extract_strided_slice %638 {offsets = [0, 2], sizes = [7, 2], strides = [1, 1]} : vector<8x4xf32> to vector<7x2xf32>
    %641 = vector.extract_strided_slice %638 {offsets = [1, 0], sizes = [7, 2], strides = [1, 1]} : vector<8x4xf32> to vector<7x2xf32>
    %642 = tpu.concatenate %640, %641 in 1 : vector<7x2xf32>, vector<7x2xf32> -> vector<7x4xf32>
    %643 = tpu.concatenate %639, %642 in 0 : vector<7x4xf32>, vector<7x4xf32> -> vector<14x4xf32>
    %c0_291 = arith.constant 0 : index
    %c26 = arith.constant 26 : index
    %c0_292 = arith.constant 0 : index
    %c0_293 = arith.constant 0 : index
    %644 = vector.load %arg1[%c0_291, %c26, %c0_292, %c0_293] : memref<1x30x8x4xf32, #tpu.memory_space<vmem>>, vector<1x1x8x4xf32>
    %645 = vector.shape_cast %644 : vector<1x1x8x4xf32> to vector<8x4xf32>
    %646 = vector.extract_strided_slice %645 {offsets = [0, 0], sizes = [7, 4], strides = [1, 1]} : vector<8x4xf32> to vector<7x4xf32>
    %647 = vector.extract_strided_slice %645 {offsets = [0, 2], sizes = [7, 2], strides = [1, 1]} : vector<8x4xf32> to vector<7x2xf32>
    %648 = vector.extract_strided_slice %645 {offsets = [1, 0], sizes = [7, 2], strides = [1, 1]} : vector<8x4xf32> to vector<7x2xf32>
    %649 = tpu.concatenate %647, %648 in 1 : vector<7x2xf32>, vector<7x2xf32> -> vector<7x4xf32>
    %650 = tpu.concatenate %646, %649 in 0 : vector<7x4xf32>, vector<7x4xf32> -> vector<14x4xf32>
    %c0_294 = arith.constant 0 : index
    %c27 = arith.constant 27 : index
    %c0_295 = arith.constant 0 : index
    %c0_296 = arith.constant 0 : index
    %651 = vector.load %arg1[%c0_294, %c27, %c0_295, %c0_296] : memref<1x30x8x4xf32, #tpu.memory_space<vmem>>, vector<1x1x8x4xf32>
    %652 = vector.shape_cast %651 : vector<1x1x8x4xf32> to vector<8x4xf32>
    %653 = vector.extract_strided_slice %652 {offsets = [0, 0], sizes = [7, 4], strides = [1, 1]} : vector<8x4xf32> to vector<7x4xf32>
    %654 = vector.extract_strided_slice %652 {offsets = [0, 2], sizes = [7, 2], strides = [1, 1]} : vector<8x4xf32> to vector<7x2xf32>
    %655 = vector.extract_strided_slice %652 {offsets = [1, 0], sizes = [7, 2], strides = [1, 1]} : vector<8x4xf32> to vector<7x2xf32>
    %656 = tpu.concatenate %654, %655 in 1 : vector<7x2xf32>, vector<7x2xf32> -> vector<7x4xf32>
    %657 = tpu.concatenate %653, %656 in 0 : vector<7x4xf32>, vector<7x4xf32> -> vector<14x4xf32>
    %658 = tpu.concatenate %636, %643, %650, %657 in 1 : vector<14x4xf32>, vector<14x4xf32>, vector<14x4xf32>, vector<14x4xf32> -> vector<14x16xf32>
    %cst_297 = arith.constant dense<0.000000e+00> : vector<14x32xf32>
    %659 = tpu.matmul %658, %0, %cst_297 {dimension_numbers = #tpu.dot_dimension_numbers<[1], [0], [0], [1], [0, 0, 1, 1], [], []>} : vector<14x16xf32>, vector<16x32xf32>, vector<14x32xf32> -> vector<14x32xf32>
    %660 = vector.extract_strided_slice %659 {offsets = [0, 0], sizes = [14, 8], strides = [1, 1]} : vector<14x32xf32> to vector<14x8xf32>
    %661 = vector.extract_strided_slice %659 {offsets = [0, 8], sizes = [14, 8], strides = [1, 1]} : vector<14x32xf32> to vector<14x8xf32>
    %662 = arith.maximumf %660, %661 : vector<14x8xf32>
    %663 = vector.extract_strided_slice %659 {offsets = [0, 16], sizes = [14, 8], strides = [1, 1]} : vector<14x32xf32> to vector<14x8xf32>
    %664 = vector.extract_strided_slice %659 {offsets = [0, 24], sizes = [14, 8], strides = [1, 1]} : vector<14x32xf32> to vector<14x8xf32>
    %665 = arith.maximumf %663, %664 : vector<14x8xf32>
    %666 = arith.maximumf %662, %665 : vector<14x8xf32>
    %667 = vector.broadcast %2 : vector<1x8xf32> to vector<14x8xf32>
    %668 = arith.addf %666, %667 : vector<14x8xf32>
    %cst_298 = arith.constant 0.000000e+00 : f32
    %669 = vector.broadcast %cst_298 : f32 to vector<14x8xf32>
    %670 = arith.maximumf %668, %669 : vector<14x8xf32>
    %671 = vector.extract_strided_slice %670 {offsets = [0, 0], sizes = [7, 8], strides = [1, 1]} : vector<14x8xf32> to vector<7x8xf32>
    %672 = tpu.concatenate %671, %17 in 0 : vector<7x8xf32>, vector<1x8xf32> -> vector<8x8xf32>
    %c13_299 = arith.constant 13 : index
    %c0_300 = arith.constant 0 : index
    %c0_301 = arith.constant 0 : index
    %673 = vector.load %arg10[%c13_299, %c0_300, %c0_301] : memref<16x8x8xf32, #tpu.memory_space<vmem>>, vector<1x8x8xf32>
    %674 = vector.shape_cast %673 : vector<1x8x8xf32> to vector<8x8xf32>
    %675 = vector.shape_cast %672 : vector<8x8xf32> to vector<1x8x8xf32>
    tpu.vector_store %arg10[%c13_299, %c0_300, %c0_301], %675 {strides = array<i32>} : memref<16x8x8xf32, #tpu.memory_space<vmem>>, vector<1x8x8xf32>,
    %676 = vector.extract_strided_slice %670 {offsets = [7, 0], sizes = [7, 8], strides = [1, 1]} : vector<14x8xf32> to vector<7x8xf32>
    %677 = tpu.concatenate %17, %676 in 0 : vector<1x8xf32>, vector<7x8xf32> -> vector<8x8xf32>
    %c13_302 = arith.constant 13 : index
    %c0_303 = arith.constant 0 : index
    %c0_304 = arith.constant 0 : index
    %678 = vector.load %arg9[%c13_302, %c0_303, %c0_304] : memref<16x8x8xf32, #tpu.memory_space<vmem>>, vector<1x8x8xf32>
    %679 = vector.shape_cast %678 : vector<1x8x8xf32> to vector<8x8xf32>
    %680 = vector.shape_cast %677 : vector<8x8xf32> to vector<1x8x8xf32>
    tpu.vector_store %arg9[%c13_302, %c0_303, %c0_304], %680 {strides = array<i32>} : memref<16x8x8xf32, #tpu.memory_space<vmem>>, vector<1x8x8xf32>,
    %c0_305 = arith.constant 0 : index
    %c26_306 = arith.constant 26 : index
    %c0_307 = arith.constant 0 : index
    %c0_308 = arith.constant 0 : index
    %681 = vector.load %arg1[%c0_305, %c26_306, %c0_307, %c0_308] : memref<1x30x8x4xf32, #tpu.memory_space<vmem>>, vector<1x1x8x4xf32>
    %682 = vector.shape_cast %681 : vector<1x1x8x4xf32> to vector<8x4xf32>
    %683 = vector.extract_strided_slice %682 {offsets = [0, 0], sizes = [7, 4], strides = [1, 1]} : vector<8x4xf32> to vector<7x4xf32>
    %684 = vector.extract_strided_slice %682 {offsets = [0, 2], sizes = [7, 2], strides = [1, 1]} : vector<8x4xf32> to vector<7x2xf32>
    %685 = vector.extract_strided_slice %682 {offsets = [1, 0], sizes = [7, 2], strides = [1, 1]} : vector<8x4xf32> to vector<7x2xf32>
    %686 = tpu.concatenate %684, %685 in 1 : vector<7x2xf32>, vector<7x2xf32> -> vector<7x4xf32>
    %687 = tpu.concatenate %683, %686 in 0 : vector<7x4xf32>, vector<7x4xf32> -> vector<14x4xf32>
    %c0_309 = arith.constant 0 : index
    %c27_310 = arith.constant 27 : index
    %c0_311 = arith.constant 0 : index
    %c0_312 = arith.constant 0 : index
    %688 = vector.load %arg1[%c0_309, %c27_310, %c0_311, %c0_312] : memref<1x30x8x4xf32, #tpu.memory_space<vmem>>, vector<1x1x8x4xf32>
    %689 = vector.shape_cast %688 : vector<1x1x8x4xf32> to vector<8x4xf32>
    %690 = vector.extract_strided_slice %689 {offsets = [0, 0], sizes = [7, 4], strides = [1, 1]} : vector<8x4xf32> to vector<7x4xf32>
    %691 = vector.extract_strided_slice %689 {offsets = [0, 2], sizes = [7, 2], strides = [1, 1]} : vector<8x4xf32> to vector<7x2xf32>
    %692 = vector.extract_strided_slice %689 {offsets = [1, 0], sizes = [7, 2], strides = [1, 1]} : vector<8x4xf32> to vector<7x2xf32>
    %693 = tpu.concatenate %691, %692 in 1 : vector<7x2xf32>, vector<7x2xf32> -> vector<7x4xf32>
    %694 = tpu.concatenate %690, %693 in 0 : vector<7x4xf32>, vector<7x4xf32> -> vector<14x4xf32>
    %c0_313 = arith.constant 0 : index
    %c28 = arith.constant 28 : index
    %c0_314 = arith.constant 0 : index
    %c0_315 = arith.constant 0 : index
    %695 = vector.load %arg1[%c0_313, %c28, %c0_314, %c0_315] : memref<1x30x8x4xf32, #tpu.memory_space<vmem>>, vector<1x1x8x4xf32>
    %696 = vector.shape_cast %695 : vector<1x1x8x4xf32> to vector<8x4xf32>
    %697 = vector.extract_strided_slice %696 {offsets = [0, 0], sizes = [7, 4], strides = [1, 1]} : vector<8x4xf32> to vector<7x4xf32>
    %698 = vector.extract_strided_slice %696 {offsets = [0, 2], sizes = [7, 2], strides = [1, 1]} : vector<8x4xf32> to vector<7x2xf32>
    %699 = vector.extract_strided_slice %696 {offsets = [1, 0], sizes = [7, 2], strides = [1, 1]} : vector<8x4xf32> to vector<7x2xf32>
    %700 = tpu.concatenate %698, %699 in 1 : vector<7x2xf32>, vector<7x2xf32> -> vector<7x4xf32>
    %701 = tpu.concatenate %697, %700 in 0 : vector<7x4xf32>, vector<7x4xf32> -> vector<14x4xf32>
    %c0_316 = arith.constant 0 : index
    %c29 = arith.constant 29 : index
    %c0_317 = arith.constant 0 : index
    %c0_318 = arith.constant 0 : index
    %702 = vector.load %arg1[%c0_316, %c29, %c0_317, %c0_318] : memref<1x30x8x4xf32, #tpu.memory_space<vmem>>, vector<1x1x8x4xf32>
    %703 = vector.shape_cast %702 : vector<1x1x8x4xf32> to vector<8x4xf32>
    %704 = vector.extract_strided_slice %703 {offsets = [0, 0], sizes = [7, 4], strides = [1, 1]} : vector<8x4xf32> to vector<7x4xf32>
    %705 = vector.extract_strided_slice %703 {offsets = [0, 2], sizes = [7, 2], strides = [1, 1]} : vector<8x4xf32> to vector<7x2xf32>
    %706 = vector.extract_strided_slice %703 {offsets = [1, 0], sizes = [7, 2], strides = [1, 1]} : vector<8x4xf32> to vector<7x2xf32>
    %707 = tpu.concatenate %705, %706 in 1 : vector<7x2xf32>, vector<7x2xf32> -> vector<7x4xf32>
    %708 = tpu.concatenate %704, %707 in 0 : vector<7x4xf32>, vector<7x4xf32> -> vector<14x4xf32>
    %709 = tpu.concatenate %687, %694, %701, %708 in 1 : vector<14x4xf32>, vector<14x4xf32>, vector<14x4xf32>, vector<14x4xf32> -> vector<14x16xf32>
    %cst_319 = arith.constant dense<0.000000e+00> : vector<14x32xf32>
    %710 = tpu.matmul %709, %0, %cst_319 {dimension_numbers = #tpu.dot_dimension_numbers<[1], [0], [0], [1], [0, 0, 1, 1], [], []>} : vector<14x16xf32>, vector<16x32xf32>, vector<14x32xf32> -> vector<14x32xf32>
    %711 = vector.extract_strided_slice %710 {offsets = [0, 0], sizes = [14, 8], strides = [1, 1]} : vector<14x32xf32> to vector<14x8xf32>
    %712 = vector.extract_strided_slice %710 {offsets = [0, 8], sizes = [14, 8], strides = [1, 1]} : vector<14x32xf32> to vector<14x8xf32>
    %713 = arith.maximumf %711, %712 : vector<14x8xf32>
    %714 = vector.extract_strided_slice %710 {offsets = [0, 16], sizes = [14, 8], strides = [1, 1]} : vector<14x32xf32> to vector<14x8xf32>
    %715 = vector.extract_strided_slice %710 {offsets = [0, 24], sizes = [14, 8], strides = [1, 1]} : vector<14x32xf32> to vector<14x8xf32>
    %716 = arith.maximumf %714, %715 : vector<14x8xf32>
    %717 = arith.maximumf %713, %716 : vector<14x8xf32>
    %718 = vector.broadcast %2 : vector<1x8xf32> to vector<14x8xf32>
    %719 = arith.addf %717, %718 : vector<14x8xf32>
    %cst_320 = arith.constant 0.000000e+00 : f32
    %720 = vector.broadcast %cst_320 : f32 to vector<14x8xf32>
    %721 = arith.maximumf %719, %720 : vector<14x8xf32>
    %722 = vector.extract_strided_slice %721 {offsets = [0, 0], sizes = [7, 8], strides = [1, 1]} : vector<14x8xf32> to vector<7x8xf32>
    %723 = tpu.concatenate %722, %17 in 0 : vector<7x8xf32>, vector<1x8xf32> -> vector<8x8xf32>
    %c14_321 = arith.constant 14 : index
    %c0_322 = arith.constant 0 : index
    %c0_323 = arith.constant 0 : index
    %724 = vector.load %arg10[%c14_321, %c0_322, %c0_323] : memref<16x8x8xf32, #tpu.memory_space<vmem>>, vector<1x8x8xf32>
    %725 = vector.shape_cast %724 : vector<1x8x8xf32> to vector<8x8xf32>
    %726 = vector.shape_cast %723 : vector<8x8xf32> to vector<1x8x8xf32>
    tpu.vector_store %arg10[%c14_321, %c0_322, %c0_323], %726 {strides = array<i32>} : memref<16x8x8xf32, #tpu.memory_space<vmem>>, vector<1x8x8xf32>,
    %727 = vector.extract_strided_slice %721 {offsets = [7, 0], sizes = [7, 8], strides = [1, 1]} : vector<14x8xf32> to vector<7x8xf32>
    %728 = tpu.concatenate %17, %727 in 0 : vector<1x8xf32>, vector<7x8xf32> -> vector<8x8xf32>
    %c14_324 = arith.constant 14 : index
    %c0_325 = arith.constant 0 : index
    %c0_326 = arith.constant 0 : index
    %729 = vector.load %arg9[%c14_324, %c0_325, %c0_326] : memref<16x8x8xf32, #tpu.memory_space<vmem>>, vector<1x8x8xf32>
    %730 = vector.shape_cast %729 : vector<1x8x8xf32> to vector<8x8xf32>
    %731 = vector.shape_cast %728 : vector<8x8xf32> to vector<1x8x8xf32>
    tpu.vector_store %arg9[%c14_324, %c0_325, %c0_326], %731 {strides = array<i32>} : memref<16x8x8xf32, #tpu.memory_space<vmem>>, vector<1x8x8xf32>,
    %c0_327 = arith.constant 0 : index
    %c0_328 = arith.constant 0 : index
    %c0_329 = arith.constant 0 : index
    %732 = vector.load %arg9[%c0_327, %c0_328, %c0_329] : memref<16x8x8xf32, #tpu.memory_space<vmem>>, vector<1x8x8xf32>
    %733 = vector.shape_cast %732 : vector<1x8x8xf32> to vector<8x8xf32>
    %c0_330 = arith.constant 0 : index
    %c0_331 = arith.constant 0 : index
    %c0_332 = arith.constant 0 : index
    %734 = vector.load %arg10[%c0_330, %c0_331, %c0_332] : memref<16x8x8xf32, #tpu.memory_space<vmem>>, vector<1x8x8xf32>
    %735 = vector.shape_cast %734 : vector<1x8x8xf32> to vector<8x8xf32>
    %736 = vector.extract_strided_slice %733 {offsets = [0, 0], sizes = [7, 8], strides = [1, 1]} : vector<8x8xf32> to vector<7x8xf32>
    %737 = vector.extract_strided_slice %735 {offsets = [0, 0], sizes = [7, 8], strides = [1, 1]} : vector<8x8xf32> to vector<7x8xf32>
    %738 = vector.extract_strided_slice %733 {offsets = [1, 0], sizes = [7, 8], strides = [1, 1]} : vector<8x8xf32> to vector<7x8xf32>
    %739 = vector.extract_strided_slice %735 {offsets = [1, 0], sizes = [7, 8], strides = [1, 1]} : vector<8x8xf32> to vector<7x8xf32>
    %c1_333 = arith.constant 1 : index
    %c0_334 = arith.constant 0 : index
    %c0_335 = arith.constant 0 : index
    %740 = vector.load %arg9[%c1_333, %c0_334, %c0_335] : memref<16x8x8xf32, #tpu.memory_space<vmem>>, vector<1x8x8xf32>
    %741 = vector.shape_cast %740 : vector<1x8x8xf32> to vector<8x8xf32>
    %c1_336 = arith.constant 1 : index
    %c0_337 = arith.constant 0 : index
    %c0_338 = arith.constant 0 : index
    %742 = vector.load %arg10[%c1_336, %c0_337, %c0_338] : memref<16x8x8xf32, #tpu.memory_space<vmem>>, vector<1x8x8xf32>
    %743 = vector.shape_cast %742 : vector<1x8x8xf32> to vector<8x8xf32>
    %744 = vector.extract_strided_slice %741 {offsets = [0, 0], sizes = [7, 8], strides = [1, 1]} : vector<8x8xf32> to vector<7x8xf32>
    %745 = vector.extract_strided_slice %743 {offsets = [0, 0], sizes = [7, 8], strides = [1, 1]} : vector<8x8xf32> to vector<7x8xf32>
    %746 = vector.extract_strided_slice %741 {offsets = [1, 0], sizes = [7, 8], strides = [1, 1]} : vector<8x8xf32> to vector<7x8xf32>
    %747 = vector.extract_strided_slice %743 {offsets = [1, 0], sizes = [7, 8], strides = [1, 1]} : vector<8x8xf32> to vector<7x8xf32>
    %c2_339 = arith.constant 2 : index
    %c0_340 = arith.constant 0 : index
    %c0_341 = arith.constant 0 : index
    %748 = vector.load %arg9[%c2_339, %c0_340, %c0_341] : memref<16x8x8xf32, #tpu.memory_space<vmem>>, vector<1x8x8xf32>
    %749 = vector.shape_cast %748 : vector<1x8x8xf32> to vector<8x8xf32>
    %c2_342 = arith.constant 2 : index
    %c0_343 = arith.constant 0 : index
    %c0_344 = arith.constant 0 : index
    %750 = vector.load %arg10[%c2_342, %c0_343, %c0_344] : memref<16x8x8xf32, #tpu.memory_space<vmem>>, vector<1x8x8xf32>
    %751 = vector.shape_cast %750 : vector<1x8x8xf32> to vector<8x8xf32>
    %752 = vector.extract_strided_slice %749 {offsets = [0, 0], sizes = [7, 8], strides = [1, 1]} : vector<8x8xf32> to vector<7x8xf32>
    %753 = vector.extract_strided_slice %751 {offsets = [0, 0], sizes = [7, 8], strides = [1, 1]} : vector<8x8xf32> to vector<7x8xf32>
    %754 = vector.extract_strided_slice %749 {offsets = [1, 0], sizes = [7, 8], strides = [1, 1]} : vector<8x8xf32> to vector<7x8xf32>
    %755 = vector.extract_strided_slice %751 {offsets = [1, 0], sizes = [7, 8], strides = [1, 1]} : vector<8x8xf32> to vector<7x8xf32>
    %c3_345 = arith.constant 3 : index
    %c0_346 = arith.constant 0 : index
    %c0_347 = arith.constant 0 : index
    %756 = vector.load %arg9[%c3_345, %c0_346, %c0_347] : memref<16x8x8xf32, #tpu.memory_space<vmem>>, vector<1x8x8xf32>
    %757 = vector.shape_cast %756 : vector<1x8x8xf32> to vector<8x8xf32>
    %c3_348 = arith.constant 3 : index
    %c0_349 = arith.constant 0 : index
    %c0_350 = arith.constant 0 : index
    %758 = vector.load %arg10[%c3_348, %c0_349, %c0_350] : memref<16x8x8xf32, #tpu.memory_space<vmem>>, vector<1x8x8xf32>
    %759 = vector.shape_cast %758 : vector<1x8x8xf32> to vector<8x8xf32>
    %760 = vector.extract_strided_slice %757 {offsets = [0, 0], sizes = [7, 8], strides = [1, 1]} : vector<8x8xf32> to vector<7x8xf32>
    %761 = vector.extract_strided_slice %759 {offsets = [0, 0], sizes = [7, 8], strides = [1, 1]} : vector<8x8xf32> to vector<7x8xf32>
    %762 = vector.extract_strided_slice %757 {offsets = [1, 0], sizes = [7, 8], strides = [1, 1]} : vector<8x8xf32> to vector<7x8xf32>
    %763 = vector.extract_strided_slice %759 {offsets = [1, 0], sizes = [7, 8], strides = [1, 1]} : vector<8x8xf32> to vector<7x8xf32>
    %764 = tpu.concatenate %736, %737, %738, %739, %744, %745, %746, %747, %752, %753, %754, %755, %760, %761, %762, %763 in 1 : vector<7x8xf32>, vector<7x8xf32>, vector<7x8xf32>, vector<7x8xf32>, vector<7x8xf32>, vector<7x8xf32>, vector<7x8xf32>, vector<7x8xf32>, vector<7x8xf32>, vector<7x8xf32>, vector<7x8xf32>, vector<7x8xf32>, vector<7x8xf32>, vector<7x8xf32>, vector<7x8xf32>, vector<7x8xf32> -> vector<7x128xf32>
    %cst_351 = arith.constant dense<0.000000e+00> : vector<7x64xf32>
    %765 = tpu.matmul %764, %1, %cst_351 {dimension_numbers = #tpu.dot_dimension_numbers<[1], [0], [0], [1], [0, 0, 1, 1], [], []>} : vector<7x128xf32>, vector<128x64xf32>, vector<7x64xf32> -> vector<7x64xf32>
    %766 = vector.extract_strided_slice %765 {offsets = [0, 0], sizes = [7, 16], strides = [1, 1]} : vector<7x64xf32> to vector<7x16xf32>
    %767 = vector.extract_strided_slice %765 {offsets = [0, 16], sizes = [7, 16], strides = [1, 1]} : vector<7x64xf32> to vector<7x16xf32>
    %768 = arith.maximumf %766, %767 : vector<7x16xf32>
    %769 = vector.extract_strided_slice %765 {offsets = [0, 32], sizes = [7, 16], strides = [1, 1]} : vector<7x64xf32> to vector<7x16xf32>
    %770 = vector.extract_strided_slice %765 {offsets = [0, 48], sizes = [7, 16], strides = [1, 1]} : vector<7x64xf32> to vector<7x16xf32>
    %771 = arith.maximumf %769, %770 : vector<7x16xf32>
    %772 = arith.maximumf %768, %771 : vector<7x16xf32>
    %773 = vector.broadcast %3 : vector<1x16xf32> to vector<7x16xf32>
    %774 = arith.addf %772, %773 : vector<7x16xf32>
    %cst_352 = arith.constant 0.000000e+00 : f32
    %775 = vector.broadcast %cst_352 : f32 to vector<7x16xf32>
    %776 = arith.maximumf %774, %775 : vector<7x16xf32>
    %c0_353 = arith.constant 0 : index
    %c0_354 = arith.constant 0 : index
    %777 = vector.load %arg11[%c0_353, %c0_354] : memref<49x16xf32, #tpu.memory_space<vmem>>, vector<7x16xf32>
    tpu.vector_store %arg11[%c0_353, %c0_354], %776 {strides = array<i32>} : memref<49x16xf32, #tpu.memory_space<vmem>>, vector<7x16xf32>,
    %c2_355 = arith.constant 2 : index
    %c0_356 = arith.constant 0 : index
    %c0_357 = arith.constant 0 : index
    %778 = vector.load %arg9[%c2_355, %c0_356, %c0_357] : memref<16x8x8xf32, #tpu.memory_space<vmem>>, vector<1x8x8xf32>
    %779 = vector.shape_cast %778 : vector<1x8x8xf32> to vector<8x8xf32>
    %c2_358 = arith.constant 2 : index
    %c0_359 = arith.constant 0 : index
    %c0_360 = arith.constant 0 : index
    %780 = vector.load %arg10[%c2_358, %c0_359, %c0_360] : memref<16x8x8xf32, #tpu.memory_space<vmem>>, vector<1x8x8xf32>
    %781 = vector.shape_cast %780 : vector<1x8x8xf32> to vector<8x8xf32>
    %782 = vector.extract_strided_slice %779 {offsets = [0, 0], sizes = [7, 8], strides = [1, 1]} : vector<8x8xf32> to vector<7x8xf32>
    %783 = vector.extract_strided_slice %781 {offsets = [0, 0], sizes = [7, 8], strides = [1, 1]} : vector<8x8xf32> to vector<7x8xf32>
    %784 = vector.extract_strided_slice %779 {offsets = [1, 0], sizes = [7, 8], strides = [1, 1]} : vector<8x8xf32> to vector<7x8xf32>
    %785 = vector.extract_strided_slice %781 {offsets = [1, 0], sizes = [7, 8], strides = [1, 1]} : vector<8x8xf32> to vector<7x8xf32>
    %c3_361 = arith.constant 3 : index
    %c0_362 = arith.constant 0 : index
    %c0_363 = arith.constant 0 : index
    %786 = vector.load %arg9[%c3_361, %c0_362, %c0_363] : memref<16x8x8xf32, #tpu.memory_space<vmem>>, vector<1x8x8xf32>
    %787 = vector.shape_cast %786 : vector<1x8x8xf32> to vector<8x8xf32>
    %c3_364 = arith.constant 3 : index
    %c0_365 = arith.constant 0 : index
    %c0_366 = arith.constant 0 : index
    %788 = vector.load %arg10[%c3_364, %c0_365, %c0_366] : memref<16x8x8xf32, #tpu.memory_space<vmem>>, vector<1x8x8xf32>
    %789 = vector.shape_cast %788 : vector<1x8x8xf32> to vector<8x8xf32>
    %790 = vector.extract_strided_slice %787 {offsets = [0, 0], sizes = [7, 8], strides = [1, 1]} : vector<8x8xf32> to vector<7x8xf32>
    %791 = vector.extract_strided_slice %789 {offsets = [0, 0], sizes = [7, 8], strides = [1, 1]} : vector<8x8xf32> to vector<7x8xf32>
    %792 = vector.extract_strided_slice %787 {offsets = [1, 0], sizes = [7, 8], strides = [1, 1]} : vector<8x8xf32> to vector<7x8xf32>
    %793 = vector.extract_strided_slice %789 {offsets = [1, 0], sizes = [7, 8], strides = [1, 1]} : vector<8x8xf32> to vector<7x8xf32>
    %c4_367 = arith.constant 4 : index
    %c0_368 = arith.constant 0 : index
    %c0_369 = arith.constant 0 : index
    %794 = vector.load %arg9[%c4_367, %c0_368, %c0_369] : memref<16x8x8xf32, #tpu.memory_space<vmem>>, vector<1x8x8xf32>
    %795 = vector.shape_cast %794 : vector<1x8x8xf32> to vector<8x8xf32>
    %c4_370 = arith.constant 4 : index
    %c0_371 = arith.constant 0 : index
    %c0_372 = arith.constant 0 : index
    %796 = vector.load %arg10[%c4_370, %c0_371, %c0_372] : memref<16x8x8xf32, #tpu.memory_space<vmem>>, vector<1x8x8xf32>
    %797 = vector.shape_cast %796 : vector<1x8x8xf32> to vector<8x8xf32>
    %798 = vector.extract_strided_slice %795 {offsets = [0, 0], sizes = [7, 8], strides = [1, 1]} : vector<8x8xf32> to vector<7x8xf32>
    %799 = vector.extract_strided_slice %797 {offsets = [0, 0], sizes = [7, 8], strides = [1, 1]} : vector<8x8xf32> to vector<7x8xf32>
    %800 = vector.extract_strided_slice %795 {offsets = [1, 0], sizes = [7, 8], strides = [1, 1]} : vector<8x8xf32> to vector<7x8xf32>
    %801 = vector.extract_strided_slice %797 {offsets = [1, 0], sizes = [7, 8], strides = [1, 1]} : vector<8x8xf32> to vector<7x8xf32>
    %c5_373 = arith.constant 5 : index
    %c0_374 = arith.constant 0 : index
    %c0_375 = arith.constant 0 : index
    %802 = vector.load %arg9[%c5_373, %c0_374, %c0_375] : memref<16x8x8xf32, #tpu.memory_space<vmem>>, vector<1x8x8xf32>
    %803 = vector.shape_cast %802 : vector<1x8x8xf32> to vector<8x8xf32>
    %c5_376 = arith.constant 5 : index
    %c0_377 = arith.constant 0 : index
    %c0_378 = arith.constant 0 : index
    %804 = vector.load %arg10[%c5_376, %c0_377, %c0_378] : memref<16x8x8xf32, #tpu.memory_space<vmem>>, vector<1x8x8xf32>
    %805 = vector.shape_cast %804 : vector<1x8x8xf32> to vector<8x8xf32>
    %806 = vector.extract_strided_slice %803 {offsets = [0, 0], sizes = [7, 8], strides = [1, 1]} : vector<8x8xf32> to vector<7x8xf32>
    %807 = vector.extract_strided_slice %805 {offsets = [0, 0], sizes = [7, 8], strides = [1, 1]} : vector<8x8xf32> to vector<7x8xf32>
    %808 = vector.extract_strided_slice %803 {offsets = [1, 0], sizes = [7, 8], strides = [1, 1]} : vector<8x8xf32> to vector<7x8xf32>
    %809 = vector.extract_strided_slice %805 {offsets = [1, 0], sizes = [7, 8], strides = [1, 1]} : vector<8x8xf32> to vector<7x8xf32>
    %810 = tpu.concatenate %782, %783, %784, %785, %790, %791, %792, %793, %798, %799, %800, %801, %806, %807, %808, %809 in 1 : vector<7x8xf32>, vector<7x8xf32>, vector<7x8xf32>, vector<7x8xf32>, vector<7x8xf32>, vector<7x8xf32>, vector<7x8xf32>, vector<7x8xf32>, vector<7x8xf32>, vector<7x8xf32>, vector<7x8xf32>, vector<7x8xf32>, vector<7x8xf32>, vector<7x8xf32>, vector<7x8xf32>, vector<7x8xf32> -> vector<7x128xf32>
    %cst_379 = arith.constant dense<0.000000e+00> : vector<7x64xf32>
    %811 = tpu.matmul %810, %1, %cst_379 {dimension_numbers = #tpu.dot_dimension_numbers<[1], [0], [0], [1], [0, 0, 1, 1], [], []>} : vector<7x128xf32>, vector<128x64xf32>, vector<7x64xf32> -> vector<7x64xf32>
    %812 = vector.extract_strided_slice %811 {offsets = [0, 0], sizes = [7, 16], strides = [1, 1]} : vector<7x64xf32> to vector<7x16xf32>
    %813 = vector.extract_strided_slice %811 {offsets = [0, 16], sizes = [7, 16], strides = [1, 1]} : vector<7x64xf32> to vector<7x16xf32>
    %814 = arith.maximumf %812, %813 : vector<7x16xf32>
    %815 = vector.extract_strided_slice %811 {offsets = [0, 32], sizes = [7, 16], strides = [1, 1]} : vector<7x64xf32> to vector<7x16xf32>
    %816 = vector.extract_strided_slice %811 {offsets = [0, 48], sizes = [7, 16], strides = [1, 1]} : vector<7x64xf32> to vector<7x16xf32>
    %817 = arith.maximumf %815, %816 : vector<7x16xf32>
    %818 = arith.maximumf %814, %817 : vector<7x16xf32>
    %819 = vector.broadcast %3 : vector<1x16xf32> to vector<7x16xf32>
    %820 = arith.addf %818, %819 : vector<7x16xf32>
    %cst_380 = arith.constant 0.000000e+00 : f32
    %821 = vector.broadcast %cst_380 : f32 to vector<7x16xf32>
    %822 = arith.maximumf %820, %821 : vector<7x16xf32>
    %c7_381 = arith.constant 7 : index
    %c0_382 = arith.constant 0 : index
    %823 = vector.load %arg11[%c7_381, %c0_382] : memref<49x16xf32, #tpu.memory_space<vmem>>, vector<7x16xf32>
    tpu.vector_store %arg11[%c7_381, %c0_382], %822 {strides = array<i32>} : memref<49x16xf32, #tpu.memory_space<vmem>>, vector<7x16xf32>,
    %c4_383 = arith.constant 4 : index
    %c0_384 = arith.constant 0 : index
    %c0_385 = arith.constant 0 : index
    %824 = vector.load %arg9[%c4_383, %c0_384, %c0_385] : memref<16x8x8xf32, #tpu.memory_space<vmem>>, vector<1x8x8xf32>
    %825 = vector.shape_cast %824 : vector<1x8x8xf32> to vector<8x8xf32>
    %c4_386 = arith.constant 4 : index
    %c0_387 = arith.constant 0 : index
    %c0_388 = arith.constant 0 : index
    %826 = vector.load %arg10[%c4_386, %c0_387, %c0_388] : memref<16x8x8xf32, #tpu.memory_space<vmem>>, vector<1x8x8xf32>
    %827 = vector.shape_cast %826 : vector<1x8x8xf32> to vector<8x8xf32>
    %828 = vector.extract_strided_slice %825 {offsets = [0, 0], sizes = [7, 8], strides = [1, 1]} : vector<8x8xf32> to vector<7x8xf32>
    %829 = vector.extract_strided_slice %827 {offsets = [0, 0], sizes = [7, 8], strides = [1, 1]} : vector<8x8xf32> to vector<7x8xf32>
    %830 = vector.extract_strided_slice %825 {offsets = [1, 0], sizes = [7, 8], strides = [1, 1]} : vector<8x8xf32> to vector<7x8xf32>
    %831 = vector.extract_strided_slice %827 {offsets = [1, 0], sizes = [7, 8], strides = [1, 1]} : vector<8x8xf32> to vector<7x8xf32>
    %c5_389 = arith.constant 5 : index
    %c0_390 = arith.constant 0 : index
    %c0_391 = arith.constant 0 : index
    %832 = vector.load %arg9[%c5_389, %c0_390, %c0_391] : memref<16x8x8xf32, #tpu.memory_space<vmem>>, vector<1x8x8xf32>
    %833 = vector.shape_cast %832 : vector<1x8x8xf32> to vector<8x8xf32>
    %c5_392 = arith.constant 5 : index
    %c0_393 = arith.constant 0 : index
    %c0_394 = arith.constant 0 : index
    %834 = vector.load %arg10[%c5_392, %c0_393, %c0_394] : memref<16x8x8xf32, #tpu.memory_space<vmem>>, vector<1x8x8xf32>
    %835 = vector.shape_cast %834 : vector<1x8x8xf32> to vector<8x8xf32>
    %836 = vector.extract_strided_slice %833 {offsets = [0, 0], sizes = [7, 8], strides = [1, 1]} : vector<8x8xf32> to vector<7x8xf32>
    %837 = vector.extract_strided_slice %835 {offsets = [0, 0], sizes = [7, 8], strides = [1, 1]} : vector<8x8xf32> to vector<7x8xf32>
    %838 = vector.extract_strided_slice %833 {offsets = [1, 0], sizes = [7, 8], strides = [1, 1]} : vector<8x8xf32> to vector<7x8xf32>
    %839 = vector.extract_strided_slice %835 {offsets = [1, 0], sizes = [7, 8], strides = [1, 1]} : vector<8x8xf32> to vector<7x8xf32>
    %c6_395 = arith.constant 6 : index
    %c0_396 = arith.constant 0 : index
    %c0_397 = arith.constant 0 : index
    %840 = vector.load %arg9[%c6_395, %c0_396, %c0_397] : memref<16x8x8xf32, #tpu.memory_space<vmem>>, vector<1x8x8xf32>
    %841 = vector.shape_cast %840 : vector<1x8x8xf32> to vector<8x8xf32>
    %c6_398 = arith.constant 6 : index
    %c0_399 = arith.constant 0 : index
    %c0_400 = arith.constant 0 : index
    %842 = vector.load %arg10[%c6_398, %c0_399, %c0_400] : memref<16x8x8xf32, #tpu.memory_space<vmem>>, vector<1x8x8xf32>
    %843 = vector.shape_cast %842 : vector<1x8x8xf32> to vector<8x8xf32>
    %844 = vector.extract_strided_slice %841 {offsets = [0, 0], sizes = [7, 8], strides = [1, 1]} : vector<8x8xf32> to vector<7x8xf32>
    %845 = vector.extract_strided_slice %843 {offsets = [0, 0], sizes = [7, 8], strides = [1, 1]} : vector<8x8xf32> to vector<7x8xf32>
    %846 = vector.extract_strided_slice %841 {offsets = [1, 0], sizes = [7, 8], strides = [1, 1]} : vector<8x8xf32> to vector<7x8xf32>
    %847 = vector.extract_strided_slice %843 {offsets = [1, 0], sizes = [7, 8], strides = [1, 1]} : vector<8x8xf32> to vector<7x8xf32>
    %c7_401 = arith.constant 7 : index
    %c0_402 = arith.constant 0 : index
    %c0_403 = arith.constant 0 : index
    %848 = vector.load %arg9[%c7_401, %c0_402, %c0_403] : memref<16x8x8xf32, #tpu.memory_space<vmem>>, vector<1x8x8xf32>
    %849 = vector.shape_cast %848 : vector<1x8x8xf32> to vector<8x8xf32>
    %c7_404 = arith.constant 7 : index
    %c0_405 = arith.constant 0 : index
    %c0_406 = arith.constant 0 : index
    %850 = vector.load %arg10[%c7_404, %c0_405, %c0_406] : memref<16x8x8xf32, #tpu.memory_space<vmem>>, vector<1x8x8xf32>
    %851 = vector.shape_cast %850 : vector<1x8x8xf32> to vector<8x8xf32>
    %852 = vector.extract_strided_slice %849 {offsets = [0, 0], sizes = [7, 8], strides = [1, 1]} : vector<8x8xf32> to vector<7x8xf32>
    %853 = vector.extract_strided_slice %851 {offsets = [0, 0], sizes = [7, 8], strides = [1, 1]} : vector<8x8xf32> to vector<7x8xf32>
    %854 = vector.extract_strided_slice %849 {offsets = [1, 0], sizes = [7, 8], strides = [1, 1]} : vector<8x8xf32> to vector<7x8xf32>
    %855 = vector.extract_strided_slice %851 {offsets = [1, 0], sizes = [7, 8], strides = [1, 1]} : vector<8x8xf32> to vector<7x8xf32>
    %856 = tpu.concatenate %828, %829, %830, %831, %836, %837, %838, %839, %844, %845, %846, %847, %852, %853, %854, %855 in 1 : vector<7x8xf32>, vector<7x8xf32>, vector<7x8xf32>, vector<7x8xf32>, vector<7x8xf32>, vector<7x8xf32>, vector<7x8xf32>, vector<7x8xf32>, vector<7x8xf32>, vector<7x8xf32>, vector<7x8xf32>, vector<7x8xf32>, vector<7x8xf32>, vector<7x8xf32>, vector<7x8xf32>, vector<7x8xf32> -> vector<7x128xf32>
    %cst_407 = arith.constant dense<0.000000e+00> : vector<7x64xf32>
    %857 = tpu.matmul %856, %1, %cst_407 {dimension_numbers = #tpu.dot_dimension_numbers<[1], [0], [0], [1], [0, 0, 1, 1], [], []>} : vector<7x128xf32>, vector<128x64xf32>, vector<7x64xf32> -> vector<7x64xf32>
    %858 = vector.extract_strided_slice %857 {offsets = [0, 0], sizes = [7, 16], strides = [1, 1]} : vector<7x64xf32> to vector<7x16xf32>
    %859 = vector.extract_strided_slice %857 {offsets = [0, 16], sizes = [7, 16], strides = [1, 1]} : vector<7x64xf32> to vector<7x16xf32>
    %860 = arith.maximumf %858, %859 : vector<7x16xf32>
    %861 = vector.extract_strided_slice %857 {offsets = [0, 32], sizes = [7, 16], strides = [1, 1]} : vector<7x64xf32> to vector<7x16xf32>
    %862 = vector.extract_strided_slice %857 {offsets = [0, 48], sizes = [7, 16], strides = [1, 1]} : vector<7x64xf32> to vector<7x16xf32>
    %863 = arith.maximumf %861, %862 : vector<7x16xf32>
    %864 = arith.maximumf %860, %863 : vector<7x16xf32>
    %865 = vector.broadcast %3 : vector<1x16xf32> to vector<7x16xf32>
    %866 = arith.addf %864, %865 : vector<7x16xf32>
    %cst_408 = arith.constant 0.000000e+00 : f32
    %867 = vector.broadcast %cst_408 : f32 to vector<7x16xf32>
    %868 = arith.maximumf %866, %867 : vector<7x16xf32>
    %c14_409 = arith.constant 14 : index
    %c0_410 = arith.constant 0 : index
    %869 = vector.load %arg11[%c14_409, %c0_410] : memref<49x16xf32, #tpu.memory_space<vmem>>, vector<7x16xf32>
    tpu.vector_store %arg11[%c14_409, %c0_410], %868 {strides = array<i32>} : memref<49x16xf32, #tpu.memory_space<vmem>>, vector<7x16xf32>,
    %c6_411 = arith.constant 6 : index
    %c0_412 = arith.constant 0 : index
    %c0_413 = arith.constant 0 : index
    %870 = vector.load %arg9[%c6_411, %c0_412, %c0_413] : memref<16x8x8xf32, #tpu.memory_space<vmem>>, vector<1x8x8xf32>
    %871 = vector.shape_cast %870 : vector<1x8x8xf32> to vector<8x8xf32>
    %c6_414 = arith.constant 6 : index
    %c0_415 = arith.constant 0 : index
    %c0_416 = arith.constant 0 : index
    %872 = vector.load %arg10[%c6_414, %c0_415, %c0_416] : memref<16x8x8xf32, #tpu.memory_space<vmem>>, vector<1x8x8xf32>
    %873 = vector.shape_cast %872 : vector<1x8x8xf32> to vector<8x8xf32>
    %874 = vector.extract_strided_slice %871 {offsets = [0, 0], sizes = [7, 8], strides = [1, 1]} : vector<8x8xf32> to vector<7x8xf32>
    %875 = vector.extract_strided_slice %873 {offsets = [0, 0], sizes = [7, 8], strides = [1, 1]} : vector<8x8xf32> to vector<7x8xf32>
    %876 = vector.extract_strided_slice %871 {offsets = [1, 0], sizes = [7, 8], strides = [1, 1]} : vector<8x8xf32> to vector<7x8xf32>
    %877 = vector.extract_strided_slice %873 {offsets = [1, 0], sizes = [7, 8], strides = [1, 1]} : vector<8x8xf32> to vector<7x8xf32>
    %c7_417 = arith.constant 7 : index
    %c0_418 = arith.constant 0 : index
    %c0_419 = arith.constant 0 : index
    %878 = vector.load %arg9[%c7_417, %c0_418, %c0_419] : memref<16x8x8xf32, #tpu.memory_space<vmem>>, vector<1x8x8xf32>
    %879 = vector.shape_cast %878 : vector<1x8x8xf32> to vector<8x8xf32>
    %c7_420 = arith.constant 7 : index
    %c0_421 = arith.constant 0 : index
    %c0_422 = arith.constant 0 : index
    %880 = vector.load %arg10[%c7_420, %c0_421, %c0_422] : memref<16x8x8xf32, #tpu.memory_space<vmem>>, vector<1x8x8xf32>
    %881 = vector.shape_cast %880 : vector<1x8x8xf32> to vector<8x8xf32>
    %882 = vector.extract_strided_slice %879 {offsets = [0, 0], sizes = [7, 8], strides = [1, 1]} : vector<8x8xf32> to vector<7x8xf32>
    %883 = vector.extract_strided_slice %881 {offsets = [0, 0], sizes = [7, 8], strides = [1, 1]} : vector<8x8xf32> to vector<7x8xf32>
    %884 = vector.extract_strided_slice %879 {offsets = [1, 0], sizes = [7, 8], strides = [1, 1]} : vector<8x8xf32> to vector<7x8xf32>
    %885 = vector.extract_strided_slice %881 {offsets = [1, 0], sizes = [7, 8], strides = [1, 1]} : vector<8x8xf32> to vector<7x8xf32>
    %c8_423 = arith.constant 8 : index
    %c0_424 = arith.constant 0 : index
    %c0_425 = arith.constant 0 : index
    %886 = vector.load %arg9[%c8_423, %c0_424, %c0_425] : memref<16x8x8xf32, #tpu.memory_space<vmem>>, vector<1x8x8xf32>
    %887 = vector.shape_cast %886 : vector<1x8x8xf32> to vector<8x8xf32>
    %c8_426 = arith.constant 8 : index
    %c0_427 = arith.constant 0 : index
    %c0_428 = arith.constant 0 : index
    %888 = vector.load %arg10[%c8_426, %c0_427, %c0_428] : memref<16x8x8xf32, #tpu.memory_space<vmem>>, vector<1x8x8xf32>
    %889 = vector.shape_cast %888 : vector<1x8x8xf32> to vector<8x8xf32>
    %890 = vector.extract_strided_slice %887 {offsets = [0, 0], sizes = [7, 8], strides = [1, 1]} : vector<8x8xf32> to vector<7x8xf32>
    %891 = vector.extract_strided_slice %889 {offsets = [0, 0], sizes = [7, 8], strides = [1, 1]} : vector<8x8xf32> to vector<7x8xf32>
    %892 = vector.extract_strided_slice %887 {offsets = [1, 0], sizes = [7, 8], strides = [1, 1]} : vector<8x8xf32> to vector<7x8xf32>
    %893 = vector.extract_strided_slice %889 {offsets = [1, 0], sizes = [7, 8], strides = [1, 1]} : vector<8x8xf32> to vector<7x8xf32>
    %c9_429 = arith.constant 9 : index
    %c0_430 = arith.constant 0 : index
    %c0_431 = arith.constant 0 : index
    %894 = vector.load %arg9[%c9_429, %c0_430, %c0_431] : memref<16x8x8xf32, #tpu.memory_space<vmem>>, vector<1x8x8xf32>
    %895 = vector.shape_cast %894 : vector<1x8x8xf32> to vector<8x8xf32>
    %c9_432 = arith.constant 9 : index
    %c0_433 = arith.constant 0 : index
    %c0_434 = arith.constant 0 : index
    %896 = vector.load %arg10[%c9_432, %c0_433, %c0_434] : memref<16x8x8xf32, #tpu.memory_space<vmem>>, vector<1x8x8xf32>
    %897 = vector.shape_cast %896 : vector<1x8x8xf32> to vector<8x8xf32>
    %898 = vector.extract_strided_slice %895 {offsets = [0, 0], sizes = [7, 8], strides = [1, 1]} : vector<8x8xf32> to vector<7x8xf32>
    %899 = vector.extract_strided_slice %897 {offsets = [0, 0], sizes = [7, 8], strides = [1, 1]} : vector<8x8xf32> to vector<7x8xf32>
    %900 = vector.extract_strided_slice %895 {offsets = [1, 0], sizes = [7, 8], strides = [1, 1]} : vector<8x8xf32> to vector<7x8xf32>
    %901 = vector.extract_strided_slice %897 {offsets = [1, 0], sizes = [7, 8], strides = [1, 1]} : vector<8x8xf32> to vector<7x8xf32>
    %902 = tpu.concatenate %874, %875, %876, %877, %882, %883, %884, %885, %890, %891, %892, %893, %898, %899, %900, %901 in 1 : vector<7x8xf32>, vector<7x8xf32>, vector<7x8xf32>, vector<7x8xf32>, vector<7x8xf32>, vector<7x8xf32>, vector<7x8xf32>, vector<7x8xf32>, vector<7x8xf32>, vector<7x8xf32>, vector<7x8xf32>, vector<7x8xf32>, vector<7x8xf32>, vector<7x8xf32>, vector<7x8xf32>, vector<7x8xf32> -> vector<7x128xf32>
    %cst_435 = arith.constant dense<0.000000e+00> : vector<7x64xf32>
    %903 = tpu.matmul %902, %1, %cst_435 {dimension_numbers = #tpu.dot_dimension_numbers<[1], [0], [0], [1], [0, 0, 1, 1], [], []>} : vector<7x128xf32>, vector<128x64xf32>, vector<7x64xf32> -> vector<7x64xf32>
    %904 = vector.extract_strided_slice %903 {offsets = [0, 0], sizes = [7, 16], strides = [1, 1]} : vector<7x64xf32> to vector<7x16xf32>
    %905 = vector.extract_strided_slice %903 {offsets = [0, 16], sizes = [7, 16], strides = [1, 1]} : vector<7x64xf32> to vector<7x16xf32>
    %906 = arith.maximumf %904, %905 : vector<7x16xf32>
    %907 = vector.extract_strided_slice %903 {offsets = [0, 32], sizes = [7, 16], strides = [1, 1]} : vector<7x64xf32> to vector<7x16xf32>
    %908 = vector.extract_strided_slice %903 {offsets = [0, 48], sizes = [7, 16], strides = [1, 1]} : vector<7x64xf32> to vector<7x16xf32>
    %909 = arith.maximumf %907, %908 : vector<7x16xf32>
    %910 = arith.maximumf %906, %909 : vector<7x16xf32>
    %911 = vector.broadcast %3 : vector<1x16xf32> to vector<7x16xf32>
    %912 = arith.addf %910, %911 : vector<7x16xf32>
    %cst_436 = arith.constant 0.000000e+00 : f32
    %913 = vector.broadcast %cst_436 : f32 to vector<7x16xf32>
    %914 = arith.maximumf %912, %913 : vector<7x16xf32>
    %c21_437 = arith.constant 21 : index
    %c0_438 = arith.constant 0 : index
    %915 = vector.load %arg11[%c21_437, %c0_438] : memref<49x16xf32, #tpu.memory_space<vmem>>, vector<7x16xf32>
    tpu.vector_store %arg11[%c21_437, %c0_438], %914 {strides = array<i32>} : memref<49x16xf32, #tpu.memory_space<vmem>>, vector<7x16xf32>,
    %c8_439 = arith.constant 8 : index
    %c0_440 = arith.constant 0 : index
    %c0_441 = arith.constant 0 : index
    %916 = vector.load %arg9[%c8_439, %c0_440, %c0_441] : memref<16x8x8xf32, #tpu.memory_space<vmem>>, vector<1x8x8xf32>
    %917 = vector.shape_cast %916 : vector<1x8x8xf32> to vector<8x8xf32>
    %c8_442 = arith.constant 8 : index
    %c0_443 = arith.constant 0 : index
    %c0_444 = arith.constant 0 : index
    %918 = vector.load %arg10[%c8_442, %c0_443, %c0_444] : memref<16x8x8xf32, #tpu.memory_space<vmem>>, vector<1x8x8xf32>
    %919 = vector.shape_cast %918 : vector<1x8x8xf32> to vector<8x8xf32>
    %920 = vector.extract_strided_slice %917 {offsets = [0, 0], sizes = [7, 8], strides = [1, 1]} : vector<8x8xf32> to vector<7x8xf32>
    %921 = vector.extract_strided_slice %919 {offsets = [0, 0], sizes = [7, 8], strides = [1, 1]} : vector<8x8xf32> to vector<7x8xf32>
    %922 = vector.extract_strided_slice %917 {offsets = [1, 0], sizes = [7, 8], strides = [1, 1]} : vector<8x8xf32> to vector<7x8xf32>
    %923 = vector.extract_strided_slice %919 {offsets = [1, 0], sizes = [7, 8], strides = [1, 1]} : vector<8x8xf32> to vector<7x8xf32>
    %c9_445 = arith.constant 9 : index
    %c0_446 = arith.constant 0 : index
    %c0_447 = arith.constant 0 : index
    %924 = vector.load %arg9[%c9_445, %c0_446, %c0_447] : memref<16x8x8xf32, #tpu.memory_space<vmem>>, vector<1x8x8xf32>
    %925 = vector.shape_cast %924 : vector<1x8x8xf32> to vector<8x8xf32>
    %c9_448 = arith.constant 9 : index
    %c0_449 = arith.constant 0 : index
    %c0_450 = arith.constant 0 : index
    %926 = vector.load %arg10[%c9_448, %c0_449, %c0_450] : memref<16x8x8xf32, #tpu.memory_space<vmem>>, vector<1x8x8xf32>
    %927 = vector.shape_cast %926 : vector<1x8x8xf32> to vector<8x8xf32>
    %928 = vector.extract_strided_slice %925 {offsets = [0, 0], sizes = [7, 8], strides = [1, 1]} : vector<8x8xf32> to vector<7x8xf32>
    %929 = vector.extract_strided_slice %927 {offsets = [0, 0], sizes = [7, 8], strides = [1, 1]} : vector<8x8xf32> to vector<7x8xf32>
    %930 = vector.extract_strided_slice %925 {offsets = [1, 0], sizes = [7, 8], strides = [1, 1]} : vector<8x8xf32> to vector<7x8xf32>
    %931 = vector.extract_strided_slice %927 {offsets = [1, 0], sizes = [7, 8], strides = [1, 1]} : vector<8x8xf32> to vector<7x8xf32>
    %c10_451 = arith.constant 10 : index
    %c0_452 = arith.constant 0 : index
    %c0_453 = arith.constant 0 : index
    %932 = vector.load %arg9[%c10_451, %c0_452, %c0_453] : memref<16x8x8xf32, #tpu.memory_space<vmem>>, vector<1x8x8xf32>
    %933 = vector.shape_cast %932 : vector<1x8x8xf32> to vector<8x8xf32>
    %c10_454 = arith.constant 10 : index
    %c0_455 = arith.constant 0 : index
    %c0_456 = arith.constant 0 : index
    %934 = vector.load %arg10[%c10_454, %c0_455, %c0_456] : memref<16x8x8xf32, #tpu.memory_space<vmem>>, vector<1x8x8xf32>
    %935 = vector.shape_cast %934 : vector<1x8x8xf32> to vector<8x8xf32>
    %936 = vector.extract_strided_slice %933 {offsets = [0, 0], sizes = [7, 8], strides = [1, 1]} : vector<8x8xf32> to vector<7x8xf32>
    %937 = vector.extract_strided_slice %935 {offsets = [0, 0], sizes = [7, 8], strides = [1, 1]} : vector<8x8xf32> to vector<7x8xf32>
    %938 = vector.extract_strided_slice %933 {offsets = [1, 0], sizes = [7, 8], strides = [1, 1]} : vector<8x8xf32> to vector<7x8xf32>
    %939 = vector.extract_strided_slice %935 {offsets = [1, 0], sizes = [7, 8], strides = [1, 1]} : vector<8x8xf32> to vector<7x8xf32>
    %c11_457 = arith.constant 11 : index
    %c0_458 = arith.constant 0 : index
    %c0_459 = arith.constant 0 : index
    %940 = vector.load %arg9[%c11_457, %c0_458, %c0_459] : memref<16x8x8xf32, #tpu.memory_space<vmem>>, vector<1x8x8xf32>
    %941 = vector.shape_cast %940 : vector<1x8x8xf32> to vector<8x8xf32>
    %c11_460 = arith.constant 11 : index
    %c0_461 = arith.constant 0 : index
    %c0_462 = arith.constant 0 : index
    %942 = vector.load %arg10[%c11_460, %c0_461, %c0_462] : memref<16x8x8xf32, #tpu.memory_space<vmem>>, vector<1x8x8xf32>
    %943 = vector.shape_cast %942 : vector<1x8x8xf32> to vector<8x8xf32>
    %944 = vector.extract_strided_slice %941 {offsets = [0, 0], sizes = [7, 8], strides = [1, 1]} : vector<8x8xf32> to vector<7x8xf32>
    %945 = vector.extract_strided_slice %943 {offsets = [0, 0], sizes = [7, 8], strides = [1, 1]} : vector<8x8xf32> to vector<7x8xf32>
    %946 = vector.extract_strided_slice %941 {offsets = [1, 0], sizes = [7, 8], strides = [1, 1]} : vector<8x8xf32> to vector<7x8xf32>
    %947 = vector.extract_strided_slice %943 {offsets = [1, 0], sizes = [7, 8], strides = [1, 1]} : vector<8x8xf32> to vector<7x8xf32>
    %948 = tpu.concatenate %920, %921, %922, %923, %928, %929, %930, %931, %936, %937, %938, %939, %944, %945, %946, %947 in 1 : vector<7x8xf32>, vector<7x8xf32>, vector<7x8xf32>, vector<7x8xf32>, vector<7x8xf32>, vector<7x8xf32>, vector<7x8xf32>, vector<7x8xf32>, vector<7x8xf32>, vector<7x8xf32>, vector<7x8xf32>, vector<7x8xf32>, vector<7x8xf32>, vector<7x8xf32>, vector<7x8xf32>, vector<7x8xf32> -> vector<7x128xf32>
    %cst_463 = arith.constant dense<0.000000e+00> : vector<7x64xf32>
    %949 = tpu.matmul %948, %1, %cst_463 {dimension_numbers = #tpu.dot_dimension_numbers<[1], [0], [0], [1], [0, 0, 1, 1], [], []>} : vector<7x128xf32>, vector<128x64xf32>, vector<7x64xf32> -> vector<7x64xf32>
    %950 = vector.extract_strided_slice %949 {offsets = [0, 0], sizes = [7, 16], strides = [1, 1]} : vector<7x64xf32> to vector<7x16xf32>
    %951 = vector.extract_strided_slice %949 {offsets = [0, 16], sizes = [7, 16], strides = [1, 1]} : vector<7x64xf32> to vector<7x16xf32>
    %952 = arith.maximumf %950, %951 : vector<7x16xf32>
    %953 = vector.extract_strided_slice %949 {offsets = [0, 32], sizes = [7, 16], strides = [1, 1]} : vector<7x64xf32> to vector<7x16xf32>
    %954 = vector.extract_strided_slice %949 {offsets = [0, 48], sizes = [7, 16], strides = [1, 1]} : vector<7x64xf32> to vector<7x16xf32>
    %955 = arith.maximumf %953, %954 : vector<7x16xf32>
    %956 = arith.maximumf %952, %955 : vector<7x16xf32>
    %957 = vector.broadcast %3 : vector<1x16xf32> to vector<7x16xf32>
    %958 = arith.addf %956, %957 : vector<7x16xf32>
    %cst_464 = arith.constant 0.000000e+00 : f32
    %959 = vector.broadcast %cst_464 : f32 to vector<7x16xf32>
    %960 = arith.maximumf %958, %959 : vector<7x16xf32>
    %c28_465 = arith.constant 28 : index
    %c0_466 = arith.constant 0 : index
    %961 = vector.load %arg11[%c28_465, %c0_466] : memref<49x16xf32, #tpu.memory_space<vmem>>, vector<7x16xf32>
    tpu.vector_store %arg11[%c28_465, %c0_466], %960 {strides = array<i32>} : memref<49x16xf32, #tpu.memory_space<vmem>>, vector<7x16xf32>,
    %c10_467 = arith.constant 10 : index
    %c0_468 = arith.constant 0 : index
    %c0_469 = arith.constant 0 : index
    %962 = vector.load %arg9[%c10_467, %c0_468, %c0_469] : memref<16x8x8xf32, #tpu.memory_space<vmem>>, vector<1x8x8xf32>
    %963 = vector.shape_cast %962 : vector<1x8x8xf32> to vector<8x8xf32>
    %c10_470 = arith.constant 10 : index
    %c0_471 = arith.constant 0 : index
    %c0_472 = arith.constant 0 : index
    %964 = vector.load %arg10[%c10_470, %c0_471, %c0_472] : memref<16x8x8xf32, #tpu.memory_space<vmem>>, vector<1x8x8xf32>
    %965 = vector.shape_cast %964 : vector<1x8x8xf32> to vector<8x8xf32>
    %966 = vector.extract_strided_slice %963 {offsets = [0, 0], sizes = [7, 8], strides = [1, 1]} : vector<8x8xf32> to vector<7x8xf32>
    %967 = vector.extract_strided_slice %965 {offsets = [0, 0], sizes = [7, 8], strides = [1, 1]} : vector<8x8xf32> to vector<7x8xf32>
    %968 = vector.extract_strided_slice %963 {offsets = [1, 0], sizes = [7, 8], strides = [1, 1]} : vector<8x8xf32> to vector<7x8xf32>
    %969 = vector.extract_strided_slice %965 {offsets = [1, 0], sizes = [7, 8], strides = [1, 1]} : vector<8x8xf32> to vector<7x8xf32>
    %c11_473 = arith.constant 11 : index
    %c0_474 = arith.constant 0 : index
    %c0_475 = arith.constant 0 : index
    %970 = vector.load %arg9[%c11_473, %c0_474, %c0_475] : memref<16x8x8xf32, #tpu.memory_space<vmem>>, vector<1x8x8xf32>
    %971 = vector.shape_cast %970 : vector<1x8x8xf32> to vector<8x8xf32>
    %c11_476 = arith.constant 11 : index
    %c0_477 = arith.constant 0 : index
    %c0_478 = arith.constant 0 : index
    %972 = vector.load %arg10[%c11_476, %c0_477, %c0_478] : memref<16x8x8xf32, #tpu.memory_space<vmem>>, vector<1x8x8xf32>
    %973 = vector.shape_cast %972 : vector<1x8x8xf32> to vector<8x8xf32>
    %974 = vector.extract_strided_slice %971 {offsets = [0, 0], sizes = [7, 8], strides = [1, 1]} : vector<8x8xf32> to vector<7x8xf32>
    %975 = vector.extract_strided_slice %973 {offsets = [0, 0], sizes = [7, 8], strides = [1, 1]} : vector<8x8xf32> to vector<7x8xf32>
    %976 = vector.extract_strided_slice %971 {offsets = [1, 0], sizes = [7, 8], strides = [1, 1]} : vector<8x8xf32> to vector<7x8xf32>
    %977 = vector.extract_strided_slice %973 {offsets = [1, 0], sizes = [7, 8], strides = [1, 1]} : vector<8x8xf32> to vector<7x8xf32>
    %c12_479 = arith.constant 12 : index
    %c0_480 = arith.constant 0 : index
    %c0_481 = arith.constant 0 : index
    %978 = vector.load %arg9[%c12_479, %c0_480, %c0_481] : memref<16x8x8xf32, #tpu.memory_space<vmem>>, vector<1x8x8xf32>
    %979 = vector.shape_cast %978 : vector<1x8x8xf32> to vector<8x8xf32>
    %c12_482 = arith.constant 12 : index
    %c0_483 = arith.constant 0 : index
    %c0_484 = arith.constant 0 : index
    %980 = vector.load %arg10[%c12_482, %c0_483, %c0_484] : memref<16x8x8xf32, #tpu.memory_space<vmem>>, vector<1x8x8xf32>
    %981 = vector.shape_cast %980 : vector<1x8x8xf32> to vector<8x8xf32>
    %982 = vector.extract_strided_slice %979 {offsets = [0, 0], sizes = [7, 8], strides = [1, 1]} : vector<8x8xf32> to vector<7x8xf32>
    %983 = vector.extract_strided_slice %981 {offsets = [0, 0], sizes = [7, 8], strides = [1, 1]} : vector<8x8xf32> to vector<7x8xf32>
    %984 = vector.extract_strided_slice %979 {offsets = [1, 0], sizes = [7, 8], strides = [1, 1]} : vector<8x8xf32> to vector<7x8xf32>
    %985 = vector.extract_strided_slice %981 {offsets = [1, 0], sizes = [7, 8], strides = [1, 1]} : vector<8x8xf32> to vector<7x8xf32>
    %c13_485 = arith.constant 13 : index
    %c0_486 = arith.constant 0 : index
    %c0_487 = arith.constant 0 : index
    %986 = vector.load %arg9[%c13_485, %c0_486, %c0_487] : memref<16x8x8xf32, #tpu.memory_space<vmem>>, vector<1x8x8xf32>
    %987 = vector.shape_cast %986 : vector<1x8x8xf32> to vector<8x8xf32>
    %c13_488 = arith.constant 13 : index
    %c0_489 = arith.constant 0 : index
    %c0_490 = arith.constant 0 : index
    %988 = vector.load %arg10[%c13_488, %c0_489, %c0_490] : memref<16x8x8xf32, #tpu.memory_space<vmem>>, vector<1x8x8xf32>
    %989 = vector.shape_cast %988 : vector<1x8x8xf32> to vector<8x8xf32>
    %990 = vector.extract_strided_slice %987 {offsets = [0, 0], sizes = [7, 8], strides = [1, 1]} : vector<8x8xf32> to vector<7x8xf32>
    %991 = vector.extract_strided_slice %989 {offsets = [0, 0], sizes = [7, 8], strides = [1, 1]} : vector<8x8xf32> to vector<7x8xf32>
    %992 = vector.extract_strided_slice %987 {offsets = [1, 0], sizes = [7, 8], strides = [1, 1]} : vector<8x8xf32> to vector<7x8xf32>
    %993 = vector.extract_strided_slice %989 {offsets = [1, 0], sizes = [7, 8], strides = [1, 1]} : vector<8x8xf32> to vector<7x8xf32>
    %994 = tpu.concatenate %966, %967, %968, %969, %974, %975, %976, %977, %982, %983, %984, %985, %990, %991, %992, %993 in 1 : vector<7x8xf32>, vector<7x8xf32>, vector<7x8xf32>, vector<7x8xf32>, vector<7x8xf32>, vector<7x8xf32>, vector<7x8xf32>, vector<7x8xf32>, vector<7x8xf32>, vector<7x8xf32>, vector<7x8xf32>, vector<7x8xf32>, vector<7x8xf32>, vector<7x8xf32>, vector<7x8xf32>, vector<7x8xf32> -> vector<7x128xf32>
    %cst_491 = arith.constant dense<0.000000e+00> : vector<7x64xf32>
    %995 = tpu.matmul %994, %1, %cst_491 {dimension_numbers = #tpu.dot_dimension_numbers<[1], [0], [0], [1], [0, 0, 1, 1], [], []>} : vector<7x128xf32>, vector<128x64xf32>, vector<7x64xf32> -> vector<7x64xf32>
    %996 = vector.extract_strided_slice %995 {offsets = [0, 0], sizes = [7, 16], strides = [1, 1]} : vector<7x64xf32> to vector<7x16xf32>
    %997 = vector.extract_strided_slice %995 {offsets = [0, 16], sizes = [7, 16], strides = [1, 1]} : vector<7x64xf32> to vector<7x16xf32>
    %998 = arith.maximumf %996, %997 : vector<7x16xf32>
    %999 = vector.extract_strided_slice %995 {offsets = [0, 32], sizes = [7, 16], strides = [1, 1]} : vector<7x64xf32> to vector<7x16xf32>
    %1000 = vector.extract_strided_slice %995 {offsets = [0, 48], sizes = [7, 16], strides = [1, 1]} : vector<7x64xf32> to vector<7x16xf32>
    %1001 = arith.maximumf %999, %1000 : vector<7x16xf32>
    %1002 = arith.maximumf %998, %1001 : vector<7x16xf32>
    %1003 = vector.broadcast %3 : vector<1x16xf32> to vector<7x16xf32>
    %1004 = arith.addf %1002, %1003 : vector<7x16xf32>
    %cst_492 = arith.constant 0.000000e+00 : f32
    %1005 = vector.broadcast %cst_492 : f32 to vector<7x16xf32>
    %1006 = arith.maximumf %1004, %1005 : vector<7x16xf32>
    %c35 = arith.constant 35 : index
    %c0_493 = arith.constant 0 : index
    %1007 = vector.load %arg11[%c35, %c0_493] : memref<49x16xf32, #tpu.memory_space<vmem>>, vector<7x16xf32>
    tpu.vector_store %arg11[%c35, %c0_493], %1006 {strides = array<i32>} : memref<49x16xf32, #tpu.memory_space<vmem>>, vector<7x16xf32>,
    %c12_494 = arith.constant 12 : index
    %c0_495 = arith.constant 0 : index
    %c0_496 = arith.constant 0 : index
    %1008 = vector.load %arg9[%c12_494, %c0_495, %c0_496] : memref<16x8x8xf32, #tpu.memory_space<vmem>>, vector<1x8x8xf32>
    %1009 = vector.shape_cast %1008 : vector<1x8x8xf32> to vector<8x8xf32>
    %c12_497 = arith.constant 12 : index
    %c0_498 = arith.constant 0 : index
    %c0_499 = arith.constant 0 : index
    %1010 = vector.load %arg10[%c12_497, %c0_498, %c0_499] : memref<16x8x8xf32, #tpu.memory_space<vmem>>, vector<1x8x8xf32>
    %1011 = vector.shape_cast %1010 : vector<1x8x8xf32> to vector<8x8xf32>
    %1012 = vector.extract_strided_slice %1009 {offsets = [0, 0], sizes = [7, 8], strides = [1, 1]} : vector<8x8xf32> to vector<7x8xf32>
    %1013 = vector.extract_strided_slice %1011 {offsets = [0, 0], sizes = [7, 8], strides = [1, 1]} : vector<8x8xf32> to vector<7x8xf32>
    %1014 = vector.extract_strided_slice %1009 {offsets = [1, 0], sizes = [7, 8], strides = [1, 1]} : vector<8x8xf32> to vector<7x8xf32>
    %1015 = vector.extract_strided_slice %1011 {offsets = [1, 0], sizes = [7, 8], strides = [1, 1]} : vector<8x8xf32> to vector<7x8xf32>
    %c13_500 = arith.constant 13 : index
    %c0_501 = arith.constant 0 : index
    %c0_502 = arith.constant 0 : index
    %1016 = vector.load %arg9[%c13_500, %c0_501, %c0_502] : memref<16x8x8xf32, #tpu.memory_space<vmem>>, vector<1x8x8xf32>
    %1017 = vector.shape_cast %1016 : vector<1x8x8xf32> to vector<8x8xf32>
    %c13_503 = arith.constant 13 : index
    %c0_504 = arith.constant 0 : index
    %c0_505 = arith.constant 0 : index
    %1018 = vector.load %arg10[%c13_503, %c0_504, %c0_505] : memref<16x8x8xf32, #tpu.memory_space<vmem>>, vector<1x8x8xf32>
    %1019 = vector.shape_cast %1018 : vector<1x8x8xf32> to vector<8x8xf32>
    %1020 = vector.extract_strided_slice %1017 {offsets = [0, 0], sizes = [7, 8], strides = [1, 1]} : vector<8x8xf32> to vector<7x8xf32>
    %1021 = vector.extract_strided_slice %1019 {offsets = [0, 0], sizes = [7, 8], strides = [1, 1]} : vector<8x8xf32> to vector<7x8xf32>
    %1022 = vector.extract_strided_slice %1017 {offsets = [1, 0], sizes = [7, 8], strides = [1, 1]} : vector<8x8xf32> to vector<7x8xf32>
    %1023 = vector.extract_strided_slice %1019 {offsets = [1, 0], sizes = [7, 8], strides = [1, 1]} : vector<8x8xf32> to vector<7x8xf32>
    %c14_506 = arith.constant 14 : index
    %c0_507 = arith.constant 0 : index
    %c0_508 = arith.constant 0 : index
    %1024 = vector.load %arg9[%c14_506, %c0_507, %c0_508] : memref<16x8x8xf32, #tpu.memory_space<vmem>>, vector<1x8x8xf32>
    %1025 = vector.shape_cast %1024 : vector<1x8x8xf32> to vector<8x8xf32>
    %c14_509 = arith.constant 14 : index
    %c0_510 = arith.constant 0 : index
    %c0_511 = arith.constant 0 : index
    %1026 = vector.load %arg10[%c14_509, %c0_510, %c0_511] : memref<16x8x8xf32, #tpu.memory_space<vmem>>, vector<1x8x8xf32>
    %1027 = vector.shape_cast %1026 : vector<1x8x8xf32> to vector<8x8xf32>
    %1028 = vector.extract_strided_slice %1025 {offsets = [0, 0], sizes = [7, 8], strides = [1, 1]} : vector<8x8xf32> to vector<7x8xf32>
    %1029 = vector.extract_strided_slice %1027 {offsets = [0, 0], sizes = [7, 8], strides = [1, 1]} : vector<8x8xf32> to vector<7x8xf32>
    %1030 = vector.extract_strided_slice %1025 {offsets = [1, 0], sizes = [7, 8], strides = [1, 1]} : vector<8x8xf32> to vector<7x8xf32>
    %1031 = vector.extract_strided_slice %1027 {offsets = [1, 0], sizes = [7, 8], strides = [1, 1]} : vector<8x8xf32> to vector<7x8xf32>
    %c15_512 = arith.constant 15 : index
    %c0_513 = arith.constant 0 : index
    %c0_514 = arith.constant 0 : index
    %1032 = vector.load %arg9[%c15_512, %c0_513, %c0_514] : memref<16x8x8xf32, #tpu.memory_space<vmem>>, vector<1x8x8xf32>
    %1033 = vector.shape_cast %1032 : vector<1x8x8xf32> to vector<8x8xf32>
    %c15_515 = arith.constant 15 : index
    %c0_516 = arith.constant 0 : index
    %c0_517 = arith.constant 0 : index
    %1034 = vector.load %arg10[%c15_515, %c0_516, %c0_517] : memref<16x8x8xf32, #tpu.memory_space<vmem>>, vector<1x8x8xf32>
    %1035 = vector.shape_cast %1034 : vector<1x8x8xf32> to vector<8x8xf32>
    %1036 = vector.extract_strided_slice %1033 {offsets = [0, 0], sizes = [7, 8], strides = [1, 1]} : vector<8x8xf32> to vector<7x8xf32>
    %1037 = vector.extract_strided_slice %1035 {offsets = [0, 0], sizes = [7, 8], strides = [1, 1]} : vector<8x8xf32> to vector<7x8xf32>
    %1038 = vector.extract_strided_slice %1033 {offsets = [1, 0], sizes = [7, 8], strides = [1, 1]} : vector<8x8xf32> to vector<7x8xf32>
    %1039 = vector.extract_strided_slice %1035 {offsets = [1, 0], sizes = [7, 8], strides = [1, 1]} : vector<8x8xf32> to vector<7x8xf32>
    %1040 = tpu.concatenate %1012, %1013, %1014, %1015, %1020, %1021, %1022, %1023, %1028, %1029, %1030, %1031, %1036, %1037, %1038, %1039 in 1 : vector<7x8xf32>, vector<7x8xf32>, vector<7x8xf32>, vector<7x8xf32>, vector<7x8xf32>, vector<7x8xf32>, vector<7x8xf32>, vector<7x8xf32>, vector<7x8xf32>, vector<7x8xf32>, vector<7x8xf32>, vector<7x8xf32>, vector<7x8xf32>, vector<7x8xf32>, vector<7x8xf32>, vector<7x8xf32> -> vector<7x128xf32>
    %cst_518 = arith.constant dense<0.000000e+00> : vector<7x64xf32>
    %1041 = tpu.matmul %1040, %1, %cst_518 {dimension_numbers = #tpu.dot_dimension_numbers<[1], [0], [0], [1], [0, 0, 1, 1], [], []>} : vector<7x128xf32>, vector<128x64xf32>, vector<7x64xf32> -> vector<7x64xf32>
    %1042 = vector.extract_strided_slice %1041 {offsets = [0, 0], sizes = [7, 16], strides = [1, 1]} : vector<7x64xf32> to vector<7x16xf32>
    %1043 = vector.extract_strided_slice %1041 {offsets = [0, 16], sizes = [7, 16], strides = [1, 1]} : vector<7x64xf32> to vector<7x16xf32>
    %1044 = arith.maximumf %1042, %1043 : vector<7x16xf32>
    %1045 = vector.extract_strided_slice %1041 {offsets = [0, 32], sizes = [7, 16], strides = [1, 1]} : vector<7x64xf32> to vector<7x16xf32>
    %1046 = vector.extract_strided_slice %1041 {offsets = [0, 48], sizes = [7, 16], strides = [1, 1]} : vector<7x64xf32> to vector<7x16xf32>
    %1047 = arith.maximumf %1045, %1046 : vector<7x16xf32>
    %1048 = arith.maximumf %1044, %1047 : vector<7x16xf32>
    %1049 = vector.broadcast %3 : vector<1x16xf32> to vector<7x16xf32>
    %1050 = arith.addf %1048, %1049 : vector<7x16xf32>
    %cst_519 = arith.constant 0.000000e+00 : f32
    %1051 = vector.broadcast %cst_519 : f32 to vector<7x16xf32>
    %1052 = arith.maximumf %1050, %1051 : vector<7x16xf32>
    %c42 = arith.constant 42 : index
    %c0_520 = arith.constant 0 : index
    %1053 = vector.load %arg11[%c42, %c0_520] : memref<49x16xf32, #tpu.memory_space<vmem>>, vector<7x16xf32>
    tpu.vector_store %arg11[%c42, %c0_520], %1052 {strides = array<i32>} : memref<49x16xf32, #tpu.memory_space<vmem>>, vector<7x16xf32>,
    %c0_521 = arith.constant 0 : index
    %c0_522 = arith.constant 0 : index
    %1054 = vector.load %arg11[%c0_521, %c0_522] : memref<49x16xf32, #tpu.memory_space<vmem>>, vector<49x16xf32>
    %cst_523 = arith.constant 0.000000e+00 : f32
    %1055 = vector.broadcast %cst_523 : f32 to vector<49x10xf32>
    %1056 = vector.extract_strided_slice %1054 {offsets = [0, 0], sizes = [49, 1], strides = [1, 1]} : vector<49x16xf32> to vector<49x1xf32>
    %c0_524 = arith.constant 0 : index
    %c0_525 = arith.constant 0 : index
    %c0_526 = arith.constant 0 : index
    %1057 = vector.load %arg6[%c0_524, %c0_525, %c0_526] : memref<16x49x10xf32, #tpu.memory_space<vmem>>, vector<1x49x10xf32>
    %1058 = vector.shape_cast %1057 : vector<1x49x10xf32> to vector<49x10xf32>
    %1059 = vector.broadcast %1056 : vector<49x1xf32> to vector<49x10xf32>
    %1060 = arith.mulf %1059, %1058 : vector<49x10xf32>
    %1061 = arith.addf %1055, %1060 : vector<49x10xf32>
    %1062 = vector.extract_strided_slice %1054 {offsets = [0, 1], sizes = [49, 1], strides = [1, 1]} : vector<49x16xf32> to vector<49x1xf32>
    %c1_527 = arith.constant 1 : index
    %c0_528 = arith.constant 0 : index
    %c0_529 = arith.constant 0 : index
    %1063 = vector.load %arg6[%c1_527, %c0_528, %c0_529] : memref<16x49x10xf32, #tpu.memory_space<vmem>>, vector<1x49x10xf32>
    %1064 = vector.shape_cast %1063 : vector<1x49x10xf32> to vector<49x10xf32>
    %1065 = vector.broadcast %1062 : vector<49x1xf32> to vector<49x10xf32>
    %1066 = arith.mulf %1065, %1064 : vector<49x10xf32>
    %1067 = arith.addf %1061, %1066 : vector<49x10xf32>
    %1068 = vector.extract_strided_slice %1054 {offsets = [0, 2], sizes = [49, 1], strides = [1, 1]} : vector<49x16xf32> to vector<49x1xf32>
    %c2_530 = arith.constant 2 : index
    %c0_531 = arith.constant 0 : index
    %c0_532 = arith.constant 0 : index
    %1069 = vector.load %arg6[%c2_530, %c0_531, %c0_532] : memref<16x49x10xf32, #tpu.memory_space<vmem>>, vector<1x49x10xf32>
    %1070 = vector.shape_cast %1069 : vector<1x49x10xf32> to vector<49x10xf32>
    %1071 = vector.broadcast %1068 : vector<49x1xf32> to vector<49x10xf32>
    %1072 = arith.mulf %1071, %1070 : vector<49x10xf32>
    %1073 = arith.addf %1067, %1072 : vector<49x10xf32>
    %1074 = vector.extract_strided_slice %1054 {offsets = [0, 3], sizes = [49, 1], strides = [1, 1]} : vector<49x16xf32> to vector<49x1xf32>
    %c3_533 = arith.constant 3 : index
    %c0_534 = arith.constant 0 : index
    %c0_535 = arith.constant 0 : index
    %1075 = vector.load %arg6[%c3_533, %c0_534, %c0_535] : memref<16x49x10xf32, #tpu.memory_space<vmem>>, vector<1x49x10xf32>
    %1076 = vector.shape_cast %1075 : vector<1x49x10xf32> to vector<49x10xf32>
    %1077 = vector.broadcast %1074 : vector<49x1xf32> to vector<49x10xf32>
    %1078 = arith.mulf %1077, %1076 : vector<49x10xf32>
    %1079 = arith.addf %1073, %1078 : vector<49x10xf32>
    %1080 = vector.extract_strided_slice %1054 {offsets = [0, 4], sizes = [49, 1], strides = [1, 1]} : vector<49x16xf32> to vector<49x1xf32>
    %c4_536 = arith.constant 4 : index
    %c0_537 = arith.constant 0 : index
    %c0_538 = arith.constant 0 : index
    %1081 = vector.load %arg6[%c4_536, %c0_537, %c0_538] : memref<16x49x10xf32, #tpu.memory_space<vmem>>, vector<1x49x10xf32>
    %1082 = vector.shape_cast %1081 : vector<1x49x10xf32> to vector<49x10xf32>
    %1083 = vector.broadcast %1080 : vector<49x1xf32> to vector<49x10xf32>
    %1084 = arith.mulf %1083, %1082 : vector<49x10xf32>
    %1085 = arith.addf %1079, %1084 : vector<49x10xf32>
    %1086 = vector.extract_strided_slice %1054 {offsets = [0, 5], sizes = [49, 1], strides = [1, 1]} : vector<49x16xf32> to vector<49x1xf32>
    %c5_539 = arith.constant 5 : index
    %c0_540 = arith.constant 0 : index
    %c0_541 = arith.constant 0 : index
    %1087 = vector.load %arg6[%c5_539, %c0_540, %c0_541] : memref<16x49x10xf32, #tpu.memory_space<vmem>>, vector<1x49x10xf32>
    %1088 = vector.shape_cast %1087 : vector<1x49x10xf32> to vector<49x10xf32>
    %1089 = vector.broadcast %1086 : vector<49x1xf32> to vector<49x10xf32>
    %1090 = arith.mulf %1089, %1088 : vector<49x10xf32>
    %1091 = arith.addf %1085, %1090 : vector<49x10xf32>
    %1092 = vector.extract_strided_slice %1054 {offsets = [0, 6], sizes = [49, 1], strides = [1, 1]} : vector<49x16xf32> to vector<49x1xf32>
    %c6_542 = arith.constant 6 : index
    %c0_543 = arith.constant 0 : index
    %c0_544 = arith.constant 0 : index
    %1093 = vector.load %arg6[%c6_542, %c0_543, %c0_544] : memref<16x49x10xf32, #tpu.memory_space<vmem>>, vector<1x49x10xf32>
    %1094 = vector.shape_cast %1093 : vector<1x49x10xf32> to vector<49x10xf32>
    %1095 = vector.broadcast %1092 : vector<49x1xf32> to vector<49x10xf32>
    %1096 = arith.mulf %1095, %1094 : vector<49x10xf32>
    %1097 = arith.addf %1091, %1096 : vector<49x10xf32>
    %1098 = vector.extract_strided_slice %1054 {offsets = [0, 7], sizes = [49, 1], strides = [1, 1]} : vector<49x16xf32> to vector<49x1xf32>
    %c7_545 = arith.constant 7 : index
    %c0_546 = arith.constant 0 : index
    %c0_547 = arith.constant 0 : index
    %1099 = vector.load %arg6[%c7_545, %c0_546, %c0_547] : memref<16x49x10xf32, #tpu.memory_space<vmem>>, vector<1x49x10xf32>
    %1100 = vector.shape_cast %1099 : vector<1x49x10xf32> to vector<49x10xf32>
    %1101 = vector.broadcast %1098 : vector<49x1xf32> to vector<49x10xf32>
    %1102 = arith.mulf %1101, %1100 : vector<49x10xf32>
    %1103 = arith.addf %1097, %1102 : vector<49x10xf32>
    %1104 = vector.extract_strided_slice %1054 {offsets = [0, 8], sizes = [49, 1], strides = [1, 1]} : vector<49x16xf32> to vector<49x1xf32>
    %c8_548 = arith.constant 8 : index
    %c0_549 = arith.constant 0 : index
    %c0_550 = arith.constant 0 : index
    %1105 = vector.load %arg6[%c8_548, %c0_549, %c0_550] : memref<16x49x10xf32, #tpu.memory_space<vmem>>, vector<1x49x10xf32>
    %1106 = vector.shape_cast %1105 : vector<1x49x10xf32> to vector<49x10xf32>
    %1107 = vector.broadcast %1104 : vector<49x1xf32> to vector<49x10xf32>
    %1108 = arith.mulf %1107, %1106 : vector<49x10xf32>
    %1109 = arith.addf %1103, %1108 : vector<49x10xf32>
    %1110 = vector.extract_strided_slice %1054 {offsets = [0, 9], sizes = [49, 1], strides = [1, 1]} : vector<49x16xf32> to vector<49x1xf32>
    %c9_551 = arith.constant 9 : index
    %c0_552 = arith.constant 0 : index
    %c0_553 = arith.constant 0 : index
    %1111 = vector.load %arg6[%c9_551, %c0_552, %c0_553] : memref<16x49x10xf32, #tpu.memory_space<vmem>>, vector<1x49x10xf32>
    %1112 = vector.shape_cast %1111 : vector<1x49x10xf32> to vector<49x10xf32>
    %1113 = vector.broadcast %1110 : vector<49x1xf32> to vector<49x10xf32>
    %1114 = arith.mulf %1113, %1112 : vector<49x10xf32>
    %1115 = arith.addf %1109, %1114 : vector<49x10xf32>
    %1116 = vector.extract_strided_slice %1054 {offsets = [0, 10], sizes = [49, 1], strides = [1, 1]} : vector<49x16xf32> to vector<49x1xf32>
    %c10_554 = arith.constant 10 : index
    %c0_555 = arith.constant 0 : index
    %c0_556 = arith.constant 0 : index
    %1117 = vector.load %arg6[%c10_554, %c0_555, %c0_556] : memref<16x49x10xf32, #tpu.memory_space<vmem>>, vector<1x49x10xf32>
    %1118 = vector.shape_cast %1117 : vector<1x49x10xf32> to vector<49x10xf32>
    %1119 = vector.broadcast %1116 : vector<49x1xf32> to vector<49x10xf32>
    %1120 = arith.mulf %1119, %1118 : vector<49x10xf32>
    %1121 = arith.addf %1115, %1120 : vector<49x10xf32>
    %1122 = vector.extract_strided_slice %1054 {offsets = [0, 11], sizes = [49, 1], strides = [1, 1]} : vector<49x16xf32> to vector<49x1xf32>
    %c11_557 = arith.constant 11 : index
    %c0_558 = arith.constant 0 : index
    %c0_559 = arith.constant 0 : index
    %1123 = vector.load %arg6[%c11_557, %c0_558, %c0_559] : memref<16x49x10xf32, #tpu.memory_space<vmem>>, vector<1x49x10xf32>
    %1124 = vector.shape_cast %1123 : vector<1x49x10xf32> to vector<49x10xf32>
    %1125 = vector.broadcast %1122 : vector<49x1xf32> to vector<49x10xf32>
    %1126 = arith.mulf %1125, %1124 : vector<49x10xf32>
    %1127 = arith.addf %1121, %1126 : vector<49x10xf32>
    %1128 = vector.extract_strided_slice %1054 {offsets = [0, 12], sizes = [49, 1], strides = [1, 1]} : vector<49x16xf32> to vector<49x1xf32>
    %c12_560 = arith.constant 12 : index
    %c0_561 = arith.constant 0 : index
    %c0_562 = arith.constant 0 : index
    %1129 = vector.load %arg6[%c12_560, %c0_561, %c0_562] : memref<16x49x10xf32, #tpu.memory_space<vmem>>, vector<1x49x10xf32>
    %1130 = vector.shape_cast %1129 : vector<1x49x10xf32> to vector<49x10xf32>
    %1131 = vector.broadcast %1128 : vector<49x1xf32> to vector<49x10xf32>
    %1132 = arith.mulf %1131, %1130 : vector<49x10xf32>
    %1133 = arith.addf %1127, %1132 : vector<49x10xf32>
    %1134 = vector.extract_strided_slice %1054 {offsets = [0, 13], sizes = [49, 1], strides = [1, 1]} : vector<49x16xf32> to vector<49x1xf32>
    %c13_563 = arith.constant 13 : index
    %c0_564 = arith.constant 0 : index
    %c0_565 = arith.constant 0 : index
    %1135 = vector.load %arg6[%c13_563, %c0_564, %c0_565] : memref<16x49x10xf32, #tpu.memory_space<vmem>>, vector<1x49x10xf32>
    %1136 = vector.shape_cast %1135 : vector<1x49x10xf32> to vector<49x10xf32>
    %1137 = vector.broadcast %1134 : vector<49x1xf32> to vector<49x10xf32>
    %1138 = arith.mulf %1137, %1136 : vector<49x10xf32>
    %1139 = arith.addf %1133, %1138 : vector<49x10xf32>
    %1140 = vector.extract_strided_slice %1054 {offsets = [0, 14], sizes = [49, 1], strides = [1, 1]} : vector<49x16xf32> to vector<49x1xf32>
    %c14_566 = arith.constant 14 : index
    %c0_567 = arith.constant 0 : index
    %c0_568 = arith.constant 0 : index
    %1141 = vector.load %arg6[%c14_566, %c0_567, %c0_568] : memref<16x49x10xf32, #tpu.memory_space<vmem>>, vector<1x49x10xf32>
    %1142 = vector.shape_cast %1141 : vector<1x49x10xf32> to vector<49x10xf32>
    %1143 = vector.broadcast %1140 : vector<49x1xf32> to vector<49x10xf32>
    %1144 = arith.mulf %1143, %1142 : vector<49x10xf32>
    %1145 = arith.addf %1139, %1144 : vector<49x10xf32>
    %1146 = vector.extract_strided_slice %1054 {offsets = [0, 15], sizes = [49, 1], strides = [1, 1]} : vector<49x16xf32> to vector<49x1xf32>
    %c15_569 = arith.constant 15 : index
    %c0_570 = arith.constant 0 : index
    %c0_571 = arith.constant 0 : index
    %1147 = vector.load %arg6[%c15_569, %c0_570, %c0_571] : memref<16x49x10xf32, #tpu.memory_space<vmem>>, vector<1x49x10xf32>
    %1148 = vector.shape_cast %1147 : vector<1x49x10xf32> to vector<49x10xf32>
    %1149 = vector.broadcast %1146 : vector<49x1xf32> to vector<49x10xf32>
    %1150 = arith.mulf %1149, %1148 : vector<49x10xf32>
    %1151 = arith.addf %1145, %1150 : vector<49x10xf32>
    %cst_572 = arith.constant dense<0.000000e+00> : vector<10xf32>
    %1152 = vector.multi_reduction <add>, %1151, %cst_572 [0] : vector<49x10xf32> to vector<10xf32>
    %1153 = vector.shape_cast %1152 : vector<10xf32> to vector<1x10xf32>
    %c0_573 = arith.constant 0 : index
    %c0_574 = arith.constant 0 : index
    %1154 = vector.load %arg7[%c0_573, %c0_574] : memref<1x10xf32, #tpu.memory_space<vmem>>, vector<1x10xf32>
    %1155 = arith.addf %1153, %1154 : vector<1x10xf32>
    %c0_575 = arith.constant 0 : index
    %c0_576 = arith.constant 0 : index
    %c0_577 = arith.constant 0 : index
    %1156 = vector.load %arg8[%c0_575, %c0_576, %c0_577] : memref<1x1x10xf32, #tpu.memory_space<vmem>>, vector<1x1x10xf32>
    %1157 = vector.shape_cast %1156 : vector<1x1x10xf32> to vector<1x10xf32>
    %1158 = vector.shape_cast %1155 : vector<1x10xf32> to vector<1x1x10xf32>
    tpu.vector_store %arg8[%c0_575, %c0_576, %c0_577], %1158 {strides = array<i32>} : memref<1x1x10xf32, #tpu.memory_space<vmem>>, vector<1x1x10xf32>,
    return
  }
  func.func @transform_0(%arg0: i32) -> (i32, i32, i32, i32) {
    %c0_i32 = arith.constant 0 : i32
    %c0_i32_0 = arith.constant 0 : i32
    %c0_i32_1 = arith.constant 0 : i32
    %c0_i32_2 = arith.constant 0 : i32
    return %arg0, %c0_i32, %c0_i32_0, %c0_i32_1 : i32, i32, i32, i32
  }
  func.func @transform_1(%arg0: i32) -> (i32, i32) {
    %c0_i32 = arith.constant 0 : i32
    %c0_i32_0 = arith.constant 0 : i32
    %c0_i32_1 = arith.constant 0 : i32
    return %c0_i32, %c0_i32_0 : i32, i32
  }
  func.func @transform_2(%arg0: i32) -> (i32, i32) {
    %c0_i32 = arith.constant 0 : i32
    %c0_i32_0 = arith.constant 0 : i32
    %c0_i32_1 = arith.constant 0 : i32
    return %c0_i32, %c0_i32_0 : i32, i32
  }
  func.func @transform_3(%arg0: i32) -> (i32, i32) {
    %c0_i32 = arith.constant 0 : i32
    %c0_i32_0 = arith.constant 0 : i32
    %c0_i32_1 = arith.constant 0 : i32
    return %c0_i32, %c0_i32_0 : i32, i32
  }
  func.func @transform_4(%arg0: i32) -> (i32, i32) {
    %c0_i32 = arith.constant 0 : i32
    %c0_i32_0 = arith.constant 0 : i32
    %c0_i32_1 = arith.constant 0 : i32
    return %c0_i32, %c0_i32_0 : i32, i32
  }
  func.func @transform_5(%arg0: i32) -> (i32, i32, i32) {
    %c0_i32 = arith.constant 0 : i32
    %c0_i32_0 = arith.constant 0 : i32
    %c0_i32_1 = arith.constant 0 : i32
    %c0_i32_2 = arith.constant 0 : i32
    return %c0_i32, %c0_i32_0, %c0_i32_1 : i32, i32, i32
  }
  func.func @transform_6(%arg0: i32) -> (i32, i32) {
    %c0_i32 = arith.constant 0 : i32
    %c0_i32_0 = arith.constant 0 : i32
    %c0_i32_1 = arith.constant 0 : i32
    return %c0_i32, %c0_i32_0 : i32, i32
  }
  func.func @transform_7(%arg0: i32) -> (i32, i32, i32) {
    %c0_i32 = arith.constant 0 : i32
    %c0_i32_0 = arith.constant 0 : i32
    %c0_i32_1 = arith.constant 0 : i32
    return %arg0, %c0_i32, %c0_i32_0 : i32, i32, i32
  }
}

</mosaic_0001>

<bundles_post_ra>
// kernel: cnn_forward.1
= control target key start
LH: loop header
LB: loop body
LE: loop exit
PB: predicated region body
PF: predicated region fallthrough
CT: control target
= control target key end

     0   :  { %12 = vsyncpa [#allocation6], 0  ;;  %s9366_s0 = inlined_call_operand.vmem [shape: f32[2,30,8,4], index: 0, kind: input, shape index: {}]   ;;  %s9367_s1 = inlined_call_operand.vmem [shape: f32[16,32], index: 1, kind: input, shape index: {}]   ;;  %s9368_s2 = inlined_call_operand.vmem [shape: f32[1,8], index: 2, kind: input, shape index: {}]   ;;  %s9369_s3 = inlined_call_operand.vmem [shape: f32[128,64], index: 3, kind: input, shape index: {}]   ;;  %s9370_s4 = inlined_call_operand.vmem [shape: f32[1,16], index: 4, kind: input, shape index: {}]   ;;  %s9371_s5 = inlined_call_operand.vmem [shape: f32[16,49,10], index: 5, kind: input, shape index: {}]   ;;  %s9372_s6 = inlined_call_operand.vmem [shape: f32[1,10], index: 6, kind: input, shape index: {}]   ;;  %s9373_s7 = inlined_call_operand.hbm [shape: f32[2,1,10], index: 7, kind: output, shape index: {}]  }
   0x1   :  { %14 = vsyncpa [#allocation6 + $0x1], 0  ;;  %s6733_s24 = smov 0   ;;  %s6735_s25 = smov 0  }
   0x2   :  { %s6737_s26 = smov 0   ;;  %s6739_s27 = smov 0  }
   0x3 LB: > { %s6754_s28 = sadd.s32 4294967295, %s6652_s27   ;;  %s5239_s29 = sadd.s32 4294967294, %s6652_s27   ;;  %s6652_s27 = sphi %s6739_s27, %s9406_s27   ;;  %s6648_s26 = sphi %s6737_s26, %s9405_s26   ;;  %s6644_s25 = sphi %s6735_s25, %s9404_s25   ;;  %s6640_s24 = sphi %s6733_s24, %s9403_s24  }
   0x4   : > { %s6758_s30 = sadd.s32 1, %s6652_s27   ;;  %s179_s8 = sadd.s32 1, %s6648_s26 }
   0x5   : > { %s176_s9 = ssub.s32 %s6652_s27, %s6758_s30  ;;  %p189_p0 = scmp.ne.s32.totalorder %s6648_s26, %s6644_s25 }
   0x6   : > { %p177_p1 = scmp.eq.s32.totalorder %s176_s9, 0  ;;  %p190_p2 = scmp.eq.s32.totalorder %s6754_s28, 1 }
   0x7   : > { %p195_p3 = scmp.ne.s32.totalorder %s6644_s25, %s6640_s24  ;;  %p196_p4 = scmp.eq.s32.totalorder %s5239_s29, 1 }
   0x8   : > { %s6769_s10 = scalar_select %p177_p1, %s6648_s26, %s179_s8  }
   0x9   : > { %p6771_p5 = por %p190_p2, %p189_p0  ;;  %p6775_p6 = por %p196_p4, %p195_p3 }
   0xa   : > { %p5242_p7 = scmp.ge.s32.totalorder %s6652_s27, 1  ;;  %p240_p8 = scmp.lt.s32.totalorder %s6652_s27, 3 }
   0xc   : > { %p241_p9 = pnand %p5242_p7, %p240_p8 }
   0xd   : > { %p271_p10 = scmp.lt.s32.totalorder (!%p241_p9), %s6754_s28, 1  ;;  %s6654_s18 = smov (!%p241_p9), 126   ;;  %v276_v30 = vld [vmem:[%s9367_s1] sm:$0xff] (!%p241_p9)  ;;  %v277_v31 = vld [vmem:[%s9367_s1 + $0x8] sm:$0xff] (!%p241_p9)  ;;  %vm312_vm0 = vcmask (!%p241_p9), 15360   ;;  %vm317_vm1 = vcmask (!%p241_p9), 1046528  }
   0xe   : > { %244 = sbr.rel (%p241_p9) target bundleno = 2211 (0x8a3), region = 48  ;;  %s6655_s19 = smov (!%p241_p9), 2   ;;  %v6936_v34 = vpack.c.bf16 (!%p241_p9), %v277_v31, %v276_v30  ;;  %vm385_vm2 = vcmask (!%p241_p9), 31744   ;;  %vm296_vm3 = vcmask (!%p241_p9), 64512   ;;  %vm390_vm4 = vcmask (!%p241_p9), 97280  }
   0xf   : > { %s6656_s29 = smov (!%p241_p9), 4   ;;  %s6657_s8 = smov (!%p241_p9), 8   ;;  %vm393_vm5 = vcmask (!%p241_p9), 130048   ;;  %vm510_vm6 = vcmask (!%p241_p9), 1041408   ;;  %vm515_vm7 = vcmask (!%p241_p9), 1040384   ;;  %vm6675_vm8 = vmmov (!%p241_p9), 0  }
  0x10   : > { %5956 = vmatprep.subr.bf16.mxu1 (!%p241_p9), %v6936_v34  ;;  %5988 = vmatprep.subr.bf16.mxu0 (!%p241_p9), %v6936_v34  ;;  %s6658_s9 = smov (!%p241_p9), 12   ;;  %s9382_s20 = smov (!%p241_p9), 72   ;;  %vm3216_vm9 = vcmask (!%p241_p9), 195584   ;;  %vm3218_vm10 = vcmask (!%p241_p9), 261120   ;;  %vm3220_vm11 = vcmask (!%p241_p9), 326656   ;;  %vm3222_vm12 = vcmask (!%p241_p9), 392192  }
  0x11   : > { %5958 = vmatpush3.bf16.msra.mxu1 (!%p241_p9), %v6936_v34  ;;  %5990 = vmatpush3.bf16.msra.mxu0 (!%p241_p9), %v6936_v34  ;;  %s9380_s21 = smov (!%p241_p9), 16   ;;  %s9378_s22 = smov (!%p241_p9), 88   ;;  %vm3224_vm13 = vcmask (!%p241_p9), 457728   ;;  %vm3226_vm14 = vcmask (!%p241_p9), 523264   ;;  %vm3228_vm15 = vcmask (!%p241_p9), 588800  }
  0x12   : > { %5960 = vmatprep.subr.bf16.mxu1 (!%p241_p9), %v6936_v34  ;;  %5996 = vmatprep.subr.bf16.mxu0 (!%p241_p9), %v6936_v34  ;;  %s6669_s16 = smov (!%p241_p9), 32   ;;  %s9386_s23 = smov (!%p241_p9), 104  }
  0x13   : > { %s9399_s15 = smov (!%p241_p9), 88  }
  0x15   : > { %s272_s13 = scalar_select %p271_p10, %s6754_s28, 1 }
  0x17   : > { %s6179_s14 = smul.u32 240, %s272_s13  ;;  %s9376_s13 = smov 120  }
  0x19   : > { %s6786_s17 = scalar_lea.vmem %s9366_s0, %s6179_s14  ;;  %s6660_s14 = smov 112  }
  0x1a   : > { %v6789_v0 = vld [vmem:[%s6786_s17 + $0x8] sm:$0xff]  ;;  %v6792_v1 = vld [vmem:[%s6786_s17] sm:$0xff]  ;;  %v6800_v3 = vld [vmem:[%s6786_s17 + $0x10] sm:$0xff] }
  0x1b   : > { %322 = vrot.lane.b32.xlu1 %v6789_v0, %s6654_s18  ;;  %305 = vrot.lane.b32.xlu0 %v6792_v1, %s6654_s18  ;;  %v325_v2 = vrot.slane %v6789_v0, 1  ;;  %v340_v4 = vrot.slane %v6800_v3, 1  ;;  %v308_v5 = vrot.slane %v6792_v1, 1  ;;  %v6808_v6 = vld [vmem:[%s6786_s17 + $0x18] sm:$0xff]  ;;  %v6820_v8 = vld [vmem:[%s6786_s17 + $0x20] sm:$0xff] }
  0x1c   : > { %v355_v7 = vrot.slane %v6808_v6, 1  ;;  %v553_v9 = vrot.slane %v6820_v8, 1  ;;  %v6827_v10 = vld [vmem:[%s6786_s17 + $0x28] sm:$0xff]  ;;  %v6840_v12 = vld [vmem:[%s6786_s17 + $0x30] sm:$0xff]  ;;  %v6847_v14 = vld [vmem:[%s6786_s17 + $0x38] sm:$0xff] }
  0x1d   : > { %v568_v11 = vrot.slane %v6827_v10, 1  ;;  %v755_v13 = vrot.slane %v6840_v12, 1  ;;  %v770_v15 = vrot.slane %v6847_v14, 1  ;;  %v6860_v16 = vld [vmem:[%s6786_s17 + $0x40] sm:$0xff]  ;;  %v6867_v18 = vld [vmem:[%s6786_s17 + $0x48] sm:$0xff]  ;;  %v6879_v20 = vld [vmem:[%s6786_s17 + $0x50] sm:$0xff] }
  0x1e   : > { %v957_v17 = vrot.slane %v6860_v16, 1  ;;  %v972_v19 = vrot.slane %v6867_v18, 1  ;;  %v1159_v21 = vrot.slane %v6879_v20, 1  ;;  %v6886_v22 = vld [vmem:[%s6786_s17 + $0x58] sm:$0xff]  ;;  %v6898_v24 = vld [vmem:[%s6786_s17 + $0x60] sm:$0xff]  ;;  %v6905_v26 = vld [vmem:[%s6786_s17 + $0x68] sm:$0xff] }
  0x1f   : > { %326 = vrot.lane.b32.xlu1 %v325_v2, %s6655_s19  ;;  %337 = vrot.lane.b32.xlu0 %v6800_v3, %s6654_s18  ;;  %v1174_v23 = vrot.slane %v6886_v22, 1  ;;  %v1361_v25 = vrot.slane %v6898_v24, 1  ;;  %v1376_v27 = vrot.slane %v6905_v26, 1  ;;  %v6917_v28 = vld [vmem:[%s6786_s17 + $0x70] sm:$0xff] }
  0x20   : > { %v1563_v29 = vrot.slane %v6917_v28, 1 }
  0x23   : > { %341 = vrot.lane.b32.xlu1 %v340_v4, %s6655_s19  ;;  %309 = vrot.lane.b32.xlu0 %v308_v5, %s6655_s19 }
  0x27   : > { %356 = vrot.lane.b32.xlu1 %v355_v7, %s6655_s19  ;;  %352 = vrot.lane.b32.xlu0 %v6808_v6, %s6654_s18 }
  0x2b   : > { %525 = vrot.lane.b32.xlu1 %v340_v4, %s6655_s19  ;;  %521 = vrot.lane.b32.xlu0 %v6800_v3, %s6654_s18 }
  0x2f   : > { %539 = vrot.lane.b32.xlu1 %v355_v7, %s6655_s19  ;;  %535 = vrot.lane.b32.xlu0 %v6808_v6, %s6654_s18 }
  0x33   : > { %554 = vrot.lane.b32.xlu1 %v553_v9, %s6655_s19  ;;  %550 = vrot.lane.b32.xlu0 %v6820_v8, %s6654_s18 }
  0x37   : > { %569 = vrot.lane.b32.xlu1 %v568_v11, %s6655_s19  ;;  %565 = vrot.lane.b32.xlu0 %v6827_v10, %s6654_s18 }
  0x3b   : > { %727 = vrot.lane.b32.xlu1 %v553_v9, %s6655_s19  ;;  %723 = vrot.lane.b32.xlu0 %v6820_v8, %s6654_s18 }
  0x3f   : > { %741 = vrot.lane.b32.xlu1 %v568_v11, %s6655_s19  ;;  %737 = vrot.lane.b32.xlu0 %v6827_v10, %s6654_s18 }
  0x43   : > { %756 = vrot.lane.b32.xlu1 %v755_v13, %s6655_s19  ;;  %752 = vrot.lane.b32.xlu0 %v6840_v12, %s6654_s18 }
  0x47   : > { %771 = vrot.lane.b32.xlu1 %v770_v15, %s6655_s19  ;;  %767 = vrot.lane.b32.xlu0 %v6847_v14, %s6654_s18 }
  0x4b   : > { %929 = vrot.lane.b32.xlu1 %v755_v13, %s6655_s19  ;;  %925 = vrot.lane.b32.xlu0 %v6840_v12, %s6654_s18 }
  0x4f   : > { %943 = vrot.lane.b32.xlu1 %v770_v15, %s6655_s19  ;;  %939 = vrot.lane.b32.xlu0 %v6847_v14, %s6654_s18 }
  0x53   : > { %958 = vrot.lane.b32.xlu1 %v957_v17, %s6655_s19  ;;  %954 = vrot.lane.b32.xlu0 %v6860_v16, %s6654_s18 }
  0x57   : > { %973 = vrot.lane.b32.xlu1 %v972_v19, %s6655_s19  ;;  %969 = vrot.lane.b32.xlu0 %v6867_v18, %s6654_s18 }
  0x5b   : > { %1145 = vrot.lane.b32.xlu1 %v972_v19, %s6655_s19  ;;  %1141 = vrot.lane.b32.xlu0 %v6867_v18, %s6654_s18 }
  0x5f   : > { %1160 = vrot.lane.b32.xlu1 %v1159_v21, %s6655_s19  ;;  %1156 = vrot.lane.b32.xlu0 %v6879_v20, %s6654_s18 }
  0x63   : > { %1175 = vrot.lane.b32.xlu1 %v1174_v23, %s6655_s19  ;;  %1171 = vrot.lane.b32.xlu0 %v6886_v22, %s6654_s18 }
  0x67   : > { %1347 = vrot.lane.b32.xlu1 %v1174_v23, %s6655_s19  ;;  %1343 = vrot.lane.b32.xlu0 %v6886_v22, %s6654_s18 }
  0x6b   : > { %1362 = vrot.lane.b32.xlu1 %v1361_v25, %s6655_s19  ;;  %1358 = vrot.lane.b32.xlu0 %v6898_v24, %s6654_s18 }
  0x6f   : > { %1377 = vrot.lane.b32.xlu1 %v1376_v27, %s6655_s19  ;;  %1373 = vrot.lane.b32.xlu0 %v6905_v26, %s6654_s18 }
  0x73   : > { %1549 = vrot.lane.b32.xlu1 %v1376_v27, %s6655_s19  ;;  %1545 = vrot.lane.b32.xlu0 %v6905_v26, %s6654_s18 }
  0x77   : > { %1564 = vrot.lane.b32.xlu1 %v1563_v29, %s6655_s19  ;;  %1560 = vrot.lane.b32.xlu0 %v6917_v28, %s6654_s18 }
  0x8d   : > { %v323_v32 = vpop.permute.xlu1 %322  ;;  %v6934_v33 = vpop.permute.xlu0 %305 }
  0x91   : > { %v327_v35 = vpop.permute.xlu1 %326  ;;  %v338_v36 = vpop.permute.xlu0 %337 }
  0x92   : > { %v329_v37 = vsel %vm312_vm0, %v323_v32, %v327_v35 }
  0x93   : > { %v331_v38 = vrot.slane %v329_v37, 1  ;;  %v6996_v37 = vld [vmem:[%s6786_s17 + $0x78] sm:$0xff] }
  0x95   : > { %367 = vrot.lane.b32.xlu1 %v331_v38, %s6656_s29  ;;  %v342_v39 = vpop.permute.xlu1 %341  ;;  %v6946_v40 = vpop.permute.xlu0 %309  ;;  %v333_v41 = vsel %vm317_vm1, %v6789_v0, %v331_v38 }
  0x96   : > { %v344_v42 = vsel %vm312_vm0, %v338_v36, %v342_v39  ;;  %365 = vrot.lane.b32.xlu0 %v333_v41, %s6656_s29  ;;  %v1578_v39 = vrot.slane %v6996_v37, 1 }
  0x97   : > { %v346_v43 = vrot.slane %v344_v42, 1 }
  0x99   : > { %v357_v44 = vpop.permute.xlu1 %356  ;;  %374 = vrot.lane.b32.xlu1 %v346_v43, %s6657_s8  ;;  %v353_v45 = vpop.permute.xlu0 %352  ;;  %v348_v46 = vsel %vm317_vm1, %v6800_v3, %v346_v43  ;;  %v7011_v43 = vld [vmem:[%s6786_s17 + $0x80] sm:$0xff] }
  0x9a   : > { %v359_v47 = vsel %vm312_vm0, %v353_v45, %v357_v44  ;;  %372 = vrot.lane.b32.xlu0 %v348_v46, %s6657_s8  ;;  %v1765_v44 = vrot.slane %v7011_v43, 1  ;;  %v7018_v46 = vld [vmem:[%s6786_s17 + $0x88] sm:$0xff] }
  0x9b   : > { %v361_v48 = vrot.slane %v359_v47, 1 }
  0x9d   : > { %v6957_v49 = vpop.permute.xlu1 %525  ;;  %381 = vrot.lane.b32.xlu1 %v361_v48, %s6658_s9  ;;  %v6960_v50 = vpop.permute.xlu0 %521  ;;  %v363_v51 = vsel %vm317_vm1, %v6808_v6, %v361_v48  ;;  %v1780_v48 = vrot.slane %v7018_v46, 1 }
  0x9e   : > { %379 = vrot.lane.b32.xlu0 %v363_v51, %s6658_s9 }
  0xa1   : > { %v540_v52 = vpop.permute.xlu1 %539  ;;  %v536_v53 = vpop.permute.xlu0 %535 }
  0xa2   : > { %v542_v54 = vsel %vm312_vm0, %v536_v53, %v540_v52  ;;  %v7030_v53 = vld [vmem:[%s6786_s17 + $0x90] sm:$0xff] }
  0xa3   : > { %v544_v55 = vrot.slane %v542_v54, 1  ;;  %v1967_v54 = vrot.slane %v7030_v53, 1 }
  0xa5   : > { %v555_v56 = vpop.permute.xlu1 %554  ;;  %580 = vrot.lane.b32.xlu1 %v544_v55, %s6656_s29  ;;  %v551_v57 = vpop.permute.xlu0 %550  ;;  %v546_v58 = vsel %vm317_vm1, %v6808_v6, %v544_v55 }
  0xa6   : > { %v557_v59 = vsel %vm312_vm0, %v551_v57, %v555_v56  ;;  %578 = vrot.lane.b32.xlu0 %v546_v58, %s6656_s29  ;;  %v7037_v56 = vld [vmem:[%s6786_s17 + $0x98] sm:$0xff] }
  0xa7   : > { %v559_v60 = vrot.slane %v557_v59, 1  ;;  %v1982_v58 = vrot.slane %v7037_v56, 1 }
  0xa9   : > { %v570_v61 = vpop.permute.xlu1 %569  ;;  %587 = vrot.lane.b32.xlu1 %v559_v60, %s6657_s8  ;;  %v566_v62 = vpop.permute.xlu0 %565  ;;  %v561_v63 = vsel %vm317_vm1, %v6820_v8, %v559_v60 }
  0xaa   : > { %v572_v0 = vsel %vm312_vm0, %v566_v62, %v570_v61  ;;  %585 = vrot.lane.b32.xlu0 %v561_v63, %s6657_s8  ;;  %v7053_v61 = vld [vmem:[%s6786_s17 + $0xa0] sm:$0xff] }
  0xab   : > { %v574_v2 = vrot.slane %v572_v0, 1  ;;  %v2169_v62 = vrot.slane %v7053_v61, 1  ;;  %v7062_v0 = vld [vmem:[%s6786_s17 + $0xa8] sm:$0xff] }
  0xad   : > { %v6976_v4 = vpop.permute.xlu1 %727  ;;  %594 = vrot.lane.b32.xlu1 %v574_v2, %s6658_s9  ;;  %v6979_v5 = vpop.permute.xlu0 %723  ;;  %v576_v6 = vsel %vm317_vm1, %v6827_v10, %v574_v2 }
  0xae   : > { %592 = vrot.lane.b32.xlu0 %v576_v6, %s6658_s9  ;;  %v2184_v6 = vrot.slane %v7062_v0, 1 }
  0xb1   : > { %v742_v7 = vpop.permute.xlu1 %741  ;;  %v738_v9 = vpop.permute.xlu0 %737 }
  0xb2   : > { %v744_v11 = vsel %vm312_vm0, %v738_v9, %v742_v7 }
  0xb3   : > { %v746_v13 = vrot.slane %v744_v11, 1  ;;  %v7080_v11 = vld [vmem:[%s6786_s17 + $0xb0] sm:$0xff] }
  0xb5   : > { %v757_v15 = vpop.permute.xlu1 %756  ;;  %782 = vrot.lane.b32.xlu1 %v746_v13, %s6656_s29  ;;  %v753_v19 = vpop.permute.xlu0 %752  ;;  %v748_v23 = vsel %vm317_vm1, %v6827_v10, %v746_v13  ;;  %v9374_v13 = vrot.slane %v7080_v11, 1 }
  0xb6   : > { %v759_v27 = vsel %vm312_vm0, %v753_v19, %v757_v15  ;;  %780 = vrot.lane.b32.xlu0 %v748_v23, %s6656_s29  ;;  %v7089_v19 = vld [vmem:[%s6786_s17 + $0xb8] sm:$0xff] }
  0xb7   : > { %v761_v30 = vrot.slane %v759_v27, 1  ;;  %v2386_v27 = vrot.slane %v7089_v19, 1 }
  0xb9   : > { %v772_v31 = vpop.permute.xlu1 %771  ;;  %789 = vrot.lane.b32.xlu1 %v761_v30, %s6657_s8  ;;  %v768_v32 = vpop.permute.xlu0 %767  ;;  %v763_v35 = vsel %vm317_vm1, %v6840_v12, %v761_v30 }
  0xba   : > { %v774_v36 = vsel %vm312_vm0, %v768_v32, %v772_v31  ;;  %787 = vrot.lane.b32.xlu0 %v763_v35, %s6657_s8 }
  0xbb   : > { %v776_v10 = vrot.slane %v774_v36, 1 }
  0xbd   : > { %796 = vrot.lane.b32.xlu1 %v776_v10, %s6658_s9  ;;  %v778_v38 = vsel %vm317_vm1, %v6847_v14, %v776_v10  ;;  %v7003_v41 = vpop.permute.xlu1 %929  ;;  %v7005_v42 = vpop.permute.xlu0 %925 }
  0xbe   : > { %794 = vrot.lane.b32.xlu0 %v778_v38, %s6658_s9 }
  0xc1   : > { %1579 = vrot.lane.b32.xlu1 %v1578_v39, %s6655_s19  ;;  %v944_v45 = vpop.permute.xlu1 %943  ;;  %v940_v47 = vpop.permute.xlu0 %939 }
  0xc2   : > { %1575 = vrot.lane.b32.xlu0 %v6996_v37, %s6654_s18  ;;  %v946_v30 = vsel %vm312_vm0, %v940_v47, %v944_v45 }
  0xc3   : > { %v948_v35 = vrot.slane %v946_v30, 1 }
  0xc5   : > { %1751 = vrot.lane.b32.xlu1 %v1578_v39, %s6655_s19  ;;  %v959_v51 = vpop.permute.xlu1 %958  ;;  %v955_v52 = vpop.permute.xlu0 %954  ;;  %v950_v36 = vsel %vm317_vm1, %v6847_v14, %v948_v35 }
  0xc6   : > { %1747 = vrot.lane.b32.xlu0 %v6996_v37, %s6654_s18  ;;  %v961_v38 = vsel %vm312_vm0, %v955_v52, %v959_v51 }
  0xc7   : > { %v963_v45 = vrot.slane %v961_v38, 1 }
  0xc9   : > { %1766 = vrot.lane.b32.xlu1 %v1765_v44, %s6655_s19  ;;  %v974_v55 = vpop.permute.xlu1 %973  ;;  %v970_v57 = vpop.permute.xlu0 %969 }
  0xca   : > { %1762 = vrot.lane.b32.xlu0 %v7011_v43, %s6654_s18  ;;  %v976_v51 = vsel %vm312_vm0, %v970_v57, %v974_v55  ;;  %v7147_v57 = vld [vmem:[%s6786_s17 + $0xc8] sm:$0xff] }
  0xcb   : > { %v978_v52 = vrot.slane %v976_v51, 1  ;;  %v2588_v38 = vrot.slane %v7147_v57, 1 }
  0xcd   : > { %1781 = vrot.lane.b32.xlu1 %v1780_v48, %s6655_s19  ;;  %v7045_v59 = vpop.permute.xlu1 %1145  ;;  %v7047_v60 = vpop.permute.xlu0 %1141  ;;  %v980_v30 = vsel %vm317_vm1, %v6867_v18, %v978_v52 }
  0xce   : > { %1777 = vrot.lane.b32.xlu0 %v7018_v46, %s6654_s18 }
  0xd1   : > { %1953 = vrot.lane.b32.xlu1 %v1780_v48, %s6655_s19  ;;  %v7057_v63 = vpop.permute.xlu1 %1160  ;;  %v7064_v2 = vpop.permute.xlu0 %1156  ;;  %v965_v48 = vsel %vm317_vm1, %v6860_v16, %v963_v45 }
  0xd2   : > { %1949 = vrot.lane.b32.xlu0 %v7018_v46, %s6654_s18 }
  0xd5   : > { %1968 = vrot.lane.b32.xlu1 %v1967_v54, %s6655_s19  ;;  %v7072_v7 = vpop.permute.xlu1 %1175  ;;  %v7074_v9 = vpop.permute.xlu0 %1171 }
  0xd6   : > { %1964 = vrot.lane.b32.xlu0 %v7030_v53, %s6654_s18 }
  0xd9   : > { %1983 = vrot.lane.b32.xlu1 %v1982_v58, %s6655_s19  ;;  %v7084_v15 = vpop.permute.xlu1 %1347  ;;  %v7091_v23 = vpop.permute.xlu0 %1343 }
  0xda   : > { %1979 = vrot.lane.b32.xlu0 %v7037_v56, %s6654_s18 }
  0xdd   : > { %2155 = vrot.lane.b32.xlu1 %v1982_v58, %s6655_s19  ;;  %v7100_v31 = vpop.permute.xlu1 %1362  ;;  %v7102_v32 = vpop.permute.xlu0 %1358 }
  0xde   : > { %2151 = vrot.lane.b32.xlu0 %v7037_v56, %s6654_s18 }
  0xe1   : > { %2170 = vrot.lane.b32.xlu1 %v2169_v62, %s6655_s19  ;;  %v7111_v10 = vpop.permute.xlu1 %1377  ;;  %v7115_v39 = vpop.permute.xlu0 %1373 }
  0xe2   : > { %2166 = vrot.lane.b32.xlu0 %v7053_v61, %s6654_s18 }
  0xe5   : > { %2185 = vrot.lane.b32.xlu1 %v2184_v6, %s6655_s19  ;;  %v7121_v47 = vpop.permute.xlu1 %1549  ;;  %v7123_v14 = vpop.permute.xlu0 %1545 }
  0xe6   : > { %2181 = vrot.lane.b32.xlu0 %v7062_v0, %s6654_s18 }
  0xe9   : > { %2357 = vrot.lane.b32.xlu1 %v2184_v6, %s6655_s19  ;;  %v7132_v58 = vpop.permute.xlu1 %1564  ;;  %v7138_v6 = vld [vmem:[%s6786_s17 + $0xc0] sm:$0xff] }
  0xea   : > { %2353 = vrot.lane.b32.xlu0 %v7062_v0, %s6654_s18  ;;  %v9375_v55 = vrot.slane %v7138_v6, 1 }
  0xed   : > { %2372 = vrot.lane.b32.xlu1 %v9374_v13, %s6655_s19 }
  0xee   : > { %2368 = vrot.lane.b32.xlu0 %v7080_v11, %s6654_s18 }
  0xf1   : > { %2387 = vrot.lane.b32.xlu1 %v2386_v27, %s6655_s19 }
  0xf2   : > { %2383 = vrot.lane.b32.xlu0 %v7089_v19, %s6654_s18 }
  0xf5   : > { %1127 = vrot.lane.b32.xlu1 %v6860_v16, %s6654_s18 }
  0xf6   : > { %982 = vrot.lane.b32.xlu0 %v950_v36, %s6656_s29 }
  0xf9   : > { %984 = vrot.lane.b32.xlu1 %v948_v35, %s6656_s29 }
  0xfa   : > { %1131 = vrot.lane.b32.xlu0 %v957_v17, %s6655_s19  ;;  %v7135_v17 = vpop.permute.xlu0 %1560 }
  0xfd   : > { %2555 = vrot.lane.b32.xlu1 %v7089_v19, %s6654_s18 }
  0xfe   : > { %989 = vrot.lane.b32.xlu0 %v965_v48, %s6657_s8  ;;  %v1148_v48 = vsel %vm312_vm0, %v7047_v60, %v7045_v59 }
  0xff   : > { %v1150_v13 = vrot.slane %v1148_v48, 1 }
 0x101   : > { %991 = vrot.lane.b32.xlu1 %v963_v45, %s6657_s8 }
 0x102   : > { %2559 = vrot.lane.b32.xlu0 %v2386_v27, %s6655_s19  ;;  %v313_v27 = vsel %vm312_vm0, %v6934_v33, %v6946_v40 }
 0x103   : > { %v315_v45 = vrot.slane %v313_v27, 1 }
 0x105   : > { %2570 = vrot.lane.b32.xlu1 %v7138_v6, %s6654_s18  ;;  %v318_v33 = vsel %vm317_vm1, %v6792_v1, %v315_v45  ;;  %v1152_v1 = vsel %vm317_vm1, %v6867_v18, %v1150_v13  ;;  %v528_v18 = vsel %vm312_vm0, %v6960_v50, %v6957_v49  ;;  %v7203_v50 = vld [vmem:[%s6786_s17 + $0xd0] sm:$0xff] }
 0x106   : > { %996 = vrot.lane.b32.xlu0 %v980_v30, %s6658_s9 }
 0x107   : > { %v368_v35 = vpop.permute.xlu1 %367 }
 0x108   : > { %v366_v36 = vpop.permute.xlu0 %365  ;;  %v387_v60 = vsel %vm385_vm2, %v315_v45, %v368_v35  ;;  %v1178_v45 = vsel %vm312_vm0, %v7074_v9, %v7072_v7 }
 0x109   : > { %998 = vrot.lane.b32.xlu1 %v978_v52, %s6658_s9  ;;  %v386_v40 = vsel %vm385_vm2, %v318_v33, %v366_v36  ;;  %v1163_v36 = vsel %vm312_vm0, %v7064_v2, %v7057_v63 }
 0x10a   : > { %2574 = vrot.lane.b32.xlu0 %v9375_v55, %s6655_s19  ;;  %v1165_v35 = vrot.slane %v1163_v36, 1  ;;  %v1350_v36 = vsel %vm312_vm0, %v7091_v23, %v7084_v15 }
 0x10b   : > { %v375_v51 = vpop.permute.xlu1 %374 }
 0x10c   : > { %v373_v30 = vpop.permute.xlu0 %372  ;;  %v389_v48 = vsel %vm296_vm3, %v387_v60, %v375_v51 }
 0x10d   : > { %2589 = vrot.lane.b32.xlu1 %v2588_v38, %s6655_s19  ;;  %v388_v52 = vsel %vm296_vm3, %v386_v40, %v373_v30  ;;  %v1180_v30 = vrot.slane %v1178_v45, 1 }
 0x10e   : > { %2585 = vrot.lane.b32.xlu0 %v7147_v57, %s6654_s18 }
 0x10f   : > { %v382_v59 = vpop.permute.xlu1 %381 }
 0x110   : > { %v380_v27 = vpop.permute.xlu0 %379  ;;  %v392_v33 = vsel %vm390_vm4, %v389_v48, %v382_v59  ;;  %v7219_v48 = vld [vmem:[%s6786_s17 + $0xd8] sm:$0xff] }
 0x111   : > { %1329 = vrot.lane.b32.xlu1 %v6879_v20, %s6654_s18  ;;  %v391_v55 = vsel %vm390_vm4, %v388_v52, %v380_v27  ;;  %v2775_v27 = vrot.slane %v7203_v50, 1 }
 0x112   : > { %1184 = vrot.lane.b32.xlu0 %v1152_v1, %s6656_s29  ;;  %5616 = vmatprep.mubr.msk.f32.mxu1 %vm393_vm5, %v391_v55  ;;  %v1167_v55 = vsel %vm317_vm1, %v6879_v20, %v1165_v35  ;;  %v2790_v1 = vrot.slane %v7219_v48, 1 }
 0x113   : > { %5617 = vmatmul.mubr.msk.f32.vlgmr.msra.gmra.mrb[0].mxu1 %vm393_vm5, %v392_v33  ;;  %v730_v33 = vsel %vm312_vm0, %v6979_v5, %v6976_v4  ;;  %v1365_v4 = vsel %vm312_vm0, %v7102_v32, %v7100_v31 }
 0x114   : > { %5962 = vmatpush3.bf16.msra.mxu1 %v6936_v34 }
 0x115   : > { %1186 = vrot.lane.b32.xlu1 %v1150_v13, %s6656_s29  ;;  %5964 = vmatprep.subr.bf16.mxu1 %v6936_v34  ;;  %v530_v13 = vrot.slane %v528_v18, 1 }
 0x116   : > { %1333 = vrot.lane.b32.xlu0 %v1159_v21, %s6655_s19 }
 0x117   : > { %v581_v63 = vpop.permute.xlu1 %580  ;;  %v532_v49 = vsel %vm317_vm1, %v6800_v3, %v530_v13  ;;  %v1182_v3 = vsel %vm317_vm1, %v6886_v22, %v1180_v30 }
 0x118   : > { %v579_v2 = vpop.permute.xlu0 %578  ;;  %v599_v7 = vsel %vm385_vm2, %v530_v13, %v581_v63  ;;  %v1352_v63 = vrot.slane %v1350_v36, 1 }
 0x119   : > { %2757 = vrot.lane.b32.xlu1 %v7147_v57, %s6654_s18  ;;  %v598_v20 = vsel %vm385_vm2, %v532_v49, %v579_v2  ;;  %v732_v2 = vrot.slane %v730_v33, 1  ;;  %v1367_v49 = vrot.slane %v1365_v4, 1  ;;  %v1552_v33 = vsel %vm312_vm0, %v7123_v14, %v7121_v47 }
 0x11a   : > { %1191 = vrot.lane.b32.xlu0 %v1167_v55, %s6657_s8  ;;  %v1354_v15 = vsel %vm317_vm1, %v6886_v22, %v1352_v63 }
 0x11b   : > { %v588_v21 = vpop.permute.xlu1 %587  ;;  %v734_v5 = vsel %vm317_vm1, %v6820_v8, %v732_v2 }
 0x11c   : > { %v586_v51 = vpop.permute.xlu0 %585  ;;  %v601_v60 = vsel %vm296_vm3, %v599_v7, %v588_v21 }
 0x11d   : > { %1193 = vrot.lane.b32.xlu1 %v1165_v35, %s6657_s8  ;;  %v600_v9 = vsel %vm296_vm3, %v598_v20, %v586_v51 }
 0x11e   : > { %2761 = vrot.lane.b32.xlu0 %v2588_v38, %s6655_s19 }
 0x11f   : > { %v595_v40 = vpop.permute.xlu1 %594 }
 0x120   : > { %v593_v59 = vpop.permute.xlu0 %592  ;;  %v603_v38 = vsel %vm390_vm4, %v601_v60, %v595_v40  ;;  %v1369_v40 = vsel %vm317_vm1, %v6898_v24, %v1367_v49  ;;  %v7273_v60 = vld [vmem:[%s6786_s17 + $0xe0] sm:$0xff] }
 0x121   : > { %v602_v52 = vsel %vm390_vm4, %v600_v9, %v593_v59  ;;  %2772 = vrot.lane.b32.xlu1 %v7203_v50, %s6654_s18 }
 0x122   : > { %1198 = vrot.lane.b32.xlu0 %v1182_v3, %s6658_s9  ;;  %5623 = vmatprep.mubr.msk.f32.mxu1 %vm393_vm5, %v602_v52 }
 0x123   : > { %5624 = vmatmul.mubr.msk.f32.vlgmr.msra.gmra.mrb[2].mxu1 %vm393_vm5, %v603_v38 }
 0x124   : > { %5966 = vmatpush3.bf16.msra.mxu1 %v6936_v34 }
 0x125   : > { %1200 = vrot.lane.b32.xlu1 %v1180_v30, %s6658_s9  ;;  %5968 = vmatprep.subr.bf16.mxu1 %v6936_v34 }
 0x126   : > { %2776 = vrot.lane.b32.xlu0 %v2775_v27, %s6655_s19 }
 0x127   : > { %v783_v35 = vpop.permute.xlu1 %782 }
 0x128   : > { %v781_v18 = vpop.permute.xlu0 %780  ;;  %v801_v21 = vsel %vm385_vm2, %v732_v2, %v783_v35  ;;  %v1567_v2 = vsel %vm312_vm0, %v7135_v17, %v7132_v58 }
 0x129   : > { %2791 = vrot.lane.b32.xlu1 %v2790_v1, %s6655_s19  ;;  %v800_v23 = vsel %vm385_vm2, %v734_v5, %v781_v18 }
 0x12a   : > { %2787 = vrot.lane.b32.xlu0 %v7219_v48, %s6654_s18 }
 0x12b   : > { %v790_v55 = vpop.permute.xlu1 %789 }
 0x12c   : > { %v788_v13 = vpop.permute.xlu0 %787  ;;  %v803_v22 = vsel %vm296_vm3, %v801_v21, %v790_v55 }
 0x12d   : > { %1531 = vrot.lane.b32.xlu1 %v6898_v24, %s6654_s18  ;;  %v802_v51 = vsel %vm296_vm3, %v800_v23, %v788_v13 }
 0x12e   : > { %1386 = vrot.lane.b32.xlu0 %v1354_v15, %s6656_s29  ;;  %v1569_v15 = vrot.slane %v1567_v2, 1 }
 0x12f   : > { %v797_v45 = vpop.permute.xlu1 %796 }
 0x130   : > { %v795_v30 = vpop.permute.xlu0 %794  ;;  %v805_v31 = vsel %vm390_vm4, %v803_v22, %v797_v45  ;;  %v1571_v58 = vsel %vm317_vm1, %v6917_v28, %v1569_v15 }
 0x131   : > { %v804_v20 = vsel %vm390_vm4, %v802_v51, %v795_v30  ;;  %1388 = vrot.lane.b32.xlu1 %v1352_v63, %s6656_s29  ;;  %v1554_v63 = vrot.slane %v1552_v33, 1 }
 0x132   : > { %1535 = vrot.lane.b32.xlu0 %v1361_v25, %s6655_s19  ;;  %5630 = vmatprep.mubr.msk.f32.mxu1 %vm393_vm5, %v804_v20  ;;  %v1380_v25 = vsel %vm312_vm0, %v7115_v39, %v7111_v10  ;;  %v2977_v10 = vrot.slane %v7273_v60, 1  ;;  %v7282_v39 = vld [vmem:[%s6786_s17 + $0xe8] sm:$0xff] }
 0x133   : > { %v1580_v8 = vpop.permute.xlu1 %1579  ;;  %5631 = vmatmul.mubr.msk.f32.vlgmr.msra.gmra.mrb[4].mxu1 %vm393_vm5, %v805_v31  ;;  %v1382_v59 = vrot.slane %v1380_v25, 1  ;;  %v1556_v47 = vsel %vm317_vm1, %v6905_v26, %v1554_v63 }
 0x134   : > { %v1576_v32 = vpop.permute.xlu0 %1575  ;;  %5970 = vmatpush3.bf16.msra.mxu1 %v6936_v34 }
 0x135   : > { %2959 = vrot.lane.b32.xlu1 %v7219_v48, %s6654_s18  ;;  %5972 = vmatprep.subr.bf16.mxu1 %v6936_v34  ;;  %v1384_v3 = vsel %vm317_vm1, %v6905_v26, %v1382_v59  ;;  %v1582_v14 = vsel %vm312_vm0, %v1576_v32, %v1580_v8 }
 0x136   : > { %1393 = vrot.lane.b32.xlu0 %v1369_v40, %s6657_s8  ;;  %v1584_v23 = vrot.slane %v1582_v14, 1 }
 0x137   : > { %v1752_v7 = vpop.permute.xlu1 %1751 }
 0x138   : > { %v1748_v9 = vpop.permute.xlu0 %1747  ;;  %v1586_v26 = vsel %vm317_vm1, %v6996_v37, %v1584_v23 }
 0x139   : > { %1395 = vrot.lane.b32.xlu1 %v1367_v49, %s6657_s8  ;;  %v1754_v21 = vsel %vm312_vm0, %v1748_v9, %v1752_v7 }
 0x13a   : > { %2963 = vrot.lane.b32.xlu0 %v2790_v1, %s6655_s19  ;;  %v2992_v1 = vrot.slane %v7282_v39, 1  ;;  %v1756_v49 = vrot.slane %v1754_v21, 1 }
 0x13b   : > { %v1767_v52 = vpop.permute.xlu1 %1766 }
 0x13c   : > { %v1763_v24 = vpop.permute.xlu0 %1762  ;;  %v1758_v31 = vsel %vm317_vm1, %v6996_v37, %v1756_v49 }
 0x13d   : > { %2974 = vrot.lane.b32.xlu1 %v7273_v60, %s6654_s18  ;;  %v1769_v8 = vsel %vm312_vm0, %v1763_v24, %v1767_v52 }
 0x13e   : > { %1400 = vrot.lane.b32.xlu0 %v1384_v3, %s6658_s9  ;;  %v1771_v40 = vrot.slane %v1769_v8, 1 }
 0x13f   : > { %v1782_v38 = vpop.permute.xlu1 %1781 }
 0x140   : > { %v1778_v36 = vpop.permute.xlu0 %1777  ;;  %v1773_v9 = vsel %vm317_vm1, %v7011_v43, %v1771_v40 }
 0x141   : > { %1402 = vrot.lane.b32.xlu1 %v1382_v59, %s6658_s9 }
 0x142   : > { %2978 = vrot.lane.b32.xlu0 %v2977_v10, %s6655_s19 }
 0x143   : > { %v1954_v35 = vpop.permute.xlu1 %1953 }
 0x144   : > { %v1950_v18 = vpop.permute.xlu0 %1949 }
 0x145   : > { %2993 = vrot.lane.b32.xlu1 %v2992_v1, %s6655_s19  ;;  %v1956_v59 = vsel %vm312_vm0, %v1950_v18, %v1954_v35 }
 0x146   : > { %2989 = vrot.lane.b32.xlu0 %v7282_v39, %s6654_s18  ;;  %v1958_v3 = vrot.slane %v1956_v59, 1 }
 0x147   : > { %v1969_v55 = vpop.permute.xlu1 %1968 }
 0x148   : > { %v1965_v13 = vpop.permute.xlu0 %1964 }
 0x149   : > { %1590 = vrot.lane.b32.xlu1 %v1554_v63, %s6656_s29  ;;  %v1971_v1 = vsel %vm312_vm0, %v1965_v13, %v1969_v55 }
 0x14a   : > { %1588 = vrot.lane.b32.xlu0 %v1556_v47, %s6656_s29  ;;  %v1973_v18 = vrot.slane %v1971_v1, 1 }
 0x14b   : > { %v1984_v4 = vpop.permute.xlu1 %1983 }
 0x14c   : > { %v1980_v5 = vpop.permute.xlu0 %1979 }
 0x14d   : > { %1597 = vrot.lane.b32.xlu1 %v1569_v15, %s6657_s8  ;;  %v1986_v63 = vsel %vm312_vm0, %v1980_v5, %v1984_v4  ;;  %v1975_v15 = vsel %vm317_vm1, %v7030_v53, %v1973_v18 }
 0x14e   : > { %1595 = vrot.lane.b32.xlu0 %v1571_v58, %s6657_s8  ;;  %v1988_v13 = vrot.slane %v1986_v63, 1 }
 0x14f   : > { %v2156_v17 = vpop.permute.xlu1 %2155 }
 0x150   : > { %v2152_v45 = vpop.permute.xlu0 %2151 }
 0x151   : > { %1604 = vrot.lane.b32.xlu1 %v1584_v23, %s6658_s9  ;;  %v2158_v14 = vsel %vm312_vm0, %v2152_v45, %v2156_v17 }
 0x152   : > { %1602 = vrot.lane.b32.xlu0 %v1586_v26, %s6658_s9  ;;  %v2160_v5 = vrot.slane %v2158_v14, 1 }
 0x153   : > { %v7310_v51 = vpop.permute.xlu1 %2170 }
 0x154   : > { %v7312_v30 = vpop.permute.xlu0 %2166  ;;  %v2162_v21 = vsel %vm317_vm1, %v7037_v56, %v2160_v5 }
 0x155   : > { %1737 = vrot.lane.b32.xlu1 %v1563_v29, %s6655_s19 }
 0x156   : > { %1733 = vrot.lane.b32.xlu0 %v6917_v28, %s6654_s18  ;;  %v1784_v28 = vsel %vm312_vm0, %v1778_v36, %v1782_v38  ;;  %v1960_v36 = vsel %vm317_vm1, %v7018_v46, %v1958_v3 }
 0x157   : > { %v7319_v22 = vpop.permute.xlu1 %2185  ;;  %v1786_v7 = vrot.slane %v1784_v28, 1 }
 0x158   : > { %v7321_v20 = vpop.permute.xlu0 %2181 }
 0x159   : > { %1935 = vrot.lane.b32.xlu1 %v7011_v43, %s6654_s18 }
 0x15a   : > { %1790 = vrot.lane.b32.xlu0 %v1758_v31, %s6656_s29 }
 0x15b   : > { %v7329_v32 = vpop.permute.xlu1 %2357 }
 0x15c   : > { %v7331_v29 = vpop.permute.xlu0 %2353 }
 0x15d   : > { %1792 = vrot.lane.b32.xlu1 %v1756_v49, %s6656_s29 }
 0x15e   : > { %1939 = vrot.lane.b32.xlu0 %v1765_v44, %s6655_s19  ;;  %v1788_v44 = vsel %vm317_vm1, %v7018_v46, %v1786_v7  ;;  %v932_v46 = vsel %vm312_vm0, %v7005_v42, %v7003_v41  ;;  %v1990_v41 = vsel %vm317_vm1, %v7037_v56, %v1988_v13  ;;  %v2188_v56 = vsel %vm312_vm0, %v7321_v20, %v7319_v22 }
 0x15f   : > { %v7338_v25 = vpop.permute.xlu1 %2372  ;;  %v934_v47 = vrot.slane %v932_v46, 1  ;;  %v2360_v22 = vsel %vm312_vm0, %v7331_v29, %v7329_v32 }
 0x160   : > { %v7340_v37 = vpop.permute.xlu0 %2368 }
 0x161   : > { %1799 = vrot.lane.b32.xlu1 %v1771_v40, %s6657_s8  ;;  %v936_v42 = vsel %vm317_vm1, %v6840_v12, %v934_v47  ;;  %v2173_v12 = vsel %vm312_vm0, %v7312_v30, %v7310_v51 }
 0x162   : > { %1797 = vrot.lane.b32.xlu0 %v1773_v9, %s6657_s8  ;;  %v2190_v9 = vrot.slane %v2188_v56, 1 }
 0x163   : > { %v7347_v52 = vpop.permute.xlu1 %2387 }
 0x164   : > { %v7349_v24 = vpop.permute.xlu0 %2383 }
 0x165   : > { %1806 = vrot.lane.b32.xlu1 %v1786_v7, %s6658_s9  ;;  %v2175_v7 = vrot.slane %v2173_v12, 1 }
 0x166   : > { %1804 = vrot.lane.b32.xlu0 %v1788_v44, %s6658_s9  ;;  %v2192_v44 = vsel %vm317_vm1, %v7062_v0, %v2190_v9 }
 0x167   : > { %v7355_v10 = vpop.permute.xlu1 %1127  ;;  %v2177_v59 = vsel %vm317_vm1, %v7053_v61, %v2175_v7 }
 0x168   : > { %v983_v38 = vpop.permute.xlu0 %982 }
 0x169   : > { %2137 = vrot.lane.b32.xlu1 %v7030_v53, %s6654_s18  ;;  %v1002_v23 = vsel %vm385_vm2, %v936_v42, %v983_v38  ;;  %v2375_v38 = vsel %vm312_vm0, %v7340_v37, %v7338_v25 }
 0x16a   : > { %1992 = vrot.lane.b32.xlu0 %v1960_v36, %s6656_s29  ;;  %v2377_v32 = vrot.slane %v2375_v38, 1 }
 0x16b   : > { %v985_v33 = vpop.permute.xlu1 %984 }
 0x16c   : > { %v7363_v35 = vpop.permute.xlu0 %1131  ;;  %v1003_v49 = vsel %vm385_vm2, %v934_v47, %v985_v33  ;;  %v2390_v33 = vsel %vm312_vm0, %v7349_v24, %v7347_v52  ;;  %v2379_v46 = vsel %vm317_vm1, %v7080_v11, %v2377_v32 }
 0x16d   : > { %1994 = vrot.lane.b32.xlu1 %v1958_v3, %s6656_s29  ;;  %v2362_v3 = vrot.slane %v2360_v22, 1  ;;  %v1134_v25 = vsel %vm312_vm0, %v7355_v10, %v7363_v35  ;;  %v2392_v63 = vrot.slane %v2390_v33, 1 }
 0x16e   : > { %2141 = vrot.lane.b32.xlu0 %v1967_v54, %s6655_s19 }
 0x16f   : > { %v7373_v2 = vpop.permute.xlu1 %2555  ;;  %v2364_v29 = vsel %vm317_vm1, %v7062_v0, %v2362_v3  ;;  %v2394_v52 = vsel %vm317_vm1, %v7089_v19, %v2392_v63 }
 0x170   : > { %v990_v55 = vpop.permute.xlu0 %989 }
 0x171   : > { %2001 = vrot.lane.b32.xlu1 %v1973_v18, %s6657_s8  ;;  %v1004_v17 = vsel %vm296_vm3, %v1002_v23, %v990_v55  ;;  %v1136_v55 = vrot.slane %v1134_v25, 1 }
 0x172   : > { %1999 = vrot.lane.b32.xlu0 %v1975_v15, %s6657_s8 }
 0x173   : > { %v992_v4 = vpop.permute.xlu1 %991  ;;  %v1138_v10 = vsel %vm317_vm1, %v6860_v16, %v1136_v55 }
 0x174   : > { %v2560_v54 = vpop.permute.xlu0 %2559  ;;  %v1005_v31 = vsel %vm296_vm3, %v1003_v49, %v992_v4 }
 0x175   : > { %2008 = vrot.lane.b32.xlu1 %v1988_v13, %s6658_s9  ;;  %v2562_v24 = vsel %vm312_vm0, %v7373_v2, %v2560_v54 }
 0x176   : > { %2006 = vrot.lane.b32.xlu0 %v1990_v41, %s6658_s9  ;;  %v2564_v4 = vrot.slane %v2562_v24, 1  ;;  %v9393_v41 = vrot.slane %v7080_v11, 1 }
 0x177   : > { %v7387_v58 = vpop.permute.xlu1 %2570 }
 0x178   : > { %v997_v45 = vpop.permute.xlu0 %996 }
 0x179   : > { %v1006_v26 = vsel %vm390_vm4, %v1004_v17, %v997_v45  ;;  %2339 = vrot.lane.b32.xlu1 %v7053_v61, %s6654_s18  ;;  %v2566_v17 = vsel %vm317_vm1, %v7089_v19, %v2564_v4  ;;  %v9394_v19 = vrot.slane %v7138_v6, 1 }
 0x17a   : > { %2194 = vrot.lane.b32.xlu0 %v2162_v21, %s6656_s29  ;;  %5637 = vmatprep.mubr.msk.f32.mxu1 %vm393_vm5, %v1006_v26 }
 0x17b   : > { %v999_v8 = vpop.permute.xlu1 %998 }
 0x17c   : > { %v1007_v40 = vsel %vm390_vm4, %v1005_v31, %v999_v8  ;;  %v2575_v28 = vpop.permute.xlu0 %2574 }
 0x17d   : > { %2196 = vrot.lane.b32.xlu1 %v2160_v5, %s6656_s29  ;;  %5638 = vmatmul.mubr.msk.f32.vlgmr.msra.gmra.mrb[6].mxu1 %vm393_vm5, %v1007_v40  ;;  %v2577_v45 = vsel %vm312_vm0, %v7387_v58, %v2575_v28 }
 0x17e   : > { %2343 = vrot.lane.b32.xlu0 %v2169_v62, %s6655_s19  ;;  %5974 = vmatpush3.bf16.msra.mxu1 %v6936_v34  ;;  %v2579_v21 = vrot.slane %v2577_v45, 1 }
 0x17f   : > { %v7412_v51 = vpop.permute.xlu1 %2589  ;;  %5976 = vmatprep.subr.bf16.mxu1 %v6936_v34 }
 0x180   : > { %v2586_v30 = vpop.permute.xlu0 %2585  ;;  %v2581_v8 = vsel %vm317_vm1, %v7138_v6, %v2579_v21 }
 0x181   : > { %2203 = vrot.lane.b32.xlu1 %v2175_v7, %s6657_s8  ;;  %v2592_v12 = vsel %vm312_vm0, %v2586_v30, %v7412_v51 }
 0x182   : > { %2201 = vrot.lane.b32.xlu0 %v2177_v59, %s6657_s8  ;;  %v2594_v31 = vrot.slane %v2592_v12, 1 }
 0x183   : > { %v7422_v62 = vpop.permute.xlu1 %1329 }
 0x184   : > { %v1185_v20 = vpop.permute.xlu0 %1184  ;;  %v2596_v51 = vsel %vm317_vm1, %v7147_v57, %v2594_v31 }
 0x185   : > { %2210 = vrot.lane.b32.xlu1 %v2190_v9, %s6658_s9  ;;  %v1204_v35 = vsel %vm385_vm2, %v1138_v10, %v1185_v20 }
 0x186   : > { %2208 = vrot.lane.b32.xlu0 %v2192_v44, %s6658_s9 }
 0x187   : > { %v1187_v36 = vpop.permute.xlu1 %1186 }
 0x188   : > { %v1334_v1 = vpop.permute.xlu0 %1333  ;;  %v1205_v2 = vsel %vm385_vm2, %v1136_v55, %v1187_v36 }
 0x189   : > { %2398 = vrot.lane.b32.xlu1 %v2362_v3, %s6656_s29  ;;  %v1336_v30 = vsel %vm312_vm0, %v7422_v62, %v1334_v1  ;;  %v6586_v1 = vld [vmem:[%s6786_s17 + $0x50] sm:$0xff] }
 0x18a   : > { %2396 = vrot.lane.b32.xlu0 %v2364_v29, %s6656_s29  ;;  %v1338_v20 = vrot.slane %v1336_v30, 1 }
 0x18b   : > { %v2758_v37 = vpop.permute.xlu1 %2757 }
 0x18c   : > { %v1192_v18 = vpop.permute.xlu0 %1191 }
 0x18d   : > { %2405 = vrot.lane.b32.xlu1 %v2377_v32, %s6657_s8  ;;  %v1206_v47 = vsel %vm296_vm3, %v1204_v35, %v1192_v18  ;;  %v1340_v32 = vsel %vm317_vm1, %v6586_v1, %v1338_v20 }
 0x18e   : > { %2403 = vrot.lane.b32.xlu0 %v2379_v46, %s6657_s8 }
 0x18f   : > { %v1194_v0 = vpop.permute.xlu1 %1193 }
 0x190   : > { %v2762_v13 = vpop.permute.xlu0 %2761  ;;  %v1207_v16 = vsel %vm296_vm3, %v1205_v2, %v1194_v0 }
 0x191   : > { %2412 = vrot.lane.b32.xlu1 %v2392_v63, %s6658_s9  ;;  %v2764_v40 = vsel %vm312_vm0, %v2758_v37, %v2762_v13 }
 0x192   : > { %2410 = vrot.lane.b32.xlu0 %v2394_v52, %s6658_s9  ;;  %v2766_v56 = vrot.slane %v2764_v40, 1 }
 0x193   : > { %v2773_v15 = vpop.permute.xlu1 %2772 }
 0x194   : > { %v1199_v14 = vpop.permute.xlu0 %1198  ;;  %v2768_v22 = vsel %vm317_vm1, %v7147_v57, %v2766_v56 }
 0x195   : > { %v1208_v5 = vsel %vm390_vm4, %v1206_v47, %v1199_v14  ;;  %2545 = vrot.lane.b32.xlu1 %v9393_v41, %s6655_s19 }
 0x196   : > { %2541 = vrot.lane.b32.xlu0 %v7080_v11, %s6654_s18  ;;  %5644 = vmatprep.mubr.msk.f32.mxu1 %vm393_vm5, %v1208_v5 }
 0x197   : > { %v1201_v54 = vpop.permute.xlu1 %1200 }
 0x198   : > { %v1209_v42 = vsel %vm390_vm4, %v1207_v16, %v1201_v54  ;;  %v2777_v23 = vpop.permute.xlu0 %2776 }
 0x199   : > { %2743 = vrot.lane.b32.xlu1 %v7138_v6, %s6654_s18  ;;  %5645 = vmatmul.mubr.msk.f32.vlgmr.msra.gmra.mrb[8].mxu1 %vm393_vm5, %v1209_v42  ;;  %v2779_v3 = vsel %vm312_vm0, %v2773_v15, %v2777_v23 }
 0x19a   : > { %2598 = vrot.lane.b32.xlu0 %v2566_v17, %s6656_s29  ;;  %5978 = vmatpush3.bf16.msra.mxu1 %v6936_v34  ;;  %v2781_v36 = vrot.slane %v2779_v3, 1  ;;  %v6587_v17 = vld [vmem:[%s6786_s17 + $0x60] sm:$0xff] }
 0x19b   : > { %v2792_v11 = vpop.permute.xlu1 %2791  ;;  %5980 = vmatprep.subr.bf16.mxu1 %v6936_v34 }
 0x19c   : > { %v2788_v26 = vpop.permute.xlu0 %2787  ;;  %v2783_v63 = vsel %vm317_vm1, %v7203_v50, %v2781_v36 }
 0x19d   : > { %2600 = vrot.lane.b32.xlu1 %v2564_v4, %s6656_s29  ;;  %v2794_v62 = vsel %vm312_vm0, %v2788_v26, %v2792_v11 }
 0x19e   : > { %2747 = vrot.lane.b32.xlu0 %v9394_v19, %s6655_s19  ;;  %v2796_v37 = vrot.slane %v2794_v62, 1 }
 0x19f   : > { %v1532_v49 = vpop.permute.xlu1 %1531 }
 0x1a0   : > { %v1387_v58 = vpop.permute.xlu0 %1386  ;;  %v2798_v10 = vsel %vm317_vm1, %v7219_v48, %v2796_v37 }
 0x1a1   : > { %2607 = vrot.lane.b32.xlu1 %v2579_v21, %s6657_s8  ;;  %v1406_v57 = vsel %vm385_vm2, %v1340_v32, %v1387_v58 }
 0x1a2   : > { %2605 = vrot.lane.b32.xlu0 %v2581_v8, %s6657_s8 }
 0x1a3   : > { %v1389_v28 = vpop.permute.xlu1 %1388 }
 0x1a4   : > { %v1536_v7 = vpop.permute.xlu0 %1535  ;;  %v1407_v46 = vsel %vm385_vm2, %v1338_v20, %v1389_v28 }
 0x1a5   : > { %2614 = vrot.lane.b32.xlu1 %v2594_v31, %s6658_s9  ;;  %v1538_v5 = vsel %vm312_vm0, %v1532_v49, %v1536_v7 }
 0x1a6   : > { %2612 = vrot.lane.b32.xlu0 %v2596_v51, %s6658_s9  ;;  %v1540_v54 = vrot.slane %v1538_v5, 1 }
 0x1a7   : > { %v2960_v9 = vpop.permute.xlu1 %2959 }
 0x1a8   : > { %v1394_v59 = vpop.permute.xlu0 %1393  ;;  %v1542_v45 = vsel %vm317_vm1, %v6587_v17, %v1540_v54 }
 0x1a9   : > { %2945 = vrot.lane.b32.xlu1 %v7203_v50, %s6654_s18  ;;  %v1408_v33 = vsel %vm296_vm3, %v1406_v57, %v1394_v59  ;;  %s9388_s18 = smov 40  }
 0x1aa   : > { %2800 = vrot.lane.b32.xlu0 %v2768_v22, %s6656_s29 }
 0x1ab   : > { %v1396_v44 = vpop.permute.xlu1 %1395 }
 0x1ac   : > { %v2964_v38 = vpop.permute.xlu0 %2963 }
 0x1ad   : > { %2802 = vrot.lane.b32.xlu1 %v2766_v56, %s6656_s29  ;;  %v2966_v55 = vsel %vm312_vm0, %v2960_v9, %v2964_v38  ;;  %v6588_v9 = vld [vmem:[%s6786_s17 + $0x70] sm:$0xff] }
 0x1ae   : > { %2949 = vrot.lane.b32.xlu0 %v2775_v27, %s6655_s19  ;;  %v1409_v27 = vsel %vm296_vm3, %v1407_v46, %v1396_v44  ;;  %v2968_v24 = vrot.slane %v2966_v55, 1  ;;  %s9384_s19 = smov 56  }
 0x1af   : > { %v2975_v29 = vpop.permute.xlu1 %2974 }
 0x1b0   : > { %v1401_v25 = vpop.permute.xlu0 %1400  ;;  %v2970_v4 = vsel %vm317_vm1, %v7219_v48, %v2968_v24 }
 0x1b1   : > { %v1410_v18 = vsel %vm390_vm4, %v1408_v33, %v1401_v25  ;;  %2809 = vrot.lane.b32.xlu1 %v2781_v36, %s6657_s8 }
 0x1b2   : > { %2807 = vrot.lane.b32.xlu0 %v2783_v63, %s6657_s8  ;;  %5651 = vmatprep.mubr.msk.f32.mxu1 %vm393_vm5, %v1410_v18 }
 0x1b3   : > { %v1403_v0 = vpop.permute.xlu1 %1402 }
 0x1b4   : > { %v1411_v13 = vsel %vm390_vm4, %v1409_v27, %v1403_v0  ;;  %v2979_v52 = vpop.permute.xlu0 %2978 }
 0x1b5   : > { %2816 = vrot.lane.b32.xlu1 %v2796_v37, %s6658_s9  ;;  %5652 = vmatmul.mubr.msk.f32.vlgmr.msra.gmra.mrb[10].mxu1 %vm393_vm5, %v1411_v13  ;;  %v2981_v35 = vsel %vm312_vm0, %v2975_v29, %v2979_v52 }
 0x1b6   : > { %2814 = vrot.lane.b32.xlu0 %v2798_v10, %s6658_s9  ;;  %5982 = vmatpush3.bf16.msra.mxu1 %v6936_v34  ;;  %v2983_v14 = vrot.slane %v2981_v35, 1 }
 0x1b7   : > { %v7524_v15 = vpop.permute.xlu1 %2993  ;;  %5984 = vmatprep.subr.bf16.mxu1 %v6936_v34 }
 0x1b8   : > { %v7527_v47 = vpop.permute.xlu0 %2989  ;;  %v2985_v16 = vsel %vm317_vm1, %v7273_v60, %v2983_v14 }
 0x1b9   : > { %3004 = vrot.lane.b32.xlu1 %v2968_v24, %s6656_s29 }
 0x1ba   : > { %3002 = vrot.lane.b32.xlu0 %v2970_v4, %s6656_s29  ;;  %s6671_s29 = smov 48  }
 0x1bb   : > { %v1591_v41 = vpop.permute.xlu1 %1590 }
 0x1bc   : > { %v1589_v2 = vpop.permute.xlu0 %1588  ;;  %v1609_v26 = vsel %vm385_vm2, %v1540_v54, %v1591_v41 }
 0x1bd   : > { %3011 = vrot.lane.b32.xlu1 %v2983_v14, %s6657_s8  ;;  %v1608_v48 = vsel %vm385_vm2, %v1542_v45, %v1589_v2 }
 0x1be   : > { %3009 = vrot.lane.b32.xlu0 %v2985_v16, %s6657_s8 }
 0x1bf   : > { %v1598_v42 = vpop.permute.xlu1 %1597 }
 0x1c0   : > { %v1596_v23 = vpop.permute.xlu0 %1595  ;;  %v1611_v19 = vsel %vm296_vm3, %v1609_v26, %v1598_v42 }
 0x1c1   : > { %v1610_v21 = vsel %vm296_vm3, %v1608_v48, %v1596_v23 }
 0x1c3   : > { %v1605_v11 = vpop.permute.xlu1 %1604 }
 0x1c4   : > { %v1603_v12 = vpop.permute.xlu0 %1602  ;;  %v1613_v49 = vsel %vm390_vm4, %v1611_v19, %v1605_v11 }
 0x1c5   : > { %v1612_v60 = vsel %vm390_vm4, %v1610_v21, %v1603_v12 }
 0x1c6   : > { %5658 = vmatprep.mubr.msk.f32.mxu1 %vm393_vm5, %v1612_v60 }
 0x1c7   : > { %v1738_v58 = vpop.permute.xlu1 %1737  ;;  %5659 = vmatmul.mubr.msk.f32.vlgmr.msra.gmra.mrb[12].mxu1 %vm393_vm5, %v1613_v49 }
 0x1c8   : > { %v1734_v31 = vpop.permute.xlu0 %1733  ;;  %5986 = vmatpush3.bf16.msra.mxu1 %v6936_v34 }
 0x1c9   : > { %5992 = vmatprep.subr.bf16.mxu1 %v6936_v34  ;;  %v1740_v28 = vsel %vm312_vm0, %v1734_v31, %v1738_v58 }
 0x1ca   : > { %v1742_v56 = vrot.slane %v1740_v28, 1 }
 0x1cb   : > { %v1936_v8 = vpop.permute.xlu1 %1935 }
 0x1cc   : > { %v1791_v40 = vpop.permute.xlu0 %1790  ;;  %v1744_v59 = vsel %vm317_vm1, %v6588_v9, %v1742_v56 }
 0x1cd   : > { %v1810_v20 = vsel %vm385_vm2, %v1744_v59, %v1791_v40  ;;  %v2996_v59 = vsel %vm312_vm0, %v7527_v47, %v7524_v15 }
 0x1cf   : > { %v1793_v7 = vpop.permute.xlu1 %1792 }
 0x1d0   : > { %v1940_v51 = vpop.permute.xlu0 %1939  ;;  %v1811_v44 = vsel %vm385_vm2, %v1742_v56, %v1793_v7 }
 0x1d1   : > { %v1942_v33 = vsel %vm312_vm0, %v1936_v8, %v1940_v51 }
 0x1d2   : > { %v1944_v18 = vrot.slane %v1942_v33, 1 }
 0x1d3   : > { %v1800_v30 = vpop.permute.xlu1 %1799 }
 0x1d4   : > { %v1798_v22 = vpop.permute.xlu0 %1797  ;;  %v1813_v62 = vsel %vm296_vm3, %v1811_v44, %v1800_v30  ;;  %v1946_v55 = vsel %vm317_vm1, %v7011_v43, %v1944_v18 }
 0x1d5   : > { %v1812_v38 = vsel %vm296_vm3, %v1810_v20, %v1798_v22 }
 0x1d7   : > { %v1807_v3 = vpop.permute.xlu1 %1806 }
 0x1d8   : > { %v1805_v36 = vpop.permute.xlu0 %1804  ;;  %v1815_v32 = vsel %vm390_vm4, %v1813_v62, %v1807_v3 }
 0x1d9   : > { %v1814_v1 = vsel %vm390_vm4, %v1812_v38, %v1805_v36 }
 0x1da   : > { %5665 = vmatprep.mubr.msk.f32.mxu1 %vm393_vm5, %v1814_v1 }
 0x1db   : > { %v2138_v57 = vpop.permute.xlu1 %2137  ;;  %5666 = vmatmul.mubr.msk.f32.vlgmr.msra.gmra.mrb[14].mxu1 %vm393_vm5, %v1815_v32 }
 0x1dc   : > { %v1993_v29 = vpop.permute.xlu0 %1992  ;;  %5994 = vmatpush3.bf16.msra.mxu1 %v6936_v34 }
 0x1dd   : > { %6000 = vmatprep.subr.bf16.mxu1 %v6936_v34  ;;  %v2012_v0 = vsel %vm385_vm2, %v1946_v55, %v1993_v29 }
 0x1df   : > { %v1995_v25 = vpop.permute.xlu1 %1994 }
 0x1e0   : > { %v2142_v37 = vpop.permute.xlu0 %2141  ;;  %v2013_v24 = vsel %vm385_vm2, %v1944_v18, %v1995_v25 }
 0x1e1   : > { %v2144_v2 = vsel %vm312_vm0, %v2138_v57, %v2142_v37 }
 0x1e2   : > { %v2146_v42 = vrot.slane %v2144_v2, 1 }
 0x1e3   : > { %v2002_v63 = vpop.permute.xlu1 %2001 }
 0x1e4   : > { %v2000_v46 = vpop.permute.xlu0 %1999  ;;  %v2015_v43 = vsel %vm296_vm3, %v2013_v24, %v2002_v63  ;;  %v2148_v45 = vsel %vm317_vm1, %v7030_v53, %v2146_v42 }
 0x1e5   : > { %v2014_v10 = vsel %vm296_vm3, %v2012_v0, %v2000_v46  ;;  %v6589_v46 = vld [vmem:[%s6786_s17 + $0xb0] sm:$0xff]  ;;  %s9390_s17 = smov 24  }
 0x1e6   : > { %v7566_v27 = vpop.f32.mrb[0].mxu1 }
 0x1e7   : > { %v7569_v13 = vpop.f32.mrb[1].mxu1  ;;  %v2009_v52 = vpop.permute.xlu1 %2008  ;;  %479 = vrot.lane.b32.xlu1 %v7566_v27, %s9376_s13 }
 0x1e8   : > { %477 = vrot.lane.b32.xlu0 %v7569_v13, %s9376_s13  ;;  %v2007_v35 = vpop.permute.xlu0 %2006  ;;  %v2017_v4 = vsel %vm390_vm4, %v2015_v43, %v2009_v52 }
 0x1e9   : > { %v2016_v14 = vsel %vm390_vm4, %v2014_v10, %v2007_v35 }
 0x1ea   : > { %5672 = vmatprep.mubr.msk.f32.mxu0 %vm393_vm5, %v2016_v14 }
 0x1eb   : > { %v2340_v5 = vpop.permute.xlu1 %2339  ;;  %5673 = vmatmul.mubr.msk.f32.vlgmr.msra.gmra.mrb[0].mxu0 %vm393_vm5, %v2017_v4 }
 0x1ec   : > { %v2195_v41 = vpop.permute.xlu0 %2194  ;;  %5998 = vmatpush3.bf16.msra.mxu0 %v6936_v34 }
 0x1ed   : > { %6004 = vmatprep.subr.bf16.mxu0 %v6936_v34  ;;  %v2214_v11 = vsel %vm385_vm2, %v2148_v45, %v2195_v41 }
 0x1ef   : > { %v2197_v16 = vpop.permute.xlu1 %2196 }
 0x1f0   : > { %v2344_v54 = vpop.permute.xlu0 %2343  ;;  %v2215_v12 = vsel %vm385_vm2, %v2146_v42, %v2197_v16 }
 0x1f1   : > { %v2346_v31 = vsel %vm312_vm0, %v2340_v5, %v2344_v54 }
 0x1f2   : > { %v2348_v28 = vrot.slane %v2346_v31, 1 }
 0x1f3   : > { %v2204_v23 = vpop.permute.xlu1 %2203 }
 0x1f4   : > { %v2202_v17 = vpop.permute.xlu0 %2201  ;;  %v2217_v53 = vsel %vm296_vm3, %v2215_v12, %v2204_v23  ;;  %v2350_v51 = vsel %vm317_vm1, %v7053_v61, %v2348_v28  ;;  %v2998_v61 = vrot.slane %v2996_v59, 1 }
 0x1f5   : > { %v2216_v19 = vsel %vm296_vm3, %v2214_v11, %v2202_v17 }
 0x1f6   : > { %v7587_v48 = vpop.f32.mrb[2].mxu1  ;;  %v3000_v57 = vsel %vm317_vm1, %v7282_v39, %v2998_v61 }
 0x1f7   : > { %v7590_v26 = vpop.f32.mrb[3].mxu1  ;;  %v2211_v21 = vpop.permute.xlu1 %2210  ;;  %689 = vrot.lane.b32.xlu1 %v7587_v48, %s9376_s13 }
 0x1f8   : > { %687 = vrot.lane.b32.xlu0 %v7590_v26, %s9376_s13  ;;  %v2209_v60 = vpop.permute.xlu0 %2208  ;;  %v2219_v58 = vsel %vm390_vm4, %v2217_v53, %v2211_v21 }
 0x1f9   : > { %v2218_v49 = vsel %vm390_vm4, %v2216_v19, %v2209_v60 }
 0x1fa   : > { %5679 = vmatprep.mubr.msk.f32.mxu1 %vm393_vm5, %v2218_v49 }
 0x1fb   : > { %v2399_v8 = vpop.permute.xlu1 %2398  ;;  %5680 = vmatmul.mubr.msk.f32.vlgmr.msra.gmra.mrb[16].mxu1 %vm393_vm5, %v2219_v58 }
 0x1fc   : > { %v2397_v40 = vpop.permute.xlu0 %2396  ;;  %6002 = vmatpush3.bf16.msra.mxu1 %v6936_v34  ;;  %v2417_v22 = vsel %vm385_vm2, %v2348_v28, %v2399_v8 }
 0x1fd   : > { %6008 = vmatprep.subr.bf16.mxu1 %v6936_v34  ;;  %v2416_v30 = vsel %vm385_vm2, %v2350_v51, %v2397_v40 }
 0x1ff   : > { %v2406_v7 = vpop.permute.xlu1 %2405 }
 0x200   : > { %v2404_v56 = vpop.permute.xlu0 %2403  ;;  %v2419_v44 = vsel %vm296_vm3, %v2417_v22, %v2406_v7 }
 0x201   : > { %v2418_v20 = vsel %vm296_vm3, %v2416_v30, %v2404_v56 }
 0x203   : > { %v2413_v9 = vpop.permute.xlu1 %2412 }
 0x204   : > { %v2411_v3 = vpop.permute.xlu0 %2410  ;;  %v2421_v36 = vsel %vm390_vm4, %v2419_v44, %v2413_v9 }
 0x205   : > { %v2420_v38 = vsel %vm390_vm4, %v2418_v20, %v2411_v3 }
 0x206   : > { %v7617_v62 = vpop.f32.mrb[4].mxu1  ;;  %5686 = vmatprep.mubr.msk.f32.mxu0 %vm393_vm5, %v2420_v38 }
 0x207   : > { %v7620_v1 = vpop.f32.mrb[5].mxu1  ;;  %v2546_v32 = vpop.permute.xlu1 %2545  ;;  %891 = vrot.lane.b32.xlu1 %v7617_v62, %s9376_s13  ;;  %5687 = vmatmul.mubr.msk.f32.vlgmr.msra.gmra.mrb[2].mxu0 %vm393_vm5, %v2421_v36 }
 0x208   : > { %889 = vrot.lane.b32.xlu0 %v7620_v1, %s9376_s13  ;;  %v2542_v15 = vpop.permute.xlu0 %2541  ;;  %6006 = vmatpush3.bf16.msra.mxu0 %v6936_v34 }
 0x209   : > { %v2548_v33 = vsel %vm312_vm0, %v2542_v15, %v2546_v32 }
 0x20a   : > { %v2550_v37 = vrot.slane %v2548_v33, 1 }
 0x20b   : > { %v2744_v47 = vpop.permute.xlu1 %2743  ;;  %3018 = vrot.lane.b32.xlu1 %v2998_v61, %s6658_s9 }
 0x20c   : > { %3016 = vrot.lane.b32.xlu0 %v3000_v57, %s6658_s9  ;;  %v2599_v29 = vpop.permute.xlu0 %2598  ;;  %v2552_v55 = vsel %vm317_vm1, %v6589_v46, %v2550_v37  ;;  %s6672_s9 = smov 64  }
 0x20d   : > { %v2618_v52 = vsel %vm385_vm2, %v2552_v55, %v2599_v29 }
 0x20f   : > { %v2601_v25 = vpop.permute.xlu1 %2600 }
 0x210   : > { %v2748_v18 = vpop.permute.xlu0 %2747  ;;  %v2619_v10 = vsel %vm385_vm2, %v2550_v37, %v2601_v25 }
 0x211   : > { %v2750_v2 = vsel %vm312_vm0, %v2744_v47, %v2748_v18 }
 0x212   : > { %v2752_v54 = vrot.slane %v2750_v2, 1 }
 0x213   : > { %v2608_v63 = vpop.permute.xlu1 %2607 }
 0x214   : > { %v2606_v0 = vpop.permute.xlu0 %2605  ;;  %v2621_v43 = vsel %vm296_vm3, %v2619_v10, %v2608_v63  ;;  %v2754_v17 = vsel %vm317_vm1, %v7138_v6, %v2752_v54 }
 0x215   : > { %v2620_v39 = vsel %vm296_vm3, %v2618_v52, %v2606_v0 }
 0x217   : > { %v2615_v24 = vpop.permute.xlu1 %2614 }
 0x218   : > { %v2613_v35 = vpop.permute.xlu0 %2612  ;;  %v2623_v4 = vsel %vm390_vm4, %v2621_v43, %v2615_v24 }
 0x219   : > { %v2622_v14 = vsel %vm390_vm4, %v2620_v39, %v2613_v35 }
 0x21a   : > { %5693 = vmatprep.mubr.msk.f32.mxu1 %vm393_vm5, %v2622_v14 }
 0x21b   : > { %v2946_v5 = vpop.permute.xlu1 %2945  ;;  %5694 = vmatmul.mubr.msk.f32.vlgmr.msra.gmra.mrb[18].mxu1 %vm393_vm5, %v2623_v4 }
 0x21c   : > { %v2801_v41 = vpop.permute.xlu0 %2800  ;;  %6010 = vmatpush3.bf16.msra.mxu1 %v6936_v34 }
 0x21d   : > { %v2820_v11 = vsel %vm385_vm2, %v2754_v17, %v2801_v41 }
 0x21f   : > { %v2803_v16 = vpop.permute.xlu1 %2802 }
 0x220   : > { %v2950_v42 = vpop.permute.xlu0 %2949  ;;  %v2821_v12 = vsel %vm385_vm2, %v2752_v54, %v2803_v16 }
 0x221   : > { %v2952_v9 = vsel %vm312_vm0, %v2946_v5, %v2950_v42  ;;  %vm3230_vm0 = vcmask 654336  }
 0x222   : > { %v2954_v22 = vrot.slane %v2952_v9, 1  ;;  %v7827_v9 = vld [vmem:[%s9368_s2] ss:$0 sm:$0xff] }
 0x223   : > { %v2810_v23 = vpop.permute.xlu1 %2809 }
 0x224   : > { %v2808_v45 = vpop.permute.xlu0 %2807  ;;  %v2823_v34 = vsel %vm296_vm3, %v2821_v12, %v2810_v23  ;;  %v2956_v44 = vsel %vm317_vm1, %v7203_v50, %v2954_v22  ;;  %v6661_v23 = vmov 0.0  }
 0x225   : > { %v2822_v19 = vsel %vm296_vm3, %v2820_v11, %v2808_v45  ;;  %300 = vst.msk [vmem:[#allocation3] sm:$0xff] %vm296_vm3, %v6661_v23  ;;  %297 = vst.msk [vmem:[#allocation2] sm:$0xff] %vm296_vm3, %v6661_v23 }
 0x226   : > { %299 = vst.msk [vmem:[#allocation2 + $0x78] sm:$0xff] %vm296_vm3, %v6661_v23  ;;  %302 = vst.msk [vmem:[#allocation3 + $0x78] sm:$0xff] %vm296_vm3, %v6661_v23 }
 0x227   : > { %v2817_v21 = vpop.permute.xlu1 %2816 }
 0x228   : > { %v2815_v60 = vpop.permute.xlu0 %2814  ;;  %v2825_v49 = vsel %vm390_vm4, %v2823_v34, %v2817_v21 }
 0x229   : > { %v2824_v53 = vsel %vm390_vm4, %v2822_v19, %v2815_v60 }
 0x22a   : > { %5700 = vmatprep.mubr.msk.f32.mxu0 %vm393_vm5, %v2824_v53 }
 0x22b   : > { %5701 = vmatmul.mubr.msk.f32.vlgmr.msra.gmra.mrb[4].mxu0 %vm393_vm5, %v2825_v49  ;;  %v3005_v31 = vpop.permute.xlu1 %3004 }
 0x22c   : > { %v3003_v8 = vpop.permute.xlu0 %3002  ;;  %v3023_v32 = vsel %vm385_vm2, %v2954_v22, %v3005_v31  ;;  %5742 = vmatprep.mubr.msk.f32.mxu0 %vm6675_vm8, %v6661_v23 }
 0x22d   : > { %v3022_v36 = vsel %vm385_vm2, %v2956_v44, %v3003_v8  ;;  %vm3234_vm2 = vcmask 785408  }
 0x22f   : > { %v3012_v28 = vpop.permute.xlu1 %3011 }
 0x230   : > { %v3010_v56 = vpop.permute.xlu0 %3009  ;;  %v3025_v57 = vsel %vm296_vm3, %v3023_v32, %v3012_v28 }
 0x231   : > { %v3024_v15 = vsel %vm296_vm3, %v3022_v36, %v3010_v56 }
 0x250   : > { %v7655_v6 = vpop.f32.mrb[6].mxu1 }
 0x251   : > { %v7657_v58 = vpop.f32.mrb[7].mxu1 }
 0x259   : > { %v480_v51 = vpop.permute.xlu1 %479 }
 0x25a   : > { %v478_v30 = vpop.permute.xlu0 %477  ;;  %v484_v14 = vmax.f32 %v7566_v27, %v480_v51 }
 0x25b   : > { %v483_v4 = vmax.f32 %v7569_v13, %v478_v30 }
 0x269   : > { %v7664_v59 = vpop.permute.xlu1 %689 }
 0x26a   : > { %v7666_v20 = vpop.permute.xlu0 %687  ;;  %v7756_v27 = vmax.f32 %v7587_v48, %v7664_v59 }
 0x26b   : > { %v7760_v13 = vmax.f32 %v7590_v26, %v7666_v20 }
 0x26c   : > { %v7659_v40 = vpop.f32.mrb[8].mxu1 }
 0x26d   : > { %v7661_v7 = vpop.f32.mrb[9].mxu1 }
 0x279   : > { %v7668_v3 = vpop.permute.xlu1 %891 }
 0x27a   : > { %v7672_v38 = vpop.permute.xlu0 %889  ;;  %v7778_v26 = vmax.f32 %v7617_v62, %v7668_v3 }
 0x27b   : > { %v7784_v19 = vmax.f32 %v7620_v1, %v7672_v38 }
 0x27d   : > { %v3019_v61 = vpop.permute.xlu1 %3018 }
 0x27e   : > { %v3017_v47 = vpop.permute.xlu0 %3016  ;;  %v3027_v33 = vsel %vm390_vm4, %v3025_v57, %v3019_v61 }
 0x27f   : > { %v3026_v29 = vsel %vm390_vm4, %v3024_v15, %v3017_v47  ;;  %vm3236_vm4 = vcmask 850944  }
 0x280   : > { %5707 = vmatprep.mubr.msk.f32.mxu1 %vm393_vm5, %v3026_v29 }
 0x281   : > { %5708 = vmatmul.mubr.msk.f32.vlgmr.msra.gmra.mrb[20].mxu1 %vm393_vm5, %v3027_v33 }
 0x282   : > { %5777 = vmatprep.mubr.msk.f32.mxu1 %vm6675_vm8, %v6661_v23 }
 0x288   : > { %v7682_v50 = vpop.f32.mrb[10].mxu1 }
 0x289   : > { %v7684_v25 = vpop.f32.mrb[11].mxu1 }
 0x29a   : > { %v7686_v37 = vpop.f32.mrb[12].mxu1 }
 0x29b   : > { %v7688_v18 = vpop.f32.mrb[13].mxu1 }
 0x2ae   : > { %v7690_v63 = vpop.f32.mrb[14].mxu1 }
 0x2af   : > { %v7692_v46 = vpop.f32.mrb[15].mxu1 }
 0x2be   : > { %v5674_v55 = vpop.f32.mrb[0].mxu0 }
 0x2bf   : > { %2103 = vrot.lane.b32.xlu1 %v5674_v55, %s9376_s13  ;;  %v2090_v0 = vpop.f32.mrb[1].mxu0 }
 0x2c0   : > { %2101 = vrot.lane.b32.xlu0 %v2090_v0, %s9376_s13 }
 0x2ce   : > { %v7696_v52 = vpop.f32.mrb[16].mxu1 }
 0x2cf   : > { %v7698_v24 = vpop.f32.mrb[17].mxu1 }
 0x2da   : > { %v5688_v10 = vpop.f32.mrb[2].mxu0 }
 0x2db   : > { %2507 = vrot.lane.b32.xlu1 %v5688_v10, %s9376_s13  ;;  %v2494_v39 = vpop.f32.mrb[3].mxu0 }
 0x2dc   : > { %2505 = vrot.lane.b32.xlu0 %v2494_v39, %s9376_s13 }
 0x2df   : > { %1093 = vrot.lane.b32.xlu1 %v7655_v6, %s9376_s13 }
 0x2e0   : > { %1091 = vrot.lane.b32.xlu0 %v7657_v58, %s9376_s13 }
 0x2e3   : > { %1295 = vrot.lane.b32.xlu1 %v7659_v40, %s9376_s13 }
 0x2e4   : > { %1293 = vrot.lane.b32.xlu0 %v7661_v7, %s9376_s13 }
 0x2e7   : > { %1497 = vrot.lane.b32.xlu1 %v7682_v50, %s9376_s13 }
 0x2e8   : > { %1495 = vrot.lane.b32.xlu0 %v7684_v25, %s9376_s13 }
 0x2eb   : > { %1699 = vrot.lane.b32.xlu1 %v7686_v37, %s9376_s13 }
 0x2ec   : > { %1697 = vrot.lane.b32.xlu0 %v7688_v18, %s9376_s13 }
 0x2ee   : > { %v7718_v35 = vpop.f32.mrb[18].mxu1 }
 0x2ef   : > { %1901 = vrot.lane.b32.xlu1 %v7690_v63, %s9376_s13  ;;  %v7722_v43 = vpop.f32.mrb[19].mxu1 }
 0x2f0   : > { %1899 = vrot.lane.b32.xlu0 %v7692_v46, %s9376_s13 }
 0x2f3   : > { %2305 = vrot.lane.b32.xlu1 %v7696_v52, %s9376_s13 }
 0x2f4   : > { %2303 = vrot.lane.b32.xlu0 %v7698_v24, %s9376_s13 }
 0x2f7   : > { %489 = vrot.lane.b32.xlu1 %v484_v14, %s6660_s14 }
 0x2f8   : > { %487 = vrot.lane.b32.xlu0 %v483_v4, %s6660_s14 }
 0x2fe   : > { %v7734_v5 = vpop.f32.mrb[4].mxu0 }
 0x2ff   : > { %v7736_v41 = vpop.f32.mrb[5].mxu0 }
 0x331   : > { %v2104_v2 = vpop.permute.xlu1 %2103 }
 0x332   : > { %v7738_v16 = vmax.f32 %v5674_v55, %v2104_v2  ;;  %v2102_v54 = vpop.permute.xlu0 %2101 }
 0x333   : > { %v7740_v42 = vmax.f32 %v2090_v0, %v2102_v54 }
 0x334   : > { %2113 = vrot.lane.b32.xlu1 %v7738_v16, %s6660_s14 }
 0x335   : > { %2111 = vrot.lane.b32.xlu0 %v7740_v42, %s6660_s14 }
 0x338   : > { %699 = vrot.lane.b32.xlu1 %v7756_v27, %s6660_s14 }
 0x339   : > { %697 = vrot.lane.b32.xlu0 %v7760_v13, %s6660_s14 }
 0x34d   : > { %v2508_v17 = vpop.permute.xlu1 %2507 }
 0x34e   : > { %v7766_v45 = vmax.f32 %v5688_v10, %v2508_v17  ;;  %v2506_v11 = vpop.permute.xlu0 %2505 }
 0x34f   : > { %v7768_v21 = vmax.f32 %v2494_v39, %v2506_v11 }
 0x350   : > { %2517 = vrot.lane.b32.xlu1 %v7766_v45, %s6660_s14 }
 0x351   : > { %v7772_v48 = vpop.permute.xlu1 %1093  ;;  %2515 = vrot.lane.b32.xlu0 %v7768_v21, %s6660_s14 }
 0x352   : > { %v7780_v12 = vpop.permute.xlu0 %1091 }
 0x354   : > { %901 = vrot.lane.b32.xlu1 %v7778_v26, %s6660_s14  ;;  %v7788_v60 = vpop.f32.mrb[20].mxu1 }
 0x355   : > { %v7790_v34 = vpop.permute.xlu1 %1295  ;;  %v7792_v53 = vpop.f32.mrb[21].mxu1  ;;  %899 = vrot.lane.b32.xlu0 %v7784_v19, %s6660_s14 }
 0x356   : > { %v7796_v62 = vpop.permute.xlu0 %1293 }
 0x358   : > { %2709 = vrot.lane.b32.xlu1 %v7718_v35, %s9376_s13 }
 0x359   : > { %v7800_v49 = vpop.permute.xlu1 %1497  ;;  %2707 = vrot.lane.b32.xlu0 %v7722_v43, %s9376_s13 }
 0x35a   : > { %v7804_v1 = vpop.permute.xlu0 %1495 }
 0x35c   : > { %2911 = vrot.lane.b32.xlu1 %v7734_v5, %s9376_s13 }
 0x35d   : > { %v7808_v31 = vpop.permute.xlu1 %1699  ;;  %2909 = vrot.lane.b32.xlu0 %v7736_v41, %s9376_s13 }
 0x35e   : > { %v7812_v8 = vpop.permute.xlu0 %1697 }
 0x361   : > { %v7814_v28 = vpop.permute.xlu1 %1901  ;;  %3111 = vrot.lane.b32.xlu0 %v7792_v53, %s9376_s13 }
 0x362   : > { %v7818_v56 = vpop.permute.xlu0 %1899 }
 0x365   : > { %v7820_v51 = vpop.permute.xlu1 %2305 }
 0x366   : > { %v7822_v30 = vpop.permute.xlu0 %2303 }
 0x369   : > { %v490_v59 = vpop.permute.xlu1 %489 }
 0x36a   : > { %v494_v22 = vmax.f32 %v484_v14, %v490_v59  ;;  %v488_v20 = vpop.permute.xlu0 %487 }
 0x36b   : > { %v493_v3 = vmax.f32 %v483_v4, %v488_v20 }
 0x36c   : > { %v502_v44 = vadd.f32 %v7827_v9, %v494_v22 }
 0x36d   : > { %v501_v38 = vadd.f32 %v7827_v9, %v493_v3 }
 0x36e   : > { %v504_v36 = vmax.f32 %v502_v44, 0.0 }
 0x36f   : > { %v503_v61 = vmax.f32 %v501_v38, 0.0 }
 0x370   : > { %v512_v32 = vrot.slane %v504_v36, 6 }
 0x371   : > { %v505_v15 = vsel %vm317_vm1, %v503_v61, 0.0  ;;  %v511_v47 = vrot.slane %v503_v61, 6 }
 0x372   : > { %507 = vst.msk [vmem:[#allocation3 + $0x8] sm:$0xff] %vm296_vm3, %v505_v15 }
 0x373   : > { %v513_v57 = vsel %vm510_vm6, %v511_v47, %v512_v32 }
 0x374   : > { %v516_v29 = vsel %vm515_vm7, 0.0, %v513_v57 }
 0x375   : > { %518 = vst.msk [vmem:[#allocation2 + $0x8] sm:$0xff] %vm296_vm3, %v516_v29 }
 0x3a6   : > { %v2114_v33 = vpop.permute.xlu1 %2113 }
 0x3a7   : > { %v2118_v55 = vmax.f32 %v7738_v16, %v2114_v33  ;;  %v2112_v0 = vpop.permute.xlu0 %2111 }
 0x3a8   : > { %v2117_v10 = vmax.f32 %v7740_v42, %v2112_v0 }
 0x3a9   : > { %v2120_v39 = vadd.f32 %v7827_v9, %v2118_v55 }
 0x3aa   : > { %v2119_v14 = vadd.f32 %v7827_v9, %v2117_v10  ;;  %v700_v4 = vpop.permute.xlu1 %699 }
 0x3ab   : > { %v2122_v2 = vmax.f32 %v2120_v39, 0.0  ;;  %v704_v54 = vmax.f32 %v7756_v27, %v700_v4  ;;  %v698_v17 = vpop.permute.xlu0 %697 }
 0x3ac   : > { %v2121_v11 = vmax.f32 %v2119_v14, 0.0  ;;  %v703_v59 = vmax.f32 %v7760_v13, %v698_v17 }
 0x3ad   : > { %v2129_v22 = vrot.slane %v2122_v2, 6  ;;  %v706_v20 = vadd.f32 %v7827_v9, %v704_v54 }
 0x3ae   : > { %v2123_v16 = vsel %vm317_vm1, %v2121_v11, 0.0  ;;  %v2128_v3 = vrot.slane %v2121_v11, 6  ;;  %v705_v42 = vadd.f32 %v7827_v9, %v703_v59 }
 0x3af   : > { %2125 = vst.msk [vmem:[#allocation3 + $0x48] sm:$0xff] %vm296_vm3, %v2123_v16  ;;  %v708_v44 = vmax.f32 %v706_v20, 0.0 }
 0x3b0   : > { %v2130_v38 = vsel %vm510_vm6, %v2128_v3, %v2129_v22  ;;  %v707_v36 = vmax.f32 %v705_v42, 0.0 }
 0x3b1   : > { %v2132_v27 = vsel %vm515_vm7, 0.0, %v2130_v38  ;;  %v715_v61 = vrot.slane %v708_v44, 6 }
 0x3b2   : > { %2134 = vst.msk [vmem:[#allocation2 + $0x48] sm:$0xff] %vm296_vm3, %v2132_v27  ;;  %v709_v13 = vsel %vm317_vm1, %v707_v36, 0.0  ;;  %v714_v32 = vrot.slane %v707_v36, 6 }
 0x3b3   : > { %711 = vst.msk [vmem:[#allocation3 + $0x10] sm:$0xff] %vm296_vm3, %v709_v13 }
 0x3b4   : > { %v716_v15 = vsel %vm510_vm6, %v714_v32, %v715_v61 }
 0x3b5   : > { %v718_v47 = vsel %vm515_vm7, 0.0, %v716_v15 }
 0x3b6   : > { %720 = vst.msk [vmem:[#allocation2 + $0x10] sm:$0xff] %vm296_vm3, %v718_v47 }
 0x3c2   : > { %v2518_v57 = vpop.permute.xlu1 %2517 }
 0x3c3   : > { %v2522_v29 = vmax.f32 %v7766_v45, %v2518_v57  ;;  %v2516_v33 = vpop.permute.xlu0 %2515  ;;  %v7881_v57 = vmax.f32 %v7655_v6, %v7772_v48  ;;  %v7905_v6 = vmax.f32 %v7682_v50, %v7800_v49  ;;  %v7929_v50 = vmax.f32 %v7692_v46, %v7818_v56  ;;  %v3148_v49 = vld [vmem:[#allocation3 + $0x8] sm:$0xff] }
 0x3c4   : > { %v2521_v55 = vmax.f32 %v7768_v21, %v2516_v33 }
 0x3c5   : > { %v2524_v0 = vadd.f32 %v7827_v9, %v2522_v29  ;;  %v7897_v29 = vmax.f32 %v7661_v7, %v7796_v62  ;;  %v7921_v7 = vmax.f32 %v7688_v18, %v7812_v8  ;;  %v7949_v18 = vmax.f32 %v7696_v52, %v7820_v51  ;;  %v3146_v52 = vld [vmem:[#allocation3] sm:$0xff] }
 0x3c6   : > { %v2523_v10 = vadd.f32 %v7827_v9, %v2521_v55  ;;  %v902_v39 = vpop.permute.xlu1 %901  ;;  %v3178_v8 = vrot.slane %v3148_v49, 1 }
 0x3c7   : > { %v2526_v14 = vmax.f32 %v2524_v0, 0.0  ;;  %v906_v4 = vmax.f32 %v7778_v26, %v902_v39  ;;  %v900_v2 = vpop.permute.xlu0 %899 }
 0x3c8   : > { %v2525_v54 = vmax.f32 %v2523_v10, 0.0  ;;  %v905_v17 = vmax.f32 %v7784_v19, %v900_v2 }
 0x3c9   : > { %v2533_v11 = vrot.slane %v2526_v14, 6  ;;  %v908_v59 = vadd.f32 %v7827_v9, %v906_v4 }
 0x3ca   : > { %v2527_v45 = vsel %vm317_vm1, %v2525_v54, 0.0  ;;  %v2532_v22 = vrot.slane %v2525_v54, 6  ;;  %v907_v21 = vadd.f32 %v7827_v9, %v905_v17  ;;  %v2710_v20 = vpop.permute.xlu1 %2709 }
 0x3cb   : > { %2529 = vst.msk [vmem:[#allocation3 + $0x58] sm:$0xff] %vm296_vm3, %v2527_v45  ;;  %v910_v16 = vmax.f32 %v908_v59, 0.0  ;;  %v2708_v3 = vpop.permute.xlu0 %2707 }
 0x3cc   : > { %v2534_v42 = vsel %vm510_vm6, %v2532_v22, %v2533_v11  ;;  %v909_v26 = vmax.f32 %v907_v21, 0.0  ;;  %v7952_v46 = vmax.f32 %v7722_v43, %v2708_v3 }
 0x3cd   : > { %v2536_v44 = vsel %vm515_vm7, 0.0, %v2534_v42  ;;  %v917_v38 = vrot.slane %v910_v16, 6 }
 0x3ce   : > { %2538 = vst.msk [vmem:[#allocation2 + $0x58] sm:$0xff] %vm296_vm3, %v2536_v44  ;;  %v911_v19 = vsel %vm317_vm1, %v909_v26, 0.0  ;;  %v916_v36 = vrot.slane %v909_v26, 6  ;;  %v2912_v27 = vpop.permute.xlu1 %2911 }
 0x3cf   : > { %913 = vst.msk [vmem:[#allocation3 + $0x18] sm:$0xff] %vm296_vm3, %v911_v19  ;;  %v7870_v61 = vmax.f32 %v7734_v5, %v2912_v27  ;;  %v2910_v13 = vpop.permute.xlu0 %2909  ;;  %v7885_v5 = vmax.f32 %v7657_v58, %v7780_v12  ;;  %v7909_v58 = vmax.f32 %v7684_v25, %v7804_v1  ;;  %v7937_v25 = vmax.f32 %v7690_v63, %v7814_v28  ;;  %v7966_v12 = vld [vmem:[#allocation3 + $0x10] sm:$0xff] }
 0x3d0   : > { %v918_v32 = vsel %vm510_vm6, %v916_v36, %v917_v38  ;;  %v2915_v15 = vmax.f32 %v7736_v41, %v2910_v13  ;;  %v7893_v41 = vmax.f32 %v7659_v40, %v7790_v34  ;;  %v7917_v40 = vmax.f32 %v7686_v37, %v7808_v31 }
 0x3d1   : > { %v920_v47 = vsel %vm515_vm7, 0.0, %v918_v32  ;;  %2921 = vrot.lane.b32.xlu1 %v7870_v61, %s6660_s14  ;;  %v7941_v37 = vmax.f32 %v7698_v24, %v7822_v30  ;;  %v7959_v63 = vmax.f32 %v7718_v35, %v2710_v20  ;;  %v6257_v43 = vpack.i.bf16 %v7966_v12, %v3146_v52 }
 0x3d2   : > { %922 = vst.msk [vmem:[#allocation2 + $0x18] sm:$0xff] %vm296_vm3, %v920_v47  ;;  %2919 = vrot.lane.b32.xlu0 %v2915_v15, %s6660_s14  ;;  %v3162_v34 = vrot.slane %v3146_v52, 1  ;;  %v3349_v62 = vrot.slane %v7966_v12, 1  ;;  %v6665_v20 = vmov 0.0|0.0  }
 0x3d3   : > { %v3112_v48 = vpop.permute.xlu0 %3111  ;;  %6011 = vmatprep.subr.bf16.mxu0 %v6665_v20  ;;  %6035 = vmatprep.subr.bf16.mxu1 %v6665_v20 }
 0x3d4   : > { %v7962_v24 = vmax.f32 %v7792_v53, %v3112_v48  ;;  %v6262_v35 = vpack.i.bf16 %v3349_v62, %v3162_v34 }
 0x3d5   : > { %1103 = vrot.lane.b32.xlu1 %v7881_v57, %s6660_s14 }
 0x3d6   : > { %1101 = vrot.lane.b32.xlu0 %v7885_v5, %s6660_s14  ;;  %v7975_v53 = vld [vmem:[#allocation3 + $0x18] sm:$0xff] }
 0x3d7   : > { %v6267_v1 = vpack.i.bf16 %v7975_v53, %v3148_v49  ;;  %v3365_v31 = vrot.slane %v7975_v53, 1  ;;  %v278_v49 = vld [vmem:[%s9369_s3] sm:$0xff] }
 0x3d9   : > { %1305 = vrot.lane.b32.xlu1 %v7893_v41, %s6660_s14  ;;  %v6277_v28 = vpack.i.bf16 %v3365_v31, %v3178_v8 }
 0x3da   : > { %1303 = vrot.lane.b32.xlu0 %v7897_v29, %s6660_s14 }
 0x3dd   : > { %1507 = vrot.lane.b32.xlu1 %v7905_v6, %s6660_s14 }
 0x3de   : > { %1505 = vrot.lane.b32.xlu0 %v7909_v58, %s6660_s14 }
 0x3e1   : > { %1709 = vrot.lane.b32.xlu1 %v7917_v40, %s6660_s14 }
 0x3e2   : > { %1707 = vrot.lane.b32.xlu0 %v7921_v7, %s6660_s14 }
 0x3e5   : > { %3113 = vrot.lane.b32.xlu1 %v7788_v60, %s9376_s13 }
 0x3e6   : > { %1909 = vrot.lane.b32.xlu0 %v7929_v50, %s6660_s14 }
 0x3e9   : > { %1911 = vrot.lane.b32.xlu1 %v7937_v25, %s6660_s14 }
 0x3ea   : > { %2313 = vrot.lane.b32.xlu0 %v7941_v37, %s6660_s14 }
 0x3ed   : > { %2315 = vrot.lane.b32.xlu1 %v7949_v18, %s6660_s14 }
 0x3ee   : > { %2717 = vrot.lane.b32.xlu0 %v7952_v46, %s6660_s14 }
 0x3f1   : > { %2719 = vrot.lane.b32.xlu1 %v7959_v63, %s6660_s14 }
 0x3f2   : > { %3121 = vrot.lane.b32.xlu0 %v7962_v24, %s6660_s14 }
 0x3f6   : > { %6258 = vrot.lane.b32.xlu0 %v6257_v43, %s6657_s8 }
 0x3fa   : > { %6263 = vrot.lane.b32.xlu0 %v6262_v35, %s9390_s17  ;;  %v8009_v35 = vld [vmem:[#allocation2] sm:$0xff] }
 0x3fe   : > { %6268 = vrot.lane.b32.xlu0 %v6267_v1, %s9388_s18  ;;  %s6674_s18 = smov 96  }
 0x402   : > { %6278 = vrot.lane.b32.xlu0 %v6277_v28, %s9384_s19  ;;  %s9395_s19 = smov 40  }
 0x443   : > { %v2922_v56 = vpop.permute.xlu1 %2921 }
 0x444   : > { %v2926_v51 = vmax.f32 %v7870_v61, %v2922_v56  ;;  %v2920_v30 = vpop.permute.xlu0 %2919  ;;  %v8020_v56 = vld [vmem:[#allocation2 + $0x10] sm:$0xff] }
 0x445   : > { %v2925_v33 = vmax.f32 %v2915_v15, %v2920_v30 }
 0x446   : > { %v2928_v55 = vadd.f32 %v7827_v9, %v2926_v51 }
 0x447   : > { %v2927_v0 = vadd.f32 %v7827_v9, %v2925_v33  ;;  %v1104_v10 = vpop.permute.xlu1 %1103 }
 0x448   : > { %v2930_v39 = vmax.f32 %v2928_v55, 0.0  ;;  %v1108_v14 = vmax.f32 %v7881_v57, %v1104_v10  ;;  %v1102_v4 = vpop.permute.xlu0 %1101 }
 0x449   : > { %v2929_v2 = vmax.f32 %v2927_v0, 0.0  ;;  %v1107_v54 = vmax.f32 %v7885_v5, %v1102_v4 }
 0x44a   : > { %v2937_v17 = vrot.slane %v2930_v39, 6  ;;  %v1110_v11 = vadd.f32 %v7827_v9, %v1108_v14  ;;  %v3158_v14 = vrot.slane %v8009_v35, 1 }
 0x44b   : > { %v2931_v59 = vsel %vm317_vm1, %v2929_v2, 0.0  ;;  %v2936_v45 = vrot.slane %v2929_v2, 6  ;;  %v1109_v22 = vadd.f32 %v7827_v9, %v1107_v54  ;;  %v1306_v21 = vpop.permute.xlu1 %1305 }
 0x44c   : > { %2933 = vst.msk [vmem:[#allocation3 + $0x68] sm:$0xff] %vm296_vm3, %v2931_v59  ;;  %v1112_v16 = vmax.f32 %v1110_v11, 0.0  ;;  %v1310_v3 = vmax.f32 %v7893_v41, %v1306_v21  ;;  %v1304_v42 = vpop.permute.xlu0 %1303  ;;  %v281_v21 = vld [vmem:[%s9369_s3 + $0x18] sm:$0xff] }
 0x44d   : > { %v2938_v26 = vsel %vm510_vm6, %v2936_v45, %v2937_v17  ;;  %v1111_v44 = vmax.f32 %v1109_v22, 0.0  ;;  %v1309_v38 = vmax.f32 %v7897_v29, %v1304_v42  ;;  %v3345_v17 = vrot.slane %v8020_v56, 1  ;;  %v280_v22 = vld [vmem:[%s9369_s3 + $0x10] sm:$0xff] }
 0x44e   : > { %v2940_v19 = vsel %vm515_vm7, 0.0, %v2938_v26  ;;  %v1119_v36 = vrot.slane %v1112_v16, 6  ;;  %v1312_v27 = vadd.f32 %v7827_v9, %v1310_v3 }
 0x44f   : > { %2942 = vst.msk [vmem:[#allocation2 + $0x68] sm:$0xff] %vm296_vm3, %v2940_v19  ;;  %v1113_v61 = vsel %vm317_vm1, %v1111_v44, 0.0  ;;  %v1118_v13 = vrot.slane %v1111_v44, 6  ;;  %v1311_v32 = vadd.f32 %v7827_v9, %v1309_v38  ;;  %v1508_v15 = vpop.permute.xlu1 %1507 }
 0x450   : > { %1115 = vst.msk [vmem:[#allocation3 + $0x20] sm:$0xff] %vm296_vm3, %v1113_v61  ;;  %v1314_v47 = vmax.f32 %v1312_v27, 0.0  ;;  %v1512_v57 = vmax.f32 %v7905_v6, %v1508_v15  ;;  %v1506_v5 = vpop.permute.xlu0 %1505  ;;  %v279_v6 = vld [vmem:[%s9369_s3 + $0x8] sm:$0xff] }
 0x451   : > { %v1120_v41 = vsel %vm510_vm6, %v1118_v13, %v1119_v36  ;;  %v1313_v29 = vmax.f32 %v1311_v32, 0.0  ;;  %v1511_v48 = vmax.f32 %v7909_v58, %v1506_v5  ;;  %v8022_v51 = vpack.c.bf16 %v279_v6, %v278_v49 }
 0x452   : > { %v1122_v52 = vsel %vm515_vm7, 0.0, %v1120_v41  ;;  %v1321_v43 = vrot.slane %v1314_v47, 6  ;;  %v1514_v34 = vadd.f32 %v7827_v9, %v1512_v57  ;;  %v6272_v41 = vpack.i.bf16 %v3345_v17, %v3158_v14 }
 0x453   : > { %1124 = vst.msk [vmem:[#allocation2 + $0x20] sm:$0xff] %vm296_vm3, %v1122_v52  ;;  %v1315_v1 = vsel %vm317_vm1, %v1313_v29, 0.0  ;;  %v1320_v58 = vrot.slane %v1313_v29, 6  ;;  %v1513_v8 = vadd.f32 %v7827_v9, %v1511_v48  ;;  %v1710_v28 = vpop.permute.xlu1 %1709  ;;  %6013 = vmatpush3.bf16.msra.mxu0 %v8022_v51  ;;  %6037 = vmatpush3.bf16.msra.mxu1 %v8022_v51 }
 0x454   : > { %1317 = vst.msk [vmem:[#allocation3 + $0x28] sm:$0xff] %vm296_vm3, %v1315_v1  ;;  %v1516_v30 = vmax.f32 %v1514_v34, 0.0  ;;  %v1714_v33 = vmax.f32 %v7917_v40, %v1710_v28  ;;  %v1708_v55 = vpop.permute.xlu0 %1707  ;;  %6014 = vmatprep.subr.bf16.mxu0 %v6665_v20  ;;  %6038 = vmatprep.subr.bf16.mxu1 %v6665_v20  ;;  %v283_v28 = vld [vmem:[%s9369_s3 + $0x28] sm:$0xff] }
 0x455   : > { %v1322_v0 = vsel %vm510_vm6, %v1320_v58, %v1321_v43  ;;  %v1515_v10 = vmax.f32 %v1513_v8, 0.0  ;;  %v1713_v39 = vmax.f32 %v7921_v7, %v1708_v55  ;;  %v282_v8 = vld [vmem:[%s9369_s3 + $0x20] sm:$0xff] }
 0x456   : > { %v1324_v4 = vsel %vm515_vm7, 0.0, %v1322_v0  ;;  %v1523_v2 = vrot.slane %v1516_v30, 6  ;;  %v1716_v54 = vadd.f32 %v7827_v9, %v1714_v33 }
 0x457   : > { %1326 = vst.msk [vmem:[#allocation2 + $0x28] sm:$0xff] %vm296_vm3, %v1324_v4  ;;  %v1517_v40 = vsel %vm317_vm1, %v1515_v10, 0.0  ;;  %v1522_v7 = vrot.slane %v1515_v10, 6  ;;  %v1715_v11 = vadd.f32 %v7827_v9, %v1713_v39  ;;  %v3114_v59 = vpop.permute.xlu1 %3113  ;;  %v8039_v45 = vld [vmem:[#allocation3 + $0x20] sm:$0xff] }
 0x458   : > { %1519 = vst.msk [vmem:[#allocation3 + $0x30] sm:$0xff] %vm296_vm3, %v1517_v40  ;;  %v1718_v16 = vmax.f32 %v1716_v54, 0.0  ;;  %v8049_v3 = vmax.f32 %v7788_v60, %v3114_v59  ;;  %v1910_v42 = vpop.permute.xlu0 %1909  ;;  %v6287_v26 = vpack.i.bf16 %v8039_v45, %v7966_v12  ;;  %v3381_v44 = vrot.slane %v8039_v45, 1 }
 0x459   : > { %v1524_v38 = vsel %vm510_vm6, %v1522_v7, %v1523_v2  ;;  %v1717_v19 = vmax.f32 %v1715_v11, 0.0  ;;  %v1915_v36 = vmax.f32 %v7929_v50, %v1910_v42  ;;  %v8060_v60 = vpack.c.bf16 %v281_v21, %v280_v22  ;;  %v8065_v50 = vld [vmem:[#allocation2 + $0x18] sm:$0xff] }
 0x45a   : > { %v1526_v27 = vsel %vm515_vm7, 0.0, %v1524_v38  ;;  %v1725_v61 = vrot.slane %v1718_v16, 6  ;;  %3123 = vrot.lane.b32.xlu1 %v8049_v3, %s6660_s14  ;;  %6288 = vrot.lane.b32.xlu0 %v6287_v26, %s9382_s20  ;;  %v6297_v29 = vpack.i.bf16 %v3381_v44, %v3349_v62  ;;  %v3147_v62 = vld [vmem:[#allocation2 + $0x8] sm:$0xff]  ;;  %v3361_v49 = vrot.slane %v8065_v50, 1  ;;  %v8119_v16 = vld [vmem:[#allocation2 + $0x20] sm:$0xff]  ;;  %s6673_s20 = smov 80  }
 0x45b   : > { %1528 = vst.msk [vmem:[#allocation2 + $0x30] sm:$0xff] %vm296_vm3, %v1526_v27  ;;  %v1719_v13 = vsel %vm317_vm1, %v1717_v19, 0.0  ;;  %v1724_v32 = vrot.slane %v1717_v19, 6  ;;  %v1917_v15 = vadd.f32 %v7827_v9, %v1915_v36  ;;  %v1912_v47 = vpop.permute.xlu1 %1911  ;;  %v8075_v48 = vld [vmem:[#allocation3 + $0x28] sm:$0xff]  ;;  %6016 = vmatpush3.bf16.msra.mxu0 %v8060_v60  ;;  %6040 = vmatpush3.bf16.msra.mxu1 %v8060_v60  ;;  %v6282_v0 = vpack.i.bf16 %v8065_v50, %v3147_v62 }
 0x45c   : > { %1721 = vst.msk [vmem:[#allocation3 + $0x38] sm:$0xff] %vm296_vm3, %v1719_v13  ;;  %v1916_v57 = vmax.f32 %v7937_v25, %v1912_v47  ;;  %v2314_v5 = vpop.permute.xlu0 %2313  ;;  %6017 = vmatprep.subr.bf16.mxu0 %v6665_v20  ;;  %6041 = vmatprep.subr.bf16.mxu1 %v6665_v20  ;;  %v3397_v58 = vrot.slane %v8075_v48, 1  ;;  %v6307_v10 = vpack.i.bf16 %v8075_v48, %v7975_v53  ;;  %v3174_v4 = vrot.slane %v3147_v62, 1 }
 0x45d   : > { %v1726_v52 = vsel %vm510_vm6, %v1724_v32, %v1725_v61  ;;  %v1919_v43 = vmax.f32 %v1917_v15, 0.0  ;;  %v2319_v25 = vmax.f32 %v7941_v37, %v2314_v5  ;;  %v8109_v7 = vpack.c.bf16 %v283_v28, %v282_v8  ;;  %v284_v8 = vld [vmem:[%s9369_s3 + $0x30] sm:$0xff]  ;;  %v285_v28 = vld [vmem:[%s9369_s3 + $0x38] sm:$0xff] }
 0x45e   : > { %v1728_v12 = vsel %vm515_vm7, 0.0, %v1726_v52  ;;  %v1918_v34 = vadd.f32 %v7827_v9, %v1916_v57  ;;  %6273 = vrot.lane.b32.xlu1 %v6272_v41, %s9380_s21  ;;  %6298 = vrot.lane.b32.xlu0 %v6297_v29, %s9378_s22  ;;  %v6292_v22 = vpack.i.bf16 %v3361_v49, %v3174_v4  ;;  %v6327_v21 = vpack.i.bf16 %v3397_v58, %v3365_v31  ;;  %v3501_v62 = vld [vmem:[#allocation2 + $0x28] sm:$0xff]  ;;  %s9397_s22 = smov 56  }
 0x45f   : > { %1730 = vst.msk [vmem:[#allocation2 + $0x38] sm:$0xff] %vm296_vm3, %v1728_v12  ;;  %v1921_v37 = vsel %vm317_vm1, %v1919_v43, 0.0  ;;  %v2321_v6 = vadd.f32 %v7827_v9, %v2319_v25  ;;  %v2316_v1 = vpop.permute.xlu1 %2315  ;;  %v1926_v2 = vrot.slane %v1919_v43, 6  ;;  %6019 = vmatpush3.bf16.msra.mxu0 %v8109_v7  ;;  %6043 = vmatpush3.bf16.msra.mxu1 %v8109_v7  ;;  %v3512_v32 = vrot.slane %v8119_v16, 1 }
 0x460   : > { %1923 = vst.msk [vmem:[#allocation3 + $0x40] sm:$0xff] %vm296_vm3, %v1921_v37  ;;  %v1920_v30 = vmax.f32 %v1918_v34, 0.0  ;;  %v2320_v33 = vmax.f32 %v7949_v18, %v2316_v1  ;;  %v2718_v55 = vpop.permute.xlu0 %2717  ;;  %6020 = vmatprep.subr.bf16.mxu0 %v6665_v20  ;;  %6044 = vmatprep.subr.bf16.mxu1 %v6665_v20  ;;  %v6302_v5 = vpack.i.bf16 %v8119_v16, %v8020_v56 }
 0x461   : > { %v2323_v39 = vmax.f32 %v2321_v6, 0.0  ;;  %v2723_v14 = vmax.f32 %v7952_v46, %v2718_v55  ;;  %v6312_v6 = vpack.i.bf16 %v3512_v32, %v3345_v17  ;;  %v286_v17 = vld [vmem:[%s9369_s3 + $0x40] sm:$0xff]  ;;  %v8177_v55 = vld [vmem:[#allocation2 + $0x48] sm:$0xff] }
 0x462   : > { %v1927_v54 = vrot.slane %v1920_v30, 6  ;;  %v2322_v40 = vadd.f32 %v7827_v9, %v2320_v33  ;;  %6283 = vrot.lane.b32.xlu1 %v6282_v0, %s6669_s16  ;;  %6308 = vrot.lane.b32.xlu0 %v6307_v10, %s9386_s23  ;;  %v8107_v18 = vld [vmem:[#allocation2 + $0x30] sm:$0xff]  ;;  %v287_v33 = vld [vmem:[%s9369_s3 + $0x48] sm:$0xff]  ;;  %v8179_v0 = vpack.c.bf16 %v285_v28, %v284_v8  ;;  %v6317_v10 = vpack.i.bf16 %v3501_v62, %v8065_v50  ;;  %v290_v50 = vld [vmem:[%s9369_s3 + $0x60] sm:$0xff]  ;;  %s9398_s23 = smov 72  }
 0x463   : > { %v2325_v11 = vsel %vm317_vm1, %v2323_v39, 0.0  ;;  %v2725_v59 = vadd.f32 %v7827_v9, %v2723_v14  ;;  %v2720_v46 = vpop.permute.xlu1 %2719  ;;  %v3679_v36 = vrot.slane %v8107_v18, 1  ;;  %v2330_v61 = vrot.slane %v2323_v39, 6 }
 0x464   : > { %v1928_v42 = vsel %vm510_vm6, %v1926_v2, %v1927_v54  ;;  %2327 = vst.msk [vmem:[#allocation3 + $0x50] sm:$0xff] %vm296_vm3, %v2325_v11  ;;  %v2324_v26 = vmax.f32 %v2322_v40, 0.0  ;;  %v2724_v38 = vmax.f32 %v7959_v63, %v2720_v46  ;;  %v3122_v19 = vpop.permute.xlu0 %3121  ;;  %v3393_v14 = vrot.slane %v3501_v62, 1  ;;  %6022 = vmatpush3.bf16.msra.mxu0 %v8179_v0  ;;  %6046 = vmatpush3.bf16.msra.mxu1 %v8179_v0  ;;  %v288_v54 = vld [vmem:[%s9369_s3 + $0x50] sm:$0xff]  ;;  %v289_v40 = vld [vmem:[%s9369_s3 + $0x58] sm:$0xff] }
 0x465   : > { %v1930_v53 = vsel %vm515_vm7, 0.0, %v1928_v42  ;;  %v2727_v27 = vmax.f32 %v2725_v59, 0.0  ;;  %v3127_v31 = vmax.f32 %v7962_v24, %v3122_v19  ;;  %v6352_v41 = vpack.i.bf16 %v3679_v36, %v3512_v32  ;;  %6023 = vmatprep.subr.bf16.mxu0 %v6665_v20  ;;  %6047 = vmatprep.subr.bf16.mxu1 %v6665_v20  ;;  %v8201_v46 = vld [vmem:[#allocation3 + $0x30] sm:$0xff] }
 0x466   : > { %1932 = vst.msk [vmem:[#allocation2 + $0x40] sm:$0xff] %vm296_vm3, %v1930_v53  ;;  %v2331_v63 = vrot.slane %v2324_v26, 6  ;;  %v2726_v13 = vadd.f32 %v7827_v9, %v2724_v38  ;;  %6293 = vrot.lane.b32.xlu1 %v6292_v22, %s6671_s29  ;;  %6328 = vrot.lane.b32.xlu0 %v6327_v21, %s9376_s13  ;;  %v8148_v43 = vld [vmem:[#allocation2 + $0x38] sm:$0xff]  ;;  %v8187_v2 = vpack.c.bf16 %v287_v33, %v286_v17  ;;  %v3683_v38 = vrot.slane %v8201_v46, 1  ;;  %s9400_s13 = smov 120  }
 0x467   : > { %v2729_v15 = vsel %vm317_vm1, %v2727_v27, 0.0  ;;  %v8138_v24 = vadd.f32 %v7827_v9, %v3127_v31  ;;  %v2734_v25 = vrot.slane %v2727_v27, 6  ;;  %v6362_v1 = vpack.i.bf16 %v8148_v43, %v3501_v62  ;;  %v292_v27 = vld [vmem:[%s9369_s3 + $0x70] sm:$0xff]  ;;  %v293_v31 = vld [vmem:[%s9369_s3 + $0x78] sm:$0xff] }
 0x468   : > { %v2332_v47 = vsel %vm510_vm6, %v2330_v61, %v2331_v63  ;;  %2731 = vst.msk [vmem:[#allocation3 + $0x60] sm:$0xff] %vm296_vm3, %v2729_v15  ;;  %v2728_v57 = vmax.f32 %v2726_v13, 0.0  ;;  %v6367_v39 = vpack.i.bf16 %v8177_v55, %v8148_v43  ;;  %v3695_v4 = vrot.slane %v8148_v43, 1  ;;  %6025 = vmatpush3.bf16.msra.mxu0 %v8187_v2  ;;  %6049 = vmatpush3.bf16.msra.mxu1 %v8187_v2  ;;  %v3669_v13 = vld [vmem:[#allocation3 + $0x38] sm:$0xff] }
 0x469   : > { %v2334_v29 = vsel %vm515_vm7, 0.0, %v2332_v47  ;;  %v3131_v52 = vmax.f32 %v8138_v24, 0.0  ;;  %v6322_v11 = vpack.i.bf16 %v3393_v14, %v3361_v49  ;;  %v8207_v21 = vpack.c.bf16 %v289_v40, %v288_v54  ;;  %v291_v49 = vld [vmem:[%s9369_s3 + $0x68] sm:$0xff]  ;;  %6026 = vmatprep.subr.bf16.mxu0 %v6665_v20  ;;  %6050 = vmatprep.subr.bf16.mxu1 %v6665_v20  ;;  %v4003_v43 = vld [vmem:[#allocation3 + $0x58] sm:$0xff] }
 0x46a   : > { %2336 = vst.msk [vmem:[#allocation2 + $0x50] sm:$0xff] %vm296_vm3, %v2334_v29  ;;  %v2735_v12 = vrot.slane %v2728_v57, 6  ;;  %6303 = vrot.lane.b32.xlu1 %v6302_v5, %s6672_s9  ;;  %6353 = vrot.lane.b32.xlu0 %v6352_v41, %s9380_s21  ;;  %v6377_v59 = vpack.i.bf16 %v3695_v4, %v3393_v14  ;;  %v6332_v42 = vpack.i.bf16 %v8201_v46, %v8039_v45  ;;  %v3727_v15 = vrot.slane %v8177_v55, 1  ;;  %v3673_v47 = vld [vmem:[#allocation3 + $0x48] sm:$0xff]  ;;  %v3834_v57 = vld [vmem:[#allocation3 + $0x40] sm:$0xff]  ;;  %s9396_s21 = smov 104  }
 0x46b   : > { %v3133_v34 = vsel %vm317_vm1, %v3131_v52, 0.0  ;;  %v8231_v53 = vpack.c.bf16 %v291_v49, %v290_v50  ;;  %v6337_v61 = vpack.i.bf16 %v3683_v38, %v3381_v44  ;;  %v8251_v32 = vpack.c.bf16 %v293_v31, %v292_v27  ;;  %v8293_v54 = vld [vmem:[#allocation2 + $0x78] sm:$0xff] }
 0x46c   : > { %v2736_v37 = vsel %vm510_vm6, %v2734_v25, %v2735_v12  ;;  %3135 = vst.msk [vmem:[#allocation3 + $0x70] sm:$0xff] %vm296_vm3, %v3133_v34  ;;  %6028 = vmatpush3.bf16.msra.mxu0 %v8207_v21  ;;  %6052 = vmatpush3.bf16.msra.mxu1 %v8207_v21  ;;  %v6342_v45 = vpack.i.bf16 %v3669_v13, %v8075_v48  ;;  %v3699_v29 = vrot.slane %v3669_v13, 1  ;;  %v4033_v34 = vrot.slane %v4003_v43, 1 }
 0x46d   : > { %v2738_v30 = vsel %vm515_vm7, 0.0, %v2736_v37  ;;  %v8203_v22 = vld [vmem:[#allocation2 + $0x40] sm:$0xff]  ;;  %6029 = vmatprep.subr.bf16.mxu0 %v6665_v20  ;;  %6053 = vmatprep.subr.bf16.mxu1 %v6665_v20  ;;  %v6397_v44 = vpack.i.bf16 %v3727_v15, %v3695_v4  ;;  %v6347_v5 = vpack.i.bf16 %v3673_v47, %v3669_v13  ;;  %v6417_v12 = vpack.i.bf16 %v4003_v43, %v3673_v47  ;;  %v8291_v4 = vld [vmem:[#allocation2 + $0x68] sm:$0xff] }
 0x46e   : > { %2740 = vst.msk [vmem:[#allocation2 + $0x60] sm:$0xff] %vm296_vm3, %v2738_v30  ;;  %6313 = vrot.lane.b32.xlu1 %v6312_v6, %s6673_s20  ;;  %6363 = vrot.lane.b32.xlu0 %v6362_v1, %s6669_s16  ;;  %v6387_v26 = vpack.i.bf16 %v8203_v22, %v8107_v18  ;;  %v3711_v19 = vrot.slane %v8203_v22, 1  ;;  %v6357_v25 = vpack.i.bf16 %v3699_v29, %v3397_v58  ;;  %v3866_v62 = vrot.slane %v3673_v47, 1  ;;  %v4002_v30 = vld [vmem:[#allocation2 + $0x58] sm:$0xff] }
 0x46f   : > { %v6372_v37 = vpack.i.bf16 %v3834_v57, %v8201_v46  ;;  %v3715_v1 = vrot.slane %v3834_v57, 1  ;;  %v6412_v17 = vpack.i.bf16 %v4002_v30, %v8177_v55  ;;  %v4029_v33 = vrot.slane %v4002_v30, 1 }
 0x470   : > { %v6392_v63 = vpack.i.bf16 %v3711_v19, %v3679_v36  ;;  %6031 = vmatpush3.bf16.msra.mxu0 %v8231_v53  ;;  %6055 = vmatpush3.bf16.msra.mxu1 %v8231_v53  ;;  %v4001_v36 = vld [vmem:[#allocation3 + $0x50] sm:$0xff]  ;;  %v6427_v6 = vpack.i.bf16 %v4033_v34, %v3866_v62  ;;  %v6402_v48 = vpack.i.bf16 %v3866_v62, %v3699_v29  ;;  %vm3232_vm1 = vcmask 719872  }
 0x471   : > { %6032 = vmatprep.subr.bf16.mxu0 %v6665_v20  ;;  %6056 = vmatprep.subr.bf16.mxu1 %v6665_v20  ;;  %v6407_v41 = vpack.i.bf16 %v4001_v36, %v3834_v57  ;;  %v6382_v8 = vpack.i.bf16 %v3715_v1, %v3683_v38  ;;  %v3882_v28 = vrot.slane %v4001_v36, 1  ;;  %v6442_v40 = vpack.i.bf16 %v8293_v54, %v8291_v4 }
 0x472   : > { %6318 = vrot.lane.b32.xlu1 %v6317_v10, %s6674_s18  ;;  %6368 = vrot.lane.b32.xlu0 %v6367_v39, %s6674_s18  ;;  %v6422_v10 = vpack.i.bf16 %v4029_v33, %v3727_v15  ;;  %v8281_v39 = vld [vmem:[#allocation2 + $0x50] sm:$0xff] }
 0x473   : > { %v6432_v58 = vpack.i.bf16 %v3882_v28, %v3715_v1  ;;  %v3878_v14 = vrot.slane %v8281_v39, 1 }
 0x474   : > { %6034 = vmatpush3.bf16.msra.mxu0 %v8251_v32  ;;  %6058 = vmatpush3.bf16.msra.mxu1 %v8251_v32 }
 0x475   : > { %6059 = vmatprep.subr.bf16.mxu0 %v6665_v20  ;;  %6083 = vmatprep.subr.bf16.mxu1 %v6665_v20  ;;  %v6437_v55 = vpack.i.bf16 %v3878_v14, %v3711_v19  ;;  %v8302_v50 = vld [vmem:[#allocation2 + $0x60] sm:$0xff]  ;;  %v4196_v19 = vrot.slane %v8291_v4, 1 }
 0x476   : > { %6323 = vrot.lane.b32.xlu1 %v6322_v11, %s6660_s14  ;;  %6378 = vrot.lane.b32.xlu0 %v6377_v59, %s6671_s29  ;;  %v4172_v11 = vld [vmem:[#allocation3 + $0x70] sm:$0xff]  ;;  %v4005_v59 = vld [vmem:[#allocation3 + $0x60] sm:$0xff]  ;;  %v4180_v49 = vrot.slane %v8302_v50, 1 }
 0x477   : > { %v6452_v46 = vpack.i.bf16 %v4172_v11, %v4005_v59 }
 0x47a   : > { %6333 = vrot.lane.b32.xlu1 %v6332_v42, %s6657_s8  ;;  %6388 = vrot.lane.b32.xlu0 %v6387_v26, %s6672_s9  ;;  %v6259_v42 = vpop.permute.xlu0 %6258  ;;  %v4170_v26 = vld [vmem:[#allocation3 + $0x68] sm:$0xff] }
 0x47b   : > { %v4200_v27 = vrot.slane %v4170_v26, 1 }
 0x47e   : > { %6338 = vrot.lane.b32.xlu1 %v6337_v61, %s9390_s17  ;;  %6393 = vrot.lane.b32.xlu0 %v6392_v63, %s6673_s20  ;;  %v6264_v38 = vpop.permute.xlu0 %6263  ;;  %v4184_v61 = vrot.slane %v4005_v59, 1  ;;  %v8318_v63 = vld [vmem:[#allocation3 + $0x78] sm:$0xff] }
 0x47f   : > { %v6447_v15 = vpack.i.bf16 %v8318_v63, %v4170_v26 }
 0x482   : > { %6343 = vrot.lane.b32.xlu1 %v6342_v45, %s9395_s19  ;;  %6398 = vrot.lane.b32.xlu0 %v6397_v44, %s6660_s14  ;;  %v6269_v31 = vpop.permute.xlu0 %6268  ;;  %v4216_v45 = vrot.slane %v4172_v11, 1 }
 0x484   : > { %v6457_v47 = vpack.i.bf16 %v4216_v45, %v4184_v61 }
 0x486   : > { %6348 = vrot.lane.b32.xlu1 %v6347_v5, %s9396_s21  ;;  %6408 = vrot.lane.b32.xlu0 %v6407_v41, %s6657_s8  ;;  %v6279_v13 = vpop.permute.xlu0 %6278  ;;  %v6261_v5 = vunpack.i.h.bf16 %v6259_v42  ;;  %v6260_v41 = vunpack.i.l.bf16 %v6259_v42 }
 0x487   : > { %v6280_v45 = vunpack.i.l.bf16 %v6279_v13 }
 0x48a   : > { %6358 = vrot.lane.b32.xlu1 %v6357_v25, %s9397_s22  ;;  %6418 = vrot.lane.b32.xlu0 %v6417_v12, %s9395_s19 }
 0x48e   : > { %6373 = vrot.lane.b32.xlu1 %v6372_v37, %s9398_s23  ;;  %6428 = vrot.lane.b32.xlu0 %v6427_v6, %s9397_s22  ;;  %v3401_v37 = vsel %vm296_vm3, %v8020_v56, %v6261_v5  ;;  %v3214_v6 = vsel %vm296_vm3, %v8009_v35, %v6260_v41 }
 0x492   : > { %6383 = vrot.lane.b32.xlu1 %v6382_v8, %s9399_s15  ;;  %3875 = vrot.lane.b32.xlu0 %v4001_v36, %s9398_s23 }
 0x496   : > { %6403 = vrot.lane.b32.xlu1 %v6402_v48, %s9400_s13  ;;  %6433 = vrot.lane.b32.xlu0 %v6432_v58, %s9390_s17  ;;  %s9401_s17 = smov 16   ;;  %v6265_v48 = vunpack.i.l.bf16 %v6264_v38 }
 0x49a   : > { %6413 = vrot.lane.b32.xlu1 %v6412_v17, %s6669_s16  ;;  %3883 = vrot.lane.b32.xlu0 %v3882_v28, %s9399_s15  ;;  %v6266_v28 = vunpack.i.h.bf16 %v6264_v38 }
 0x49e   : > { %6423 = vrot.lane.b32.xlu1 %v6422_v10, %s6671_s29  ;;  %3891 = vrot.lane.b32.xlu0 %v4003_v43, %s9396_s21 }
 0x4a2   : > { %3871 = vrot.lane.b32.xlu1 %v8281_v39, %s6672_s9  ;;  %3899 = vrot.lane.b32.xlu0 %v4033_v34, %s9400_s13 }
 0x4a6   : > { %6438 = vrot.lane.b32.xlu1 %v6437_v55, %s9401_s17  ;;  %4189 = vrot.lane.b32.xlu0 %v8291_v4, %s6669_s16  ;;  %v6271_v55 = vunpack.i.h.bf16 %v6269_v31 }
 0x4aa   : > { %3887 = vrot.lane.b32.xlu1 %v4002_v30, %s6674_s18  ;;  %6443 = vrot.lane.b32.xlu0 %v6442_v40, %s6674_s18  ;;  %v6270_v40 = vunpack.i.l.bf16 %v6269_v31 }
 0x4ae   : > { %3879 = vrot.lane.b32.xlu1 %v3878_v14, %s6673_s20  ;;  %6453 = vrot.lane.b32.xlu0 %v6452_v46, %s9398_s23 }
 0x4b2   : > { %3895 = vrot.lane.b32.xlu1 %v4029_v33, %s6660_s14  ;;  %4181 = vrot.lane.b32.xlu0 %v4180_v49, %s9401_s17  ;;  %s9402_s17 = smov 24  }
 0x4b6   : > { %4176 = vrot.lane.b32.xlu1 %v4005_v59, %s6657_s8 }
 0x4ba   : > { %4193 = vrot.lane.b32.xlu1 %v4170_v26, %s9395_s19 }
 0x4be   : > { %4197 = vrot.lane.b32.xlu1 %v4196_v19, %s6671_s29 }
 0x4c2   : > { %4201 = vrot.lane.b32.xlu1 %v4200_v27, %s9397_s22 }
 0x4c6   : > { %4185 = vrot.lane.b32.xlu1 %v4184_v61, %s9402_s17 }
 0x4ca   : > { %6448 = vrot.lane.b32.xlu1 %v6447_v15, %s9396_s21  ;;  %v6281_v15 = vunpack.i.h.bf16 %v6279_v13 }
 0x4cc   : > { %v3124_v44 = vpop.permute.xlu1 %3123  ;;  %v8323_v36 = vpop.permute.xlu0 %6288 }
 0x4cd   : > { %v3128_v57 = vmax.f32 %v8049_v3, %v3124_v44  ;;  %v3138_v3 = vrot.slane %v3131_v52, 6  ;;  %v6291_v13 = vunpack.i.h.bf16 %v8323_v36 }
 0x4ce   : > { %6458 = vrot.lane.b32.xlu1 %v6457_v47, %s9399_s15 }
 0x4cf   : > { %v3130_v29 = vadd.f32 %v7827_v9, %v3128_v57 }
 0x4d0   : > { %v6274_v43 = vpop.permute.xlu1 %6273  ;;  %v8328_v25 = vpop.permute.xlu0 %6298 }
 0x4d1   : > { %v3132_v12 = vmax.f32 %v3130_v29, 0.0  ;;  %v6276_v34 = vunpack.i.h.bf16 %v6274_v43  ;;  %v6275_v62 = vunpack.i.l.bf16 %v6274_v43 }
 0x4d2   : > { %4066 = vrot.lane.b32.xlu1 %v4200_v27, %s9400_s13 }
 0x4d3   : > { %v3139_v1 = vrot.slane %v3132_v12, 6  ;;  %v3215_v9 = vsel %vm393_vm5, %v3214_v6, %v6275_v62  ;;  %v3402_v8 = vsel %vm393_vm5, %v3401_v37, %v6276_v34  ;;  %v6290_v37 = vunpack.i.l.bf16 %v8323_v36 }
 0x4d4   : > { %v6284_v58 = vpop.permute.xlu1 %6283  ;;  %v8339_v30 = vpop.permute.xlu0 %6308  ;;  %v3217_v24 = vsel %vm3216_vm9, %v3215_v9, %v6265_v48  ;;  %v3403_v52 = vsel %vm3216_vm9, %v3402_v8, %v6266_v28  ;;  %v4228_v48 = vrot.slane %v8293_v54, 1 }
 0x4d5   : > { %v3140_v56 = vsel %vm510_vm6, %v3138_v3, %v3139_v1  ;;  %v6286_v35 = vunpack.i.h.bf16 %v6284_v58  ;;  %v6285_v17 = vunpack.i.l.bf16 %v6284_v58  ;;  %vm3238_vm6 = vcmask 916480  }
 0x4d6   : > { %v3142_v33 = vsel %vm515_vm7, 0.0, %v3140_v56  ;;  %vm3240_vm7 = vcmask 982016  }
 0x4d7   : > { %3144 = vst.msk [vmem:[#allocation2 + $0x70] sm:$0xff] %vm296_vm3, %v3142_v33  ;;  %v3219_v10 = vsel %vm3218_vm10, %v3217_v24, %v6285_v17  ;;  %v3404_v14 = vsel %vm3218_vm10, %v3403_v52, %v6286_v35  ;;  %v6301_v35 = vunpack.i.h.bf16 %v8328_v25  ;;  %v6300_v17 = vunpack.i.l.bf16 %v8328_v25 }
 0x4d8   : > { %v6294_v11 = vpop.permute.xlu1 %6293  ;;  %v8348_v59 = vpop.permute.xlu0 %6328  ;;  %v3221_v26 = vsel %vm3220_vm11, %v3219_v10, %v6270_v40  ;;  %v3405_v38 = vsel %vm3220_vm11, %v3404_v14, %v6271_v55  ;;  %v6472_v40 = vpack.i.bf16 %v4228_v48, %v4196_v19  ;;  %v6311_v25 = vunpack.i.h.bf16 %v8339_v30 }
 0x4d9   : > { %v6296_v46 = vunpack.i.h.bf16 %v6294_v11  ;;  %v6295_v42 = vunpack.i.l.bf16 %v6294_v11  ;;  %v6310_v11 = vunpack.i.l.bf16 %v8339_v30  ;;  %v6330_v4 = vunpack.i.l.bf16 %v8348_v59 }
 0x4db   : > { %v3223_v27 = vsel %vm3222_vm12, %v3221_v26, %v6295_v42  ;;  %v3406_v61 = vsel %vm3222_vm12, %v3405_v38, %v6296_v46 }
 0x4dc   : > { %v6304_v44 = vpop.permute.xlu1 %6303  ;;  %v8354_v31 = vpop.permute.xlu0 %6353  ;;  %v3225_v5 = vsel %vm3224_vm13, %v3223_v27, %v6280_v45  ;;  %v3407_v41 = vsel %vm3224_vm13, %v3406_v61, %v6281_v15  ;;  %v4232_v27 = vrot.slane %v8318_v63, 1  ;;  %v6331_v61 = vunpack.i.h.bf16 %v8348_v59 }
 0x4dd   : > { %v6306_v47 = vunpack.i.h.bf16 %v6304_v44  ;;  %v6305_v57 = vunpack.i.l.bf16 %v6304_v44 }
 0x4de   : > { %v4171_v29 = vld [vmem:[#allocation2 + $0x70] sm:$0xff] }
 0x4df   : > { %v3227_v43 = vsel %vm3226_vm14, %v3225_v5, %v6305_v57  ;;  %v3408_v12 = vsel %vm3226_vm14, %v3407_v41, %v6306_v47  ;;  %v6462_v34 = vpack.i.bf16 %v4171_v29, %v8302_v50  ;;  %v4212_v62 = vrot.slane %v4171_v29, 1 }
 0x4e0   : > { %v6314_v6 = vpop.permute.xlu1 %6313  ;;  %v8363_v3 = vpop.permute.xlu0 %6363  ;;  %v3229_v8 = vsel %vm3228_vm15, %v3227_v43, %v6290_v37  ;;  %v3409_v28 = vsel %vm3228_vm15, %v3408_v12, %v6291_v13  ;;  %v6356_v13 = vunpack.i.h.bf16 %v8354_v31  ;;  %v6355_v37 = vunpack.i.l.bf16 %v8354_v31 }
 0x4e1   : > { %v6316_v1 = vunpack.i.h.bf16 %v6314_v6  ;;  %v6315_v9 = vunpack.i.l.bf16 %v6314_v6  ;;  %6463 = vrot.lane.b32.xlu0 %v6462_v34, %s6672_s9  ;;  %v6467_v36 = vpack.i.bf16 %v4212_v62, %v4180_v49  ;;  %v6366_v31 = vunpack.i.h.bf16 %v8363_v3  ;;  %s5434_s9 = sshll.u32 %s6754_s28, 4  ;;  %s6692_s28 = smov [#allocation5]  }
 0x4e2   : > { %v6365_v48 = vunpack.i.l.bf16 %v8363_v3  ;;  %s9323_s23 = scalar_lea.hbm %s9373_s7, %s5434_s9  ;;  %s6594_s17 = sshll.u32 %s6692_s28, 4  ;;  %s6595_s17 = int_to_ptr.vmem [resolvable:$false] %s6594_s17 }
 0x4e3   : > { %v3231_v58 = vsel %vm3230_vm0, %v3229_v8, %v6315_v9  ;;  %v3410_v56 = vsel %vm3230_vm0, %v3409_v28, %v6316_v1  ;;  %s6596_s8 = scalar_lea.vmem %s6595_s17, 32 }
 0x4e4   : > { %v6319_v33 = vpop.permute.xlu1 %6318  ;;  %v8375_v24 = vpop.permute.xlu0 %6368  ;;  %v3233_v54 = vsel %vm3232_vm1, %v3231_v58, %v6300_v17  ;;  %v3411_v14 = vsel %vm3232_vm1, %v3410_v56, %v6301_v35 }
 0x4e5   : > { %v6321_v52 = vunpack.i.h.bf16 %v6319_v33  ;;  %v6320_v10 = vunpack.i.l.bf16 %v6319_v33  ;;  %6468 = vrot.lane.b32.xlu0 %v6467_v36, %s6673_s20  ;;  %s269_s20 = sand.u32 1, %s6644_s25  }
 0x4e6   : > { %s5172_s15 = scalar_lea.sflag [#allocation6], %s269_s20 }
 0x4e7   : > { %v3235_v55 = vsel %vm3234_vm2, %v3233_v54, %v6320_v10  ;;  %v3412_v49 = vsel %vm3234_vm2, %v3411_v14, %v6321_v52 }
 0x4e8   : > { %v6324_v46 = vpop.permute.xlu1 %6323  ;;  %v8386_v42 = vpop.permute.xlu0 %6378  ;;  %v3237_v19 = vsel %vm3236_vm4, %v3235_v55, %v6310_v11  ;;  %v3413_v15 = vsel %vm3236_vm4, %v3412_v49, %v6311_v25 }
 0x4e9   : > { %v6326_v26 = vunpack.i.h.bf16 %v6324_v46  ;;  %v6325_v38 = vunpack.i.l.bf16 %v6324_v46  ;;  %6473 = vrot.lane.b32.xlu0 %v6472_v40, %s6660_s14  ;;  %v6381_v3 = vunpack.i.h.bf16 %v8386_v42  ;;  %v6380_v52 = vunpack.i.l.bf16 %v8386_v42 }
 0x4eb   : > { %v3239_v30 = vsel %vm3238_vm6, %v3237_v19, %v6325_v38  ;;  %v3414_v45 = vsel %vm3238_vm6, %v3413_v15, %v6326_v26 }
 0x4ec   : > { %v6334_v44 = vpop.permute.xlu1 %6333  ;;  %v3241_v47 = vsel %vm3240_vm7, %v3239_v30, %v6330_v4  ;;  %v3415_v57 = vsel %vm3240_vm7, %v3414_v45, %v6331_v61  ;;  %v8398_v5 = vpop.permute.xlu0 %6388 }
 0x4ed   : > { %4233 = vrot.lane.b32.xlu0 %v4232_v27, %s9400_s13  ;;  %5743 = vmatmul.mubr.f32.vlgmr.msra.gmra.mrb[6].mxu0 %v3241_v47  ;;  %v6336_v63 = vunpack.i.h.bf16 %v6334_v44  ;;  %v6335_v59 = vunpack.i.l.bf16 %v6334_v44  ;;  %v6391_v46 = vunpack.i.h.bf16 %v8398_v5  ;;  %v6390_v42 = vunpack.i.l.bf16 %v8398_v5 }
 0x4ee   : > { %5778 = vmatmul.mubr.f32.vlgmr.msra.gmra.mrb[22].mxu1 %v3415_v57  ;;  %6061 = vmatpush3.bf16.msra.mxu0 %v8022_v51 }
 0x4ef   : > { %6085 = vmatpush3.bf16.msra.mxu1 %v8022_v51  ;;  %6062 = vmatprep.subr.bf16.mxu0 %v6665_v20  ;;  %v3735_v29 = vsel %vm296_vm3, %v8107_v18, %v6336_v63  ;;  %v3568_v43 = vsel %vm296_vm3, %v8119_v16, %v6335_v59  ;;  %v6371_v63 = vunpack.i.h.bf16 %v8375_v24  ;;  %v6370_v59 = vunpack.i.l.bf16 %v8375_v24 }
 0x4f0   : > { %v6339_v41 = vpop.permute.xlu1 %6338  ;;  %6086 = vmatprep.subr.bf16.mxu1 %v6665_v20  ;;  %5812 = vmatprep.mubr.msk.f32.mxu0 %vm6675_vm8, %v6661_v23  ;;  %v8414_v62 = vpop.permute.xlu0 %6393  ;;  %v3569_v18 = vsel %vm393_vm5, %v3568_v43, %v6355_v37  ;;  %v3736_v1 = vsel %vm393_vm5, %v3735_v29, %v6356_v13 }
 0x4f1   : > { %5847 = vmatprep.mubr.msk.f32.mxu1 %vm6675_vm8, %v6661_v23  ;;  %v6341_v12 = vunpack.i.h.bf16 %v6339_v41  ;;  %v6340_v34 = vunpack.i.l.bf16 %v6339_v41  ;;  %v6396_v30 = vunpack.i.h.bf16 %v8414_v62  ;;  %v6395_v45 = vunpack.i.l.bf16 %v8414_v62 }
 0x4f2   : > { %6064 = vmatpush3.bf16.msra.mxu0 %v8060_v60 }
 0x4f3   : > { %6088 = vmatpush3.bf16.msra.mxu1 %v8060_v60  ;;  %6065 = vmatprep.subr.bf16.mxu0 %v6665_v20  ;;  %v3570_v16 = vsel %vm3216_vm9, %v3569_v18, %v6340_v34  ;;  %v3737_v9 = vsel %vm3216_vm9, %v3736_v1, %v6341_v12 }
 0x4f4   : > { %v6344_v6 = vpop.permute.xlu1 %6343  ;;  %6089 = vmatprep.subr.bf16.mxu1 %v6665_v20  ;;  %v8433_v56 = vpop.permute.xlu0 %6398  ;;  %v3571_v36 = vsel %vm3218_vm10, %v3570_v16, %v6365_v48  ;;  %v3738_v35 = vsel %vm3218_vm10, %v3737_v9, %v6366_v31 }
 0x4f5   : > { %v6346_v8 = vunpack.i.h.bf16 %v6344_v6  ;;  %v6345_v28 = vunpack.i.l.bf16 %v6344_v6  ;;  %v6401_v6 = vunpack.i.h.bf16 %v8433_v56  ;;  %v6400_v18 = vunpack.i.l.bf16 %v8433_v56 }
 0x4f6   : > { %6067 = vmatpush3.bf16.msra.mxu0 %v8109_v7 }
 0x4f7   : > { %6091 = vmatpush3.bf16.msra.mxu1 %v8109_v7  ;;  %6068 = vmatprep.subr.bf16.mxu0 %v6665_v20  ;;  %v3572_v17 = vsel %vm3220_vm11, %v3571_v36, %v6345_v28  ;;  %v3739_v33 = vsel %vm3220_vm11, %v3738_v35, %v6346_v8 }
 0x4f8   : > { %v8430_v58 = vpop.permute.xlu1 %6348  ;;  %6092 = vmatprep.subr.bf16.mxu1 %v6665_v20  ;;  %v3573_v55 = vsel %vm3222_vm12, %v3572_v17, %v6380_v52  ;;  %v3740_v49 = vsel %vm3222_vm12, %v3739_v33, %v6381_v3  ;;  %v8448_v40 = vpop.permute.xlu0 %6408 }
 0x4f9   : > { %v6351_v34 = vunpack.i.h.bf16 %v8430_v58  ;;  %v6350_v62 = vunpack.i.l.bf16 %v8430_v58  ;;  %v6410_v3 = vunpack.i.l.bf16 %v8448_v40 }
 0x4fa   : > { %6070 = vmatpush3.bf16.msra.mxu0 %v8179_v0 }
 0x4fb   : > { %6094 = vmatpush3.bf16.msra.mxu1 %v8179_v0  ;;  %6071 = vmatprep.subr.bf16.mxu0 %v6665_v20 }
 0x4fc   : > { %v6359_v10 = vpop.permute.xlu1 %6358  ;;  %6095 = vmatprep.subr.bf16.mxu1 %v6665_v20  ;;  %v8467_v47 = vpop.permute.xlu0 %6418 }
 0x4fd   : > { %v6361_v54 = vunpack.i.h.bf16 %v6359_v10  ;;  %v6360_v14 = vunpack.i.l.bf16 %v6359_v10 }
 0x4fe   : > { %6073 = vmatpush3.bf16.msra.mxu0 %v8187_v2 }
 0x4ff   : > { %v3574_v25 = vsel %vm3224_vm13, %v3573_v55, %v6360_v14  ;;  %v3741_v11 = vsel %vm3224_vm13, %v3740_v49, %v6361_v54  ;;  %6097 = vmatpush3.bf16.msra.mxu1 %v8187_v2  ;;  %6074 = vmatprep.subr.bf16.mxu0 %v6665_v20  ;;  %v3902_v14 = vsel %vm296_vm3, %v8203_v22, %v6410_v3 }
 0x500   : > { %v6374_v26 = vpop.permute.xlu1 %6373  ;;  %6098 = vmatprep.subr.bf16.mxu1 %v6665_v20  ;;  %v3575_v61 = vsel %vm3226_vm14, %v3574_v25, %v6390_v42  ;;  %v3742_v4 = vsel %vm3226_vm14, %v3741_v11, %v6391_v46  ;;  %v8488_v28 = vpop.permute.xlu0 %6428  ;;  %v6420_v11 = vunpack.i.l.bf16 %v8467_v47 }
 0x501   : > { %v6376_v38 = vunpack.i.h.bf16 %v6374_v26  ;;  %v6375_v27 = vunpack.i.l.bf16 %v6374_v26 }
 0x502   : > { %6076 = vmatpush3.bf16.msra.mxu0 %v8207_v21 }
 0x503   : > { %v3576_v19 = vsel %vm3228_vm15, %v3575_v61, %v6375_v27  ;;  %v3743_v15 = vsel %vm3228_vm15, %v3742_v4, %v6376_v38  ;;  %6100 = vmatpush3.bf16.msra.mxu1 %v8207_v21  ;;  %6077 = vmatprep.subr.bf16.mxu0 %v6665_v20  ;;  %v6430_v38 = vunpack.i.l.bf16 %v8488_v28 }
 0x504   : > { %v6384_v44 = vpop.permute.xlu1 %6383  ;;  %6101 = vmatprep.subr.bf16.mxu1 %v6665_v20  ;;  %v3577_v41 = vsel %vm3230_vm0, %v3576_v19, %v6395_v45  ;;  %v3744_v29 = vsel %vm3230_vm0, %v3743_v15, %v6396_v30  ;;  %v3876_v17 = vpop.permute.xlu0 %3875 }
 0x505   : > { %v6386_v57 = vunpack.i.h.bf16 %v6384_v44  ;;  %v6385_v5 = vunpack.i.l.bf16 %v6384_v44 }
 0x506   : > { %6079 = vmatpush3.bf16.msra.mxu0 %v8231_v53 }
 0x507   : > { %v3578_v43 = vsel %vm3232_vm1, %v3577_v41, %v6385_v5  ;;  %v3745_v12 = vsel %vm3232_vm1, %v3744_v29, %v6386_v57  ;;  %6103 = vmatpush3.bf16.msra.mxu1 %v8231_v53  ;;  %6080 = vmatprep.subr.bf16.mxu0 %v6665_v20 }
 0x508   : > { %v6404_v13 = vpop.permute.xlu1 %6403  ;;  %6104 = vmatprep.subr.bf16.mxu1 %v6665_v20  ;;  %v3579_v24 = vsel %vm3234_vm2, %v3578_v43, %v6370_v59  ;;  %v3746_v37 = vsel %vm3234_vm2, %v3745_v12, %v6371_v63  ;;  %v8515_v52 = vpop.permute.xlu0 %6433 }
 0x509   : > { %v6406_v1 = vunpack.i.h.bf16 %v6404_v13  ;;  %v6405_v16 = vunpack.i.l.bf16 %v6404_v13  ;;  %v3580_v9 = vsel %vm3236_vm4, %v3579_v24, %v6350_v62  ;;  %v3747_v8 = vsel %vm3236_vm4, %v3746_v37, %v6351_v34 }
 0x50a   : > { %6082 = vmatpush3.bf16.msra.mxu0 %v8251_v32  ;;  %v3581_v31 = vsel %vm3238_vm6, %v3580_v9, %v6400_v18  ;;  %v3748_v48 = vsel %vm3238_vm6, %v3747_v8, %v6401_v6  ;;  %v6435_v55 = vunpack.i.l.bf16 %v8515_v52 }
 0x50b   : > { %6106 = vmatpush3.bf16.msra.mxu1 %v8251_v32  ;;  %6107 = vmatprep.subr.bf16.mxu0 %v6665_v20  ;;  %v3582_v56 = vsel %vm3240_vm7, %v3581_v31, %v6405_v16  ;;  %v3749_v36 = vsel %vm3240_vm7, %v3748_v48, %v6406_v1 }
 0x50c   : > { %v8494_v58 = vpop.permute.xlu1 %6413  ;;  %6131 = vmatprep.subr.bf16.mxu1 %v6665_v20  ;;  %v3884_v61 = vpop.permute.xlu0 %3883 }
 0x50d   : > { %5813 = vmatmul.mubr.f32.vlgmr.msra.gmra.mrb[8].mxu0 %v3582_v56  ;;  %v6415_v49 = vunpack.i.l.bf16 %v8494_v58 }
 0x50e   : > { %5848 = vmatmul.mubr.f32.vlgmr.msra.gmra.mrb[24].mxu1 %v3749_v36  ;;  %6109 = vmatpush3.bf16.msra.mxu0 %v8022_v51 }
 0x50f   : > { %6110 = vmatprep.subr.bf16.mxu0 %v6665_v20  ;;  %5882 = vmatprep.mubr.msk.f32.mxu0 %vm6675_vm8, %v6661_v23 }
 0x510   : > { %v8503_v35 = vpop.permute.xlu1 %6423  ;;  %6133 = vmatpush3.bf16.msra.mxu1 %v8022_v51  ;;  %5917 = vmatprep.mubr.msk.f32.mxu1 %vm6675_vm8, %v6661_v23  ;;  %v3892_v5 = vpop.permute.xlu0 %3891 }
 0x511   : > { %6134 = vmatprep.subr.bf16.mxu1 %v6665_v20  ;;  %v6425_v26 = vunpack.i.l.bf16 %v8503_v35  ;;  %v6426_v48 = vunpack.i.h.bf16 %v8503_v35 }
 0x512   : > { %6112 = vmatpush3.bf16.msra.mxu0 %v8060_v60 }
 0x513   : > { %6113 = vmatprep.subr.bf16.mxu0 %v6665_v20 }
 0x514   : > { %v3872_v33 = vpop.permute.xlu1 %3871  ;;  %6136 = vmatpush3.bf16.msra.mxu1 %v8060_v60  ;;  %v3900_v43 = vpop.permute.xlu0 %3899 }
 0x515   : > { %6137 = vmatprep.subr.bf16.mxu1 %v6665_v20 }
 0x516   : > { %6115 = vmatpush3.bf16.msra.mxu0 %v8109_v7 }
 0x517   : > { %6116 = vmatprep.subr.bf16.mxu0 %v6665_v20 }
 0x518   : > { %v8518_v10 = vpop.permute.xlu1 %6438  ;;  %6139 = vmatpush3.bf16.msra.mxu1 %v8109_v7  ;;  %v4190_v13 = vpop.permute.xlu0 %4189 }
 0x519   : > { %v6440_v54 = vunpack.i.l.bf16 %v8518_v10  ;;  %6140 = vmatprep.subr.bf16.mxu1 %v6665_v20  ;;  %v6441_v6 = vunpack.i.h.bf16 %v8518_v10 }
 0x51a   : > { %6118 = vmatpush3.bf16.msra.mxu0 %v8179_v0 }
 0x51b   : > { %v3903_v25 = vsel %vm393_vm5, %v3902_v14, %v6440_v54  ;;  %6119 = vmatprep.subr.bf16.mxu0 %v6665_v20 }
 0x51c   : > { %v3904_v46 = vsel %vm3216_vm9, %v3903_v25, %v6435_v55  ;;  %v3888_v42 = vpop.permute.xlu1 %3887  ;;  %6142 = vmatpush3.bf16.msra.mxu1 %v8179_v0  ;;  %v8572_v37 = vpop.permute.xlu0 %6443 }
 0x51d   : > { %v3905_v22 = vsel %vm3218_vm10, %v3904_v46, %v6415_v49  ;;  %6143 = vmatprep.subr.bf16.mxu1 %v6665_v20 }
 0x51e   : > { %6121 = vmatpush3.bf16.msra.mxu0 %v8187_v2  ;;  %v3906_v27 = vsel %vm3220_vm11, %v3905_v22, %v6420_v11  ;;  %v6446_v22 = vunpack.i.h.bf16 %v8572_v37 }
 0x51f   : > { %v3907_v4 = vsel %vm3222_vm12, %v3906_v27, %v6425_v26  ;;  %6122 = vmatprep.subr.bf16.mxu0 %v6665_v20 }
 0x520   : > { %v3908_v19 = vsel %vm3224_vm13, %v3907_v4, %v6430_v38  ;;  %6145 = vmatpush3.bf16.msra.mxu1 %v8187_v2  ;;  %v3880_v30 = vpop.permute.xlu1 %3879  ;;  %v6445_v38 = vunpack.i.l.bf16 %v8572_v37 }
 0x521   : > { %v3909_v15 = vsel %vm3226_vm14, %v3908_v19, %v3872_v33  ;;  %6146 = vmatprep.subr.bf16.mxu1 %v6665_v20 }
 0x522   : > { %v3910_v45 = vsel %vm3228_vm15, %v3909_v15, %v3876_v17  ;;  %6124 = vmatpush3.bf16.msra.mxu0 %v8207_v21 }
 0x523   : > { %v3911_v44 = vsel %vm3230_vm0, %v3910_v45, %v3880_v30  ;;  %6125 = vmatprep.subr.bf16.mxu0 %v6665_v20 }
 0x524   : > { %v3912_v57 = vsel %vm3232_vm1, %v3911_v44, %v3884_v61  ;;  %6148 = vmatpush3.bf16.msra.mxu1 %v8207_v21  ;;  %v3896_v41 = vpop.permute.xlu1 %3895 }
 0x525   : > { %v3913_v63 = vsel %vm3234_vm2, %v3912_v57, %v3888_v42  ;;  %6149 = vmatprep.subr.bf16.mxu1 %v6665_v20 }
 0x526   : > { %v3914_v59 = vsel %vm3236_vm4, %v3913_v63, %v3892_v5  ;;  %6127 = vmatpush3.bf16.msra.mxu0 %v8231_v53 }
 0x527   : > { %6128 = vmatprep.subr.bf16.mxu0 %v6665_v20  ;;  %v3915_v29 = vsel %vm3238_vm6, %v3914_v59, %v3896_v41 }
 0x528   : > { %6151 = vmatpush3.bf16.msra.mxu1 %v8231_v53  ;;  %v3916_v12 = vsel %vm3240_vm7, %v3915_v29, %v3900_v43  ;;  %v4177_v34 = vpop.permute.xlu1 %4176 }
 0x529   : > { %6152 = vmatprep.subr.bf16.mxu1 %v6665_v20 }
 0x52a   : > { %6130 = vmatpush3.bf16.msra.mxu0 %v8251_v32 }
 0x52b   : > { %6155 = vmatprep.subr.bf16.mxu0 %v6665_v20 }
 0x52c   : > { %6154 = vmatpush3.bf16.msra.mxu1 %v8251_v32  ;;  %v4194_v62 = vpop.permute.xlu1 %4193 }
 0x52d   : > { %5883 = vmatmul.mubr.f32.vlgmr.msra.gmra.mrb[10].mxu0 %v3916_v12 }
 0x52e   : > { %6157 = vmatpush3.bf16.msra.mxu0 %v8022_v51  ;;  %5952 = vmatprep.mubr.msk.f32.mxu0 %vm6675_vm8, %v6661_v23  ;;  %v6411_v51 = vunpack.i.h.bf16 %v8448_v40  ;;  %v6436_v40 = vunpack.i.h.bf16 %v8515_v52  ;;  %vm5159_vm8 = vcmask 73728  }
 0x52f   : > { %6158 = vmatprep.subr.bf16.mxu0 %v6665_v20 }
 0x530   : > { %v4198_v24 = vpop.permute.xlu1 %4197 }
 0x532   : > { %6160 = vmatpush3.bf16.msra.mxu0 %v8060_v60  ;;  %v6454_v60 = vpop.permute.xlu0 %6453 }
 0x533   : > { %6161 = vmatprep.subr.bf16.mxu0 %v6665_v20  ;;  %v6456_v35 = vunpack.i.h.bf16 %v6454_v60  ;;  %v6455_v55 = vunpack.i.l.bf16 %v6454_v60 }
 0x534   : > { %v4202_v23 = vpop.permute.xlu1 %4201 }
 0x536   : > { %6163 = vmatpush3.bf16.msra.mxu0 %v8109_v7  ;;  %v4069_v7 = vsel %vm296_vm3, %v8281_v39, %v6411_v51  ;;  %v4182_v1 = vpop.permute.xlu0 %4181  ;;  %v6416_v39 = vunpack.i.h.bf16 %v8494_v58  ;;  %v6431_v58 = vunpack.i.h.bf16 %v8488_v28 }
 0x537   : > { %6164 = vmatprep.subr.bf16.mxu0 %v6665_v20 }
 0x538   : > { %v4186_v18 = vpop.permute.xlu1 %4185 }
 0x53a   : > { %6166 = vmatpush3.bf16.msra.mxu0 %v8179_v0  ;;  %v4236_v0 = vsel %vm296_vm3, %v8302_v50, %v4177_v34  ;;  %vm3330_vm3 = vcmask 129024  }
 0x53b   : > { %6167 = vmatprep.subr.bf16.mxu0 %v6665_v20 }
 0x53c   : > { %v6449_v56 = vpop.permute.xlu1 %6448 }
 0x53d   : > { %v6451_v4 = vunpack.i.h.bf16 %v6449_v56  ;;  %v6450_v19 = vunpack.i.l.bf16 %v6449_v56 }
 0x53e   : > { %6169 = vmatpush3.bf16.msra.mxu0 %v8187_v2  ;;  %v4070_v2 = vsel %vm393_vm5, %v4069_v7, %v6441_v6 }
 0x53f   : > { %6170 = vmatprep.subr.bf16.mxu0 %v6665_v20  ;;  %v4071_v16 = vsel %vm3216_vm9, %v4070_v2, %v6436_v40 }
 0x540   : > { %v4072_v50 = vsel %vm3218_vm10, %v4071_v16, %v6416_v39  ;;  %v6459_v10 = vpop.permute.xlu1 %6458 }
 0x541   : > { %v6461_v46 = vunpack.i.h.bf16 %v6459_v10  ;;  %v6460_v42 = vunpack.i.l.bf16 %v6459_v10 }
 0x542   : > { %6172 = vmatpush3.bf16.msra.mxu0 %v8207_v21  ;;  %v4237_v21 = vsel %vm393_vm5, %v4236_v0, %v4182_v1  ;;  %vm5147_vm5 = vcmask 80896  }
 0x543   : > { %6173 = vmatprep.subr.bf16.mxu0 %v6665_v20  ;;  %v4238_v9 = vsel %vm3216_vm9, %v4237_v21, %v4186_v18 }
 0x544   : > { %v4239_v8 = vsel %vm3218_vm10, %v4238_v9, %v4190_v13  ;;  %v4067_v29 = vpop.permute.xlu1 %4066 }
 0x545   : > { %v4240_v31 = vsel %vm3220_vm11, %v4239_v8, %v4194_v62 }
 0x546   : > { %6175 = vmatpush3.bf16.msra.mxu0 %v8231_v53  ;;  %v6421_v53 = vunpack.i.h.bf16 %v8467_v47  ;;  %v4241_v36 = vsel %vm3222_vm12, %v4240_v31, %v4198_v24  ;;  %v6677_v31 = vmov 0  }
 0x547   : > { %6176 = vmatprep.subr.bf16.mxu0 %v6665_v20  ;;  %v4242_v52 = vsel %vm3224_vm13, %v4241_v36, %v4202_v23  ;;  %6477 = vset.pattern.permute.xlu1 %v6677_v31 }
 0x548   : > { %v4073_v20 = vsel %vm3220_vm11, %v4072_v50, %v6421_v53  ;;  %v6676_v53 = vmov 14  }
 0x549   : > { %v4074_v17 = vsel %vm3222_vm12, %v4073_v20, %v6426_v48  ;;  %6491 = vset.pattern.permute.xlu0 %v6676_v53 }
 0x54a   : > { %6178 = vmatpush3.bf16.msra.mxu0 %v8251_v32  ;;  %v4075_v47 = vsel %vm3224_vm13, %v4074_v17, %v6431_v58 }
 0x553   : > { %v6464_v32 = vpop.permute.xlu0 %6463 }
 0x554   : > { %v6466_v33 = vunpack.i.h.bf16 %v6464_v32  ;;  %v6465_v3 = vunpack.i.l.bf16 %v6464_v32 }
 0x556   : > { %v4243_v54 = vsel %vm3226_vm14, %v4242_v52, %v6466_v33  ;;  %v4076_v14 = vsel %vm3226_vm14, %v4075_v47, %v6465_v3  ;;  %v8645_v3 = vld [vmem:[%s9370_s4] ss:$0 sm:$0xff] }
 0x557   : > { %v6469_v49 = vpop.permute.xlu0 %6468  ;;  %v4077_v28 = vsel %vm3228_vm15, %v4076_v14, %v6455_v55  ;;  %v4244_v26 = vsel %vm3228_vm15, %v4243_v54, %v6456_v35 }
 0x558   : > { %v6471_v25 = vunpack.i.h.bf16 %v6469_v49  ;;  %v6470_v11 = vunpack.i.l.bf16 %v6469_v49 }
 0x55a   : > { %v4078_v27 = vsel %vm3230_vm0, %v4077_v28, %v6470_v11  ;;  %v4245_v61 = vsel %vm3230_vm0, %v4244_v26, %v6471_v25  ;;  %v6679_v28 = vmov 2  }
 0x55b   : > { %v4079_v15 = vsel %vm3232_vm1, %v4078_v27, %v6460_v42  ;;  %v4246_v30 = vsel %vm3232_vm1, %v4245_v61, %v6461_v46  ;;  %v6474_v45 = vpop.permute.xlu0 %6473  ;;  %v6678_v42 = vmov 1   ;;  %v6680_v27 = vmov 3  }
 0x55c   : > { %v6476_v44 = vunpack.i.h.bf16 %v6474_v45  ;;  %v6475_v57 = vunpack.i.l.bf16 %v6474_v45  ;;  %v4247_v5 = vsel %vm3234_vm2, %v4246_v30, %v6446_v22  ;;  %v4080_v63 = vsel %vm3234_vm2, %v4079_v15, %v6445_v38 }
 0x55d   : > { %v4248_v59 = vsel %vm3236_vm4, %v4247_v5, %v6451_v4  ;;  %v4081_v41 = vsel %vm3236_vm4, %v4080_v63, %v6450_v19  ;;  %v6681_v45 = vmov 4   ;;  %v6683_v5 = vmov 6  }
 0x55e   : > { %v4249_v43 = vsel %vm3238_vm6, %v4248_v59, %v6476_v44  ;;  %v4082_v12 = vsel %vm3238_vm6, %v4081_v41, %v6475_v57  ;;  %v6682_v44 = vmov 5   ;;  %v6684_v63 = vmov 7  }
 0x55f   : > { %v4234_v34 = vpop.permute.xlu0 %4233  ;;  %v4083_v62 = vsel %vm3240_vm7, %v4082_v12, %v4067_v29  ;;  %v6685_v59 = vmov 8   ;;  %v6686_v41 = vmov 9  }
 0x560   : > { %v4250_v13 = vsel %vm3240_vm7, %v4249_v43, %v4234_v34  ;;  %5918 = vmatmul.mubr.f32.vlgmr.msra.gmra.mrb[26].mxu1 %v4083_v62  ;;  %v6687_v34 = vmov 10  }
 0x561   : > { %5953 = vmatmul.mubr.f32.vlgmr.msra.gmra.mrb[12].mxu0 %v4250_v13  ;;  %v6688_v13 = vmov 11  }
 0x5c0   : > { %v3308_v24 = vpop.f32.mrb[6].mxu0 }
 0x5c1   : > { %v3482_v37 = vpop.f32.mrb[22].mxu1  ;;  %3313 = vrot.lane.b32.xlu1 %v3308_v24, %s6660_s14  ;;  %v5744_v23 = vpop.f32.mrb[7].mxu0 }
 0x5c2   : > { %v5779_v51 = vpop.f32.mrb[23].mxu1  ;;  %v6691_v23 = vmov 15  }
 0x5c5   : > { %3487 = vrot.lane.b32.xlu1 %v3482_v37, %s6660_s14 }
 0x5e0   : > { %v3649_v60 = vpop.f32.mrb[8].mxu0 }
 0x5e1   : > { %v3816_v6 = vpop.f32.mrb[24].mxu1  ;;  %3654 = vrot.lane.b32.xlu0 %v3649_v60, %s6660_s14  ;;  %v5814_v7 = vpop.f32.mrb[9].mxu0 }
 0x5e2   : > { %v5849_v0 = vpop.f32.mrb[25].mxu1  ;;  %3821 = vrot.lane.b32.xlu1 %v3816_v6, %s6660_s14 }
 0x600   : > { %v3983_v2 = vpop.f32.mrb[10].mxu0 }
 0x601   : > { %3988 = vrot.lane.b32.xlu1 %v3983_v2, %s6660_s14  ;;  %v5884_v18 = vpop.f32.mrb[11].mxu0 }
 0x633   : > { %v4150_v40 = vpop.f32.mrb[26].mxu1  ;;  %v3314_v1 = vpop.permute.xlu1 %3313 }
 0x634   : > { %v3316_v21 = vmax.f32 %v3308_v24, %v3314_v1  ;;  %v5919_v16 = vpop.f32.mrb[27].mxu1  ;;  %4155 = vrot.lane.b32.xlu1 %v4150_v40, %s6660_s14  ;;  %v4317_v9 = vpop.f32.mrb[12].mxu0  ;;  %v6689_v24 = vmov 12  }
 0x635   : > { %v5954_v39 = vpop.f32.mrb[13].mxu0 }
 0x636   : > { %3318 = vrot.lane.b32.xlu0 %v3316_v21, %s6674_s18 }
 0x637   : > { %v3488_v50 = vpop.permute.xlu1 %3487 }
 0x638   : > { %v3490_v8 = vmax.f32 %v3482_v37, %v3488_v50  ;;  %4322 = vrot.lane.b32.xlu1 %v4317_v9, %s6660_s14  ;;  %v6690_v37 = vmov 13  }
 0x63a   : > { %3492 = vrot.lane.b32.xlu0 %v3490_v8, %s6674_s18 }
 0x653   : > { %v3655_v20 = vpop.permute.xlu0 %3654 }
 0x654   : > { %v3822_v48 = vpop.permute.xlu1 %3821  ;;  %v3657_v56 = vmax.f32 %v3649_v60, %v3655_v20 }
 0x655   : > { %v3824_v36 = vmax.f32 %v3816_v6, %v3822_v48 }
 0x656   : > { %3659 = vrot.lane.b32.xlu1 %v3657_v56, %s6674_s18 }
 0x657   : > { %3826 = vrot.lane.b32.xlu0 %v3824_v36, %s6674_s18 }
 0x673   : > { %v3989_v17 = vpop.permute.xlu1 %3988 }
 0x674   : > { %v8636_v58 = vmax.f32 %v3983_v2, %v3989_v17 }
 0x676   : > { %3993 = vrot.lane.b32.xlu0 %v8636_v58, %s6674_s18 }
 0x6a6   : > { %v4156_v32 = vpop.permute.xlu1 %4155 }
 0x6a7   : > { %v8640_v33 = vmax.f32 %v4150_v40, %v4156_v32  ;;  %v5330_v32 = vld [vmem:[%s9371_s5 + $0x40] sm:$0xff] }
 0x6a8   : > { %v3319_v52 = vpop.permute.xlu0 %3318 }
 0x6a9   : > { %v3321_v47 = vmax.f32 %v3316_v21, %v3319_v52  ;;  %4160 = vrot.lane.b32.xlu0 %v8640_v33, %s6674_s18 }
 0x6aa   : > { %v4323_v10 = vpop.permute.xlu1 %4322 }
 0x6ab   : > { %v3328_v54 = vadd.f32 %v8645_v3, %v3321_v47  ;;  %v8650_v14 = vmax.f32 %v4317_v9, %v4323_v10 }
 0x6ac   : > { %v3493_v35 = vpop.permute.xlu0 %3492 }
 0x6ad   : > { %v3329_v55 = vmax.f32 %v3328_v54, 0.0  ;;  %v3495_v49 = vmax.f32 %v3490_v8, %v3493_v35  ;;  %4327 = vrot.lane.b32.xlu0 %v8650_v14, %s6674_s18  ;;  %v5337_v54 = vld [vmem:[%s9371_s5 + $0x78] sm:$0xff]  ;;  %s270_s18 = scalar_lea.vmem [#allocation5], %s269_s20 }
 0x6ae   : > { %s5184_s19 = sshll.u32 %s270_s18, 4  ;;  %s9325_s19 = int_to_ptr.vmem [resolvable:$true] %s5184_s19 }
 0x6af   : > { %3331 = vst.msk [vmem:[#allocation4] sm:$0x7f] %vm3330_vm3, %v3329_v55  ;;  %v3496_v25 = vadd.f32 %v8645_v3, %v3495_v49  ;;  %s6590_s13 = scalar_lea.vmem %s9325_s19, 16  ;;  %p6597_p0 = scmp.lt.s32.totalorder %s9325_s19, %s6595_s17 }
 0x6b0   : > { %p6591_p11 = scmp.ne.s32.totalorder %s9325_s19, %s6590_s13  ;;  %p6598_p1 = scmp.lt.s32.totalorder %s6596_s8, %s6590_s13 }
 0x6b1   : > { %v3497_v11 = vmax.f32 %v3496_v25, 0.0  ;;  %v5344_v25 = vld [vmem:[%s9371_s5 + $0xb0] sm:$0xff] }
 0x6b2   : > { %p6592_p12 = pnand %p6591_p11, %p6771_p5  ;;  %p6599_p2 = por %p6598_p1, %p6597_p0 }
 0x6b3   : > { %3498 = vst.msk [vmem:[#allocation4 + $0x7] sm:$0x7f] %vm3330_vm3, %v3497_v11 }
 0x6b4   : > { %p6593_p13 = pneg %p6592_p12 }
 0x6b6   : > { %p6600_p3 = pnand %p6599_p2, %p6593_p13 }
 0x6ba   : > { %v8657_v46 = vld [vmem:[#allocation4] sm:$0xff] }
 0x6bb   : > { %4350 = vperm.xlu1 %6477, %v8657_v46   ;;  %5056 = vperm.xlu0 %6491, %v8657_v46  }
 0x6bf   : > { %6478 = vset.pattern.permute.xlu1 %v6678_v42  ;;  %6493 = vset.pattern.permute.xlu0 %v6677_v31 }
 0x6c0   : > { %4406 = vperm.xlu1 %6478, %v8657_v46  }
 0x6c4   : > { %6479 = vset.pattern.permute.xlu1 %v6679_v28 }
 0x6c5   : > { %4456 = vperm.xlu1 %6479, %v8657_v46  }
 0x6c8   : > { %v3660_v26 = vpop.permute.xlu1 %3659 }
 0x6c9   : > { %v3827_v22 = vpop.permute.xlu0 %3826  ;;  %v3662_v38 = vmax.f32 %v3657_v56, %v3660_v26  ;;  %6480 = vset.pattern.permute.xlu1 %v6680_v27 }
 0x6ca   : > { %v3829_v61 = vmax.f32 %v3824_v36, %v3827_v22  ;;  %4506 = vperm.xlu1 %6480, %v8657_v46  }
 0x6cb   : > { %v3663_v4 = vadd.f32 %v8645_v3, %v3662_v38  ;;  %v5351_v38 = vld [vmem:[%s9371_s5 + $0xe8] sm:$0xff] }
 0x6cc   : > { %v3830_v19 = vadd.f32 %v8645_v3, %v3829_v61 }
 0x6cd   : > { %v3664_v15 = vmax.f32 %v3663_v4, 0.0 }
 0x6ce   : > { %v3831_v30 = vmax.f32 %v3830_v19, 0.0  ;;  %6481 = vset.pattern.permute.xlu1 %v6681_v45 }
 0x6cf   : > { %3665 = vst.msk [vmem:[#allocation4 + $0xe] sm:$0x7f] %vm3330_vm3, %v3664_v15  ;;  %4556 = vperm.xlu1 %6481, %v8657_v46  }
 0x6d0   : > { %3832 = vst.msk [vmem:[#allocation4 + $0x15] sm:$0x7f] %vm3330_vm3, %v3831_v30 }
 0x6d3   : > { %6482 = vset.pattern.permute.xlu1 %v6682_v44 }
 0x6d4   : > { %4606 = vperm.xlu1 %6482, %v8657_v46  }
 0x6d6   : > { %v8676_v57 = vld [vmem:[#allocation4 + $0x8] sm:$0xff] }
 0x6d7   : > { %4355 = vperm.xlu0 %6493, %v8676_v57   ;;  %v8722_v51 = vld [vmem:[#allocation4 + $0x10] sm:$0xff] }
 0x6d8   : > { %6483 = vset.pattern.permute.xlu1 %v6683_v5 }
 0x6d9   : > { %4656 = vperm.xlu1 %6483, %v8657_v46  }
 0x6db   : > { %6494 = vset.pattern.permute.xlu0 %v6678_v42 }
 0x6dc   : > { %4410 = vperm.xlu0 %6494, %v8676_v57  }
 0x6dd   : > { %6484 = vset.pattern.permute.xlu1 %v6684_v63 }
 0x6de   : > { %4706 = vperm.xlu1 %6484, %v8657_v46  }
 0x6e0   : > { %6495 = vset.pattern.permute.xlu0 %v6679_v28 }
 0x6e1   : > { %4460 = vperm.xlu0 %6495, %v8676_v57  }
 0x6e2   : > { %6485 = vset.pattern.permute.xlu1 %v6685_v59 }
 0x6e3   : > { %4756 = vperm.xlu1 %6485, %v8657_v46  }
 0x6e5   : > { %6496 = vset.pattern.permute.xlu0 %v6680_v27 }
 0x6e6   : > { %4510 = vperm.xlu0 %6496, %v8676_v57  }
 0x6e7   : > { %6486 = vset.pattern.permute.xlu1 %v6686_v41 }
 0x6e8   : > { %v3994_v29 = vpop.permute.xlu0 %3993  ;;  %4806 = vperm.xlu1 %6486, %v8657_v46  }
 0x6e9   : > { %v3996_v43 = vmax.f32 %v8636_v58, %v3994_v29  ;;  %v4342_v58 = vld [vmem:[%s9371_s5 + $0x8] sm:$0xff] }
 0x6ea   : > { %6497 = vset.pattern.permute.xlu0 %v6681_v45 }
 0x6eb   : > { %v3997_v12 = vadd.f32 %v8645_v3, %v3996_v43  ;;  %4560 = vperm.xlu0 %6497, %v8676_v57  }
 0x6ec   : > { %6487 = vset.pattern.permute.xlu1 %v6687_v34 }
 0x6ed   : > { %v3998_v62 = vmax.f32 %v3997_v12, 0.0  ;;  %4856 = vperm.xlu1 %6487, %v8657_v46  }
 0x6ef   : > { %3999 = vst.msk [vmem:[#allocation4 + $0x1c] sm:$0x7f] %vm3330_vm3, %v3998_v62  ;;  %6498 = vset.pattern.permute.xlu0 %v6682_v44 }
 0x6f0   : > { %4610 = vperm.xlu0 %6498, %v8676_v57  }
 0x6f1   : > { %6488 = vset.pattern.permute.xlu1 %v6688_v13 }
 0x6f2   : > { %4906 = vperm.xlu1 %6488, %v8657_v46  }
 0x6f4   : > { %6499 = vset.pattern.permute.xlu0 %v6683_v5 }
 0x6f5   : > { %4660 = vperm.xlu0 %6499, %v8676_v57  }
 0x6f6   : > { %6489 = vset.pattern.permute.xlu1 %v6689_v24  ;;  %v8745_v40 = vld [vmem:[#allocation4 + $0x18] sm:$0xff] }
 0x6f7   : > { %4956 = vperm.xlu1 %6489, %v8657_v46  }
 0x6f9   : > { %6500 = vset.pattern.permute.xlu0 %v6684_v63 }
 0x6fa   : > { %4710 = vperm.xlu0 %6500, %v8676_v57  }
 0x6fb   : > { %6490 = vset.pattern.permute.xlu1 %v6690_v37 }
 0x6fc   : > { %5006 = vperm.xlu1 %6490, %v8657_v46  }
 0x6fe   : > { %6501 = vset.pattern.permute.xlu0 %v6685_v59 }
 0x6ff   : > { %4760 = vperm.xlu0 %6501, %v8676_v57  }
 0x700   : > { %6492 = vset.pattern.permute.xlu1 %v6691_v23 }
 0x701   : > { %5106 = vperm.xlu1 %6492, %v8657_v46  }
 0x703   : > { %6502 = vset.pattern.permute.xlu0 %v6686_v41 }
 0x704   : > { %4810 = vperm.xlu0 %6502, %v8676_v57  }
 0x705   : > { %6507 = vset.pattern.permute.xlu1 %v6676_v53 }
 0x706   : > { %5060 = vperm.xlu1 %6507, %v8676_v57  }
 0x708   : > { %6503 = vset.pattern.permute.xlu0 %v6687_v34 }
 0x709   : > { %4860 = vperm.xlu0 %6503, %v8676_v57  }
 0x70a   : > { %6509 = vset.pattern.permute.xlu1 %v6677_v31 }
 0x70b   : > { %4360 = vperm.xlu1 %6509, %v8722_v51  }
 0x70d   : > { %6504 = vset.pattern.permute.xlu0 %v6688_v13 }
 0x70e   : > { %4910 = vperm.xlu0 %6504, %v8676_v57  }
 0x70f   : > { %6510 = vset.pattern.permute.xlu1 %v6678_v42 }
 0x710   : > { %4414 = vperm.xlu1 %6510, %v8722_v51  }
 0x712   : > { %6505 = vset.pattern.permute.xlu0 %v6689_v24 }
 0x713   : > { %4960 = vperm.xlu0 %6505, %v8676_v57  }
 0x714   : > { %6511 = vset.pattern.permute.xlu1 %v6679_v28 }
 0x715   : > { %4464 = vperm.xlu1 %6511, %v8722_v51  }
 0x717   : > { %6506 = vset.pattern.permute.xlu0 %v6690_v37 }
 0x718   : > { %5010 = vperm.xlu0 %6506, %v8676_v57  }
 0x719   : > { %6512 = vset.pattern.permute.xlu1 %v6680_v27 }
 0x71a   : > { %4514 = vperm.xlu1 %6512, %v8722_v51  }
 0x71b   : > { %v4161_v60 = vpop.permute.xlu0 %4160 }
 0x71c   : > { %v4163_v6 = vmax.f32 %v8640_v33, %v4161_v60  ;;  %6508 = vset.pattern.permute.xlu0 %v6691_v23 }
 0x71d   : > { %5110 = vperm.xlu0 %6508, %v8676_v57   ;;  %v5358_v57 = vld [vmem:[%s9371_s5 + $0x120] sm:$0xff] }
 0x71e   : > { %v4164_v7 = vadd.f32 %v8645_v3, %v4163_v6  ;;  %6513 = vset.pattern.permute.xlu1 %v6681_v45 }
 0x71f   : > { %v4328_v0 = vpop.permute.xlu0 %4327  ;;  %4564 = vperm.xlu1 %6513, %v8722_v51  }
 0x720   : > { %v4165_v2 = vmax.f32 %v4164_v7, 0.0  ;;  %v4330_v18 = vmax.f32 %v8650_v14, %v4328_v0  ;;  %v5329_v7 = vld [vmem:[%s9371_s5 + $0x38] sm:$0xff] }
 0x721   : > { %6538 = vset.pattern.permute.xlu0 %v6690_v37 }
 0x722   : > { %4166 = vst.msk [vmem:[#allocation4 + $0x23] sm:$0x7f] %vm3330_vm3, %v4165_v2  ;;  %v4331_v1 = vadd.f32 %v8645_v3, %v4330_v18  ;;  %5018 = vperm.xlu0 %6538, %v8745_v40   ;;  %v5372_v18 = vld [vmem:[%s9371_s5 + $0x190] sm:$0xff] }
 0x723   : > { %6514 = vset.pattern.permute.xlu1 %v6682_v44 }
 0x724   : > { %v4332_v21 = vmax.f32 %v4331_v1, 0.0  ;;  %4614 = vperm.xlu1 %6514, %v8722_v51   ;;  %v4341_v1 = vld [vmem:[%s9371_s5] sm:$0xff] }
 0x726   : > { %4333 = vst.msk [vmem:[#allocation4 + $0x2a] sm:$0x7f] %vm3330_vm3, %v4332_v21  ;;  %6539 = vset.pattern.permute.xlu0 %v6676_v53  ;;  %v5336_v21 = vld [vmem:[%s9371_s5 + $0x70] sm:$0xff] }
 0x727   : > { %5068 = vperm.xlu0 %6539, %v8745_v40  }
 0x728   : > { %6515 = vset.pattern.permute.xlu1 %v6683_v5 }
 0x729   : > { %v8757_v16 = vld [vmem:[#allocation4 + $0x20] sm:$0xff]  ;;  %4664 = vperm.xlu1 %6515, %v8722_v51  }
 0x72b   : > { %6541 = vset.pattern.permute.xlu0 %v6677_v31 }
 0x72c   : > { %4370 = vperm.xlu0 %6541, %v8757_v16  }
 0x72d   : > { %6516 = vset.pattern.permute.xlu1 %v6684_v63  ;;  %v8849_v19 = vld [vmem:[#allocation4 + $0x30] sm:$0x1] }
 0x72e   : > { %4714 = vperm.xlu1 %6516, %v8722_v51  }
 0x730   : > { %6542 = vset.pattern.permute.xlu0 %v6678_v42 }
 0x731   : > { %4422 = vperm.xlu0 %6542, %v8757_v16  }
 0x732   : > { %6517 = vset.pattern.permute.xlu1 %v6685_v59 }
 0x733   : > { %4764 = vperm.xlu1 %6517, %v8722_v51  }
 0x735   : > { %6543 = vset.pattern.permute.xlu0 %v6679_v28 }
 0x736   : > { %4472 = vperm.xlu0 %6543, %v8757_v16  }
 0x737   : > { %6518 = vset.pattern.permute.xlu1 %v6686_v41 }
 0x738   : > { %4814 = vperm.xlu1 %6518, %v8722_v51  }
 0x73a   : > { %6544 = vset.pattern.permute.xlu0 %v6680_v27  ;;  %v8773_v9 = vpop.permute.xlu1 %4350  ;;  %v8802_v48 = vpop.permute.xlu0 %5056 }
 0x73b   : > { %4522 = vperm.xlu0 %6544, %v8757_v16  }
 0x73c   : > { %6519 = vset.pattern.permute.xlu1 %v6687_v34 }
 0x73d   : > { %4864 = vperm.xlu1 %6519, %v8722_v51  }
 0x73f   : > { %6545 = vset.pattern.permute.xlu0 %v6681_v45  ;;  %v8779_v39 = vpop.permute.xlu1 %4406 }
 0x740   : > { %4572 = vperm.xlu0 %6545, %v8757_v16  }
 0x741   : > { %6520 = vset.pattern.permute.xlu1 %v6688_v13 }
 0x742   : > { %4914 = vperm.xlu1 %6520, %v8722_v51  }
 0x744   : > { %6546 = vset.pattern.permute.xlu0 %v6682_v44  ;;  %v8785_v50 = vpop.permute.xlu1 %4456 }
 0x745   : > { %4622 = vperm.xlu0 %6546, %v8757_v16  }
 0x746   : > { %6521 = vset.pattern.permute.xlu1 %v6689_v24 }
 0x747   : > { %4964 = vperm.xlu1 %6521, %v8722_v51  }
 0x749   : > { %6547 = vset.pattern.permute.xlu0 %v6683_v5  ;;  %v8791_v8 = vpop.permute.xlu1 %4506 }
 0x74a   : > { %4672 = vperm.xlu0 %6547, %v8757_v16  }
 0x74b   : > { %6522 = vset.pattern.permute.xlu1 %v6690_v37 }
 0x74c   : > { %5014 = vperm.xlu1 %6522, %v8722_v51  }
 0x74e   : > { %6548 = vset.pattern.permute.xlu0 %v6684_v63  ;;  %v8797_v20 = vpop.permute.xlu1 %4556 }
 0x74f   : > { %4722 = vperm.xlu0 %6548, %v8757_v16  }
 0x750   : > { %6523 = vset.pattern.permute.xlu1 %v6676_v53 }
 0x751   : > { %5064 = vperm.xlu1 %6523, %v8722_v51  }
 0x753   : > { %6549 = vset.pattern.permute.xlu0 %v6685_v59  ;;  %v8805_v56 = vpop.permute.xlu1 %4606 }
 0x754   : > { %4772 = vperm.xlu0 %6549, %v8757_v16  }
 0x755   : > { %6524 = vset.pattern.permute.xlu1 %v6691_v23 }
 0x756   : > { %v4356_v36 = vpop.permute.xlu0 %4355  ;;  %5114 = vperm.xlu1 %6524, %v8722_v51   ;;  %v5365_v51 = vld [vmem:[%s9371_s5 + $0x158] sm:$0xff] }
 0x757   : > { %v4384_v3 = vmul.f32 %v4356_v36, %v4342_v58  ;;  %v4433_v36 = vmul.f32 %v5329_v7, %v8779_v39  ;;  %v5350_v39 = vld [vmem:[%s9371_s5 + $0xe0] sm:$0xff]  ;;  %v5385_v7 = vld [vmem:[%s9371_s5 + $0x1f8] sm:$0xff] }
 0x758   : > { %6550 = vset.pattern.permute.xlu0 %v6686_v41  ;;  %v8811_v17 = vpop.permute.xlu1 %4656 }
 0x759   : > { %4822 = vperm.xlu0 %6550, %v8757_v16  }
 0x75a   : > { %6525 = vset.pattern.permute.xlu1 %v6677_v31 }
 0x75b   : > { %v4411_v33 = vpop.permute.xlu0 %4410  ;;  %4365 = vperm.xlu1 %6525, %v8745_v40  }
 0x75c   : > { %v4434_v52 = vmul.f32 %v5330_v32, %v4411_v33  ;;  %v5343_v32 = vld [vmem:[%s9371_s5 + $0xa8] sm:$0xff] }
 0x75d   : > { %6551 = vset.pattern.permute.xlu0 %v6687_v34  ;;  %v8823_v47 = vpop.permute.xlu1 %4706 }
 0x75e   : > { %v4441_v10 = vadd.f32 %v4434_v52, %v4384_v3  ;;  %4872 = vperm.xlu0 %6551, %v8757_v16   ;;  %v4383_v3 = vmul.f32 %v8773_v9, %v4341_v1  ;;  %v4483_v52 = vmul.f32 %v5336_v21, %v8785_v50  ;;  %v4533_v9 = vmul.f32 %v5343_v32, %v8791_v8  ;;  %v5357_v50 = vld [vmem:[%s9371_s5 + $0x118] sm:$0xff] }
 0x75f   : > { %6526 = vset.pattern.permute.xlu1 %v6678_v42 }
 0x760   : > { %v4461_v14 = vpop.permute.xlu0 %4460  ;;  %4418 = vperm.xlu1 %6526, %v8745_v40  }
 0x761   : > { %v4484_v35 = vmul.f32 %v5337_v54, %v4461_v14  ;;  %v5379_v14 = vld [vmem:[%s9371_s5 + $0x1c8] sm:$0xff] }
 0x762   : > { %6552 = vset.pattern.permute.xlu0 %v6688_v13  ;;  %v8832_v55 = vpop.permute.xlu1 %4756 }
 0x763   : > { %v4491_v49 = vadd.f32 %v4484_v35, %v4441_v10  ;;  %4922 = vperm.xlu0 %6552, %v8757_v16   ;;  %v4440_v35 = vadd.f32 %v4433_v36, %v4383_v3 }
 0x764   : > { %6527 = vset.pattern.permute.xlu1 %v6679_v28 }
 0x765   : > { %v4511_v11 = vpop.permute.xlu0 %4510  ;;  %4468 = vperm.xlu1 %6527, %v8745_v40  }
 0x766   : > { %v4534_v46 = vmul.f32 %v5344_v25, %v4511_v11  ;;  %v4490_v25 = vadd.f32 %v4483_v52, %v4440_v35  ;;  %v4583_v11 = vmul.f32 %v5350_v39, %v8797_v20  ;;  %v5371_v20 = vld [vmem:[%s9371_s5 + $0x188] sm:$0xff] }
 0x767   : > { %6556 = vset.pattern.permute.xlu0 %v6691_v23  ;;  %v8841_v26 = vpop.permute.xlu1 %4806 }
 0x768   : > { %v4541_v22 = vadd.f32 %v4534_v46, %v4491_v49  ;;  %5122 = vperm.xlu0 %6556, %v8757_v16  }
 0x769   : > { %6528 = vset.pattern.permute.xlu1 %v6680_v27 }
 0x76a   : > { %v4561_v61 = vpop.permute.xlu0 %4560  ;;  %4518 = vperm.xlu1 %6528, %v8745_v40  }
 0x76b   : > { %v4584_v4 = vmul.f32 %v5351_v38, %v4561_v61  ;;  %v4540_v38 = vadd.f32 %v4533_v9, %v4490_v25  ;;  %v4633_v61 = vmul.f32 %v5357_v50, %v8805_v56  ;;  %v5378_v56 = vld [vmem:[%s9371_s5 + $0x1c0] sm:$0xff] }
 0x76c   : > { %6558 = vset.pattern.permute.xlu0 %v6677_v31  ;;  %v8852_v15 = vpop.permute.xlu1 %4856  ;;  %v4783_v1 = vmul.f32 %v5378_v56, %v8832_v55  ;;  %v5420_v56 = vld [vmem:[%s9371_s5 + $0x310] sm:$0xff] }
 0x76d   : > { %v4591_v30 = vadd.f32 %v4584_v4, %v4541_v22  ;;  %4380 = vperm.xlu0 %6558, %v8849_v19   ;;  %v5364_v22 = vld [vmem:[%s9371_s5 + $0x150] sm:$0xff] }
 0x76e   : > { %6529 = vset.pattern.permute.xlu1 %v6681_v45 }
 0x76f   : > { %v4611_v29 = vpop.permute.xlu0 %4610  ;;  %4568 = vperm.xlu1 %6529, %v8745_v40  }
 0x770   : > { %v4634_v43 = vmul.f32 %v5358_v57, %v4611_v29  ;;  %v4590_v57 = vadd.f32 %v4583_v11, %v4540_v38  ;;  %v4683_v29 = vmul.f32 %v5364_v22, %v8811_v17  ;;  %v5407_v38 = vld [vmem:[%s9371_s5 + $0x2a8] sm:$0xff] }
 0x771   : > { %6560 = vset.pattern.permute.xlu0 %v6678_v42  ;;  %v8861_v12 = vpop.permute.xlu1 %4906 }
 0x772   : > { %v4641_v62 = vadd.f32 %v4634_v43, %v4591_v30  ;;  %4430 = vperm.xlu0 %6560, %v8849_v19   ;;  %v5386_v30 = vld [vmem:[%s9371_s5 + $0x200] sm:$0xff] }
 0x773   : > { %6530 = vset.pattern.permute.xlu1 %v6682_v44 }
 0x774   : > { %v4661_v60 = vpop.permute.xlu0 %4660  ;;  %4618 = vperm.xlu1 %6530, %v8745_v40  }
 0x775   : > { %v4684_v6 = vmul.f32 %v5365_v51, %v4661_v60  ;;  %v4640_v51 = vadd.f32 %v4633_v61, %v4590_v57  ;;  %v4733_v60 = vmul.f32 %v5371_v20, %v8823_v47  ;;  %v5392_v47 = vld [vmem:[%s9371_s5 + $0x230] sm:$0xff]  ;;  %v5338_v20 = vld [vmem:[%s9371_s5 + $0x80] sm:$0xff] }
 0x776   : > { %6562 = vset.pattern.permute.xlu0 %v6679_v28  ;;  %v8873_v0 = vpop.permute.xlu1 %4956  ;;  %v4883_v52 = vmul.f32 %v5392_v47, %v8852_v15  ;;  %v5413_v15 = vld [vmem:[%s9371_s5 + $0x2d8] sm:$0xff] }
 0x777   : > { %v4691_v2 = vadd.f32 %v4684_v6, %v4641_v62  ;;  %4480 = vperm.xlu0 %6562, %v8849_v19  }
 0x778   : > { %6531 = vset.pattern.permute.xlu1 %v6683_v5 }
 0x779   : > { %v4711_v58 = vpop.permute.xlu0 %4710  ;;  %4668 = vperm.xlu1 %6531, %v8745_v40  }
 0x77a   : > { %v4734_v33 = vmul.f32 %v5372_v18, %v4711_v58  ;;  %v4690_v18 = vadd.f32 %v4683_v29, %v4640_v51  ;;  %v4833_v58 = vmul.f32 %v5385_v7, %v8841_v26  ;;  %v5406_v26 = vld [vmem:[%s9371_s5 + $0x2a0] sm:$0xff] }
 0x77b   : > { %6564 = vset.pattern.permute.xlu0 %v6680_v27  ;;  %v8894_v10 = vpop.permute.xlu1 %5006  ;;  %v4983_v11 = vmul.f32 %v5406_v26, %v8873_v0 }
 0x77c   : > { %v4741_v54 = vadd.f32 %v4734_v33, %v4691_v2  ;;  %4530 = vperm.xlu0 %6564, %v8849_v19   ;;  %v5393_v2 = vld [vmem:[%s9371_s5 + $0x238] sm:$0xff]  ;;  %v4740_v36 = vadd.f32 %v4733_v60, %v4690_v18  ;;  %v5399_v33 = vld [vmem:[%s9371_s5 + $0x268] sm:$0xff]  ;;  %v5083_v18 = vmul.f32 %v5420_v56, %v8802_v48 }
 0x77d   : > { %6532 = vset.pattern.permute.xlu1 %v6684_v63  ;;  %v4933_v35 = vmul.f32 %v5399_v33, %v8861_v12  ;;  %v4343_v12 = vld [vmem:[%s9371_s5 + $0x10] sm:$0xff]  ;;  %v5373_v56 = vld [vmem:[%s9371_s5 + $0x198] sm:$0xff] }
 0x77e   : > { %v4761_v49 = vpop.permute.xlu0 %4760  ;;  %4718 = vperm.xlu1 %6532, %v8745_v40   ;;  %v4790_v3 = vadd.f32 %v4783_v1, %v4740_v36  ;;  %v5421_v1 = vld [vmem:[%s9371_s5 + $0x318] sm:$0xff] }
 0x77f   : > { %v4784_v46 = vmul.f32 %v5379_v14, %v4761_v49  ;;  %v5331_v49 = vld [vmem:[%s9371_s5 + $0x48] sm:$0xff]  ;;  %v5345_v36 = vld [vmem:[%s9371_s5 + $0xb8] sm:$0xff] }
 0x780   : > { %6566 = vset.pattern.permute.xlu0 %v6681_v45  ;;  %v8914_v8 = vpop.permute.xlu1 %5106  ;;  %v4840_v14 = vadd.f32 %v4833_v58, %v4790_v3 }
 0x781   : > { %v4791_v4 = vadd.f32 %v4784_v46, %v4741_v54  ;;  %4580 = vperm.xlu0 %6566, %v8849_v19   ;;  %v5400_v54 = vld [vmem:[%s9371_s5 + $0x270] sm:$0xff] }
 0x782   : > { %6533 = vset.pattern.permute.xlu1 %v6685_v59  ;;  %v4890_v25 = vadd.f32 %v4883_v52, %v4840_v14 }
 0x783   : > { %v4811_v43 = vpop.permute.xlu0 %4810  ;;  %4768 = vperm.xlu1 %6533, %v8745_v40  }
 0x784   : > { %v4834_v62 = vmul.f32 %v5386_v30, %v4811_v43  ;;  %v4940_v61 = vadd.f32 %v4933_v35, %v4890_v25 }
 0x785   : > { %6568 = vset.pattern.permute.xlu0 %v6682_v44  ;;  %v8932_v6 = vpop.permute.xlu1 %5060 }
 0x786   : > { %v4841_v17 = vadd.f32 %v4834_v62, %v4791_v4  ;;  %4630 = vperm.xlu0 %6568, %v8849_v19   ;;  %v5033_v4 = vmul.f32 %v5413_v15, %v8894_v10  ;;  %v4990_v57 = vadd.f32 %v4983_v11, %v4940_v61  ;;  %v5084_v48 = vmul.f32 %v5421_v1, %v8932_v6 }
 0x787   : > { %6534 = vset.pattern.permute.xlu1 %v6686_v41 }
 0x788   : > { %v4861_v21 = vpop.permute.xlu0 %4860  ;;  %4818 = vperm.xlu1 %6534, %v8745_v40   ;;  %v5040_v62 = vadd.f32 %v5033_v4, %v4990_v57 }
 0x789   : > { %v4884_v32 = vmul.f32 %v5393_v2, %v4861_v21  ;;  %v5427_v2 = vld [vmem:[%s9371_s5 + $0x348] sm:$0xff] }
 0x78a   : > { %6570 = vset.pattern.permute.xlu0 %v6683_v5  ;;  %v4361_v55 = vpop.permute.xlu1 %4360  ;;  %v5133_v33 = vmul.f32 %v5427_v2, %v8914_v8  ;;  %v5352_v8 = vld [vmem:[%s9371_s5 + $0xf0] sm:$0xff] }
 0x78b   : > { %v4891_v39 = vadd.f32 %v4884_v32, %v4841_v17  ;;  %4680 = vperm.xlu0 %6570, %v8849_v19   ;;  %v4385_v29 = vmul.f32 %v4361_v55, %v4343_v12  ;;  %v5414_v17 = vld [vmem:[%s9371_s5 + $0x2e0] sm:$0xff]  ;;  %v5090_v32 = vadd.f32 %v5083_v18, %v5040_v62 }
 0x78c   : > { %6535 = vset.pattern.permute.xlu1 %v6687_v34 }
 0x78d   : > { %v4911_v9 = vpop.permute.xlu0 %4910  ;;  %4868 = vperm.xlu1 %6535, %v8745_v40   ;;  %v5140_v6 = vadd.f32 %v5133_v33, %v5090_v32 }
 0x78e   : > { %v4934_v50 = vmul.f32 %v5400_v54, %v4911_v9 }
 0x78f   : > { %6572 = vset.pattern.permute.xlu0 %v6684_v63  ;;  %v4415_v46 = vpop.permute.xlu1 %4414 }
 0x790   : > { %v4941_v22 = vadd.f32 %v4934_v50, %v4891_v39  ;;  %4730 = vperm.xlu0 %6572, %v8849_v19   ;;  %v4435_v30 = vmul.f32 %v5331_v49, %v4415_v46  ;;  %v5428_v39 = vld [vmem:[%s9371_s5 + $0x350] sm:$0xff]  ;;  %v5148_v49 = vsel %vm5147_vm5, %v5140_v6, 0.0  ;;  %v5359_v46 = vld [vmem:[%s9371_s5 + $0x128] sm:$0xff]  ;;  %v5354_v6 = vld [vmem:[%s9371_s5 + $0x100] sm:$0xff] }
 0x791   : > { %6536 = vset.pattern.permute.xlu1 %v6688_v13 }
 0x792   : > { %v4961_v0 = vpop.permute.xlu0 %4960  ;;  %4918 = vperm.xlu1 %6536, %v8745_v40   ;;  %v4442_v51 = vadd.f32 %v4435_v30, %v4385_v29  ;;  %v5366_v30 = vld [vmem:[%s9371_s5 + $0x160] sm:$0xff] }
 0x793   : > { %v4984_v43 = vmul.f32 %v5407_v38, %v4961_v0  ;;  %v9038_v0 = vld [vmem:[#allocation4 + $0x28] sm:$0xff] }
 0x794   : > { %6574 = vset.pattern.permute.xlu0 %v6685_v59  ;;  %v4465_v10 = vpop.permute.xlu1 %4464 }
 0x795   : > { %v4991_v60 = vadd.f32 %v4984_v43, %v4941_v22  ;;  %4780 = vperm.xlu0 %6574, %v8849_v19   ;;  %v4485_v7 = vmul.f32 %v5338_v20, %v4465_v10 }
 0x796   : > { %6537 = vset.pattern.permute.xlu1 %v6689_v24 }
 0x797   : > { %v4492_v47 = vadd.f32 %v4485_v7, %v4442_v51  ;;  %v5011_v21 = vpop.permute.xlu0 %5010  ;;  %4968 = vperm.xlu1 %6537, %v8745_v40   ;;  %v5333_v51 = vld [vmem:[%s9371_s5 + $0x58] sm:$0xff]  ;;  %v5380_v7 = vld [vmem:[%s9371_s5 + $0x1d0] sm:$0xff] }
 0x798   : > { %v5034_v58 = vmul.f32 %v5414_v17, %v5011_v21 }
 0x799   : > { %6576 = vset.pattern.permute.xlu0 %v6686_v41  ;;  %v4515_v55 = vpop.permute.xlu1 %4514 }
 0x79a   : > { %v5041_v3 = vadd.f32 %v5034_v58, %v4991_v60  ;;  %4830 = vperm.xlu0 %6576, %v8849_v19   ;;  %v4535_v52 = vmul.f32 %v5345_v36, %v4515_v55  ;;  %v5387_v58 = vld [vmem:[%s9371_s5 + $0x208] sm:$0xff] }
 0x79b   : > { %6540 = vset.pattern.permute.xlu1 %v6691_v23 }
 0x79c   : > { %v4542_v54 = vadd.f32 %v4535_v52, %v4492_v47  ;;  %v5111_v26 = vpop.permute.xlu0 %5110  ;;  %v5091_v14 = vadd.f32 %v5084_v48, %v5041_v3  ;;  %5118 = vperm.xlu1 %6540, %v8745_v40   ;;  %v5347_v3 = vld [vmem:[%s9371_s5 + $0xc8] sm:$0xff] }
 0x79d   : > { %v5134_v35 = vmul.f32 %v5428_v39, %v5111_v26  ;;  %v5394_v39 = vld [vmem:[%s9371_s5 + $0x240] sm:$0xff] }
 0x79e   : > { %6578 = vset.pattern.permute.xlu0 %v6687_v34  ;;  %v4565_v9 = vpop.permute.xlu1 %4564 }
 0x79f   : > { %v5141_v15 = vadd.f32 %v5134_v35, %v5091_v14  ;;  %4880 = vperm.xlu0 %6578, %v8849_v19   ;;  %v4585_v50 = vmul.f32 %v5352_v8, %v4565_v9  ;;  %v5401_v9 = vld [vmem:[%s9371_s5 + $0x278] sm:$0xff] }
 0x7a0   : > { %6553 = vset.pattern.permute.xlu1 %v6689_v24 }
 0x7a1   : > { %v5149_v40 = vsel %vm5147_vm5, %v5141_v15, 0.0  ;;  %v4592_v25 = vadd.f32 %v4585_v50, %v4542_v54  ;;  %v9021_v11 = vpop.permute.xlu0 %5018  ;;  %4972 = vperm.xlu1 %6553, %v8757_v16  }
 0x7a2   : > { %v9027_v12 = vadd.f32 %v5149_v40, %v5148_v49 }
 0x7a3   : > { %6580 = vset.pattern.permute.xlu0 %v6688_v13  ;;  %v4615_v22 = vpop.permute.xlu1 %4614 }
 0x7a4   : > { %4930 = vperm.xlu0 %6580, %v8849_v19   ;;  %v4635_v38 = vmul.f32 %v5359_v46, %v4615_v22  ;;  %v5408_v22 = vld [vmem:[%s9371_s5 + $0x2b0] sm:$0xff] }
 0x7a5   : > { %6554 = vset.pattern.permute.xlu1 %v6690_v37 }
 0x7a6   : > { %v4642_v61 = vadd.f32 %v4635_v38, %v4592_v25  ;;  %v9032_v4 = vpop.permute.xlu0 %5068  ;;  %5022 = vperm.xlu1 %6554, %v8757_v16   ;;  %v5361_v25 = vld [vmem:[%s9371_s5 + $0x138] sm:$0xff] }
 0x7a8   : > { %6582 = vset.pattern.permute.xlu0 %v6690_v37  ;;  %v4665_v20 = vpop.permute.xlu1 %4664  ;;  %v4345_v37 = vld [vmem:[%s9371_s5 + $0x20] sm:$0xff] }
 0x7a9   : > { %5026 = vperm.xlu0 %6582, %v9038_v0   ;;  %v4685_v57 = vmul.f32 %v5366_v30, %v4665_v20 }
 0x7aa   : > { %6555 = vset.pattern.permute.xlu1 %v6676_v53 }
 0x7ab   : > { %v4692_v29 = vadd.f32 %v4685_v57, %v4642_v61  ;;  %v4371_v43 = vpop.permute.xlu0 %4370  ;;  %5072 = vperm.xlu1 %6555, %v8757_v16  }
 0x7ac   : > { %v4387_v17 = vmul.f32 %v4371_v43, %v4345_v37 }
 0x7ad   : > { %5030 = vperm.xlu0 %6582, %v8849_v19   ;;  %v4715_v10 = vpop.permute.xlu1 %4714 }
 0x7ae   : > { %v4735_v62 = vmul.f32 %v5373_v56, %v4715_v10  ;;  %v5422_v10 = vld [vmem:[%s9371_s5 + $0x320] sm:$0xff] }
 0x7af   : > { %6557 = vset.pattern.permute.xlu1 %v6677_v31  ;;  %v5340_v31 = vld [vmem:[%s9371_s5 + $0x90] sm:$0xff] }
 0x7b0   : > { %v4742_v60 = vadd.f32 %v4735_v62, %v4692_v29  ;;  %v4423_v16 = vpop.permute.xlu0 %4422  ;;  %4375 = vperm.xlu1 %6557, %v9038_v0  }
 0x7b1   : > { %v4437_v2 = vmul.f32 %v5333_v51, %v4423_v16  ;;  %6585 = vset.pattern.permute.xlu0 %v6691_v23  ;;  %v5429_v51 = vld [vmem:[%s9371_s5 + $0x358] sm:$0xff] }
 0x7b2   : > { %5130 = vperm.xlu0 %6585, %v8849_v19   ;;  %v4765_v18 = vpop.permute.xlu1 %4764 }
 0x7b3   : > { %v4444_v1 = vadd.f32 %v4437_v2, %v4387_v17  ;;  %v4785_v47 = vmul.f32 %v5380_v7, %v4765_v18 }
 0x7b4   : > { %6559 = vset.pattern.permute.xlu1 %v6678_v42 }
 0x7b5   : > { %v4792_v21 = vadd.f32 %v4785_v47, %v4742_v60  ;;  %v4473_v36 = vpop.permute.xlu0 %4472  ;;  %4426 = vperm.xlu1 %6559, %v9038_v0  }
 0x7b6   : > { %v4487_v32 = vmul.f32 %v5340_v31, %v4473_v36 }
 0x7b7   : > { %v4815_v33 = vpop.permute.xlu1 %4814 }
 0x7b8   : > { %v4494_v55 = vadd.f32 %v4487_v32, %v4444_v1  ;;  %v4835_v48 = vmul.f32 %v5387_v58, %v4815_v33  ;;  %v5346_v58 = vld [vmem:[%s9371_s5 + $0xc0] sm:$0xff] }
 0x7b9   : > { %6561 = vset.pattern.permute.xlu1 %v6679_v28 }
 0x7ba   : > { %v4842_v52 = vadd.f32 %v4835_v48, %v4792_v21  ;;  %v4523_v42 = vpop.permute.xlu0 %4522  ;;  %4476 = vperm.xlu1 %6561, %v9038_v0  }
 0x7bb   : > { %v4537_v54 = vmul.f32 %v5347_v3, %v4523_v42 }
 0x7bc   : > { %v4865_v26 = vpop.permute.xlu1 %4864 }
 0x7bd   : > { %v4544_v14 = vadd.f32 %v4537_v54, %v4494_v55  ;;  %v4885_v8 = vmul.f32 %v5394_v39, %v4865_v26  ;;  %v5353_v55 = vld [vmem:[%s9371_s5 + $0xf8] sm:$0xff]  ;;  %v5367_v54 = vld [vmem:[%s9371_s5 + $0x168] sm:$0xff] }
 0x7be   : > { %6563 = vset.pattern.permute.xlu1 %v6680_v27 }
 0x7bf   : > { %v4892_v35 = vadd.f32 %v4885_v8, %v4842_v52  ;;  %v4573_v28 = vpop.permute.xlu0 %4572  ;;  %4526 = vperm.xlu1 %6563, %v9038_v0   ;;  %v5360_v52 = vld [vmem:[%s9371_s5 + $0x130] sm:$0xff] }
 0x7c0   : > { %v4587_v15 = vmul.f32 %v5354_v6, %v4573_v28  ;;  %v5374_v6 = vld [vmem:[%s9371_s5 + $0x1a0] sm:$0xff] }
 0x7c1   : > { %v4915_v50 = vpop.permute.xlu1 %4914 }
 0x7c2   : > { %v4594_v49 = vadd.f32 %v4587_v15, %v4544_v14  ;;  %v4935_v40 = vmul.f32 %v5401_v9, %v4915_v50  ;;  %v5381_v15 = vld [vmem:[%s9371_s5 + $0x1d8] sm:$0xff] }
 0x7c3   : > { %6565 = vset.pattern.permute.xlu1 %v6681_v45  ;;  %v5415_v45 = vld [vmem:[%s9371_s5 + $0x2e8] sm:$0xff] }
 0x7c4   : > { %v4942_v46 = vadd.f32 %v4935_v40, %v4892_v35  ;;  %v4623_v27 = vpop.permute.xlu0 %4622  ;;  %4576 = vperm.xlu1 %6565, %v9038_v0  }
 0x7c5   : > { %v4637_v38 = vmul.f32 %v5361_v25, %v4623_v27  ;;  %v5388_v25 = vld [vmem:[%s9371_s5 + $0x210] sm:$0xff] }
 0x7c6   : > { %v4965_v61 = vpop.permute.xlu1 %4964 }
 0x7c7   : > { %v9093_v30 = vadd.f32 %v4637_v38, %v4594_v49  ;;  %v4985_v20 = vmul.f32 %v5408_v22, %v4965_v61 }
 0x7c8   : > { %6567 = vset.pattern.permute.xlu1 %v6682_v44 }
 0x7c9   : > { %v4992_v57 = vadd.f32 %v4985_v20, %v4942_v46  ;;  %4626 = vperm.xlu1 %6567, %v9038_v0   ;;  %v4673_v35 = vpop.permute.xlu0 %4672 }
 0x7cb   : > { %v5015_v29 = vpop.permute.xlu1 %5014 }
 0x7cc   : > { %v5035_v43 = vmul.f32 %v5415_v45, %v5015_v29  ;;  %v5402_v45 = vld [vmem:[%s9371_s5 + $0x280] sm:$0xff]  ;;  %v5368_v29 = vld [vmem:[%s9371_s5 + $0x170] sm:$0xff] }
 0x7cd   : > { %6569 = vset.pattern.permute.xlu1 %v6683_v5 }
 0x7ce   : > { %v5042_v56 = vadd.f32 %v5035_v43, %v4992_v57  ;;  %4676 = vperm.xlu1 %6569, %v9038_v0   ;;  %v4723_v50 = vpop.permute.xlu0 %4722 }
 0x7d0   : > { %v5065_v37 = vpop.permute.xlu1 %5064 }
 0x7d1   : > { %v5085_v44 = vmul.f32 %v5422_v10, %v5065_v37  ;;  %v4687_v37 = vmul.f32 %v5368_v29, %v4673_v35 }
 0x7d2   : > { %6571 = vset.pattern.permute.xlu1 %v6684_v63  ;;  %v4344_v63 = vld [vmem:[%s9371_s5 + $0x18] sm:$0xff] }
 0x7d3   : > { %v5092_v62 = vadd.f32 %v5085_v44, %v5042_v56  ;;  %4726 = vperm.xlu1 %6571, %v9038_v0   ;;  %v4773_v27 = vpop.permute.xlu0 %4772  ;;  %v5375_v56 = vld [vmem:[%s9371_s5 + $0x1a8] sm:$0xff]  ;;  %v5382_v44 = vld [vmem:[%s9371_s5 + $0x1e0] sm:$0xff] }
 0x7d5   : > { %v5115_v60 = vpop.permute.xlu1 %5114 }
 0x7d6   : > { %v5135_v5 = vmul.f32 %v5429_v51, %v5115_v60  ;;  %v5409_v60 = vld [vmem:[%s9371_s5 + $0x2b8] sm:$0xff] }
 0x7d7   : > { %6573 = vset.pattern.permute.xlu1 %v6685_v59  ;;  %v5332_v59 = vld [vmem:[%s9371_s5 + $0x50] sm:$0xff] }
 0x7d8   : > { %v5142_v16 = vadd.f32 %v5135_v5, %v5092_v62  ;;  %4776 = vperm.xlu1 %6573, %v9038_v0   ;;  %v4823_v20 = vpop.permute.xlu0 %4822  ;;  %v4737_v5 = vmul.f32 %v5375_v56, %v4723_v50 }
 0x7da   : > { %v5151_v7 = vsel %vm5147_vm5, %v5142_v16, 0.0  ;;  %v4366_v17 = vpop.permute.xlu1 %4365  ;;  %v5416_v16 = vld [vmem:[%s9371_s5 + $0x2f0] sm:$0xff] }
 0x7db   : > { %v9114_v2 = vadd.f32 %v5151_v7, %v9027_v12  ;;  %v4386_v1 = vmul.f32 %v4366_v17, %v4344_v63  ;;  %v5389_v7 = vld [vmem:[%s9371_s5 + $0x218] sm:$0xff]  ;;  %v4694_v63 = vadd.f32 %v4687_v37, %v9093_v30  ;;  %v5403_v30 = vld [vmem:[%s9371_s5 + $0x288] sm:$0xff] }
 0x7dc   : > { %6575 = vset.pattern.permute.xlu1 %v6686_v41  ;;  %v5339_v41 = vld [vmem:[%s9371_s5 + $0x88] sm:$0xff] }
 0x7dd   : > { %4826 = vperm.xlu1 %6575, %v9038_v0   ;;  %v4873_v62 = vpop.permute.xlu0 %4872 }
 0x7df   : > { %v4419_v18 = vpop.permute.xlu1 %4418 }
 0x7e0   : > { %v4436_v47 = vmul.f32 %v5332_v59, %v4419_v18  ;;  %v4787_v59 = vmul.f32 %v5382_v44, %v4773_v27 }
 0x7e1   : > { %6577 = vset.pattern.permute.xlu1 %v6687_v34 }
 0x7e2   : > { %v4443_v31 = vadd.f32 %v4436_v47, %v4386_v1  ;;  %4876 = vperm.xlu1 %6577, %v9038_v0   ;;  %v5423_v1 = vld [vmem:[%s9371_s5 + $0x328] sm:$0xff]  ;;  %v5396_v47 = vld [vmem:[%s9371_s5 + $0x250] sm:$0xff] }
 0x7e4   : > { %v4469_v12 = vpop.permute.xlu1 %4468 }
 0x7e5   : > { %v4486_v21 = vmul.f32 %v5339_v41, %v4469_v12  ;;  %v4744_v41 = vadd.f32 %v4737_v5, %v4694_v63  ;;  %v4837_v12 = vmul.f32 %v5389_v7, %v4823_v20  ;;  %v5335_v7 = vld [vmem:[%s9371_s5 + $0x68] sm:$0x1]  ;;  %v5342_v63 = vld [vmem:[%s9371_s5 + $0xa0] sm:$0x1] }
 0x7e6   : > { %6579 = vset.pattern.permute.xlu1 %v6688_v13 }
 0x7e7   : > { %v4493_v36 = vadd.f32 %v4486_v21, %v4443_v31  ;;  %4926 = vperm.xlu1 %6579, %v9038_v0   ;;  %v5036_v31 = vmul.f32 %v5416_v16, %v9021_v11 }
 0x7e9   : > { %v4519_v32 = vpop.permute.xlu1 %4518 }
 0x7ea   : > { %v4536_v34 = vmul.f32 %v5346_v58, %v4519_v32  ;;  %v4923_v58 = vpop.permute.xlu0 %4922  ;;  %v5086_v32 = vmul.f32 %v5423_v1, %v9032_v4 }
 0x7eb   : > { %6581 = vset.pattern.permute.xlu1 %v6689_v24 }
 0x7ec   : > { %v4543_v33 = vadd.f32 %v4536_v34, %v4493_v36  ;;  %4976 = vperm.xlu1 %6581, %v9038_v0   ;;  %v5430_v36 = vld [vmem:[%s9371_s5 + $0x360] sm:$0xff]  ;;  %v4794_v34 = vadd.f32 %v4787_v59, %v4744_v41  ;;  %v4346_v41 = vld [vmem:[%s9371_s5 + $0x28] sm:$0xff] }
 0x7ed   : > { %v5334_v59 = vld [vmem:[%s9371_s5 + $0x60] sm:$0xff] }
 0x7ee   : > { %v4569_v48 = vpop.permute.xlu1 %4568  ;;  %v4844_v11 = vadd.f32 %v4837_v12, %v4794_v34  ;;  %v5341_v12 = vld [vmem:[%s9371_s5 + $0x98] sm:$0xff] }
 0x7ef   : > { %v4586_v13 = vmul.f32 %v5353_v55, %v4569_v48 }
 0x7f0   : > { %4980 = vperm.xlu1 %6581, %v8849_v19  }
 0x7f1   : > { %v4593_v3 = vadd.f32 %v4586_v13, %v4543_v33  ;;  %v4887_v33 = vmul.f32 %v5396_v47, %v4873_v62  ;;  %v5349_v47 = vld [vmem:[%s9371_s5 + $0xd8] sm:$0x1] }
 0x7f3   : > { %v4619_v42 = vpop.permute.xlu1 %4618 }
 0x7f4   : > { %v4636_v39 = vmul.f32 %v5360_v52, %v4619_v42  ;;  %6583 = vset.pattern.permute.xlu1 %v6676_v53  ;;  %v5410_v42 = vld [vmem:[%s9371_s5 + $0x2c0] sm:$0xff] }
 0x7f5   : > { %5076 = vperm.xlu1 %6583, %v9038_v0  }
 0x7f6   : > { %v4643_v24 = vadd.f32 %v4636_v39, %v4593_v3  ;;  %v4937_v3 = vmul.f32 %v5403_v30, %v4923_v58  ;;  %v4894_v39 = vadd.f32 %v4887_v33, %v4844_v11  ;;  %v5356_v58 = vld [vmem:[%s9371_s5 + $0x110] sm:$0x1]  ;;  %v5355_v11 = vld [vmem:[%s9371_s5 + $0x108] sm:$0xff] }
 0x7f8   : > { %v4669_v26 = vpop.permute.xlu1 %4668 }
 0x7f9   : > { %v4686_v14 = vmul.f32 %v5367_v54, %v4669_v26  ;;  %5080 = vperm.xlu1 %6583, %v8849_v19   ;;  %v4944_v26 = vadd.f32 %v4937_v3, %v4894_v39 }
 0x7fb   : > { %v4693_v8 = vadd.f32 %v4686_v14, %v4643_v24  ;;  %v5123_v14 = vpop.permute.xlu0 %5122 }
 0x7fd   : > { %6584 = vset.pattern.permute.xlu1 %v6691_v23  ;;  %v4719_v53 = vpop.permute.xlu1 %4718 }
 0x7fe   : > { %v4736_v28 = vmul.f32 %v5374_v6, %v4719_v53  ;;  %5126 = vperm.xlu1 %6584, %v9038_v0   ;;  %v5395_v0 = vld [vmem:[%s9371_s5 + $0x248] sm:$0xff]  ;;  %v5417_v53 = vld [vmem:[%s9371_s5 + $0x2f8] sm:$0xff] }
 0x800   : > { %v4743_v9 = vadd.f32 %v4736_v28, %v4693_v8 }
 0x802   : > { %v4769_v49 = vpop.permute.xlu1 %4768 }
 0x803   : > { %v4786_v19 = vmul.f32 %v5381_v15, %v4769_v49  ;;  %v4381_v15 = vpop.permute.xlu0 %4380  ;;  %v5424_v49 = vld [vmem:[%s9371_s5 + $0x330] sm:$0xff] }
 0x805   : > { %v4793_v40 = vadd.f32 %v4786_v19, %v4743_v9  ;;  %v5431_v19 = vld [vmem:[%s9371_s5 + $0x368] sm:$0xff] }
 0x807   : > { %v4819_v46 = vpop.permute.xlu1 %4818 }
 0x808   : > { %v4836_v23 = vmul.f32 %v5388_v25, %v4819_v46  ;;  %v4431_v46 = vpop.permute.xlu0 %4430 }
 0x80a   : > { %v4843_v22 = vadd.f32 %v4836_v23, %v4793_v40 }
 0x80c   : > { %v4869_v38 = vpop.permute.xlu1 %4868 }
 0x80d   : > { %v4886_v61 = vmul.f32 %v5395_v0, %v4869_v38 }
 0x80f   : > { %v4893_v57 = vadd.f32 %v4886_v61, %v4843_v22  ;;  %v4481_v61 = vpop.permute.xlu0 %4480 }
 0x811   : > { %v4919_v43 = vpop.permute.xlu1 %4918 }
 0x812   : > { %v4936_v10 = vmul.f32 %v5402_v45, %v4919_v43 }
 0x814   : > { %v4943_v51 = vadd.f32 %v4936_v10, %v4893_v57  ;;  %v4531_v57 = vpop.permute.xlu0 %4530 }
 0x815   : > { %v4539_v33 = vmul.f32 %v5349_v47, %v4531_v57  ;;  %v5404_v47 = vld [vmem:[%s9371_s5 + $0x290] sm:$0xff] }
 0x816   : > { %v4969_v17 = vpop.permute.xlu1 %4968 }
 0x817   : > { %v4986_v18 = vmul.f32 %v5409_v60, %v4969_v17  ;;  %v4347_v17 = vld [vmem:[%s9371_s5 + $0x30] sm:$0x1] }
 0x818   : > { %v4581_v43 = vpop.permute.xlu0 %4580 }
 0x819   : > { %v4993_v21 = vadd.f32 %v4986_v18, %v4943_v51  ;;  %v4439_v18 = vmul.f32 %v5335_v7, %v4431_v46  ;;  %v5405_v7 = vld [vmem:[%s9371_s5 + $0x298] sm:$0x1] }
 0x81b   : > { %v5043_v55 = vadd.f32 %v5036_v31, %v4993_v21  ;;  %v5119_v48 = vpop.permute.xlu1 %5118  ;;  %v4389_v21 = vmul.f32 %v4381_v15, %v4347_v17 }
 0x81c   : > { %v5136_v13 = vmul.f32 %v5430_v36, %v5119_v48  ;;  %v4631_v10 = vpop.permute.xlu0 %4630  ;;  %v4489_v36 = vmul.f32 %v5342_v63, %v4481_v61  ;;  %v5383_v61 = vld [vmem:[%s9371_s5 + $0x1e8] sm:$0xff] }
 0x81d   : > { %v5093_v52 = vadd.f32 %v5086_v32, %v5043_v55  ;;  %v5348_v32 = vld [vmem:[%s9371_s5 + $0xd0] sm:$0xff]  ;;  %v4446_v34 = vadd.f32 %v4439_v18, %v4389_v21 }
 0x81f   : > { %v5143_v24 = vadd.f32 %v5136_v13, %v5093_v52  ;;  %v5363_v13 = vld [vmem:[%s9371_s5 + $0x148] sm:$0x1]  ;;  %v4496_v52 = vadd.f32 %v4489_v36, %v4446_v34 }
 0x820   : > { %v4973_v54 = vpop.permute.xlu1 %4972  ;;  %v4681_v44 = vpop.permute.xlu0 %4680 }
 0x821   : > { %v5153_v8 = vsel %vm5147_vm5, %v5143_v24, 0.0  ;;  %v4987_v4 = vmul.f32 %v5410_v42, %v4973_v54  ;;  %v4589_v42 = vmul.f32 %v5356_v58, %v4581_v43  ;;  %v5370_v54 = vld [vmem:[%s9371_s5 + $0x180] sm:$0x1] }
 0x822   : > { %v5154_v6 = vadd.f32 %v5153_v8, %v9114_v2  ;;  %v5137_v2 = vmul.f32 %v5431_v19, %v5123_v14  ;;  %v5362_v14 = vld [vmem:[%s9371_s5 + $0x140] sm:$0xff]  ;;  %v4546_v8 = vadd.f32 %v4539_v33, %v4496_v52  ;;  %v4689_v15 = vmul.f32 %v5370_v54, %v4681_v44  ;;  %v5425_v54 = vld [vmem:[%s9371_s5 + $0x338] sm:$0xff] }
 0x823   : > { %v4994_v35 = vadd.f32 %v4987_v4, %v4944_v26  ;;  %v4639_v4 = vmul.f32 %v5363_v13, %v4631_v10  ;;  %v5398_v43 = vld [vmem:[%s9371_s5 + $0x260] sm:$0x1] }
 0x824   : > { %v4731_v51 = vpop.permute.xlu0 %4730 }
 0x825   : > { %v5023_v28 = vpop.permute.xlu1 %5022 }
 0x826   : > { %v5037_v9 = vmul.f32 %v5417_v53, %v5023_v28  ;;  %v5377_v53 = vld [vmem:[%s9371_s5 + $0x1b8] sm:$0x1] }
 0x827   : > { %v5369_v28 = vld [vmem:[%s9371_s5 + $0x178] sm:$0xff]  ;;  %v4739_v46 = vmul.f32 %v5377_v53, %v4731_v51 }
 0x828   : > { %v5044_v50 = vadd.f32 %v5037_v9, %v4994_v35  ;;  %v4781_v5 = vpop.permute.xlu0 %4780  ;;  %v4596_v9 = vadd.f32 %v4589_v42, %v4546_v8 }
 0x82a   : > { %v5073_v40 = vpop.permute.xlu1 %5072 }
 0x82b   : > { %v5087_v25 = vmul.f32 %v5424_v49, %v5073_v40  ;;  %v5384_v40 = vld [vmem:[%s9371_s5 + $0x1f0] sm:$0x1] }
 0x82c   : > { %v4831_v31 = vpop.permute.xlu0 %4830  ;;  %v4789_v57 = vmul.f32 %v5384_v40, %v4781_v5 }
 0x82d   : > { %v5094_v27 = vadd.f32 %v5087_v25, %v5044_v50  ;;  %v5376_v25 = vld [vmem:[%s9371_s5 + $0x1b0] sm:$0xff] }
 0x82f   : > { %v5144_v23 = vadd.f32 %v5137_v2, %v5094_v27  ;;  %v4376_v22 = vpop.permute.xlu1 %4375  ;;  %v4646_v2 = vadd.f32 %v4639_v4, %v4596_v9 }
 0x830   : > { %v4388_v55 = vmul.f32 %v4376_v22, %v4346_v41  ;;  %v4881_v26 = vpop.permute.xlu0 %4880  ;;  %v5391_v22 = vld [vmem:[%s9371_s5 + $0x228] sm:$0x1] }
 0x831   : > { %v5155_v0 = vsel %vm5147_vm5, %v5144_v23, 0.0  ;;  %v4839_v44 = vmul.f32 %v5391_v22, %v4831_v31  ;;  %v4889_v17 = vmul.f32 %v5398_v43, %v4881_v26 }
 0x832   : > { %v9214_v38 = vadd.f32 %v5155_v0, %v5154_v6 }
 0x834   : > { %v4427_v20 = vpop.permute.xlu1 %4426  ;;  %v4931_v0 = vpop.permute.xlu0 %4930 }
 0x835   : > { %v4438_v30 = vmul.f32 %v5334_v59, %v4427_v20  ;;  %v4696_v20 = vadd.f32 %v4689_v15, %v4646_v2  ;;  %v5432_v15 = vld [vmem:[%s9371_s5 + $0x370] sm:$0xff] }
 0x837   : > { %v4445_v39 = vadd.f32 %v4438_v30, %v4388_v55  ;;  %v5411_v30 = vld [vmem:[%s9371_s5 + $0x2c8] sm:$0xff] }
 0x838   : > { %v5027_v18 = vpop.permute.xlu0 %5026 }
 0x839   : > { %v4477_v45 = vpop.permute.xlu1 %4476 }
 0x83a   : > { %v4488_v48 = vmul.f32 %v5341_v12, %v4477_v45  ;;  %v4939_v12 = vmul.f32 %v5405_v7, %v4931_v0 }
 0x83c   : > { %v4495_v6 = vadd.f32 %v4488_v48, %v4445_v39  ;;  %v5031_v52 = vpop.permute.xlu0 %5030 }
 0x83e   : > { %v4527_v29 = vpop.permute.xlu1 %4526 }
 0x83f   : > { %v4538_v24 = vmul.f32 %v5348_v32, %v4527_v29 }
 0x840   : > { %v5131_v9 = vpop.permute.xlu0 %5130 }
 0x841   : > { %v4545_v50 = vadd.f32 %v4538_v24, %v4495_v6  ;;  %v5418_v24 = vld [vmem:[%s9371_s5 + $0x300] sm:$0xff] }
 0x842   : > { %v5038_v6 = vmul.f32 %v5418_v24, %v5027_v18 }
 0x843   : > { %v4577_v56 = vpop.permute.xlu1 %4576 }
 0x844   : > { %v4588_v35 = vmul.f32 %v5355_v11, %v4577_v56  ;;  %v5390_v56 = vld [vmem:[%s9371_s5 + $0x220] sm:$0xff]  ;;  %v5419_v11 = vld [vmem:[%s9371_s5 + $0x308] sm:$0x1] }
 0x845   : > { %v5039_v26 = vmul.f32 %v5419_v11, %v5031_v52 }
 0x846   : > { %v4595_v27 = vadd.f32 %v4588_v35, %v4545_v50 }
 0x848   : > { %v4627_v37 = vpop.permute.xlu1 %4626 }
 0x849   : > { %v4638_v49 = vmul.f32 %v5362_v14, %v4627_v37  ;;  %v4746_v37 = vadd.f32 %v4739_v46, %v4696_v20 }
 0x84b   : > { %v4645_v45 = vadd.f32 %v4638_v49, %v4595_v27  ;;  %v4796_v5 = vadd.f32 %v4789_v57, %v4746_v37 }
 0x84d   : > { %v4677_v62 = vpop.permute.xlu1 %4676  ;;  %v4846_v41 = vadd.f32 %v4839_v44, %v4796_v5 }
 0x84e   : > { %v4688_v23 = vmul.f32 %v5369_v28, %v4677_v62  ;;  %v5433_v28 = vld [vmem:[%s9371_s5 + $0x378] sm:$0x1] }
 0x84f   : > { %v4896_v58 = vadd.f32 %v4889_v17, %v4846_v41  ;;  %v5139_v40 = vmul.f32 %v5433_v28, %v5131_v9 }
 0x850   : > { %v4695_v62 = vadd.f32 %v4688_v23, %v4645_v45 }
 0x851   : > { %v4946_v33 = vadd.f32 %v4939_v12, %v4896_v58 }
 0x852   : > { %v4727_v60 = vpop.permute.xlu1 %4726 }
 0x853   : > { %v4738_v29 = vmul.f32 %v5376_v25, %v4727_v60  ;;  %v5397_v60 = vld [vmem:[%s9371_s5 + $0x258] sm:$0xff] }
 0x855   : > { %v4745_v63 = vadd.f32 %v4738_v29, %v4695_v62 }
 0x857   : > { %v4777_v16 = vpop.permute.xlu1 %4776 }
 0x858   : > { %v4788_v51 = vmul.f32 %v5383_v61, %v4777_v16  ;;  %v5412_v16 = vld [vmem:[%s9371_s5 + $0x2d0] sm:$0x1] }
 0x85a   : > { %v4795_v21 = vadd.f32 %v4788_v51, %v4745_v63 }
 0x85c   : > { %v4827_v1 = vpop.permute.xlu1 %4826 }
 0x85d   : > { %v4838_v59 = vmul.f32 %v5390_v56, %v4827_v1  ;;  %v5168_v56 = vld [vmem:[%s9372_s6] sm:$0x1] }
 0x85f   : > { %v4845_v1 = vadd.f32 %v4838_v59, %v4795_v21 }
 0x861   : > { %v4877_v3 = vpop.permute.xlu1 %4876 }
 0x862   : > { %v4888_v36 = vmul.f32 %v5397_v60, %v4877_v3  ;;  %v5426_v3 = vld [vmem:[%s9371_s5 + $0x340] sm:$0x1] }
 0x864   : > { %v4895_v55 = vadd.f32 %v4888_v36, %v4845_v1 }
 0x866   : > { %v4927_v19 = vpop.permute.xlu1 %4926 }
 0x867   : > { %v4938_v32 = vmul.f32 %v5404_v47, %v4927_v19 }
 0x869   : > { %v4945_v42 = vadd.f32 %v4938_v32, %v4895_v55 }
 0x86b   : > { %v4977_v10 = vpop.permute.xlu1 %4976 }
 0x86c   : > { %v4988_v48 = vmul.f32 %v5411_v30, %v4977_v10 }
 0x86e   : > { %v4995_v14 = vadd.f32 %v4988_v48, %v4945_v42 }
 0x86f   : > { %v4981_v31 = vpop.permute.xlu1 %4980 }
 0x870   : > { %v4989_v34 = vmul.f32 %v5412_v16, %v4981_v31  ;;  %v5045_v50 = vadd.f32 %v5038_v6, %v4995_v14 }
 0x872   : > { %v4996_v39 = vadd.f32 %v4989_v34, %v4946_v33 }
 0x874   : > { %v5077_v13 = vpop.permute.xlu1 %5076  ;;  %v5046_v53 = vadd.f32 %v5039_v26, %v4996_v39 }
 0x875   : > { %v5088_v35 = vmul.f32 %v5425_v54, %v5077_v13 }
 0x877   : > { %v5095_v25 = vadd.f32 %v5088_v35, %v5045_v50 }
 0x878   : > { %v5081_v8 = vpop.permute.xlu1 %5080 }
 0x879   : > { %v5089_v4 = vmul.f32 %v5426_v3, %v5081_v8 }
 0x87b   : > { %v5096_v49 = vadd.f32 %v5089_v4, %v5046_v53 }
 0x87d   : > { %v5127_v19 = vpop.permute.xlu1 %5126  ;;  %v5146_v46 = vadd.f32 %v5139_v40, %v5096_v49 }
 0x87e   : > { %v5138_v2 = vmul.f32 %v5432_v15, %v5127_v19 }
 0x87f   : > { %v5160_v0 = vsel %vm5159_vm8, %v5146_v46, 0.0 }
 0x880   : > { %v5145_v27 = vadd.f32 %v5138_v2, %v5095_v25 }
 0x882   : > { %v5157_v23 = vsel %vm5147_vm5, %v5145_v27, 0.0 }
 0x883   : > { %v5158_v22 = vadd.f32 %v5157_v23, %v9214_v38 }
 0x885   : > { %v5161_v61 = vadd.f32 %v5160_v0, %v5158_v22 }
 0x887   : > { %v5162_v20 = vrot.slane %v5161_v61, 4 }
 0x889   : > { %v5163_v57 = vadd.f32 %v5162_v20, %v5161_v61 }
 0x88b   : > { %v5164_v45 = vrot.slane %v5163_v57, 2 }
 0x88d   : > { %v5165_v29 = vadd.f32 %v5164_v45, %v5163_v57 }
 0x88f   : > { %v5166_v43 = vrot.slane %v5165_v29, 1 }
 0x891   : > { %v5167_v10 = vadd.f32 %v5166_v43, %v5165_v29 }
 0x893   : > { %v5169_v37 = vadd.f32 %v5168_v56, %v5167_v10 }
 0x895   : > { %5170 = vst.msk [vmem:[%s270_s18] sm:$0x1] %vm5159_vm8, %v5169_v37 }
 0x896   : > { %6603 = shalt.err (!%p6600_p3)
}
 0x897   : > { %s6604_s14 = scalar_lea.hbm %s9323_s23, 16  ;;  %s6608_s29 = scalar_lea.hbm %s9373_s7, 32 }
 0x898   : > { %p6605_p4 = scmp.ne.s32.totalorder %s9323_s23, %s6604_s14  ;;  %p6609_p9 = scmp.lt.u32.totalorder %s9323_s23, %s9373_s7 }
 0x899   : > { %p6610_p10 = scmp.lt.u32.totalorder %s6608_s29, %s6604_s14  ;;  %p6612_p12 = scmp.lt.u32.totalorder %s6604_s14, %s9323_s23 }
 0x89a   : > { %p6606_p7 = pnand %p6605_p4, %p6771_p5 }
 0x89b   : > { %p6611_p11 = por %p6610_p10, %p6609_p9 }
 0x89c   : > { %p6607_p8 = pneg %p6606_p7 }
 0x89d   : > { %p6613_p13 = por %p6612_p12, %p6611_p11 }
 0x89f   : > { %p6614_p0 = pnand %p6613_p13, %p6607_p8 }
 0x8a1   : > { %6617 = shalt.err (!%p6614_p0)
}
 0x8a2   : > { %6180 = dma.vmem_to_hbm [thread:$0]  (%p6771_p5), %s9325_s19, 16, %s9323_s23, %s5172_s15  }
 0x8a3 PF: > { %p6186_p1 = scmp.ge.s32.totalorder %s6652_s27, 2  ;;  %s5196_s21 = sand.u32 1, %s6640_s24  }
 0x8a4   : > { %s5197_s22 = scalar_lea.sflag [#allocation6], %s5196_s21 }
 0x8a5   : > { %p6183_p2 = pnand %p6186_p1, %p6775_p6 }
 0x8a7   : > { %6635 = dma.done.wait (!%p6183_p2), %s5197_s22, 16  }
 0x8a8   : > { %6637 = vsyncadd (!%p6183_p2), %s5197_s22, 4294967280  ;;  %p17_p3 = scmp.ge.s32.totalorder %s6758_s30, 4   ;;  %s9403_s24 = smov %s6644_s25 }
 0x8a9   : > { %s9404_s25 = smov %s6648_s26  ;;  %s9405_s26 = smov %s6769_s10 }
 0x8aa   : > { %s9406_s27 = smov %s6758_s30  ;;  %19 = sbr.rel (!%p17_p3) target bundleno = 3 (0x3), region = 157 }
 0x8b1   :  { %5201 = vsyncpa [#allocation6], 1 }
 0x8b2   :  { %5203 = vsyncpa [#allocation6 + $0x1], 1 }

</bundles_post_ra>
